<compile_context>
chip_gen: v6e
topology: v6e:2x2x1
jax: 0.10.0
libtpu: 0.0.40
codegen_flags: <defaults>
</compile_context>

<pallas_src>
import jax
import jax.numpy as jnp
from jax.experimental import pallas as pl
from jax.experimental.pallas import tpu as pltpu


COMPUTE_DTYPE = jnp.bfloat16   # MXU-native; f32 accumulation inside the kernel.
IN_EPS = 1e-5                  # nn.InstanceNorm3d default eps.


# -------------------- fused Pallas kernels --------------------

def _conv_in_relu_kernel(p_ref, w_ref, o_ref):
    """Fused Conv3d(3, pad=1, bias=False) + InstanceNorm3d + ReLU, one sample.

    p_ref: (1, K, S) bf16 transposed im2col patches (K = 27*Cin, S = D*H*W)
    w_ref: (Cout, K)  bf16 reshaped conv weight
    o_ref: (1, Cout, S)  -- lane axis is S (lane-dense stores)
    """
    y = jnp.dot(w_ref[...], p_ref[0], preferred_element_type=jnp.float32)
    mean = jnp.mean(y, axis=-1, keepdims=True)
    var = jnp.mean(jnp.square(y - mean), axis=-1, keepdims=True)
    y = (y - mean) * jax.lax.rsqrt(var + IN_EPS)
    o_ref[0] = jnp.maximum(y, 0.0).astype(o_ref.dtype)


def _conv_in_relu_final_kernel(p_ref, w_ref, wf_ref, o_ref):
    """Last decoder block fused with the final 1x1x1 conv (no bias).

    p_ref:  (1, K, S) bf16 patches
    w_ref:  (C0, K)   bf16 block conv weight
    wf_ref: (num_class, C0) f32 final 1x1x1 conv weight
    o_ref:  (1, num_class, S) f32 logits
    """
    y = jnp.dot(w_ref[...], p_ref[0], preferred_element_type=jnp.float32)
    mean = jnp.mean(y, axis=-1, keepdims=True)
    var = jnp.mean(jnp.square(y - mean), axis=-1, keepdims=True)
    y = jnp.maximum((y - mean) * jax.lax.rsqrt(var + IN_EPS), 0.0)       # [C0, S]
    logits = jnp.dot(wf_ref[...], y, preferred_element_type=jnp.float32)  # [nc, S]
    o_ref[0] = logits.astype(o_ref.dtype)


# -------------------- XLA-side glue --------------------

def _im2col_T(x):
    """x: [N, Cin, D, H, W] -> transposed patches [N, 27*Cin, D*H*W]."""
    N, Cin, D, H, W = x.shape
    xp = jnp.pad(x, ((0, 0), (0, 0), (1, 1), (1, 1), (1, 1)))
    cols = [xp[:, :, kd:kd + D, kh:kh + H, kw:kw + W]
            for kd in range(3) for kh in range(3) for kw in range(3)]
    return jnp.concatenate(cols, axis=1).reshape(N, 27 * Cin, D * H * W)


def _w_matrix(w):
    """Torch Conv3d weight [Cout, Cin, 3, 3, 3] -> [Cout, 27*Cin] (tap-major, c-minor)."""
    cout, cin = w.shape[0], w.shape[1]
    return jnp.transpose(w, (0, 2, 3, 4, 1)).reshape(cout, 27 * cin)


def conv_in_relu_block(x, w):
    """One encoder/decoder block. x: [N, Cin, D, H, W] -> [N, Cout, D, H, W] (bf16)."""
    N, Cin, D, H, W = x.shape
    Cout = w.shape[0]
    S = D * H * W
    K = 27 * Cin
    patches = _im2col_T(x).astype(COMPUTE_DTYPE)
    wmat = _w_matrix(w).astype(COMPUTE_DTYPE)
    out = pl.pallas_call(
        _conv_in_relu_kernel,
        out_shape=jax.ShapeDtypeStruct((N, Cout, S), COMPUTE_DTYPE),
        grid_spec=pltpu.PrefetchScalarGridSpec(
            num_scalar_prefetch=0,
            grid=(N,),
            in_specs=[pl.BlockSpec((1, K, S), lambda n: (n, 0, 0)),
                      pl.BlockSpec((Cout, K), lambda n: (0, 0))],
            out_specs=pl.BlockSpec((1, Cout, S), lambda n: (n, 0, 0))),
        compiler_params=pltpu.CompilerParams(
            dimension_semantics=("parallel",)),
    )(patches, wmat)
    return out.reshape(N, Cout, D, H, W)


def conv_in_relu_final_block(x, w, w_final):
    """Last block fused with final 1x1x1 conv. Returns f32 logits [N, nc, D, H, W]."""
    N, Cin, D, H, W = x.shape
    Cout = w.shape[0]
    num_class = w_final.shape[0]
    S = D * H * W
    K = 27 * Cin
    patches = _im2col_T(x).astype(COMPUTE_DTYPE)
    wmat = _w_matrix(w).astype(COMPUTE_DTYPE)
    wf = w_final.reshape(num_class, Cout).astype(jnp.float32)
    out = pl.pallas_call(
        _conv_in_relu_final_kernel,
        out_shape=jax.ShapeDtypeStruct((N, num_class, S), jnp.float32),
        grid_spec=pltpu.PrefetchScalarGridSpec(
            num_scalar_prefetch=0,
            grid=(N,),
            in_specs=[pl.BlockSpec((1, K, S), lambda n: (n, 0, 0)),
                      pl.BlockSpec((Cout, K), lambda n: (0, 0)),
                      pl.BlockSpec((num_class, Cout), lambda n: (0, 0))],
            out_specs=pl.BlockSpec((1, num_class, S), lambda n: (n, 0, 0))),
        compiler_params=pltpu.CompilerParams(
            dimension_semantics=("parallel",)),
    )(patches, wmat, wf)
    return out.reshape(N, num_class, D, H, W)


def maxpool3d_2(x):
    """nn.MaxPool3d(kernel_size=2) on [N, C, D, H, W]."""
    N, C, D, H, W = x.shape
    return x.reshape(N, C, D // 2, 2, H // 2, 2, W // 2, 2).max(axis=(3, 5, 7))


def _interp_matrix(in_size, out_size):
    """Static align_corners=True linear-interp matrix [out_size, in_size]."""
    if in_size == 1:
        return jnp.ones((out_size, 1), jnp.float32)
    pos = jnp.arange(out_size, dtype=jnp.float32) * ((in_size - 1) / (out_size - 1))
    lo = jnp.floor(pos).astype(jnp.int32)
    hi = jnp.minimum(lo + 1, in_size - 1)
    frac = pos - lo.astype(jnp.float32)
    return (jax.nn.one_hot(lo, in_size, dtype=jnp.float32) * (1.0 - frac)[:, None]
            + jax.nn.one_hot(hi, in_size, dtype=jnp.float32) * frac[:, None])


def upsample_trilinear_2x(x):
    """nn.Upsample(scale_factor=2, mode='trilinear', align_corners=True); static stencils."""
    N, C, D, H, W = x.shape
    md = _interp_matrix(D, 2 * D)
    mh = _interp_matrix(H, 2 * H)
    mw = _interp_matrix(W, 2 * W)
    xf = x.astype(jnp.float32)
    xf = jnp.einsum('od,ncdhw->ncohw', md, xf)
    xf = jnp.einsum('ph,ncdhw->ncdpw', mh, xf)
    xf = jnp.einsum('qw,ncdhw->ncdhq', mw, xf)
    return xf.astype(x.dtype)


# -------------------- parameters --------------------

NUM_CLASS = 2
NUM_CHANNEL = [4, 8, 8, 16, 16]   # cfg.num_channel
# cfg.num_blocks = [1,1,1,1], cfg.decoder_num_block = 1 -> single block per stage.


def _kaiming_conv(key, cout, cin, k):
    fan_in = cin * k ** 3
    std = (2.0 / fan_in) ** 0.5
    return jax.random.normal(key, (cout, cin, k, k, k), jnp.float32) * std


def init_params(key):
    nc = NUM_CHANNEL
    names_shapes = [
        ("conv0_0", nc[0], 1, 3),
        ("conv1_0", nc[1], nc[0], 3),
        ("conv2_0", nc[2], nc[1], 3),
        ("conv3_0", nc[3], nc[2], 3),
        ("conv4_0", nc[4], nc[3], 3),
        ("conv3_1", nc[3], nc[3] + nc[4], 3),
        ("conv2_2", nc[2], nc[2] + nc[3], 3),
        ("conv1_3", nc[1], nc[1] + nc[2], 3),
        ("conv0_4", nc[0], nc[0] + nc[1], 3),
        ("final", NUM_CLASS, nc[0], 1),
    ]
    keys = jax.random.split(key, len(names_shapes))
    return {name: _kaiming_conv(k, cout, cin, ks)
            for k, (name, cout, cin, ks) in zip(keys, names_shapes)}


# -------------------- forward --------------------

@jax.jit
def context_unet_forward(params, x_ncdhw):
    """x_ncdhw: [N, 1, D, H, W] -> logits [N, num_class, D, H, W]."""
    x = x_ncdhw.astype(jnp.float32)

    x0 = conv_in_relu_block(x, params["conv0_0"])
    x1 = conv_in_relu_block(maxpool3d_2(x0), params["conv1_0"])
    x2 = conv_in_relu_block(maxpool3d_2(x1), params["conv2_0"])
    x3 = conv_in_relu_block(maxpool3d_2(x2), params["conv3_0"])
    x4 = conv_in_relu_block(maxpool3d_2(x3), params["conv4_0"])
    # context_block is None -> nn.Sequential() identity.

    x3 = conv_in_relu_block(
        jnp.concatenate([x3, upsample_trilinear_2x(x4)], axis=1), params["conv3_1"])
    x2 = conv_in_relu_block(
        jnp.concatenate([x2, upsample_trilinear_2x(x3)], axis=1), params["conv2_2"])
    x1 = conv_in_relu_block(
        jnp.concatenate([x1, upsample_trilinear_2x(x2)], axis=1), params["conv1_3"])
    logits = conv_in_relu_final_block(
        jnp.concatenate([x0, upsample_trilinear_2x(x1)], axis=1),
        params["conv0_4"], params["final"])
    return logits


# -------------------- main --------------------

if __name__ == "__main__":
    key = jax.random.PRNGKey(0)
    pkey, xkey = jax.random.split(key)
    params = init_params(pkey)

    # input: [N=2, C=1, D=16, H=16, W=16] (spatial must be divisible by 2^4)
    x = jax.random.normal(xkey, (2, 1, 16, 16, 16), jnp.float32)

    out = context_unet_forward(params, x)
    out = jax.block_until_ready(out)

    assert out.shape == (2, NUM_CLASS, 16, 16, 16), out.shape
    assert bool(jnp.all(jnp.isfinite(out)))
    print("KERNEL_OK")
</pallas_src>

<mosaic_0001>
module attributes {stable_mosaic.version = 11 : i64} {
  func.func @_conv_in_relu_kernel(%arg0: i32, %arg1: memref<1x27x4096xbf16, #tpu.memory_space<vmem>>, %arg2: memref<4x27xbf16, #tpu.memory_space<vmem>>, %arg3: memref<1x4x4096xbf16, #tpu.memory_space<vmem>>) attributes {dimension_semantics = [#tpu.dimension_semantics<parallel>], iteration_bounds = array<i64: 2>, scalar_prefetch = 0 : i64, scratch_operands = 0 : i64, tpu.core_type = #tpu.core_type<tc>, window_params = [{transform_indices = @transform_0, window_bounds = array<i64: 1, 27, 4096>}, {pipeline_mode = #tpu.pipeline_mode<synchronous>, transform_indices = @transform_1, window_bounds = array<i64: 4, 27>}, {transform_indices = @transform_2, window_bounds = array<i64: 1, 4, 4096>}]} {
    %c0 = arith.constant 0 : index
    %c0_0 = arith.constant 0 : index
    %0 = vector.load %arg2[%c0, %c0_0] : memref<4x27xbf16, #tpu.memory_space<vmem>>, vector<4x27xbf16>
    %c0_1 = arith.constant 0 : index
    %c0_2 = arith.constant 0 : index
    %c0_3 = arith.constant 0 : index
    %1 = vector.load %arg1[%c0_1, %c0_2, %c0_3] : memref<1x27x4096xbf16, #tpu.memory_space<vmem>>, vector<1x27x4096xbf16>
    %2 = vector.shape_cast %1 : vector<1x27x4096xbf16> to vector<27x4096xbf16>
    %cst = arith.constant dense<0.000000e+00> : vector<4x4096xf32>
    %3 = tpu.matmul %0, %2, %cst {dimension_numbers = #tpu.dot_dimension_numbers<[1], [0], [0], [1], [0, 0, 1, 1], [], []>} : vector<4x27xbf16>, vector<27x4096xbf16>, vector<4x4096xf32> -> vector<4x4096xf32>
    %cst_4 = arith.constant dense<0.000000e+00> : vector<4xf32>
    %4 = vector.multi_reduction <add>, %3, %cst_4 [1] : vector<4x4096xf32> to vector<4xf32>
    %5 = vector.shape_cast %4 : vector<4xf32> to vector<4x1xf32>
    %cst_5 = arith.constant 4.096000e+03 : f32
    %6 = vector.broadcast %cst_5 : f32 to vector<4x1xf32>
    %7 = arith.divf %5, %6 : vector<4x1xf32>
    %8 = vector.broadcast %7 : vector<4x1xf32> to vector<4x4096xf32>
    %9 = arith.subf %3, %8 : vector<4x4096xf32>
    %10 = arith.mulf %9, %9 : vector<4x4096xf32>
    %cst_6 = arith.constant dense<0.000000e+00> : vector<4xf32>
    %11 = vector.multi_reduction <add>, %10, %cst_6 [1] : vector<4x4096xf32> to vector<4xf32>
    %12 = vector.shape_cast %11 : vector<4xf32> to vector<4x1xf32>
    %cst_7 = arith.constant 4.096000e+03 : f32
    %13 = vector.broadcast %cst_7 : f32 to vector<4x1xf32>
    %14 = arith.divf %12, %13 : vector<4x1xf32>
    %15 = vector.broadcast %7 : vector<4x1xf32> to vector<4x4096xf32>
    %16 = arith.subf %3, %15 : vector<4x4096xf32>
    %cst_8 = arith.constant 9.99999974E-6 : f32
    %17 = vector.broadcast %cst_8 : f32 to vector<4x1xf32>
    %18 = arith.addf %14, %17 : vector<4x1xf32>
    %19 = math.rsqrt %18 : vector<4x1xf32>
    %20 = vector.broadcast %19 : vector<4x1xf32> to vector<4x4096xf32>
    %21 = arith.mulf %16, %20 : vector<4x4096xf32>
    %cst_9 = arith.constant 0.000000e+00 : f32
    %22 = vector.broadcast %cst_9 : f32 to vector<4x4096xf32>
    %23 = arith.maximumf %21, %22 : vector<4x4096xf32>
    %24 = arith.truncf %23 : vector<4x4096xf32> to vector<4x4096xbf16>
    %c0_10 = arith.constant 0 : index
    %c0_11 = arith.constant 0 : index
    %c0_12 = arith.constant 0 : index
    %25 = vector.load %arg3[%c0_10, %c0_11, %c0_12] : memref<1x4x4096xbf16, #tpu.memory_space<vmem>>, vector<1x4x4096xbf16>
    %26 = vector.shape_cast %25 : vector<1x4x4096xbf16> to vector<4x4096xbf16>
    %27 = vector.shape_cast %24 : vector<4x4096xbf16> to vector<1x4x4096xbf16>
    tpu.vector_store %arg3[%c0_10, %c0_11, %c0_12], %27 {strides = array<i32>} : memref<1x4x4096xbf16, #tpu.memory_space<vmem>>, vector<1x4x4096xbf16>,
    return
  }
  func.func @transform_0(%arg0: i32) -> (i32, i32, i32) {
    %c0_i32 = arith.constant 0 : i32
    %c0_i32_0 = arith.constant 0 : i32
    %c0_i32_1 = arith.constant 0 : i32
    return %arg0, %c0_i32, %c0_i32_0 : i32, i32, i32
  }
  func.func @transform_1(%arg0: i32) -> (i32, i32) {
    %c0_i32 = arith.constant 0 : i32
    %c0_i32_0 = arith.constant 0 : i32
    %c0_i32_1 = arith.constant 0 : i32
    return %c0_i32, %c0_i32_0 : i32, i32
  }
  func.func @transform_2(%arg0: i32) -> (i32, i32, i32) {
    %c0_i32 = arith.constant 0 : i32
    %c0_i32_0 = arith.constant 0 : i32
    %c0_i32_1 = arith.constant 0 : i32
    return %arg0, %c0_i32, %c0_i32_0 : i32, i32, i32
  }
}

module attributes {stable_mosaic.version = 11 : i64} {
  func.func @_conv_in_relu_kernel(%arg0: i32, %arg1: memref<1x108x512xbf16, #tpu.memory_space<vmem>>, %arg2: memref<8x108xbf16, #tpu.memory_space<vmem>>, %arg3: memref<1x8x512xbf16, #tpu.memory_space<vmem>>) attributes {dimension_semantics = [#tpu.dimension_semantics<parallel>], iteration_bounds = array<i64: 2>, scalar_prefetch = 0 : i64, scratch_operands = 0 : i64, tpu.core_type = #tpu.core_type<tc>, window_params = [{transform_indices = @transform_0, window_bounds = array<i64: 1, 108, 512>}, {pipeline_mode = #tpu.pipeline_mode<synchronous>, transform_indices = @transform_1, window_bounds = array<i64: 8, 108>}, {transform_indices = @transform_2, window_bounds = array<i64: 1, 8, 512>}]} {
    %c0 = arith.constant 0 : index
    %c0_0 = arith.constant 0 : index
    %0 = vector.load %arg2[%c0, %c0_0] : memref<8x108xbf16, #tpu.memory_space<vmem>>, vector<8x108xbf16>
    %c0_1 = arith.constant 0 : index
    %c0_2 = arith.constant 0 : index
    %c0_3 = arith.constant 0 : index
    %1 = vector.load %arg1[%c0_1, %c0_2, %c0_3] : memref<1x108x512xbf16, #tpu.memory_space<vmem>>, vector<1x108x512xbf16>
    %2 = vector.shape_cast %1 : vector<1x108x512xbf16> to vector<108x512xbf16>
    %cst = arith.constant dense<0.000000e+00> : vector<8x512xf32>
    %3 = tpu.matmul %0, %2, %cst {dimension_numbers = #tpu.dot_dimension_numbers<[1], [0], [0], [1], [0, 0, 1, 1], [], []>} : vector<8x108xbf16>, vector<108x512xbf16>, vector<8x512xf32> -> vector<8x512xf32>
    %cst_4 = arith.constant dense<0.000000e+00> : vector<8xf32>
    %4 = vector.multi_reduction <add>, %3, %cst_4 [1] : vector<8x512xf32> to vector<8xf32>
    %5 = vector.shape_cast %4 : vector<8xf32> to vector<8x1xf32>
    %cst_5 = arith.constant 5.120000e+02 : f32
    %6 = vector.broadcast %cst_5 : f32 to vector<8x1xf32>
    %7 = arith.divf %5, %6 : vector<8x1xf32>
    %8 = vector.broadcast %7 : vector<8x1xf32> to vector<8x512xf32>
    %9 = arith.subf %3, %8 : vector<8x512xf32>
    %10 = arith.mulf %9, %9 : vector<8x512xf32>
    %cst_6 = arith.constant dense<0.000000e+00> : vector<8xf32>
    %11 = vector.multi_reduction <add>, %10, %cst_6 [1] : vector<8x512xf32> to vector<8xf32>
    %12 = vector.shape_cast %11 : vector<8xf32> to vector<8x1xf32>
    %cst_7 = arith.constant 5.120000e+02 : f32
    %13 = vector.broadcast %cst_7 : f32 to vector<8x1xf32>
    %14 = arith.divf %12, %13 : vector<8x1xf32>
    %15 = vector.broadcast %7 : vector<8x1xf32> to vector<8x512xf32>
    %16 = arith.subf %3, %15 : vector<8x512xf32>
    %cst_8 = arith.constant 9.99999974E-6 : f32
    %17 = vector.broadcast %cst_8 : f32 to vector<8x1xf32>
    %18 = arith.addf %14, %17 : vector<8x1xf32>
    %19 = math.rsqrt %18 : vector<8x1xf32>
    %20 = vector.broadcast %19 : vector<8x1xf32> to vector<8x512xf32>
    %21 = arith.mulf %16, %20 : vector<8x512xf32>
    %cst_9 = arith.constant 0.000000e+00 : f32
    %22 = vector.broadcast %cst_9 : f32 to vector<8x512xf32>
    %23 = arith.maximumf %21, %22 : vector<8x512xf32>
    %24 = arith.truncf %23 : vector<8x512xf32> to vector<8x512xbf16>
    %c0_10 = arith.constant 0 : index
    %c0_11 = arith.constant 0 : index
    %c0_12 = arith.constant 0 : index
    %25 = vector.load %arg3[%c0_10, %c0_11, %c0_12] : memref<1x8x512xbf16, #tpu.memory_space<vmem>>, vector<1x8x512xbf16>
    %26 = vector.shape_cast %25 : vector<1x8x512xbf16> to vector<8x512xbf16>
    %27 = vector.shape_cast %24 : vector<8x512xbf16> to vector<1x8x512xbf16>
    tpu.vector_store %arg3[%c0_10, %c0_11, %c0_12], %27 {strides = array<i32>} : memref<1x8x512xbf16, #tpu.memory_space<vmem>>, vector<1x8x512xbf16>,
    return
  }
  func.func @transform_0(%arg0: i32) -> (i32, i32, i32) {
    %c0_i32 = arith.constant 0 : i32
    %c0_i32_0 = arith.constant 0 : i32
    %c0_i32_1 = arith.constant 0 : i32
    return %arg0, %c0_i32, %c0_i32_0 : i32, i32, i32
  }
  func.func @transform_1(%arg0: i32) -> (i32, i32) {
    %c0_i32 = arith.constant 0 : i32
    %c0_i32_0 = arith.constant 0 : i32
    %c0_i32_1 = arith.constant 0 : i32
    return %c0_i32, %c0_i32_0 : i32, i32
  }
  func.func @transform_2(%arg0: i32) -> (i32, i32, i32) {
    %c0_i32 = arith.constant 0 : i32
    %c0_i32_0 = arith.constant 0 : i32
    %c0_i32_1 = arith.constant 0 : i32
    return %arg0, %c0_i32, %c0_i32_0 : i32, i32, i32
  }
}

module attributes {stable_mosaic.version = 11 : i64} {
  func.func @_conv_in_relu_kernel(%arg0: i32, %arg1: memref<1x216x64xbf16, #tpu.memory_space<vmem>>, %arg2: memref<8x216xbf16, #tpu.memory_space<vmem>>, %arg3: memref<1x8x64xbf16, #tpu.memory_space<vmem>>) attributes {dimension_semantics = [#tpu.dimension_semantics<parallel>], iteration_bounds = array<i64: 2>, scalar_prefetch = 0 : i64, scratch_operands = 0 : i64, tpu.core_type = #tpu.core_type<tc>, window_params = [{transform_indices = @transform_0, window_bounds = array<i64: 1, 216, 64>}, {pipeline_mode = #tpu.pipeline_mode<synchronous>, transform_indices = @transform_1, window_bounds = array<i64: 8, 216>}, {transform_indices = @transform_2, window_bounds = array<i64: 1, 8, 64>}]} {
    %c0 = arith.constant 0 : index
    %c0_0 = arith.constant 0 : index
    %0 = vector.load %arg2[%c0, %c0_0] : memref<8x216xbf16, #tpu.memory_space<vmem>>, vector<8x216xbf16>
    %c0_1 = arith.constant 0 : index
    %c0_2 = arith.constant 0 : index
    %c0_3 = arith.constant 0 : index
    %1 = vector.load %arg1[%c0_1, %c0_2, %c0_3] : memref<1x216x64xbf16, #tpu.memory_space<vmem>>, vector<1x216x64xbf16>
    %2 = vector.shape_cast %1 : vector<1x216x64xbf16> to vector<216x64xbf16>
    %cst = arith.constant dense<0.000000e+00> : vector<8x64xf32>
    %3 = tpu.matmul %0, %2, %cst {dimension_numbers = #tpu.dot_dimension_numbers<[1], [0], [0], [1], [0, 0, 1, 1], [], []>} : vector<8x216xbf16>, vector<216x64xbf16>, vector<8x64xf32> -> vector<8x64xf32>
    %cst_4 = arith.constant dense<0.000000e+00> : vector<8xf32>
    %4 = vector.multi_reduction <add>, %3, %cst_4 [1] : vector<8x64xf32> to vector<8xf32>
    %5 = vector.shape_cast %4 : vector<8xf32> to vector<8x1xf32>
    %cst_5 = arith.constant 6.400000e+01 : f32
    %6 = vector.broadcast %cst_5 : f32 to vector<8x1xf32>
    %7 = arith.divf %5, %6 : vector<8x1xf32>
    %8 = vector.broadcast %7 : vector<8x1xf32> to vector<8x64xf32>
    %9 = arith.subf %3, %8 : vector<8x64xf32>
    %10 = arith.mulf %9, %9 : vector<8x64xf32>
    %cst_6 = arith.constant dense<0.000000e+00> : vector<8xf32>
    %11 = vector.multi_reduction <add>, %10, %cst_6 [1] : vector<8x64xf32> to vector<8xf32>
    %12 = vector.shape_cast %11 : vector<8xf32> to vector<8x1xf32>
    %cst_7 = arith.constant 6.400000e+01 : f32
    %13 = vector.broadcast %cst_7 : f32 to vector<8x1xf32>
    %14 = arith.divf %12, %13 : vector<8x1xf32>
    %15 = vector.broadcast %7 : vector<8x1xf32> to vector<8x64xf32>
    %16 = arith.subf %3, %15 : vector<8x64xf32>
    %cst_8 = arith.constant 9.99999974E-6 : f32
    %17 = vector.broadcast %cst_8 : f32 to vector<8x1xf32>
    %18 = arith.addf %14, %17 : vector<8x1xf32>
    %19 = math.rsqrt %18 : vector<8x1xf32>
    %20 = vector.broadcast %19 : vector<8x1xf32> to vector<8x64xf32>
    %21 = arith.mulf %16, %20 : vector<8x64xf32>
    %cst_9 = arith.constant 0.000000e+00 : f32
    %22 = vector.broadcast %cst_9 : f32 to vector<8x64xf32>
    %23 = arith.maximumf %21, %22 : vector<8x64xf32>
    %24 = arith.truncf %23 : vector<8x64xf32> to vector<8x64xbf16>
    %c0_10 = arith.constant 0 : index
    %c0_11 = arith.constant 0 : index
    %c0_12 = arith.constant 0 : index
    %25 = vector.load %arg3[%c0_10, %c0_11, %c0_12] : memref<1x8x64xbf16, #tpu.memory_space<vmem>>, vector<1x8x64xbf16>
    %26 = vector.shape_cast %25 : vector<1x8x64xbf16> to vector<8x64xbf16>
    %27 = vector.shape_cast %24 : vector<8x64xbf16> to vector<1x8x64xbf16>
    tpu.vector_store %arg3[%c0_10, %c0_11, %c0_12], %27 {strides = array<i32>} : memref<1x8x64xbf16, #tpu.memory_space<vmem>>, vector<1x8x64xbf16>,
    return
  }
  func.func @transform_0(%arg0: i32) -> (i32, i32, i32) {
    %c0_i32 = arith.constant 0 : i32
    %c0_i32_0 = arith.constant 0 : i32
    %c0_i32_1 = arith.constant 0 : i32
    return %arg0, %c0_i32, %c0_i32_0 : i32, i32, i32
  }
  func.func @transform_1(%arg0: i32) -> (i32, i32) {
    %c0_i32 = arith.constant 0 : i32
    %c0_i32_0 = arith.constant 0 : i32
    %c0_i32_1 = arith.constant 0 : i32
    return %c0_i32, %c0_i32_0 : i32, i32
  }
  func.func @transform_2(%arg0: i32) -> (i32, i32, i32) {
    %c0_i32 = arith.constant 0 : i32
    %c0_i32_0 = arith.constant 0 : i32
    %c0_i32_1 = arith.constant 0 : i32
    return %arg0, %c0_i32, %c0_i32_0 : i32, i32, i32
  }
}

module attributes {stable_mosaic.version = 11 : i64} {
  func.func @_conv_in_relu_kernel(%arg0: i32, %arg1: memref<1x216x8xbf16, #tpu.memory_space<vmem>>, %arg2: memref<16x216xbf16, #tpu.memory_space<vmem>>, %arg3: memref<1x16x8xbf16, #tpu.memory_space<vmem>>) attributes {dimension_semantics = [#tpu.dimension_semantics<parallel>], iteration_bounds = array<i64: 2>, scalar_prefetch = 0 : i64, scratch_operands = 0 : i64, tpu.core_type = #tpu.core_type<tc>, window_params = [{transform_indices = @transform_0, window_bounds = array<i64: 1, 216, 8>}, {pipeline_mode = #tpu.pipeline_mode<synchronous>, transform_indices = @transform_1, window_bounds = array<i64: 16, 216>}, {transform_indices = @transform_2, window_bounds = array<i64: 1, 16, 8>}]} {
    %c0 = arith.constant 0 : index
    %c0_0 = arith.constant 0 : index
    %0 = vector.load %arg2[%c0, %c0_0] : memref<16x216xbf16, #tpu.memory_space<vmem>>, vector<16x216xbf16>
    %c0_1 = arith.constant 0 : index
    %c0_2 = arith.constant 0 : index
    %c0_3 = arith.constant 0 : index
    %1 = vector.load %arg1[%c0_1, %c0_2, %c0_3] : memref<1x216x8xbf16, #tpu.memory_space<vmem>>, vector<1x216x8xbf16>
    %2 = vector.shape_cast %1 : vector<1x216x8xbf16> to vector<216x8xbf16>
    %cst = arith.constant dense<0.000000e+00> : vector<16x8xf32>
    %3 = tpu.matmul %0, %2, %cst {dimension_numbers = #tpu.dot_dimension_numbers<[1], [0], [0], [1], [0, 0, 1, 1], [], []>} : vector<16x216xbf16>, vector<216x8xbf16>, vector<16x8xf32> -> vector<16x8xf32>
    %cst_4 = arith.constant dense<0.000000e+00> : vector<16xf32>
    %4 = vector.multi_reduction <add>, %3, %cst_4 [1] : vector<16x8xf32> to vector<16xf32>
    %5 = vector.shape_cast %4 : vector<16xf32> to vector<16x1xf32>
    %cst_5 = arith.constant 8.000000e+00 : f32
    %6 = vector.broadcast %cst_5 : f32 to vector<16x1xf32>
    %7 = arith.divf %5, %6 : vector<16x1xf32>
    %8 = vector.broadcast %7 : vector<16x1xf32> to vector<16x8xf32>
    %9 = arith.subf %3, %8 : vector<16x8xf32>
    %10 = arith.mulf %9, %9 : vector<16x8xf32>
    %cst_6 = arith.constant dense<0.000000e+00> : vector<16xf32>
    %11 = vector.multi_reduction <add>, %10, %cst_6 [1] : vector<16x8xf32> to vector<16xf32>
    %12 = vector.shape_cast %11 : vector<16xf32> to vector<16x1xf32>
    %cst_7 = arith.constant 8.000000e+00 : f32
    %13 = vector.broadcast %cst_7 : f32 to vector<16x1xf32>
    %14 = arith.divf %12, %13 : vector<16x1xf32>
    %15 = vector.broadcast %7 : vector<16x1xf32> to vector<16x8xf32>
    %16 = arith.subf %3, %15 : vector<16x8xf32>
    %cst_8 = arith.constant 9.99999974E-6 : f32
    %17 = vector.broadcast %cst_8 : f32 to vector<16x1xf32>
    %18 = arith.addf %14, %17 : vector<16x1xf32>
    %19 = math.rsqrt %18 : vector<16x1xf32>
    %20 = vector.broadcast %19 : vector<16x1xf32> to vector<16x8xf32>
    %21 = arith.mulf %16, %20 : vector<16x8xf32>
    %cst_9 = arith.constant 0.000000e+00 : f32
    %22 = vector.broadcast %cst_9 : f32 to vector<16x8xf32>
    %23 = arith.maximumf %21, %22 : vector<16x8xf32>
    %24 = arith.truncf %23 : vector<16x8xf32> to vector<16x8xbf16>
    %c0_10 = arith.constant 0 : index
    %c0_11 = arith.constant 0 : index
    %c0_12 = arith.constant 0 : index
    %25 = vector.load %arg3[%c0_10, %c0_11, %c0_12] : memref<1x16x8xbf16, #tpu.memory_space<vmem>>, vector<1x16x8xbf16>
    %26 = vector.shape_cast %25 : vector<1x16x8xbf16> to vector<16x8xbf16>
    %27 = vector.shape_cast %24 : vector<16x8xbf16> to vector<1x16x8xbf16>
    tpu.vector_store %arg3[%c0_10, %c0_11, %c0_12], %27 {strides = array<i32>} : memref<1x16x8xbf16, #tpu.memory_space<vmem>>, vector<1x16x8xbf16>,
    return
  }
  func.func @transform_0(%arg0: i32) -> (i32, i32, i32) {
    %c0_i32 = arith.constant 0 : i32
    %c0_i32_0 = arith.constant 0 : i32
    %c0_i32_1 = arith.constant 0 : i32
    return %arg0, %c0_i32, %c0_i32_0 : i32, i32, i32
  }
  func.func @transform_1(%arg0: i32) -> (i32, i32) {
    %c0_i32 = arith.constant 0 : i32
    %c0_i32_0 = arith.constant 0 : i32
    %c0_i32_1 = arith.constant 0 : i32
    return %c0_i32, %c0_i32_0 : i32, i32
  }
  func.func @transform_2(%arg0: i32) -> (i32, i32, i32) {
    %c0_i32 = arith.constant 0 : i32
    %c0_i32_0 = arith.constant 0 : i32
    %c0_i32_1 = arith.constant 0 : i32
    return %arg0, %c0_i32, %c0_i32_0 : i32, i32, i32
  }
}

module attributes {stable_mosaic.version = 11 : i64} {
  func.func @_conv_in_relu_kernel(%arg0: i32, %arg1: memref<1x432x1xbf16, #tpu.memory_space<vmem>>, %arg2: memref<16x432xbf16, #tpu.memory_space<vmem>>, %arg3: memref<1x16x1xbf16, #tpu.memory_space<vmem>>) attributes {dimension_semantics = [#tpu.dimension_semantics<parallel>], iteration_bounds = array<i64: 2>, scalar_prefetch = 0 : i64, scratch_operands = 0 : i64, tpu.core_type = #tpu.core_type<tc>, window_params = [{transform_indices = @transform_0, window_bounds = array<i64: 1, 432, 1>}, {pipeline_mode = #tpu.pipeline_mode<synchronous>, transform_indices = @transform_1, window_bounds = array<i64: 16, 432>}, {transform_indices = @transform_2, window_bounds = array<i64: 1, 16, 1>}]} {
    %c0 = arith.constant 0 : index
    %c0_0 = arith.constant 0 : index
    %0 = vector.load %arg2[%c0, %c0_0] : memref<16x432xbf16, #tpu.memory_space<vmem>>, vector<16x432xbf16>
    %c0_1 = arith.constant 0 : index
    %c0_2 = arith.constant 0 : index
    %c0_3 = arith.constant 0 : index
    %1 = vector.load %arg1[%c0_1, %c0_2, %c0_3] : memref<1x432x1xbf16, #tpu.memory_space<vmem>>, vector<1x432x1xbf16>
    %2 = vector.shape_cast %1 : vector<1x432x1xbf16> to vector<432x1xbf16>
    %cst = arith.constant dense<0.000000e+00> : vector<16x1xf32>
    %3 = tpu.matmul %0, %2, %cst {dimension_numbers = #tpu.dot_dimension_numbers<[1], [0], [0], [1], [0, 0, 1, 1], [], []>} : vector<16x432xbf16>, vector<432x1xbf16>, vector<16x1xf32> -> vector<16x1xf32>
    %cst_4 = arith.constant dense<0.000000e+00> : vector<16xf32>
    %4 = vector.multi_reduction <add>, %3, %cst_4 [1] : vector<16x1xf32> to vector<16xf32>
    %5 = vector.shape_cast %4 : vector<16xf32> to vector<16x1xf32>
    %cst_5 = arith.constant 1.000000e+00 : f32
    %6 = vector.broadcast %cst_5 : f32 to vector<16x1xf32>
    %7 = arith.divf %5, %6 : vector<16x1xf32>
    %8 = arith.subf %3, %7 : vector<16x1xf32>
    %9 = arith.mulf %8, %8 : vector<16x1xf32>
    %cst_6 = arith.constant dense<0.000000e+00> : vector<16xf32>
    %10 = vector.multi_reduction <add>, %9, %cst_6 [1] : vector<16x1xf32> to vector<16xf32>
    %11 = vector.shape_cast %10 : vector<16xf32> to vector<16x1xf32>
    %cst_7 = arith.constant 1.000000e+00 : f32
    %12 = vector.broadcast %cst_7 : f32 to vector<16x1xf32>
    %13 = arith.divf %11, %12 : vector<16x1xf32>
    %14 = arith.subf %3, %7 : vector<16x1xf32>
    %cst_8 = arith.constant 9.99999974E-6 : f32
    %15 = vector.broadcast %cst_8 : f32 to vector<16x1xf32>
    %16 = arith.addf %13, %15 : vector<16x1xf32>
    %17 = math.rsqrt %16 : vector<16x1xf32>
    %18 = arith.mulf %14, %17 : vector<16x1xf32>
    %cst_9 = arith.constant 0.000000e+00 : f32
    %19 = vector.broadcast %cst_9 : f32 to vector<16x1xf32>
    %20 = arith.maximumf %18, %19 : vector<16x1xf32>
    %21 = arith.truncf %20 : vector<16x1xf32> to vector<16x1xbf16>
    %c0_10 = arith.constant 0 : index
    %c0_11 = arith.constant 0 : index
    %c0_12 = arith.constant 0 : index
    %22 = vector.load %arg3[%c0_10, %c0_11, %c0_12] : memref<1x16x1xbf16, #tpu.memory_space<vmem>>, vector<1x16x1xbf16>
    %23 = vector.shape_cast %22 : vector<1x16x1xbf16> to vector<16x1xbf16>
    %24 = vector.shape_cast %21 : vector<16x1xbf16> to vector<1x16x1xbf16>
    tpu.vector_store %arg3[%c0_10, %c0_11, %c0_12], %24 {strides = array<i32>} : memref<1x16x1xbf16, #tpu.memory_space<vmem>>, vector<1x16x1xbf16>,
    return
  }
  func.func @transform_0(%arg0: i32) -> (i32, i32, i32) {
    %c0_i32 = arith.constant 0 : i32
    %c0_i32_0 = arith.constant 0 : i32
    %c0_i32_1 = arith.constant 0 : i32
    return %arg0, %c0_i32, %c0_i32_0 : i32, i32, i32
  }
  func.func @transform_1(%arg0: i32) -> (i32, i32) {
    %c0_i32 = arith.constant 0 : i32
    %c0_i32_0 = arith.constant 0 : i32
    %c0_i32_1 = arith.constant 0 : i32
    return %c0_i32, %c0_i32_0 : i32, i32
  }
  func.func @transform_2(%arg0: i32) -> (i32, i32, i32) {
    %c0_i32 = arith.constant 0 : i32
    %c0_i32_0 = arith.constant 0 : i32
    %c0_i32_1 = arith.constant 0 : i32
    return %arg0, %c0_i32, %c0_i32_0 : i32, i32, i32
  }
}

module attributes {stable_mosaic.version = 11 : i64} {
  func.func @_conv_in_relu_kernel(%arg0: i32, %arg1: memref<1x864x8xbf16, #tpu.memory_space<vmem>>, %arg2: memref<16x864xbf16, #tpu.memory_space<vmem>>, %arg3: memref<1x16x8xbf16, #tpu.memory_space<vmem>>) attributes {dimension_semantics = [#tpu.dimension_semantics<parallel>], iteration_bounds = array<i64: 2>, scalar_prefetch = 0 : i64, scratch_operands = 0 : i64, tpu.core_type = #tpu.core_type<tc>, window_params = [{transform_indices = @transform_0, window_bounds = array<i64: 1, 864, 8>}, {pipeline_mode = #tpu.pipeline_mode<synchronous>, transform_indices = @transform_1, window_bounds = array<i64: 16, 864>}, {transform_indices = @transform_2, window_bounds = array<i64: 1, 16, 8>}]} {
    %c0 = arith.constant 0 : index
    %c0_0 = arith.constant 0 : index
    %0 = vector.load %arg2[%c0, %c0_0] : memref<16x864xbf16, #tpu.memory_space<vmem>>, vector<16x864xbf16>
    %c0_1 = arith.constant 0 : index
    %c0_2 = arith.constant 0 : index
    %c0_3 = arith.constant 0 : index
    %1 = vector.load %arg1[%c0_1, %c0_2, %c0_3] : memref<1x864x8xbf16, #tpu.memory_space<vmem>>, vector<1x864x8xbf16>
    %2 = vector.shape_cast %1 : vector<1x864x8xbf16> to vector<864x8xbf16>
    %cst = arith.constant dense<0.000000e+00> : vector<16x8xf32>
    %3 = tpu.matmul %0, %2, %cst {dimension_numbers = #tpu.dot_dimension_numbers<[1], [0], [0], [1], [0, 0, 1, 1], [], []>} : vector<16x864xbf16>, vector<864x8xbf16>, vector<16x8xf32> -> vector<16x8xf32>
    %cst_4 = arith.constant dense<0.000000e+00> : vector<16xf32>
    %4 = vector.multi_reduction <add>, %3, %cst_4 [1] : vector<16x8xf32> to vector<16xf32>
    %5 = vector.shape_cast %4 : vector<16xf32> to vector<16x1xf32>
    %cst_5 = arith.constant 8.000000e+00 : f32
    %6 = vector.broadcast %cst_5 : f32 to vector<16x1xf32>
    %7 = arith.divf %5, %6 : vector<16x1xf32>
    %8 = vector.broadcast %7 : vector<16x1xf32> to vector<16x8xf32>
    %9 = arith.subf %3, %8 : vector<16x8xf32>
    %10 = arith.mulf %9, %9 : vector<16x8xf32>
    %cst_6 = arith.constant dense<0.000000e+00> : vector<16xf32>
    %11 = vector.multi_reduction <add>, %10, %cst_6 [1] : vector<16x8xf32> to vector<16xf32>
    %12 = vector.shape_cast %11 : vector<16xf32> to vector<16x1xf32>
    %cst_7 = arith.constant 8.000000e+00 : f32
    %13 = vector.broadcast %cst_7 : f32 to vector<16x1xf32>
    %14 = arith.divf %12, %13 : vector<16x1xf32>
    %15 = vector.broadcast %7 : vector<16x1xf32> to vector<16x8xf32>
    %16 = arith.subf %3, %15 : vector<16x8xf32>
    %cst_8 = arith.constant 9.99999974E-6 : f32
    %17 = vector.broadcast %cst_8 : f32 to vector<16x1xf32>
    %18 = arith.addf %14, %17 : vector<16x1xf32>
    %19 = math.rsqrt %18 : vector<16x1xf32>
    %20 = vector.broadcast %19 : vector<16x1xf32> to vector<16x8xf32>
    %21 = arith.mulf %16, %20 : vector<16x8xf32>
    %cst_9 = arith.constant 0.000000e+00 : f32
    %22 = vector.broadcast %cst_9 : f32 to vector<16x8xf32>
    %23 = arith.maximumf %21, %22 : vector<16x8xf32>
    %24 = arith.truncf %23 : vector<16x8xf32> to vector<16x8xbf16>
    %c0_10 = arith.constant 0 : index
    %c0_11 = arith.constant 0 : index
    %c0_12 = arith.constant 0 : index
    %25 = vector.load %arg3[%c0_10, %c0_11, %c0_12] : memref<1x16x8xbf16, #tpu.memory_space<vmem>>, vector<1x16x8xbf16>
    %26 = vector.shape_cast %25 : vector<1x16x8xbf16> to vector<16x8xbf16>
    %27 = vector.shape_cast %24 : vector<16x8xbf16> to vector<1x16x8xbf16>
    tpu.vector_store %arg3[%c0_10, %c0_11, %c0_12], %27 {strides = array<i32>} : memref<1x16x8xbf16, #tpu.memory_space<vmem>>, vector<1x16x8xbf16>,
    return
  }
  func.func @transform_0(%arg0: i32) -> (i32, i32, i32) {
    %c0_i32 = arith.constant 0 : i32
    %c0_i32_0 = arith.constant 0 : i32
    %c0_i32_1 = arith.constant 0 : i32
    return %arg0, %c0_i32, %c0_i32_0 : i32, i32, i32
  }
  func.func @transform_1(%arg0: i32) -> (i32, i32) {
    %c0_i32 = arith.constant 0 : i32
    %c0_i32_0 = arith.constant 0 : i32
    %c0_i32_1 = arith.constant 0 : i32
    return %c0_i32, %c0_i32_0 : i32, i32
  }
  func.func @transform_2(%arg0: i32) -> (i32, i32, i32) {
    %c0_i32 = arith.constant 0 : i32
    %c0_i32_0 = arith.constant 0 : i32
    %c0_i32_1 = arith.constant 0 : i32
    return %arg0, %c0_i32, %c0_i32_0 : i32, i32, i32
  }
}

module attributes {stable_mosaic.version = 11 : i64} {
  func.func @_conv_in_relu_kernel(%arg0: i32, %arg1: memref<1x648x64xbf16, #tpu.memory_space<vmem>>, %arg2: memref<8x648xbf16, #tpu.memory_space<vmem>>, %arg3: memref<1x8x64xbf16, #tpu.memory_space<vmem>>) attributes {dimension_semantics = [#tpu.dimension_semantics<parallel>], iteration_bounds = array<i64: 2>, scalar_prefetch = 0 : i64, scratch_operands = 0 : i64, tpu.core_type = #tpu.core_type<tc>, window_params = [{transform_indices = @transform_0, window_bounds = array<i64: 1, 648, 64>}, {pipeline_mode = #tpu.pipeline_mode<synchronous>, transform_indices = @transform_1, window_bounds = array<i64: 8, 648>}, {transform_indices = @transform_2, window_bounds = array<i64: 1, 8, 64>}]} {
    %c0 = arith.constant 0 : index
    %c0_0 = arith.constant 0 : index
    %0 = vector.load %arg2[%c0, %c0_0] : memref<8x648xbf16, #tpu.memory_space<vmem>>, vector<8x648xbf16>
    %c0_1 = arith.constant 0 : index
    %c0_2 = arith.constant 0 : index
    %c0_3 = arith.constant 0 : index
    %1 = vector.load %arg1[%c0_1, %c0_2, %c0_3] : memref<1x648x64xbf16, #tpu.memory_space<vmem>>, vector<1x648x64xbf16>
    %2 = vector.shape_cast %1 : vector<1x648x64xbf16> to vector<648x64xbf16>
    %cst = arith.constant dense<0.000000e+00> : vector<8x64xf32>
    %3 = tpu.matmul %0, %2, %cst {dimension_numbers = #tpu.dot_dimension_numbers<[1], [0], [0], [1], [0, 0, 1, 1], [], []>} : vector<8x648xbf16>, vector<648x64xbf16>, vector<8x64xf32> -> vector<8x64xf32>
    %cst_4 = arith.constant dense<0.000000e+00> : vector<8xf32>
    %4 = vector.multi_reduction <add>, %3, %cst_4 [1] : vector<8x64xf32> to vector<8xf32>
    %5 = vector.shape_cast %4 : vector<8xf32> to vector<8x1xf32>
    %cst_5 = arith.constant 6.400000e+01 : f32
    %6 = vector.broadcast %cst_5 : f32 to vector<8x1xf32>
    %7 = arith.divf %5, %6 : vector<8x1xf32>
    %8 = vector.broadcast %7 : vector<8x1xf32> to vector<8x64xf32>
    %9 = arith.subf %3, %8 : vector<8x64xf32>
    %10 = arith.mulf %9, %9 : vector<8x64xf32>
    %cst_6 = arith.constant dense<0.000000e+00> : vector<8xf32>
    %11 = vector.multi_reduction <add>, %10, %cst_6 [1] : vector<8x64xf32> to vector<8xf32>
    %12 = vector.shape_cast %11 : vector<8xf32> to vector<8x1xf32>
    %cst_7 = arith.constant 6.400000e+01 : f32
    %13 = vector.broadcast %cst_7 : f32 to vector<8x1xf32>
    %14 = arith.divf %12, %13 : vector<8x1xf32>
    %15 = vector.broadcast %7 : vector<8x1xf32> to vector<8x64xf32>
    %16 = arith.subf %3, %15 : vector<8x64xf32>
    %cst_8 = arith.constant 9.99999974E-6 : f32
    %17 = vector.broadcast %cst_8 : f32 to vector<8x1xf32>
    %18 = arith.addf %14, %17 : vector<8x1xf32>
    %19 = math.rsqrt %18 : vector<8x1xf32>
    %20 = vector.broadcast %19 : vector<8x1xf32> to vector<8x64xf32>
    %21 = arith.mulf %16, %20 : vector<8x64xf32>
    %cst_9 = arith.constant 0.000000e+00 : f32
    %22 = vector.broadcast %cst_9 : f32 to vector<8x64xf32>
    %23 = arith.maximumf %21, %22 : vector<8x64xf32>
    %24 = arith.truncf %23 : vector<8x64xf32> to vector<8x64xbf16>
    %c0_10 = arith.constant 0 : index
    %c0_11 = arith.constant 0 : index
    %c0_12 = arith.constant 0 : index
    %25 = vector.load %arg3[%c0_10, %c0_11, %c0_12] : memref<1x8x64xbf16, #tpu.memory_space<vmem>>, vector<1x8x64xbf16>
    %26 = vector.shape_cast %25 : vector<1x8x64xbf16> to vector<8x64xbf16>
    %27 = vector.shape_cast %24 : vector<8x64xbf16> to vector<1x8x64xbf16>
    tpu.vector_store %arg3[%c0_10, %c0_11, %c0_12], %27 {strides = array<i32>} : memref<1x8x64xbf16, #tpu.memory_space<vmem>>, vector<1x8x64xbf16>,
    return
  }
  func.func @transform_0(%arg0: i32) -> (i32, i32, i32) {
    %c0_i32 = arith.constant 0 : i32
    %c0_i32_0 = arith.constant 0 : i32
    %c0_i32_1 = arith.constant 0 : i32
    return %arg0, %c0_i32, %c0_i32_0 : i32, i32, i32
  }
  func.func @transform_1(%arg0: i32) -> (i32, i32) {
    %c0_i32 = arith.constant 0 : i32
    %c0_i32_0 = arith.constant 0 : i32
    %c0_i32_1 = arith.constant 0 : i32
    return %c0_i32, %c0_i32_0 : i32, i32
  }
  func.func @transform_2(%arg0: i32) -> (i32, i32, i32) {
    %c0_i32 = arith.constant 0 : i32
    %c0_i32_0 = arith.constant 0 : i32
    %c0_i32_1 = arith.constant 0 : i32
    return %arg0, %c0_i32, %c0_i32_0 : i32, i32, i32
  }
}

module attributes {stable_mosaic.version = 11 : i64} {
  func.func @_conv_in_relu_kernel(%arg0: i32, %arg1: memref<1x432x512xbf16, #tpu.memory_space<vmem>>, %arg2: memref<8x432xbf16, #tpu.memory_space<vmem>>, %arg3: memref<1x8x512xbf16, #tpu.memory_space<vmem>>) attributes {dimension_semantics = [#tpu.dimension_semantics<parallel>], iteration_bounds = array<i64: 2>, scalar_prefetch = 0 : i64, scratch_operands = 0 : i64, tpu.core_type = #tpu.core_type<tc>, window_params = [{transform_indices = @transform_0, window_bounds = array<i64: 1, 432, 512>}, {pipeline_mode = #tpu.pipeline_mode<synchronous>, transform_indices = @transform_1, window_bounds = array<i64: 8, 432>}, {transform_indices = @transform_2, window_bounds = array<i64: 1, 8, 512>}]} {
    %c0 = arith.constant 0 : index
    %c0_0 = arith.constant 0 : index
    %0 = vector.load %arg2[%c0, %c0_0] : memref<8x432xbf16, #tpu.memory_space<vmem>>, vector<8x432xbf16>
    %c0_1 = arith.constant 0 : index
    %c0_2 = arith.constant 0 : index
    %c0_3 = arith.constant 0 : index
    %1 = vector.load %arg1[%c0_1, %c0_2, %c0_3] : memref<1x432x512xbf16, #tpu.memory_space<vmem>>, vector<1x432x512xbf16>
    %2 = vector.shape_cast %1 : vector<1x432x512xbf16> to vector<432x512xbf16>
    %cst = arith.constant dense<0.000000e+00> : vector<8x512xf32>
    %3 = tpu.matmul %0, %2, %cst {dimension_numbers = #tpu.dot_dimension_numbers<[1], [0], [0], [1], [0, 0, 1, 1], [], []>} : vector<8x432xbf16>, vector<432x512xbf16>, vector<8x512xf32> -> vector<8x512xf32>
    %cst_4 = arith.constant dense<0.000000e+00> : vector<8xf32>
    %4 = vector.multi_reduction <add>, %3, %cst_4 [1] : vector<8x512xf32> to vector<8xf32>
    %5 = vector.shape_cast %4 : vector<8xf32> to vector<8x1xf32>
    %cst_5 = arith.constant 5.120000e+02 : f32
    %6 = vector.broadcast %cst_5 : f32 to vector<8x1xf32>
    %7 = arith.divf %5, %6 : vector<8x1xf32>
    %8 = vector.broadcast %7 : vector<8x1xf32> to vector<8x512xf32>
    %9 = arith.subf %3, %8 : vector<8x512xf32>
    %10 = arith.mulf %9, %9 : vector<8x512xf32>
    %cst_6 = arith.constant dense<0.000000e+00> : vector<8xf32>
    %11 = vector.multi_reduction <add>, %10, %cst_6 [1] : vector<8x512xf32> to vector<8xf32>
    %12 = vector.shape_cast %11 : vector<8xf32> to vector<8x1xf32>
    %cst_7 = arith.constant 5.120000e+02 : f32
    %13 = vector.broadcast %cst_7 : f32 to vector<8x1xf32>
    %14 = arith.divf %12, %13 : vector<8x1xf32>
    %15 = vector.broadcast %7 : vector<8x1xf32> to vector<8x512xf32>
    %16 = arith.subf %3, %15 : vector<8x512xf32>
    %cst_8 = arith.constant 9.99999974E-6 : f32
    %17 = vector.broadcast %cst_8 : f32 to vector<8x1xf32>
    %18 = arith.addf %14, %17 : vector<8x1xf32>
    %19 = math.rsqrt %18 : vector<8x1xf32>
    %20 = vector.broadcast %19 : vector<8x1xf32> to vector<8x512xf32>
    %21 = arith.mulf %16, %20 : vector<8x512xf32>
    %cst_9 = arith.constant 0.000000e+00 : f32
    %22 = vector.broadcast %cst_9 : f32 to vector<8x512xf32>
    %23 = arith.maximumf %21, %22 : vector<8x512xf32>
    %24 = arith.truncf %23 : vector<8x512xf32> to vector<8x512xbf16>
    %c0_10 = arith.constant 0 : index
    %c0_11 = arith.constant 0 : index
    %c0_12 = arith.constant 0 : index
    %25 = vector.load %arg3[%c0_10, %c0_11, %c0_12] : memref<1x8x512xbf16, #tpu.memory_space<vmem>>, vector<1x8x512xbf16>
    %26 = vector.shape_cast %25 : vector<1x8x512xbf16> to vector<8x512xbf16>
    %27 = vector.shape_cast %24 : vector<8x512xbf16> to vector<1x8x512xbf16>
    tpu.vector_store %arg3[%c0_10, %c0_11, %c0_12], %27 {strides = array<i32>} : memref<1x8x512xbf16, #tpu.memory_space<vmem>>, vector<1x8x512xbf16>,
    return
  }
  func.func @transform_0(%arg0: i32) -> (i32, i32, i32) {
    %c0_i32 = arith.constant 0 : i32
    %c0_i32_0 = arith.constant 0 : i32
    %c0_i32_1 = arith.constant 0 : i32
    return %arg0, %c0_i32, %c0_i32_0 : i32, i32, i32
  }
  func.func @transform_1(%arg0: i32) -> (i32, i32) {
    %c0_i32 = arith.constant 0 : i32
    %c0_i32_0 = arith.constant 0 : i32
    %c0_i32_1 = arith.constant 0 : i32
    return %c0_i32, %c0_i32_0 : i32, i32
  }
  func.func @transform_2(%arg0: i32) -> (i32, i32, i32) {
    %c0_i32 = arith.constant 0 : i32
    %c0_i32_0 = arith.constant 0 : i32
    %c0_i32_1 = arith.constant 0 : i32
    return %arg0, %c0_i32, %c0_i32_0 : i32, i32, i32
  }
}

module attributes {stable_mosaic.version = 11 : i64} {
  func.func @_conv_in_relu_final_kernel(%arg0: i32, %arg1: memref<1x324x4096xbf16, #tpu.memory_space<vmem>>, %arg2: memref<4x324xbf16, #tpu.memory_space<vmem>>, %arg3: memref<2x4xf32, #tpu.memory_space<vmem>>, %arg4: memref<1x2x4096xf32, #tpu.memory_space<vmem>>) attributes {dimension_semantics = [#tpu.dimension_semantics<parallel>], iteration_bounds = array<i64: 2>, scalar_prefetch = 0 : i64, scratch_operands = 0 : i64, tpu.core_type = #tpu.core_type<tc>, window_params = [{transform_indices = @transform_0, window_bounds = array<i64: 1, 324, 4096>}, {pipeline_mode = #tpu.pipeline_mode<synchronous>, transform_indices = @transform_1, window_bounds = array<i64: 4, 324>}, {pipeline_mode = #tpu.pipeline_mode<synchronous>, transform_indices = @transform_2, window_bounds = array<i64: 2, 4>}, {transform_indices = @transform_3, window_bounds = array<i64: 1, 2, 4096>}]} {
    %c0 = arith.constant 0 : index
    %c0_0 = arith.constant 0 : index
    %0 = vector.load %arg2[%c0, %c0_0] : memref<4x324xbf16, #tpu.memory_space<vmem>>, vector<4x324xbf16>
    %c0_1 = arith.constant 0 : index
    %c0_2 = arith.constant 0 : index
    %c0_3 = arith.constant 0 : index
    %1 = vector.load %arg1[%c0_1, %c0_2, %c0_3] : memref<1x324x4096xbf16, #tpu.memory_space<vmem>>, vector<1x324x4096xbf16>
    %2 = vector.shape_cast %1 : vector<1x324x4096xbf16> to vector<324x4096xbf16>
    %cst = arith.constant dense<0.000000e+00> : vector<4x4096xf32>
    %3 = tpu.matmul %0, %2, %cst {dimension_numbers = #tpu.dot_dimension_numbers<[1], [0], [0], [1], [0, 0, 1, 1], [], []>} : vector<4x324xbf16>, vector<324x4096xbf16>, vector<4x4096xf32> -> vector<4x4096xf32>
    %cst_4 = arith.constant dense<0.000000e+00> : vector<4xf32>
    %4 = vector.multi_reduction <add>, %3, %cst_4 [1] : vector<4x4096xf32> to vector<4xf32>
    %5 = vector.shape_cast %4 : vector<4xf32> to vector<4x1xf32>
    %cst_5 = arith.constant 4.096000e+03 : f32
    %6 = vector.broadcast %cst_5 : f32 to vector<4x1xf32>
    %7 = arith.divf %5, %6 : vector<4x1xf32>
    %8 = vector.broadcast %7 : vector<4x1xf32> to vector<4x4096xf32>
    %9 = arith.subf %3, %8 : vector<4x4096xf32>
    %10 = arith.mulf %9, %9 : vector<4x4096xf32>
    %cst_6 = arith.constant dense<0.000000e+00> : vector<4xf32>
    %11 = vector.multi_reduction <add>, %10, %cst_6 [1] : vector<4x4096xf32> to vector<4xf32>
    %12 = vector.shape_cast %11 : vector<4xf32> to vector<4x1xf32>
    %cst_7 = arith.constant 4.096000e+03 : f32
    %13 = vector.broadcast %cst_7 : f32 to vector<4x1xf32>
    %14 = arith.divf %12, %13 : vector<4x1xf32>
    %15 = vector.broadcast %7 : vector<4x1xf32> to vector<4x4096xf32>
    %16 = arith.subf %3, %15 : vector<4x4096xf32>
    %cst_8 = arith.constant 9.99999974E-6 : f32
    %17 = vector.broadcast %cst_8 : f32 to vector<4x1xf32>
    %18 = arith.addf %14, %17 : vector<4x1xf32>
    %19 = math.rsqrt %18 : vector<4x1xf32>
    %20 = vector.broadcast %19 : vector<4x1xf32> to vector<4x4096xf32>
    %21 = arith.mulf %16, %20 : vector<4x4096xf32>
    %cst_9 = arith.constant 0.000000e+00 : f32
    %22 = vector.broadcast %cst_9 : f32 to vector<4x4096xf32>
    %23 = arith.maximumf %21, %22 : vector<4x4096xf32>
    %c0_10 = arith.constant 0 : index
    %c0_11 = arith.constant 0 : index
    %24 = vector.load %arg3[%c0_10, %c0_11] : memref<2x4xf32, #tpu.memory_space<vmem>>, vector<2x4xf32>
    %cst_12 = arith.constant dense<0.000000e+00> : vector<2x4096xf32>
    %25 = tpu.matmul %24, %23, %cst_12 {dimension_numbers = #tpu.dot_dimension_numbers<[1], [0], [0], [1], [0, 0, 1, 1], [], []>} : vector<2x4xf32>, vector<4x4096xf32>, vector<2x4096xf32> -> vector<2x4096xf32>
    %c0_13 = arith.constant 0 : index
    %c0_14 = arith.constant 0 : index
    %c0_15 = arith.constant 0 : index
    %26 = vector.load %arg4[%c0_13, %c0_14, %c0_15] : memref<1x2x4096xf32, #tpu.memory_space<vmem>>, vector<1x2x4096xf32>
    %27 = vector.shape_cast %26 : vector<1x2x4096xf32> to vector<2x4096xf32>
    %28 = vector.shape_cast %25 : vector<2x4096xf32> to vector<1x2x4096xf32>
    tpu.vector_store %arg4[%c0_13, %c0_14, %c0_15], %28 {strides = array<i32>} : memref<1x2x4096xf32, #tpu.memory_space<vmem>>, vector<1x2x4096xf32>,
    return
  }
  func.func @transform_0(%arg0: i32) -> (i32, i32, i32) {
    %c0_i32 = arith.constant 0 : i32
    %c0_i32_0 = arith.constant 0 : i32
    %c0_i32_1 = arith.constant 0 : i32
    return %arg0, %c0_i32, %c0_i32_0 : i32, i32, i32
  }
  func.func @transform_1(%arg0: i32) -> (i32, i32) {
    %c0_i32 = arith.constant 0 : i32
    %c0_i32_0 = arith.constant 0 : i32
    %c0_i32_1 = arith.constant 0 : i32
    return %c0_i32, %c0_i32_0 : i32, i32
  }
  func.func @transform_2(%arg0: i32) -> (i32, i32) {
    %c0_i32 = arith.constant 0 : i32
    %c0_i32_0 = arith.constant 0 : i32
    %c0_i32_1 = arith.constant 0 : i32
    return %c0_i32, %c0_i32_0 : i32, i32
  }
  func.func @transform_3(%arg0: i32) -> (i32, i32, i32) {
    %c0_i32 = arith.constant 0 : i32
    %c0_i32_0 = arith.constant 0 : i32
    %c0_i32_1 = arith.constant 0 : i32
    return %arg0, %c0_i32, %c0_i32_0 : i32, i32, i32
  }
}

</mosaic_0001>

<bundles_post_ra>
// kernel: context_unet_forward.9
= control target key start
LH: loop header
LB: loop body
LE: loop exit
PB: predicated region body
PF: predicated region fallthrough
CT: control target
= control target key end

     0   :  { %s1941_s9 = smov 0   ;;  %s2588_s0 = inlined_call_operand.vmem [shape: bf16[2,27,4096], index: 0, kind: input, shape index: {}]   ;;  %s2589_s1 = inlined_call_operand.vmem [shape: bf16[4,27], index: 1, kind: input, shape index: {}]   ;;  %s2590_s2 = inlined_call_operand.vmem [shape: bf16[2,4,4096], index: 2, kind: output, shape index: {}]  }
   0x1 LB: > { %s1793_s10 = sadd.s32 4294967295, %s1921_s9   ;;  %p1797_p0 = scmp.ge.s32.totalorder %s1921_s9, 1  ;;  %s1921_s9 = sphi %s1941_s9, %s12_s9  }
   0x2   : > { %p112_p1 = scmp.lt.s32.totalorder %s1921_s9, 3 }
   0x4   : > { %p113_p2 = pnand %p1797_p0, %p112_p1 }
   0x5   : > { %p134_p3 = scmp.lt.s32.totalorder (!%p113_p2), %s1793_s10, 1 }
   0x6   : > { %116 = sbr.rel (%p113_p2) target bundleno = 679 (0x2a7), region = 28 }
   0xb   : > { %vm502_vm0 = vcmask 1044480   ;;  %v1923_v0 = vmov 0   ;;  %s2592_s10 = smov (!%p134_p3, %s1793_s10), 1  ;;  %vm503_vm1 = vcmask 1045504   ;;  %v1924_v1 = vmov 65535  }
   0xc   : > { %634 = vmatprep.mubr.bf16.mxu0 %v1923_v0  ;;  %675 = vmatprep.mubr.bf16.mxu1 %v1923_v0  ;;  %v504_v2 = vsel %vm502_vm0, 4294967295, %v1924_v1  ;;  %s1900_s11 = sshll.u32 %s2592_s10, 9  ;;  %v1990_v42 = vld [vmem:[%s2589_s1] sm:$0x3]  ;;  %vm498_vm2 = vcmask 220160   ;;  %vm1258_vm3 = vcmask 1043456  }
   0xd   : > { %s1957_s14 = scalar_lea.vmem %s2588_s0, %s1900_s11  ;;  %v1961_v5 = vsel %vm503_vm1, %v504_v2, 0  ;;  %s1901_s17 = sshll.u32 %s2592_s10, 6 }
   0xe   : > { %v178_v3 = vld [vmem:[%s1957_s14 + $0x100] sm:$0xff]  ;;  %v179_v6 = vld [vmem:[%s1957_s14 + $0x108] sm:$0xff]  ;;  %v180_v16 = vld [vmem:[%s1957_s14 + $0x110] sm:$0xff]  ;;  %s2563_s20 = scalar_lea.vmem %s2590_s2, %s1901_s17 }
   0xf   : > { %v194_v4 = vld [vmem:[%s1957_s14 + $0x180] sm:$0x33]  ;;  %v195_v8 = vld [vmem:[%s1957_s14 + $0x188] sm:$0x33]  ;;  %v196_v20 = vld [vmem:[%s1957_s14 + $0x190] sm:$0x33] }
  0x10   : > { %v1835_v7 = vcombine.high %v178_v3, %v194_v4  ;;  %v1834_v9 = vcombine.low %v178_v3, %v194_v4  ;;  %v146_v10 = vld [vmem:[%s1957_s14] sm:$0xff]  ;;  %v1837_v12 = vcombine.high %v179_v6, %v195_v8  ;;  %v1836_v13 = vcombine.low %v179_v6, %v195_v8  ;;  %v147_v14 = vld [vmem:[%s1957_s14 + $0x8] sm:$0xff]  ;;  %v181_v21 = vld [vmem:[%s1957_s14 + $0x118] sm:$0xff] }
  0x11   : > { %v162_v11 = vld [vmem:[%s1957_s14 + $0x80] sm:$0xff]  ;;  %v163_v15 = vld [vmem:[%s1957_s14 + $0x88] sm:$0xff]  ;;  %v197_v22 = vld [vmem:[%s1957_s14 + $0x198] sm:$0x33]  ;;  %v1839_v26 = vcombine.high %v180_v16, %v196_v20  ;;  %v1838_v29 = vcombine.low %v180_v16, %v196_v20 }
  0x12   : > { %v510_v17 = vand.u32 %v1835_v7, %v1961_v5  ;;  %v507_v18 = vand.u32 %v1834_v9, %v1961_v5  ;;  %v1803_v19 = vcombine.high %v146_v10, %v162_v11  ;;  %v516_v23 = vand.u32 %v1837_v12, %v1961_v5  ;;  %v148_v33 = vld [vmem:[%s1957_s14 + $0x10] sm:$0xff]  ;;  %v149_v36 = vld [vmem:[%s1957_s14 + $0x18] sm:$0xff]  ;;  %v182_v37 = vld [vmem:[%s1957_s14 + $0x120] sm:$0xff] }
  0x13   : > { %v513_v24 = vand.u32 %v1836_v13, %v1961_v5  ;;  %v1805_v25 = vcombine.high %v147_v14, %v163_v15  ;;  %v1841_v27 = vcombine.high %v181_v21, %v197_v22  ;;  %v1802_v28 = vcombine.low %v146_v10, %v162_v11  ;;  %v164_v34 = vld [vmem:[%s1957_s14 + $0x90] sm:$0xff]  ;;  %v198_v38 = vld [vmem:[%s1957_s14 + $0x1a0] sm:$0x33]  ;;  %v165_v39 = vld [vmem:[%s1957_s14 + $0x98] sm:$0xff] }
  0x14   : > { %614 = vmatprep.subr.bf16.mxu0 %v510_v17  ;;  %655 = vmatprep.subr.bf16.mxu1 %v516_v23  ;;  %v1804_v30 = vcombine.low %v147_v14, %v163_v15  ;;  %v522_v31 = vand.u32 %v1839_v26, %v1961_v5  ;;  %v1840_v32 = vcombine.low %v181_v21, %v197_v22  ;;  %v183_v40 = vld [vmem:[%s1957_s14 + $0x128] sm:$0xff]  ;;  %v150_v54 = vld [vmem:[%s1957_s14 + $0x20] sm:$0xff]  ;;  %v184_v58 = vld [vmem:[%s1957_s14 + $0x130] sm:$0xff] }
  0x15   : > { %615 = vmatpush1.bf16.msra.mxu0 %v507_v18  ;;  %656 = vmatpush1.bf16.msra.mxu1 %v513_v24  ;;  %v528_v35 = vand.u32 %v1841_v27, %v1961_v5  ;;  %v199_v41 = vld [vmem:[%s1957_s14 + $0x1a8] sm:$0x33]  ;;  %v519_v43 = vand.u32 %v1838_v29, %v1961_v5  ;;  %v1807_v45 = vcombine.high %v148_v33, %v164_v34  ;;  %v166_v55 = vld [vmem:[%s1957_s14 + $0xa0] sm:$0xff]  ;;  %v200_v59 = vld [vmem:[%s1957_s14 + $0x1b0] sm:$0x33] }
  0x16   : > { %616 = vmatprep.subr.bf16.mxu0 %v1803_v19  ;;  %657 = vmatprep.subr.bf16.mxu1 %v1805_v25  ;;  %v525_v44 = vand.u32 %v1840_v32, %v1961_v5  ;;  %v1843_v46 = vcombine.high %v182_v37, %v198_v38  ;;  %v1809_v47 = vcombine.high %v149_v36, %v165_v39  ;;  %v151_v57 = vld [vmem:[%s1957_s14 + $0x28] sm:$0xff]  ;;  %v185_v61 = vld [vmem:[%s1957_s14 + $0x138] sm:$0xff]  ;;  %v152_v12 = vld [vmem:[%s1957_s14 + $0x30] sm:$0xff] }
  0x17   : > { %v1845_v48 = vcombine.high %v183_v40, %v199_v41  ;;  %v1806_v49 = vcombine.low %v148_v33, %v164_v34  ;;  %v1842_v50 = vcombine.low %v182_v37, %v198_v38  ;;  %v1808_v51 = vcombine.low %v149_v36, %v165_v39  ;;  %v167_v60 = vld [vmem:[%s1957_s14 + $0xa8] sm:$0xff]  ;;  %v201_v62 = vld [vmem:[%s1957_s14 + $0x1b8] sm:$0x33]  ;;  %v168_v13 = vld [vmem:[%s1957_s14 + $0xb0] sm:$0xff] }
  0x18   : > { %v534_v52 = vand.u32 %v1843_v46, %v1961_v5  ;;  %v1844_v53 = vcombine.low %v183_v40, %v199_v41  ;;  %v1811_v2 = vcombine.high %v150_v54, %v166_v55  ;;  %v1847_v3 = vcombine.high %v184_v58, %v200_v59  ;;  %v153_v15 = vld [vmem:[%s1957_s14 + $0x38] sm:$0xff]  ;;  %v186_v16 = vld [vmem:[%s1957_s14 + $0x140] sm:$0xff]  ;;  %v187_v19 = vld [vmem:[%s1957_s14 + $0x148] sm:$0xff] }
  0x19   : > { %617 = vmatpush1.bf16.msra.mxu0 %v1802_v28  ;;  %658 = vmatpush1.bf16.msra.mxu1 %v1804_v30  ;;  %v540_v56 = vand.u32 %v1845_v48, %v1961_v5  ;;  %v531_v63 = vand.u32 %v1842_v50, %v1961_v5  ;;  %v1813_v4 = vcombine.high %v151_v57, %v167_v60  ;;  %v202_v17 = vld [vmem:[%s1957_s14 + $0x1c0] sm:$0x33]  ;;  %v169_v18 = vld [vmem:[%s1957_s14 + $0xb8] sm:$0xff]  ;;  %v203_v20 = vld [vmem:[%s1957_s14 + $0x1c8] sm:$0x33] }
  0x1a   : > { %696 = vmatprep.subr.bf16.mxu0 %v522_v31  ;;  %737 = vmatprep.subr.bf16.mxu1 %v528_v35  ;;  %v537_v1 = vand.u32 %v1844_v53, %v1961_v5  ;;  %v1849_v6 = vcombine.high %v185_v61, %v201_v62  ;;  %v1810_v7 = vcombine.low %v150_v54, %v166_v55  ;;  %v154_v32 = vld [vmem:[%s1957_s14 + $0x40] sm:$0xff]  ;;  %v155_v35 = vld [vmem:[%s1957_s14 + $0x48] sm:$0xff]  ;;  %v188_v36 = vld [vmem:[%s1957_s14 + $0x150] sm:$0xff] }
  0x1b   : > { %v1846_v8 = vcombine.low %v184_v58, %v200_v59  ;;  %v1812_v9 = vcombine.low %v151_v57, %v167_v60  ;;  %v546_v10 = vand.u32 %v1847_v3, %v1961_v5  ;;  %v1848_v11 = vcombine.low %v185_v61, %v201_v62  ;;  %v170_v33 = vld [vmem:[%s1957_s14 + $0xc0] sm:$0xff]  ;;  %v204_v37 = vld [vmem:[%s1957_s14 + $0x1d0] sm:$0x33]  ;;  %v171_v38 = vld [vmem:[%s1957_s14 + $0xc8] sm:$0xff] }
  0x1c   : > { %1866 = vmatmul.mubr.msk.bf16.vlgmr.msra.gmra.mxu0 %vm498_vm2, %v1990_v42  ;;  %1867 = vmatmul.mubr.msk.bf16.vlgmr.msra.gmra.mxu1 %vm498_vm2, %v1990_v42  ;;  %v552_v14 = vand.u32 %v1849_v6, %v1961_v5  ;;  %v1815_v23 = vcombine.high %v152_v12, %v168_v13  ;;  %v1851_v24 = vcombine.high %v186_v16, %v202_v17  ;;  %v189_v39 = vld [vmem:[%s1957_s14 + $0x158] sm:$0xff]  ;;  %v156_v53 = vld [vmem:[%s1957_s14 + $0x50] sm:$0xff]  ;;  %v190_v57 = vld [vmem:[%s1957_s14 + $0x160] sm:$0xff] }
  0x1d   : > { %697 = vmatpush1.bf16.msra.mxu0 %v519_v43  ;;  %738 = vmatpush1.bf16.msra.mxu1 %v525_v44  ;;  %v543_v21 = vand.u32 %v1846_v8, %v1961_v5  ;;  %v549_v22 = vand.u32 %v1848_v11, %v1961_v5  ;;  %v1817_v25 = vcombine.high %v153_v15, %v169_v18  ;;  %v205_v40 = vld [vmem:[%s1957_s14 + $0x1d8] sm:$0x33]  ;;  %v172_v54 = vld [vmem:[%s1957_s14 + $0xd0] sm:$0xff]  ;;  %v206_v58 = vld [vmem:[%s1957_s14 + $0x1e0] sm:$0x33] }
  0x1e   : > { %698 = vmatprep.subr.bf16.mxu0 %v1807_v45  ;;  %739 = vmatprep.subr.bf16.mxu1 %v1809_v47  ;;  %v1853_v26 = vcombine.high %v187_v19, %v203_v20  ;;  %v1814_v27 = vcombine.low %v152_v12, %v168_v13  ;;  %v1850_v28 = vcombine.low %v186_v16, %v202_v17  ;;  %v173_v59 = vld [vmem:[%s1957_s14 + $0xd8] sm:$0xff]  ;;  %v191_v60 = vld [vmem:[%s1957_s14 + $0x168] sm:$0xff]  ;;  %v158_v11 = vld [vmem:[%s1957_s14 + $0x60] sm:$0xff] }
  0x1f   : > { %716 = vmatprep.mubr.bf16.mxu0 %v1923_v0  ;;  %757 = vmatprep.mubr.bf16.mxu1 %v1923_v0  ;;  %v1816_v29 = vcombine.low %v153_v15, %v169_v18  ;;  %v558_v30 = vand.u32 %v1851_v24, %v1961_v5  ;;  %v1852_v31 = vcombine.low %v187_v19, %v203_v20  ;;  %v207_v61 = vld [vmem:[%s1957_s14 + $0x1e8] sm:$0x33]  ;;  %v174_v12 = vld [vmem:[%s1957_s14 + $0xe0] sm:$0xff]  ;;  %v192_v15 = vld [vmem:[%s1957_s14 + $0x170] sm:$0xff] }
  0x20   : > { %v564_v34 = vand.u32 %v1853_v26, %v1961_v5  ;;  %v555_v41 = vand.u32 %v1850_v28, %v1961_v5  ;;  %v1819_v44 = vcombine.high %v154_v32, %v170_v33  ;;  %v1855_v45 = vcombine.high %v188_v36, %v204_v37  ;;  %v208_v16 = vld [vmem:[%s1957_s14 + $0x1f0] sm:$0x33]  ;;  %v175_v17 = vld [vmem:[%s1957_s14 + $0xe8] sm:$0xff]  ;;  %v193_v18 = vld [vmem:[%s1957_s14 + $0x178] sm:$0xff] }
  0x21   : > { %699 = vmatpush1.bf16.msra.mxu0 %v1806_v49  ;;  %740 = vmatpush1.bf16.msra.mxu1 %v1808_v51  ;;  %v561_v43 = vand.u32 %v1852_v31, %v1961_v5  ;;  %v1821_v46 = vcombine.high %v155_v35, %v171_v38  ;;  %v1857_v47 = vcombine.high %v189_v39, %v205_v40  ;;  %v209_v19 = vld [vmem:[%s1957_s14 + $0x1f8] sm:$0x33] }
  0x22   : > { %778 = vmatprep.subr.bf16.mxu0 %v534_v52  ;;  %819 = vmatprep.subr.bf16.mxu1 %v540_v56  ;;  %v1818_v48 = vcombine.low %v154_v32, %v170_v33  ;;  %v1854_v49 = vcombine.low %v188_v36, %v204_v37  ;;  %v1820_v50 = vcombine.low %v155_v35, %v171_v38  ;;  %v157_v56 = vld [vmem:[%s1957_s14 + $0x58] sm:$0xff]  ;;  %v160_v32 = vld [vmem:[%s1957_s14 + $0x70] sm:$0xff] }
  0x23   : > { %v570_v51 = vand.u32 %v1855_v45, %v1961_v5  ;;  %v1856_v52 = vcombine.low %v189_v39, %v205_v40  ;;  %v576_v55 = vand.u32 %v1857_v47, %v1961_v5  ;;  %v1825_v3 = vcombine.high %v157_v56, %v173_v59  ;;  %v176_v33 = vld [vmem:[%s1957_s14 + $0xf0] sm:$0xff]  ;;  %v177_v35 = vld [vmem:[%s1957_s14 + $0xf8] sm:$0xff] }
  0x24   : > { %1868 = vmatmul.mubr.msk.bf16.vlgmr.msra.gmra.mxu0 %vm498_vm2, %v1990_v42  ;;  %1869 = vmatmul.mubr.msk.bf16.vlgmr.msra.gmra.mxu1 %vm498_vm2, %v1990_v42  ;;  %v567_v62 = vand.u32 %v1854_v49, %v1961_v5  ;;  %v1822_v6 = vcombine.low %v156_v53, %v172_v54  ;;  %v1824_v8 = vcombine.low %v157_v56, %v173_v59 }
  0x25   : > { %779 = vmatpush1.bf16.msra.mxu0 %v531_v63  ;;  %820 = vmatpush1.bf16.msra.mxu1 %v537_v1  ;;  %v573_v63 = vand.u32 %v1856_v52, %v1961_v5  ;;  %v1823_v1 = vcombine.high %v156_v53, %v172_v54  ;;  %v1826_v26 = vcombine.low %v158_v11, %v174_v12 }
  0x26   : > { %780 = vmatprep.subr.bf16.mxu0 %v1811_v2  ;;  %821 = vmatprep.subr.bf16.mxu1 %v1813_v4  ;;  %v1859_v2 = vcombine.high %v190_v57, %v206_v58  ;;  %v1861_v4 = vcombine.high %v191_v60, %v207_v61  ;;  %v1831_v38 = vcombine.high %v160_v32, %v176_v33 }
  0x27   : > { %798 = vmatprep.mubr.bf16.mxu0 %v1923_v0  ;;  %839 = vmatprep.mubr.bf16.mxu1 %v1923_v0  ;;  %v1830_v40 = vcombine.low %v160_v32, %v176_v33 }
  0x28   : > { %v588_v13 = vand.u32 %v1861_v4, %v1961_v5 }
  0x29   : > { %781 = vmatpush1.bf16.msra.mxu0 %v1810_v7  ;;  %822 = vmatpush1.bf16.msra.mxu1 %v1812_v9  ;;  %v1858_v7 = vcombine.low %v190_v57, %v206_v58  ;;  %v582_v9 = vand.u32 %v1859_v2, %v1961_v5 }
  0x2a   : > { %860 = vmatprep.subr.bf16.mxu0 %v546_v10  ;;  %901 = vmatprep.subr.bf16.mxu1 %v552_v14  ;;  %v1860_v10 = vcombine.low %v191_v60, %v207_v61  ;;  %v159_v14 = vld [vmem:[%s1957_s14 + $0x68] sm:$0xff] }
  0x2b   : > { %v579_v20 = vand.u32 %v1858_v7, %v1961_v5  ;;  %v1829_v24 = vcombine.high %v159_v14, %v175_v17  ;;  %v1828_v28 = vcombine.low %v159_v14, %v175_v17 }
  0x2c   : > { %1870 = vmatmul.mubr.msk.bf16.vlgmr.msra.gmra.mxu0 %vm498_vm2, %v1990_v42  ;;  %1871 = vmatmul.mubr.msk.bf16.vlgmr.msra.gmra.mxu1 %vm498_vm2, %v1990_v42 }
  0x2d   : > { %861 = vmatpush1.bf16.msra.mxu0 %v543_v21  ;;  %902 = vmatpush1.bf16.msra.mxu1 %v549_v22  ;;  %v585_v21 = vand.u32 %v1860_v10, %v1961_v5  ;;  %v1827_v22 = vcombine.high %v158_v11, %v174_v12 }
  0x2e   : > { %862 = vmatprep.subr.bf16.mxu0 %v1815_v23  ;;  %903 = vmatprep.subr.bf16.mxu1 %v1817_v25  ;;  %v1863_v23 = vcombine.high %v192_v15, %v208_v16  ;;  %v1865_v25 = vcombine.high %v193_v18, %v209_v19 }
  0x2f   : > { %880 = vmatprep.mubr.bf16.mxu0 %v1923_v0  ;;  %921 = vmatprep.mubr.bf16.mxu1 %v1923_v0 }
  0x30   : > { %v600_v31 = vand.u32 %v1865_v25, %v1961_v5 }
  0x31   : > { %863 = vmatpush1.bf16.msra.mxu0 %v1814_v27  ;;  %904 = vmatpush1.bf16.msra.mxu1 %v1816_v29  ;;  %v1862_v27 = vcombine.low %v192_v15, %v208_v16  ;;  %v594_v29 = vand.u32 %v1863_v23, %v1961_v5 }
  0x32   : > { %942 = vmatprep.subr.bf16.mxu0 %v558_v30  ;;  %983 = vmatprep.subr.bf16.mxu1 %v564_v34  ;;  %v1864_v30 = vcombine.low %v193_v18, %v209_v19  ;;  %v161_v34 = vld [vmem:[%s1957_s14 + $0x78] sm:$0xff] }
  0x33   : > { %v591_v36 = vand.u32 %v1862_v27, %v1961_v5  ;;  %v1833_v39 = vcombine.high %v161_v34, %v177_v35 }
  0x34   : > { %1872 = vmatmul.mubr.msk.bf16.vlgmr.msra.gmra.mxu0 %vm498_vm2, %v1990_v42  ;;  %1873 = vmatmul.mubr.msk.bf16.vlgmr.msra.gmra.mxu1 %vm498_vm2, %v1990_v42  ;;  %v597_v37 = vand.u32 %v1864_v30, %v1961_v5 }
  0x35   : > { %943 = vmatpush1.bf16.msra.mxu0 %v555_v41  ;;  %984 = vmatpush1.bf16.msra.mxu1 %v561_v43  ;;  %v1832_v41 = vcombine.low %v161_v34, %v177_v35 }
  0x36   : > { %944 = vmatprep.subr.bf16.mxu0 %v1819_v44  ;;  %985 = vmatprep.subr.bf16.mxu1 %v1821_v46 }
  0x37   : > { %962 = vmatprep.mubr.bf16.mxu0 %v1923_v0  ;;  %1003 = vmatprep.mubr.bf16.mxu1 %v1923_v0 }
  0x39   : > { %945 = vmatpush1.bf16.msra.mxu0 %v1818_v48  ;;  %986 = vmatpush1.bf16.msra.mxu1 %v1820_v50 }
  0x3a   : > { %1024 = vmatprep.subr.bf16.mxu0 %v570_v51  ;;  %1065 = vmatprep.subr.bf16.mxu1 %v576_v55 }
  0x3c   : > { %1874 = vmatmul.mubr.msk.bf16.vlgmr.msra.gmra.mxu0 %vm498_vm2, %v1990_v42  ;;  %1875 = vmatmul.mubr.msk.bf16.vlgmr.msra.gmra.mxu1 %vm498_vm2, %v1990_v42 }
  0x3d   : > { %1025 = vmatpush1.bf16.msra.mxu0 %v567_v62  ;;  %1066 = vmatpush1.bf16.msra.mxu1 %v573_v63 }
  0x3e   : > { %1026 = vmatprep.subr.bf16.mxu0 %v1823_v1  ;;  %1067 = vmatprep.subr.bf16.mxu1 %v1825_v3 }
  0x3f   : > { %1044 = vmatprep.mubr.bf16.mxu0 %v1923_v0  ;;  %1085 = vmatprep.mubr.bf16.mxu1 %v1923_v0 }
  0x41   : > { %1027 = vmatpush1.bf16.msra.mxu0 %v1822_v6  ;;  %1068 = vmatpush1.bf16.msra.mxu1 %v1824_v8 }
  0x42   : > { %1106 = vmatprep.subr.bf16.mxu0 %v582_v9  ;;  %1147 = vmatprep.subr.bf16.mxu1 %v588_v13 }
  0x44   : > { %1876 = vmatmul.mubr.msk.bf16.vlgmr.msra.gmra.mxu0 %vm498_vm2, %v1990_v42  ;;  %1877 = vmatmul.mubr.msk.bf16.vlgmr.msra.gmra.mxu1 %vm498_vm2, %v1990_v42 }
  0x45   : > { %1107 = vmatpush1.bf16.msra.mxu0 %v579_v20  ;;  %1148 = vmatpush1.bf16.msra.mxu1 %v585_v21 }
  0x46   : > { %1108 = vmatprep.subr.bf16.mxu0 %v1827_v22  ;;  %1149 = vmatprep.subr.bf16.mxu1 %v1829_v24 }
  0x47   : > { %1126 = vmatprep.mubr.bf16.mxu0 %v1923_v0  ;;  %1167 = vmatprep.mubr.bf16.mxu1 %v1923_v0 }
  0x49   : > { %1109 = vmatpush1.bf16.msra.mxu0 %v1826_v26  ;;  %1150 = vmatpush1.bf16.msra.mxu1 %v1828_v28 }
  0x4a   : > { %1188 = vmatprep.subr.bf16.mxu0 %v594_v29  ;;  %1229 = vmatprep.subr.bf16.mxu1 %v600_v31 }
  0x4c   : > { %1878 = vmatmul.mubr.msk.bf16.vlgmr.msra.gmra.mxu0 %vm498_vm2, %v1990_v42  ;;  %1879 = vmatmul.mubr.msk.bf16.vlgmr.msra.gmra.mxu1 %vm498_vm2, %v1990_v42 }
  0x4d   : > { %1189 = vmatpush1.bf16.msra.mxu0 %v591_v36  ;;  %1230 = vmatpush1.bf16.msra.mxu1 %v597_v37 }
  0x4e   : > { %1190 = vmatprep.subr.bf16.mxu0 %v1831_v38  ;;  %1231 = vmatprep.subr.bf16.mxu1 %v1833_v39 }
  0x4f   : > { %1208 = vmatprep.mubr.bf16.mxu0 %v1923_v0  ;;  %1249 = vmatprep.mubr.bf16.mxu1 %v1923_v0 }
  0x51   : > { %1191 = vmatpush1.bf16.msra.mxu0 %v1830_v40  ;;  %1232 = vmatpush1.bf16.msra.mxu1 %v1832_v41 }
  0x54   : > { %1880 = vmatmul.mubr.msk.bf16.vlgmr.msra.gmra.mxu0 %vm498_vm2, %v1990_v42  ;;  %1881 = vmatmul.mubr.msk.bf16.vlgmr.msra.gmra.mxu1 %vm498_vm2, %v1990_v42 }
  0xdc   : > { %v2108_v5 = vpop.f32.mrf.mxu0  ;;  %v2110_v43 = vpop.f32.mrf.mxu1 }
  0xdd   : > { %v1259_v45 = vsel %vm1258_vm3, %v2108_v5, 0.0  ;;  %v1262_v0 = vsel %vm1258_vm3, %v2110_v43, 0.0 }
  0xde   : > { %v2112_v44 = vpop.f32.mrf.mxu0  ;;  %v2120_v47 = vpop.f32.mrf.mxu1 }
  0xdf   : > { %v1260_v46 = vsel %vm1258_vm3, %v2112_v44, 0.0  ;;  %v1264_v52 = vsel %vm1258_vm3, %v2120_v47, 0.0 }
  0xe0   : > { %v1261_v48 = vadd.f32 %v1260_v46, %v1259_v45  ;;  %v640_v42 = vpop.f32.mrf.mxu0  ;;  %v681_v49 = vpop.f32.mrf.mxu1 }
  0xe2   : > { %v1263_v50 = vadd.f32 %v1262_v0, %v1261_v48  ;;  %v641_v51 = vpop.f32.mrf.mxu0  ;;  %v682_v53 = vpop.f32.mrf.mxu1 }
  0xe4   : > { %v1265_v54 = vadd.f32 %v1264_v52, %v1263_v50  ;;  %v2124_v55 = vpop.f32.mrf.mxu0  ;;  %v2128_v57 = vpop.f32.mrf.mxu1 }
  0xe5   : > { %v1266_v56 = vsel %vm1258_vm3, %v2124_v55, 0.0  ;;  %v1270_v60 = vsel %vm1258_vm3, %v2128_v57, 0.0 }
  0xe6   : > { %v1267_v58 = vadd.f32 %v1266_v56, %v1265_v54  ;;  %v2130_v59 = vpop.f32.mrf.mxu0  ;;  %v2136_v62 = vpop.f32.mrf.mxu1 }
  0xe7   : > { %v1268_v61 = vsel %vm1258_vm3, %v2130_v59, 0.0  ;;  %v1272_v6 = vsel %vm1258_vm3, %v2136_v62, 0.0 }
  0xe8   : > { %v1269_v63 = vadd.f32 %v1268_v61, %v1267_v58  ;;  %v722_v1 = vpop.f32.mrf.mxu0  ;;  %v763_v2 = vpop.f32.mrf.mxu1 }
  0xea   : > { %v1271_v3 = vadd.f32 %v1270_v60, %v1269_v63  ;;  %v723_v4 = vpop.f32.mrf.mxu0  ;;  %v764_v7 = vpop.f32.mrf.mxu1 }
  0xec   : > { %v1273_v8 = vadd.f32 %v1272_v6, %v1271_v3  ;;  %v2140_v9 = vpop.f32.mrf.mxu0  ;;  %v2144_v11 = vpop.f32.mrf.mxu1 }
  0xed   : > { %v1274_v10 = vsel %vm1258_vm3, %v2140_v9, 0.0  ;;  %v1278_v14 = vsel %vm1258_vm3, %v2144_v11, 0.0 }
  0xee   : > { %v1275_v12 = vadd.f32 %v1274_v10, %v1273_v8  ;;  %v2146_v13 = vpop.f32.mrf.mxu0  ;;  %v2152_v16 = vpop.f32.mrf.mxu1 }
  0xef   : > { %v1276_v15 = vsel %vm1258_vm3, %v2146_v13, 0.0  ;;  %v1280_v22 = vsel %vm1258_vm3, %v2152_v16, 0.0 }
  0xf0   : > { %v1277_v17 = vadd.f32 %v1276_v15, %v1275_v12  ;;  %v804_v18 = vpop.f32.mrf.mxu0  ;;  %v845_v19 = vpop.f32.mrf.mxu1 }
  0xf2   : > { %v1279_v20 = vadd.f32 %v1278_v14, %v1277_v17  ;;  %v805_v21 = vpop.f32.mrf.mxu0  ;;  %v846_v23 = vpop.f32.mrf.mxu1 }
  0xf4   : > { %v1281_v24 = vadd.f32 %v1280_v22, %v1279_v20  ;;  %v2156_v25 = vpop.f32.mrf.mxu0  ;;  %v2160_v27 = vpop.f32.mrf.mxu1 }
  0xf5   : > { %v1282_v26 = vsel %vm1258_vm3, %v2156_v25, 0.0  ;;  %v1286_v30 = vsel %vm1258_vm3, %v2160_v27, 0.0 }
  0xf6   : > { %v1283_v28 = vadd.f32 %v1282_v26, %v1281_v24  ;;  %v2162_v29 = vpop.f32.mrf.mxu0  ;;  %v2168_v32 = vpop.f32.mrf.mxu1 }
  0xf7   : > { %v1284_v31 = vsel %vm1258_vm3, %v2162_v29, 0.0  ;;  %v1288_v38 = vsel %vm1258_vm3, %v2168_v32, 0.0 }
  0xf8   : > { %v1285_v33 = vadd.f32 %v1284_v31, %v1283_v28  ;;  %v886_v34 = vpop.f32.mrf.mxu0  ;;  %v927_v35 = vpop.f32.mrf.mxu1 }
  0xfa   : > { %v1287_v36 = vadd.f32 %v1286_v30, %v1285_v33  ;;  %v887_v37 = vpop.f32.mrf.mxu0  ;;  %v928_v39 = vpop.f32.mrf.mxu1 }
  0xfc   : > { %v1289_v40 = vadd.f32 %v1288_v38, %v1287_v36  ;;  %v2172_v41 = vpop.f32.mrf.mxu0  ;;  %v2176_v0 = vpop.f32.mrf.mxu1 }
  0xfd   : > { %v1290_v45 = vsel %vm1258_vm3, %v2172_v41, 0.0  ;;  %v1294_v42 = vsel %vm1258_vm3, %v2176_v0, 0.0 }
  0xfe   : > { %v1291_v46 = vadd.f32 %v1290_v45, %v1289_v40  ;;  %v2178_v48 = vpop.f32.mrf.mxu0  ;;  %v2184_v50 = vpop.f32.mrf.mxu1 }
  0xff   : > { %v1292_v49 = vsel %vm1258_vm3, %v2178_v48, 0.0  ;;  %v1296_v58 = vsel %vm1258_vm3, %v2184_v50, 0.0 }
 0x100   : > { %v1293_v51 = vadd.f32 %v1292_v49, %v1291_v46  ;;  %v968_v52 = vpop.f32.mrf.mxu0  ;;  %v1009_v53 = vpop.f32.mrf.mxu1 }
 0x102   : > { %v1295_v54 = vadd.f32 %v1294_v42, %v1293_v51  ;;  %v969_v56 = vpop.f32.mrf.mxu0  ;;  %v1010_v60 = vpop.f32.mrf.mxu1 }
 0x104   : > { %v1297_v61 = vadd.f32 %v1296_v58, %v1295_v54  ;;  %v2188_v63 = vpop.f32.mrf.mxu0  ;;  %v2192_v2 = vpop.f32.mrf.mxu1 }
 0x105   : > { %v1298_v1 = vsel %vm1258_vm3, %v2188_v63, 0.0  ;;  %v1302_v6 = vsel %vm1258_vm3, %v2192_v2, 0.0 }
 0x106   : > { %v1299_v3 = vadd.f32 %v1298_v1, %v1297_v61  ;;  %v2194_v4 = vpop.f32.mrf.mxu0  ;;  %v2200_v8 = vpop.f32.mrf.mxu1 }
 0x107   : > { %v1300_v7 = vsel %vm1258_vm3, %v2194_v4, 0.0  ;;  %v1304_v18 = vsel %vm1258_vm3, %v2200_v8, 0.0 }
 0x108   : > { %v1301_v10 = vadd.f32 %v1300_v7, %v1299_v3  ;;  %v1050_v12 = vpop.f32.mrf.mxu0  ;;  %v1091_v14 = vpop.f32.mrf.mxu1 }
 0x10a   : > { %v1303_v15 = vadd.f32 %v1302_v6, %v1301_v10  ;;  %v1051_v17 = vpop.f32.mrf.mxu0  ;;  %v1092_v19 = vpop.f32.mrf.mxu1 }
 0x10c   : > { %v1305_v20 = vadd.f32 %v1304_v18, %v1303_v15  ;;  %v2204_v21 = vpop.f32.mrf.mxu0  ;;  %v2208_v23 = vpop.f32.mrf.mxu1 }
 0x10d   : > { %v1306_v22 = vsel %vm1258_vm3, %v2204_v21, 0.0  ;;  %v1310_v28 = vsel %vm1258_vm3, %v2208_v23, 0.0 }
 0x10e   : > { %v1307_v24 = vadd.f32 %v1306_v22, %v1305_v20  ;;  %v2210_v26 = vpop.f32.mrf.mxu0  ;;  %v2216_v31 = vpop.f32.mrf.mxu1 }
 0x10f   : > { %v1308_v30 = vsel %vm1258_vm3, %v2210_v26, 0.0  ;;  %v1312_v38 = vsel %vm1258_vm3, %v2216_v31, 0.0 }
 0x110   : > { %v1309_v33 = vadd.f32 %v1308_v30, %v1307_v24  ;;  %v1132_v34 = vpop.f32.mrf.mxu0  ;;  %v1173_v35 = vpop.f32.mrf.mxu1 }
 0x112   : > { %v1311_v36 = vadd.f32 %v1310_v28, %v1309_v33  ;;  %v1133_v37 = vpop.f32.mrf.mxu0  ;;  %v1174_v39 = vpop.f32.mrf.mxu1 }
 0x114   : > { %v1313_v40 = vadd.f32 %v1312_v38, %v1311_v36  ;;  %v2220_v45 = vpop.f32.mrf.mxu0  ;;  %v2224_v42 = vpop.f32.mrf.mxu1 }
 0x115   : > { %v1314_v46 = vsel %vm1258_vm3, %v2220_v45, 0.0  ;;  %v1318_v52 = vsel %vm1258_vm3, %v2224_v42, 0.0 }
 0x116   : > { %v1315_v49 = vadd.f32 %v1314_v46, %v1313_v40  ;;  %v2226_v51 = vpop.f32.mrf.mxu0  ;;  %v2232_v54 = vpop.f32.mrf.mxu1 }
 0x117   : > { %v1316_v53 = vsel %vm1258_vm3, %v2226_v51, 0.0  ;;  %v1320_v6 = vsel %vm1258_vm3, %v2232_v54, 0.0 }
 0x118   : > { %v1317_v56 = vadd.f32 %v1316_v53, %v1315_v49  ;;  %v1214_v58 = vpop.f32.mrf.mxu0  ;;  %v1255_v60 = vpop.f32.mrf.mxu1 }
 0x11a   : > { %v1215_v61 = vpop.f32.mrf.mxu0  ;;  %v1319_v1 = vadd.f32 %v1318_v52, %v1317_v56  ;;  %v1256_v3 = vpop.f32.mrf.mxu1 }
 0x11c   : > { %v1321_v7 = vadd.f32 %v1320_v6, %v1319_v1 }
 0x11e   : > { %1322 = vadd.xlane.f32.xlu0 %v1321_v7 }
 0x1a7   : > { %v1323_v10 = vpop.xlane.xlu0 %1322 }
 0x1a8   : > { %v2236_v12 = vmul.f32 0.00024414063, %v1323_v10 }
 0x1aa   : > { %v2240_v14 = vsub.f32 %v2108_v5, %v2236_v12  ;;  %v2244_v15 = vsub.f32 %v2112_v44, %v2236_v12  ;;  %v2248_v17 = vsub.f32 %v2110_v43, %v2236_v12  ;;  %v2252_v18 = vsub.f32 %v2120_v47, %v2236_v12 }
 0x1ab   : > { %v2260_v5 = vsub.f32 %v2124_v55, %v2236_v12  ;;  %v2266_v43 = vsub.f32 %v2130_v59, %v2236_v12  ;;  %v2274_v30 = vsub.f32 %v2128_v57, %v2236_v12  ;;  %v2281_v59 = vsub.f32 %v2136_v62, %v2236_v12 }
 0x1ac   : > { %v1358_v19 = vmul.f32 %v2240_v14, %v2240_v14  ;;  %v1359_v20 = vmul.f32 %v2244_v15, %v2244_v15  ;;  %v1360_v44 = vmul.f32 %v2248_v17, %v2248_v17  ;;  %v1361_v47 = vmul.f32 %v2252_v18, %v2252_v18 }
 0x1ad   : > { %v1362_v55 = vmul.f32 %v2260_v5, %v2260_v5  ;;  %v1363_v35 = vmul.f32 %v2266_v43, %v2266_v43  ;;  %v2288_v57 = vsub.f32 %v2140_v9, %v2236_v12  ;;  %v1364_v38 = vmul.f32 %v2274_v30, %v2274_v30 }
 0x1ae   : > { %v1390_v22 = vsel %vm1258_vm3, %v1358_v19, 0.0  ;;  %v1391_v24 = vsel %vm1258_vm3, %v1359_v20, 0.0  ;;  %v1393_v33 = vsel %vm1258_vm3, %v1360_v44, 0.0  ;;  %v1395_v36 = vsel %vm1258_vm3, %v1361_v47, 0.0 }
 0x1af   : > { %v1392_v28 = vadd.f32 %v1391_v24, %v1390_v22  ;;  %v1397_v39 = vsel %vm1258_vm3, %v1362_v55, 0.0  ;;  %v2295_v62 = vsub.f32 %v2146_v13, %v2236_v12  ;;  %v1365_v46 = vmul.f32 %v2281_v59, %v2281_v59 }
 0x1b0   : > { %v1399_v49 = vsel %vm1258_vm3, %v1363_v35, 0.0  ;;  %v2302_v9 = vsub.f32 %v2144_v11, %v2236_v12  ;;  %v1366_v53 = vmul.f32 %v2288_v57, %v2288_v57  ;;  %v1401_v56 = vsel %vm1258_vm3, %v1364_v38, 0.0 }
 0x1b1   : > { %v1394_v34 = vadd.f32 %v1393_v33, %v1392_v28  ;;  %v2309_v13 = vsub.f32 %v2152_v16, %v2236_v12  ;;  %v1367_v60 = vmul.f32 %v2295_v62, %v2295_v62  ;;  %v1403_v61 = vsel %vm1258_vm3, %v1365_v46, 0.0 }
 0x1b2   : > { %v2316_v11 = vsub.f32 %v2156_v25, %v2236_v12  ;;  %v1368_v3 = vmul.f32 %v2302_v9, %v2302_v9  ;;  %v1405_v6 = vsel %vm1258_vm3, %v1366_v53, 0.0  ;;  %v2323_v16 = vsub.f32 %v2162_v29, %v2236_v12 }
 0x1b3   : > { %v1396_v37 = vadd.f32 %v1395_v36, %v1394_v34  ;;  %v1369_v10 = vmul.f32 %v2309_v13, %v2309_v13  ;;  %v1407_v19 = vsel %vm1258_vm3, %v1367_v60, 0.0  ;;  %v2330_v25 = vsub.f32 %v2160_v27, %v2236_v12 }
 0x1b4   : > { %v1370_v44 = vmul.f32 %v2316_v11, %v2316_v11  ;;  %v1409_v47 = vsel %vm1258_vm3, %v1368_v3, 0.0  ;;  %v2337_v29 = vsub.f32 %v2168_v32, %v2236_v12  ;;  %v1371_v24 = vmul.f32 %v2323_v16, %v2323_v16 }
 0x1b5   : > { %v1398_v40 = vadd.f32 %v1397_v39, %v1396_v37  ;;  %v1411_v28 = vsel %vm1258_vm3, %v1369_v10, 0.0  ;;  %v2344_v27 = vsub.f32 %v2172_v41, %v2236_v12  ;;  %v1372_v33 = vmul.f32 %v2330_v25, %v2330_v25 }
 0x1b6   : > { %v1413_v34 = vsel %vm1258_vm3, %v1370_v44, 0.0  ;;  %v2351_v32 = vsub.f32 %v2178_v48, %v2236_v12  ;;  %v1373_v36 = vmul.f32 %v2337_v29, %v2337_v29  ;;  %v1415_v37 = vsel %vm1258_vm3, %v1371_v24, 0.0 }
 0x1b7   : > { %v1400_v52 = vadd.f32 %v1399_v49, %v1398_v40  ;;  %v2358_v41 = vsub.f32 %v2176_v0, %v2236_v12  ;;  %v1374_v39 = vmul.f32 %v2344_v27, %v2344_v27  ;;  %v1417_v40 = vsel %vm1258_vm3, %v1372_v33, 0.0 }
 0x1b8   : > { %v2365_v48 = vsub.f32 %v2184_v50, %v2236_v12  ;;  %v1375_v49 = vmul.f32 %v2351_v32, %v2351_v32  ;;  %v2372_v0 = vsub.f32 %v2188_v63, %v2236_v12  ;;  %v2379_v50 = vsub.f32 %v2194_v4, %v2236_v12 }
 0x1b9   : > { %v1402_v58 = vadd.f32 %v1401_v56, %v1400_v52  ;;  %v1419_v52 = vsel %vm1258_vm3, %v1373_v36, 0.0  ;;  %v1376_v56 = vmul.f32 %v2358_v41, %v2358_v41  ;;  %v2386_v63 = vsub.f32 %v2192_v2, %v2236_v12 }
 0x1ba   : > { %v2393_v4 = vsub.f32 %v2200_v8, %v2236_v12  ;;  %v2400_v2 = vsub.f32 %v2204_v21, %v2236_v12  ;;  %v2407_v8 = vsub.f32 %v2210_v26, %v2236_v12  ;;  %v2414_v21 = vsub.f32 %v2208_v23, %v2236_v12 }
 0x1bb   : > { %v1404_v1 = vadd.f32 %v1403_v61, %v1402_v58  ;;  %v1421_v58 = vsel %vm1258_vm3, %v1374_v39, 0.0  ;;  %v1377_v61 = vmul.f32 %v2365_v48, %v2365_v48  ;;  %v2421_v26 = vsub.f32 %v2216_v31, %v2236_v12 }
 0x1bc   : > { %v2428_v23 = vsub.f32 %v2220_v45, %v2236_v12  ;;  %v2435_v31 = vsub.f32 %v2226_v51, %v2236_v12  ;;  %v1356_v45 = vsub.f32 %v2224_v42, %v2236_v12 }
 0x1bd   : > { %v1406_v7 = vadd.f32 %v1405_v6, %v1404_v1  ;;  %v1423_v1 = vsel %vm1258_vm3, %v1375_v49, 0.0  ;;  %v1378_v6 = vmul.f32 %v2372_v0, %v2372_v0 }
 0x1be   : > { %v1387_v51 = vmul.f32 %v2435_v31, %v2435_v31 }
 0x1bf   : > { %v1408_v20 = vadd.f32 %v1407_v19, %v1406_v7  ;;  %v1425_v7 = vsel %vm1258_vm3, %v1376_v56, 0.0  ;;  %v1379_v19 = vmul.f32 %v2379_v50, %v2379_v50 }
 0x1c1   : > { %v1410_v22 = vadd.f32 %v1409_v47, %v1408_v20  ;;  %v1427_v20 = vsel %vm1258_vm3, %v1377_v61, 0.0  ;;  %v1380_v47 = vmul.f32 %v2386_v63, %v2386_v63 }
 0x1c3   : > { %v1412_v55 = vadd.f32 %v1411_v28, %v1410_v22  ;;  %v1429_v22 = vsel %vm1258_vm3, %v1378_v6, 0.0  ;;  %v1381_v28 = vmul.f32 %v2393_v4, %v2393_v4 }
 0x1c5   : > { %v1414_v35 = vadd.f32 %v1413_v34, %v1412_v55  ;;  %v1431_v55 = vsel %vm1258_vm3, %v1379_v19, 0.0  ;;  %v1382_v34 = vmul.f32 %v2400_v2, %v2400_v2 }
 0x1c7   : > { %v1416_v38 = vadd.f32 %v1415_v37, %v1414_v35  ;;  %v1433_v35 = vsel %vm1258_vm3, %v1380_v47, 0.0  ;;  %v1383_v37 = vmul.f32 %v2407_v8, %v2407_v8 }
 0x1c9   : > { %v1418_v46 = vadd.f32 %v1417_v40, %v1416_v38  ;;  %v1435_v38 = vsel %vm1258_vm3, %v1381_v28, 0.0  ;;  %v1384_v40 = vmul.f32 %v2414_v21, %v2414_v21 }
 0x1cb   : > { %v1420_v53 = vadd.f32 %v1419_v52, %v1418_v46  ;;  %v1437_v46 = vsel %vm1258_vm3, %v1382_v34, 0.0  ;;  %v1385_v52 = vmul.f32 %v2421_v26, %v2421_v26 }
 0x1cd   : > { %v1422_v60 = vadd.f32 %v1421_v58, %v1420_v53  ;;  %v1439_v53 = vsel %vm1258_vm3, %v1383_v37, 0.0  ;;  %v1386_v58 = vmul.f32 %v2428_v23, %v2428_v23 }
 0x1cf   : > { %v1424_v3 = vadd.f32 %v1423_v1, %v1422_v60  ;;  %v1441_v60 = vsel %vm1258_vm3, %v1384_v40, 0.0  ;;  %v1357_v1 = vsub.f32 %v2232_v54, %v2236_v12 }
 0x1d1   : > { %v1426_v10 = vadd.f32 %v1425_v7, %v1424_v3  ;;  %v1443_v3 = vsel %vm1258_vm3, %v1385_v52, 0.0  ;;  %v1388_v7 = vmul.f32 %v1356_v45, %v1356_v45  ;;  %v1389_v42 = vmul.f32 %v1357_v1, %v1357_v1 }
 0x1d3   : > { %v1428_v44 = vadd.f32 %v1427_v20, %v1426_v10  ;;  %v1445_v10 = vsel %vm1258_vm3, %v1386_v58, 0.0  ;;  %v1447_v20 = vsel %vm1258_vm3, %v1387_v51, 0.0  ;;  %v1449_v47 = vsel %vm1258_vm3, %v1388_v7, 0.0 }
 0x1d5   : > { %v1430_v24 = vadd.f32 %v1429_v22, %v1428_v44 }
 0x1d7   : > { %v1432_v33 = vadd.f32 %v1431_v55, %v1430_v24  ;;  %v1451_v24 = vsel %vm1258_vm3, %v1389_v42, 0.0 }
 0x1d9   : > { %v1434_v36 = vadd.f32 %v1433_v35, %v1432_v33  ;;  %v1925_v33 = vmov 1983009808   ;;  %v1591_v35 = vlaneseq }
 0x1da   : > { %v1589_v34 = vunpack.c.l.s4 %v1925_v33 }
 0x1db   : > { %v1436_v39 = vadd.f32 %v1435_v38, %v1434_v36  ;;  %v1592_v37 = vshrl.u32 %v1591_v35, 7 }
 0x1dc   : > { %v1590_v36 = vunpack.c.0.s8 %v1589_v34 }
 0x1dd   : > { %v1438_v49 = vadd.f32 %v1437_v46, %v1436_v39 }
 0x1de   : > { %v2454_v39 = vsub.s32 %v1590_v36, %v1592_v37 }
 0x1df   : > { %v1440_v56 = vadd.f32 %v1439_v53, %v1438_v49 }
 0x1e1   : > { %v1442_v61 = vadd.f32 %v1441_v60, %v1440_v56 }
 0x1e3   : > { %v1444_v6 = vadd.f32 %v1443_v3, %v1442_v61 }
 0x1e5   : > { %v1446_v19 = vadd.f32 %v1445_v10, %v1444_v6 }
 0x1e7   : > { %v1448_v44 = vadd.f32 %v1447_v20, %v1446_v19 }
 0x1e9   : > { %v1450_v22 = vadd.f32 %v1449_v47, %v1448_v44 }
 0x1eb   : > { %v1452_v54 = vadd.f32 %v1451_v24, %v1450_v22 }
 0x1ed   : > { %1453 = vadd.xlane.f32.xlu0 %v1452_v54 }
 0x276   : > { %v1454_v12 = vpop.xlane.xlu0 %1453 }
 0x277   : > { %v1455_v28 = vmul.f32 0.00024414063, %v1454_v12 }
 0x279   : > { %v1456_v55 = vadd.f32 1e-05, %v1455_v28 }
 0x27b   : > { %1913 = vrsqrt.f32 %v1456_v55 }
 0x288   : > { %v1914_v38 = vpop.eup %1913 }
 0x289   : > { %v2457_v40 = vmul.f32 %v1914_v38, %v2240_v14  ;;  %v2460_v46 = vmul.f32 %v1914_v38, %v2244_v15  ;;  %v2463_v49 = vmul.f32 %v1914_v38, %v2248_v17  ;;  %v2466_v52 = vmul.f32 %v1914_v38, %v2252_v18 }
 0x28a   : > { %v2469_v53 = vmul.f32 %v1914_v38, %v2260_v5  ;;  %v2472_v56 = vmul.f32 %v1914_v38, %v2266_v43  ;;  %v2475_v58 = vmul.f32 %v1914_v38, %v2274_v30  ;;  %v1465_v14 = vmul.f32 %v1914_v38, %v2281_v59 }
 0x28b   : > { %v1466_v15 = vmul.f32 %v1914_v38, %v2288_v57  ;;  %v1467_v60 = vmul.f32 %v1914_v38, %v2295_v62  ;;  %v1468_v17 = vmul.f32 %v1914_v38, %v2302_v9  ;;  %v1469_v18 = vmul.f32 %v1914_v38, %v2309_v13 }
 0x28c   : > { %v1470_v61 = vmul.f32 %v1914_v38, %v2316_v11  ;;  %v1471_v5 = vmul.f32 %v1914_v38, %v2323_v16  ;;  %v1472_v43 = vmul.f32 %v1914_v38, %v2330_v25  ;;  %v1473_v51 = vmul.f32 %v1914_v38, %v2337_v29 }
 0x28d   : > { %v2487_v30 = vmul.f32 %v1914_v38, %v2344_v27  ;;  %v2490_v59 = vmul.f32 %v1914_v38, %v2351_v32  ;;  %v2493_v57 = vmul.f32 %v1914_v38, %v2358_v41  ;;  %v2496_v62 = vmul.f32 %v1914_v38, %v2365_v48 }
 0x28e   : > { %v2499_v9 = vmul.f32 %v1914_v38, %v2372_v0  ;;  %v2502_v13 = vmul.f32 %v1914_v38, %v2379_v50  ;;  %v2505_v11 = vmul.f32 %v1914_v38, %v2386_v63  ;;  %v2508_v16 = vmul.f32 %v1914_v38, %v2393_v4 }
 0x28f   : > { %v2511_v25 = vmul.f32 %v1914_v38, %v2400_v2  ;;  %v2514_v29 = vmul.f32 %v1914_v38, %v2407_v8  ;;  %v2517_v27 = vmul.f32 %v1914_v38, %v2414_v21  ;;  %v2520_v32 = vmul.f32 %v1914_v38, %v2421_v26 }
 0x290   : > { %v2523_v41 = vmul.f32 %v1914_v38, %v2428_v23  ;;  %v2526_v48 = vmul.f32 %v1914_v38, %v2435_v31  ;;  %v2528_v0 = vmul.f32 %v1914_v38, %v1356_v45  ;;  %v2530_v50 = vmul.f32 %v1914_v38, %v1357_v1 }
 0x291   : > { %v1490_v63 = vmax.f32 %v2457_v40, 0.0  ;;  %v1491_v4 = vmax.f32 %v2460_v46, 0.0  ;;  %v1492_v2 = vmax.f32 %v2463_v49, 0.0  ;;  %v1493_v8 = vmax.f32 %v2466_v52, 0.0 }
 0x292   : > { %v1494_v21 = vmax.f32 %v2469_v53, 0.0  ;;  %v1495_v26 = vmax.f32 %v2472_v56, 0.0  ;;  %v1496_v23 = vmax.f32 %v2475_v58, 0.0  ;;  %v1497_v31 = vmax.f32 %v1465_v14, 0.0 }
 0x293   : > { %v1498_v3 = vmax.f32 %v1466_v15, 0.0  ;;  %v1499_v45 = vmax.f32 %v1467_v60, 0.0  ;;  %v1500_v6 = vmax.f32 %v1468_v17, 0.0  ;;  %v1501_v1 = vmax.f32 %v1469_v18, 0.0 }
 0x294   : > { %v1502_v7 = vmax.f32 %v1470_v61, 0.0  ;;  %v1503_v10 = vmax.f32 %v1471_v5, 0.0  ;;  %v1504_v19 = vmax.f32 %v1472_v43, 0.0  ;;  %v1505_v42 = vmax.f32 %v1473_v51, 0.0 }
 0x295   : > { %v1506_v20 = vmax.f32 %v2487_v30, 0.0  ;;  %v1507_v44 = vmax.f32 %v2490_v59, 0.0  ;;  %v1508_v47 = vmax.f32 %v2493_v57, 0.0  ;;  %v1509_v22 = vmax.f32 %v2496_v62, 0.0 }
 0x296   : > { %v1510_v24 = vmax.f32 %v2499_v9, 0.0  ;;  %v1511_v54 = vmax.f32 %v2502_v13, 0.0  ;;  %v1512_v12 = vmax.f32 %v2505_v11, 0.0  ;;  %v1513_v28 = vmax.f32 %v2508_v16, 0.0 }
 0x297   : > { %v1514_v55 = vmax.f32 %v2511_v25, 0.0  ;;  %v1515_v33 = vmax.f32 %v2514_v29, 0.0  ;;  %v1516_v34 = vmax.f32 %v2517_v27, 0.0  ;;  %v1517_v35 = vmax.f32 %v2520_v32, 0.0 }
 0x298   : > { %v1518_v36 = vmax.f32 %v2523_v41, 0.0  ;;  %v1519_v37 = vmax.f32 %v2526_v48, 0.0  ;;  %v1520_v38 = vmax.f32 %v2528_v0, 0.0  ;;  %v1521_v40 = vmax.f32 %v2530_v50, 0.0 }
 0x299   : > { %v1882_v46 = vpack.c.bf16 %v1491_v4, %v1490_v63  ;;  %v1883_v49 = vpack.c.bf16 %v1493_v8, %v1492_v2  ;;  %v1884_v52 = vpack.c.bf16 %v1495_v26, %v1494_v21  ;;  %v1885_v53 = vpack.c.bf16 %v1497_v31, %v1496_v23 }
 0x29a   : > { %v1886_v56 = vpack.c.bf16 %v1499_v45, %v1498_v3  ;;  %v1887_v58 = vpack.c.bf16 %v1501_v1, %v1500_v6  ;;  %v1888_v14 = vpack.c.bf16 %v1503_v10, %v1502_v7  ;;  %v1889_v15 = vpack.c.bf16 %v1505_v42, %v1504_v19 }
 0x29b   : > { %v1594_v60 = vrot.slane %v1882_v46, %v2454_v39  ;;  %v1601_v17 = vrot.slane %v1883_v49, %v2454_v39  ;;  %v1611_v18 = vrot.slane %v1884_v52, %v2454_v39  ;;  %v1618_v61 = vrot.slane %v1885_v53, %v2454_v39 }
 0x29c   : > { %v1628_v5 = vrot.slane %v1886_v56, %v2454_v39  ;;  %v1635_v43 = vrot.slane %v1887_v58, %v2454_v39  ;;  %v1645_v51 = vrot.slane %v1888_v14, %v2454_v39  ;;  %v1652_v30 = vrot.slane %v1889_v15, %v2454_v39 }
 0x29d   : > { %v1602_v59 = vcombine.low %v1594_v60, %v1601_v17  ;;  %v1619_v57 = vcombine.low %v1611_v18, %v1618_v61  ;;  %v1890_v62 = vpack.c.bf16 %v1507_v44, %v1506_v20  ;;  %v1891_v9 = vpack.c.bf16 %v1509_v22, %v1508_v47 }
 0x29e   : > { %v1636_v13 = vcombine.low %v1628_v5, %v1635_v43  ;;  %v1653_v11 = vcombine.low %v1645_v51, %v1652_v30  ;;  %v1892_v16 = vpack.c.bf16 %v1511_v54, %v1510_v24  ;;  %v1893_v25 = vpack.c.bf16 %v1513_v28, %v1512_v12 }
 0x29f   : > { %v1662_v29 = vrot.slane %v1890_v62, %v2454_v39  ;;  %v1669_v27 = vrot.slane %v1891_v9, %v2454_v39  ;;  %v1894_v32 = vpack.c.bf16 %v1515_v33, %v1514_v55  ;;  %v1895_v41 = vpack.c.bf16 %v1517_v35, %v1516_v34  ;;  %1730 = vst [vmem:[%s2563_s20] sm:$0xff] %v1602_v59 }
 0x2a0   : > { %1731 = vst [vmem:[%s2563_s20 + $0x8] sm:$0xff] %v1619_v57  ;;  %v1679_v48 = vrot.slane %v1892_v16, %v2454_v39  ;;  %v1686_v0 = vrot.slane %v1893_v25, %v2454_v39  ;;  %v1896_v50 = vpack.c.bf16 %v1519_v37, %v1518_v36  ;;  %v1897_v63 = vpack.c.bf16 %v1521_v40, %v1520_v38 }
 0x2a1   : > { %1732 = vst [vmem:[%s2563_s20 + $0x10] sm:$0xff] %v1636_v13  ;;  %1733 = vst [vmem:[%s2563_s20 + $0x18] sm:$0xff] %v1653_v11  ;;  %v1670_v4 = vcombine.low %v1662_v29, %v1669_v27  ;;  %v1696_v2 = vrot.slane %v1894_v32, %v2454_v39  ;;  %v1703_v8 = vrot.slane %v1895_v41, %v2454_v39 }
 0x2a2   : > { %v1687_v21 = vcombine.low %v1679_v48, %v1686_v0  ;;  %v1713_v26 = vrot.slane %v1896_v50, %v2454_v39  ;;  %v1720_v23 = vrot.slane %v1897_v63, %v2454_v39 }
 0x2a3   : > { %v1704_v31 = vcombine.low %v1696_v2, %v1703_v8  ;;  %1734 = vst [vmem:[%s2563_s20 + $0x20] sm:$0xff] %v1670_v4 }
 0x2a4   : > { %v1721_v3 = vcombine.low %v1713_v26, %v1720_v23  ;;  %1735 = vst [vmem:[%s2563_s20 + $0x28] sm:$0xff] %v1687_v21 }
 0x2a5   : > { %1736 = vst [vmem:[%s2563_s20 + $0x30] sm:$0xff] %v1704_v31 }
 0x2a6   : > { %1737 = vst [vmem:[%s2563_s20 + $0x38] sm:$0xff] %v1721_v3 }
 0x2a7 PF: > { %s12_s9 = sadd.s32 1, %s1921_s9  }
 0x2a8   : > { %p9_p4 = scmp.ge.s32.totalorder %s12_s9, 4  }
 0x2aa   :  { %11 = sbr.rel (!%p9_p4) target bundleno = 1 (0x1), region = 58 }

// kernel: context_unet_forward.10
= control target key start
LH: loop header
LB: loop body
LE: loop exit
PB: predicated region body
PF: predicated region fallthrough
CT: control target
= control target key end

     0   :  { %s638_s9 = smov 0   ;;  %s692_s0 = inlined_call_operand.vmem [shape: bf16[2,108,512], index: 0, kind: input, shape index: {}]   ;;  %s693_s1 = inlined_call_operand.vmem [shape: bf16[8,108], index: 1, kind: input, shape index: {}]   ;;  %s694_s2 = inlined_call_operand.vmem [shape: bf16[2,8,512], index: 2, kind: output, shape index: {}]  }
   0x1 LB: > { %s513_s10 = sadd.s32 4294967295, %s620_s9   ;;  %p517_p0 = scmp.ge.s32.totalorder %s620_s9, 1  ;;  %s620_s9 = sphi %s638_s9, %s12_s9  }
   0x2   : > { %p112_p1 = scmp.lt.s32.totalorder %s620_s9, 3 }
   0x4   : > { %p113_p2 = pnand %p517_p0, %p112_p1 }
   0x5   : > { %p134_p3 = scmp.lt.s32.totalorder (!%p113_p2), %s513_s10, 1 }
   0x6   : > { %116 = sbr.rel (%p113_p2) target bundleno = 559 (0x22f), region = 28 }
   0xb   : > { %v622_v0 = vmov 0   ;;  %s696_s10 = smov (!%p134_p3, %s513_s10), 1  ;;  %vm314_vm0 = vcmask 1045504   ;;  %v145_v31 = vld [vmem:[%s693_s1] sm:$0xf]  ;;  %vm310_vm1 = vcmask 883712  }
   0xc   : > { %359 = vmatprep.mubr.bf16.mxu0 %v622_v0  ;;  %400 = vmatprep.mubr.bf16.mxu1 %v622_v0  ;;  %s560_s11 = smul.u32 224, %s696_s10  ;;  %s557_s17 = sshll.u32 %s696_s10, 4 }
   0xd   : > { %s143_s20 = scalar_lea.vmem %s694_s2, %s557_s17 }
   0xe   : > { %s652_s14 = scalar_lea.vmem %s692_s0, %s560_s11 }
   0xf   : > { %v570_v1 = vld [vmem:[%s652_s14 + $0xc4] ss:$16 sps:$4 sm:$0x3f]   ;;  %v572_v2 = vld [vmem:[%s652_s14 + $0xcc] ss:$16 sps:$4 sm:$0x3f]  }
  0x10   : > { %549 = vmatprep.subr.msk.bf16.mxu0 %vm314_vm0, %v570_v1  ;;  %v574_v3 = vld [vmem:[%s652_s14 + $0xc0] ss:$16 sps:$4 sm:$0x3f]   ;;  %v575_v4 = vld [vmem:[%s652_s14 + $0xc8] ss:$16 sps:$4 sm:$0x3f]   ;;  %551 = vmatprep.subr.msk.bf16.mxu1 %vm314_vm0, %v572_v2 }
  0x11   : > { %v576_v5 = vld [vmem:[%s652_s14 + $0xa4] ss:$16 sps:$4 sm:$0xff]   ;;  %v316_v6 = vsel %vm314_vm0, %v574_v3, 0  ;;  %v322_v7 = vsel %vm314_vm0, %v575_v4, 0  ;;  %v578_v8 = vld [vmem:[%s652_s14 + $0xac] ss:$16 sps:$4 sm:$0xff]  }
  0x12   : > { %330 = vmatpush1.bf16.msra.mxu0 %v316_v6  ;;  %371 = vmatpush1.bf16.msra.mxu1 %v322_v7  ;;  %v580_v9 = vld [vmem:[%s652_s14 + $0xa0] ss:$16 sps:$4 sm:$0xff]   ;;  %v581_v10 = vld [vmem:[%s652_s14 + $0xa8] ss:$16 sps:$4 sm:$0xff]   ;;  %v582_v11 = vld [vmem:[%s652_s14 + $0x84] ss:$16 sps:$4 sm:$0xff]  }
  0x13   : > { %331 = vmatprep.subr.bf16.mxu0 %v576_v5  ;;  %372 = vmatprep.subr.bf16.mxu1 %v578_v8  ;;  %v584_v12 = vld [vmem:[%s652_s14 + $0x8c] ss:$16 sps:$4 sm:$0xff]   ;;  %v586_v13 = vld [vmem:[%s652_s14 + $0x80] ss:$16 sps:$4 sm:$0xff]   ;;  %v587_v14 = vld [vmem:[%s652_s14 + $0x88] ss:$16 sps:$4 sm:$0xff]  }
  0x14   : > { %v588_v15 = vld [vmem:[%s652_s14 + $0x64] ss:$16 sps:$4 sm:$0xff]   ;;  %v590_v16 = vld [vmem:[%s652_s14 + $0x6c] ss:$16 sps:$4 sm:$0xff]   ;;  %v592_v17 = vld [vmem:[%s652_s14 + $0x60] ss:$16 sps:$4 sm:$0xff]  }
  0x15   : > { %v593_v18 = vld [vmem:[%s652_s14 + $0x68] ss:$16 sps:$4 sm:$0xff]   ;;  %v594_v19 = vld [vmem:[%s652_s14 + $0x44] ss:$16 sps:$4 sm:$0xff]   ;;  %v596_v20 = vld [vmem:[%s652_s14 + $0x4c] ss:$16 sps:$4 sm:$0xff]  }
  0x16   : > { %332 = vmatpush1.bf16.msra.mxu0 %v580_v9  ;;  %373 = vmatpush1.bf16.msra.mxu1 %v581_v10  ;;  %v598_v21 = vld [vmem:[%s652_s14 + $0x40] ss:$16 sps:$4 sm:$0xff]   ;;  %v599_v22 = vld [vmem:[%s652_s14 + $0x48] ss:$16 sps:$4 sm:$0xff]   ;;  %v600_v23 = vld [vmem:[%s652_s14 + $0x24] ss:$16 sps:$4 sm:$0xff]  }
  0x17   : > { %333 = vmatprep.subr.bf16.mxu0 %v582_v11  ;;  %374 = vmatprep.subr.bf16.mxu1 %v584_v12  ;;  %v602_v24 = vld [vmem:[%s652_s14 + $0x2c] ss:$16 sps:$4 sm:$0xff]   ;;  %v604_v25 = vld [vmem:[%s652_s14 + $0x20] ss:$16 sps:$4 sm:$0xff]   ;;  %v605_v26 = vld [vmem:[%s652_s14 + $0x28] ss:$16 sps:$4 sm:$0xff]  }
  0x18   : > { %v606_v27 = vld [vmem:[%s652_s14 + $0x4] ss:$16 sps:$4 sm:$0xff]   ;;  %v608_v28 = vld [vmem:[%s652_s14 + $0xc] ss:$16 sps:$4 sm:$0xff]   ;;  %v610_v29 = vld [vmem:[%s652_s14] ss:$16 sps:$4 sm:$0xff]  }
  0x19   : > { %v611_v30 = vld [vmem:[%s652_s14 + $0x8] ss:$16 sps:$4 sm:$0xff]  }
  0x1a   : > { %334 = vmatpush1.bf16.msra.mxu0 %v586_v13  ;;  %375 = vmatpush1.bf16.msra.mxu1 %v587_v14 }
  0x1b   : > { %335 = vmatprep.subr.bf16.mxu0 %v588_v15  ;;  %376 = vmatprep.subr.bf16.mxu1 %v590_v16 }
  0x1e   : > { %336 = vmatpush1.bf16.msra.mxu0 %v592_v17  ;;  %377 = vmatpush1.bf16.msra.mxu1 %v593_v18 }
  0x1f   : > { %337 = vmatprep.subr.bf16.mxu0 %v594_v19  ;;  %378 = vmatprep.subr.bf16.mxu1 %v596_v20 }
  0x22   : > { %338 = vmatpush1.bf16.msra.mxu0 %v598_v21  ;;  %379 = vmatpush1.bf16.msra.mxu1 %v599_v22 }
  0x23   : > { %339 = vmatprep.subr.bf16.mxu0 %v600_v23  ;;  %380 = vmatprep.subr.bf16.mxu1 %v602_v24 }
  0x26   : > { %340 = vmatpush1.bf16.msra.mxu0 %v604_v25  ;;  %381 = vmatpush1.bf16.msra.mxu1 %v605_v26 }
  0x27   : > { %341 = vmatprep.subr.bf16.mxu0 %v606_v27  ;;  %382 = vmatprep.subr.bf16.mxu1 %v608_v28 }
  0x2a   : > { %342 = vmatpush1.bf16.msra.mxu0 %v610_v29  ;;  %383 = vmatpush1.bf16.msra.mxu1 %v611_v30 }
  0x2d   : > { %550 = vmatmul.mubr.msk.bf16.vlgmr.msra.gmra.mxu0 %vm310_vm1, %v145_v31  ;;  %552 = vmatmul.mubr.msk.bf16.vlgmr.msra.gmra.mxu1 %vm310_vm1, %v145_v31 }
  0xed   : > { %v361_v32 = vpop.f32.mrf.mxu0  ;;  %v402_v33 = vpop.f32.mrf.mxu1 }
  0xef   : > { %v363_v34 = vpop.f32.mrf.mxu0  ;;  %v404_v35 = vpop.f32.mrf.mxu1 }
  0xf0   : > { %v409_v36 = vadd.f32 %v363_v34, %v361_v32 }
  0xf1   : > { %v365_v37 = vpop.f32.mrf.mxu0  ;;  %v406_v38 = vpop.f32.mrf.mxu1 }
  0xf2   : > { %v410_v39 = vadd.f32 %v409_v36, %v402_v33 }
  0xf3   : > { %v366_v40 = vpop.f32.mrf.mxu0  ;;  %v407_v41 = vpop.f32.mrf.mxu1 }
  0xf4   : > { %v411_v42 = vadd.f32 %v410_v39, %v404_v35 }
  0xf6   : > { %412 = vadd.xlane.f32.xlu0 %v411_v42 }
 0x17f   : > { %v413_v43 = vpop.xlane.xlu0 %412 }
 0x180   : > { %v415_v44 = vmul.f32 0.001953125, %v413_v43 }
 0x182   : > { %v416_v45 = vsub.f32 %v361_v32, %v415_v44  ;;  %v417_v46 = vsub.f32 %v363_v34, %v415_v44  ;;  %v418_v47 = vsub.f32 %v402_v33, %v415_v44  ;;  %v419_v48 = vsub.f32 %v404_v35, %v415_v44 }
 0x184   : > { %v420_v49 = vmul.f32 %v416_v45, %v416_v45  ;;  %v421_v50 = vmul.f32 %v417_v46, %v417_v46  ;;  %v422_v51 = vmul.f32 %v418_v47, %v418_v47  ;;  %v423_v53 = vmul.f32 %v419_v48, %v419_v48 }
 0x186   : > { %v424_v52 = vadd.f32 %v421_v50, %v420_v49 }
 0x188   : > { %v425_v54 = vadd.f32 %v424_v52, %v422_v51 }
 0x18a   : > { %v426_v55 = vadd.f32 %v425_v54, %v423_v53 }
 0x18c   : > { %427 = vadd.xlane.f32.xlu0 %v426_v55 }
 0x215   : > { %v428_v56 = vpop.xlane.xlu0 %427 }
 0x216   : > { %v429_v57 = vmul.f32 0.001953125, %v428_v56 }
 0x218   : > { %v430_v58 = vadd.f32 1e-05, %v429_v57 }
 0x21a   : > { %612 = vrsqrt.f32 %v430_v58 }
 0x227   : > { %v613_v59 = vpop.eup %612 }
 0x228   : > { %v432_v60 = vmul.f32 %v613_v59, %v416_v45  ;;  %v433_v61 = vmul.f32 %v613_v59, %v417_v46  ;;  %v434_v62 = vmul.f32 %v613_v59, %v418_v47  ;;  %v435_v63 = vmul.f32 %v613_v59, %v419_v48 }
 0x22a   : > { %v436_v0 = vmax.f32 %v432_v60, 0.0  ;;  %v437_v1 = vmax.f32 %v433_v61, 0.0  ;;  %v438_v2 = vmax.f32 %v434_v62, 0.0  ;;  %v439_v3 = vmax.f32 %v435_v63, 0.0 }
 0x22c   : > { %v558_v4 = vpack.c.bf16 %v437_v1, %v436_v0  ;;  %v559_v5 = vpack.c.bf16 %v439_v3, %v438_v2 }
 0x22e   : > { %456 = vst [vmem:[%s143_s20] sm:$0xff] %v558_v4  ;;  %457 = vst [vmem:[%s143_s20 + $0x8] sm:$0xff] %v559_v5 }
 0x22f PF: > { %s12_s9 = sadd.s32 1, %s620_s9  }
 0x230   : > { %p9_p4 = scmp.ge.s32.totalorder %s12_s9, 4  }
 0x232   :  { %11 = sbr.rel (!%p9_p4) target bundleno = 1 (0x1), region = 58 }

// kernel: context_unet_forward.11
= control target key start
LH: loop header
LB: loop body
LE: loop exit
PB: predicated region body
PF: predicated region fallthrough
CT: control target
= control target key end

     0   :  { %s456_s9 = smov 0   ;;  %s496_s0 = inlined_call_operand.vmem [shape: bf16[2,216,64], index: 0, kind: input, shape index: {}]   ;;  %s497_s1 = inlined_call_operand.vmem [shape: bf16[8,216], index: 1, kind: input, shape index: {}]   ;;  %s498_s2 = inlined_call_operand.vmem [shape: bf16[2,8,64], index: 2, kind: output, shape index: {}]  }
   0x1 LB: > { %s378_s10 = sadd.s32 4294967295, %s438_s9   ;;  %p382_p0 = scmp.ge.s32.totalorder %s438_s9, 1  ;;  %s438_s9 = sphi %s456_s9, %s12_s9  }
   0x2   : > { %p112_p1 = scmp.lt.s32.totalorder %s438_s9, 3 }
   0x4   : > { %p113_p2 = pnand %p382_p0, %p112_p1 }
   0x5   : > { %p133_p3 = scmp.lt.s32.totalorder (!%p113_p2), %s378_s10, 1 }
   0x6   : > { %116 = sbr.rel (%p113_p2) target bundleno = 573 (0x23d), region = 28 }
   0xb   : > { %v143_v0 = vld [vmem:[%s497_s1] sm:$0xff]  ;;  %vm258_vm0 = vcmask 719872   ;;  %v440_v1 = vmov 0   ;;  %s500_s10 = smov (!%p133_p3, %s378_s10), 1  ;;  %vm262_vm1 = vcmask 1043456   ;;  %vm306_vm2 = vcmask 523264  }
   0xc   : > { %266 = vmatprep.subr.bf16.mxu0 %v440_v1  ;;  %v386_v2 = vcombine.high %v143_v0, %v143_v0  ;;  %s404_s13 = smul.u32 108, %s500_s10  ;;  %v385_v18 = vcombine.low %v143_v0, %v143_v0  ;;  %s384_s17 = sshll.u32 %s500_s10, 2  ;;  %vm323_vm3 = vcmask 519168  }
   0xd   : > { %s141_s20 = scalar_lea.vmem %s498_s2, %s384_s17 }
   0xe   : > { %401 = vmatprep.mubr.msk.bf16.mxu0 %vm258_vm0, %v386_v2  ;;  %s473_s16 = scalar_lea.vmem %s496_s0, %s404_s13 }
   0xf   : > { %v414_v3 = vld [vmem:[%s473_s16 + $0x38] sm:$0xff]   ;;  %v415_v4 = vld [vmem:[%s473_s16 + $0x30] sm:$0xff]   ;;  %v416_v5 = vld [vmem:[%s473_s16 + $0x28] sm:$0xff]  }
  0x10   : > { %267 = vmatpush1.bf16.msra.mxu0 %v414_v3  ;;  %v417_v6 = vld [vmem:[%s473_s16 + $0x20] sm:$0xff]   ;;  %v418_v7 = vld [vmem:[%s473_s16 + $0x18] sm:$0xff]   ;;  %v419_v8 = vld [vmem:[%s473_s16 + $0x10] sm:$0xff]  }
  0x11   : > { %268 = vmatprep.subr.bf16.mxu0 %v440_v1  ;;  %v420_v9 = vld [vmem:[%s473_s16 + $0x8] sm:$0xff]   ;;  %v421_v10 = vld [vmem:[%s473_s16] sm:$0xff]   ;;  %v424_v14 = vld [vmem:[%s473_s16 + $0x58] sm:$0xff]  }
  0x12   : > { %v422_v11 = vld [vmem:[%s473_s16 + $0x68] ss:$0 sps:$4 sm:$0xff]   ;;  %v423_v13 = vld [vmem:[%s473_s16 + $0x60] sm:$0xff]   ;;  %v425_v15 = vld [vmem:[%s473_s16 + $0x50] sm:$0xff]  }
  0x13   : > { %v264_v12 = vsel %vm262_vm1, %v422_v11, 0  ;;  %v426_v16 = vld [vmem:[%s473_s16 + $0x48] sm:$0xff]   ;;  %v427_v17 = vld [vmem:[%s473_s16 + $0x40] sm:$0xff]  }
  0x14   : > { %269 = vmatpush1.bf16.msra.mxu0 %v415_v4 }
  0x15   : > { %270 = vmatprep.subr.bf16.mxu0 %v440_v1 }
  0x18   : > { %271 = vmatpush1.bf16.msra.mxu0 %v416_v5 }
  0x19   : > { %272 = vmatprep.subr.bf16.mxu0 %v440_v1 }
  0x1c   : > { %273 = vmatpush1.bf16.msra.mxu0 %v417_v6 }
  0x1d   : > { %274 = vmatprep.subr.bf16.mxu0 %v440_v1 }
  0x20   : > { %275 = vmatpush1.bf16.msra.mxu0 %v418_v7 }
  0x21   : > { %276 = vmatprep.subr.bf16.mxu0 %v440_v1 }
  0x24   : > { %277 = vmatpush1.bf16.msra.mxu0 %v419_v8 }
  0x25   : > { %278 = vmatprep.subr.bf16.mxu0 %v440_v1 }
  0x28   : > { %279 = vmatpush1.bf16.msra.mxu0 %v420_v9 }
  0x29   : > { %280 = vmatprep.subr.bf16.mxu0 %v440_v1 }
  0x2c   : > { %281 = vmatpush1.bf16.msra.mxu0 %v421_v10 }
  0x2d   : > { %286 = vmatprep.subr.bf16.mxu0 %v440_v1 }
  0x30   : > { %287 = vmatpush2.bf16.msra.mxu0 %v264_v12 }
  0x31   : > { %288 = vmatprep.subr.bf16.mxu0 %v440_v1 }
  0x34   : > { %289 = vmatpush2.bf16.msra.mxu0 %v423_v13 }
  0x35   : > { %290 = vmatprep.subr.bf16.mxu0 %v440_v1 }
  0x38   : > { %291 = vmatpush2.bf16.msra.mxu0 %v424_v14 }
  0x39   : > { %292 = vmatprep.subr.bf16.mxu0 %v440_v1 }
  0x3c   : > { %293 = vmatpush2.bf16.msra.mxu0 %v425_v15 }
  0x3d   : > { %294 = vmatprep.subr.bf16.mxu0 %v440_v1 }
  0x40   : > { %295 = vmatpush2.bf16.msra.mxu0 %v426_v16 }
  0x41   : > { %296 = vmatprep.subr.bf16.mxu0 %v440_v1 }
  0x44   : > { %297 = vmatpush2.bf16.msra.mxu0 %v427_v17 }
  0x47   : > { %299 = vmatmul.mubr.bf16.vlgmr.msra.gmra.mxu0 %v385_v18 }
 0x107   : > { %v300_v19 = vpop.f32.mrf.mxu0 }
 0x108   : > { %v307_v20 = vsel %vm306_vm2, %v300_v19, 0.0 }
 0x109   : > { %308 = vadd.xlane.f32.xlu0 %v307_v20  ;;  %v302_v21 = vpop.f32.mrf.mxu0 }
 0x10b   : > { %v303_v22 = vpop.f32.mrf.mxu0 }
 0x10d   : > { %v304_v23 = vpop.f32.mrf.mxu0 }
 0x192   : > { %v309_v24 = vpop.xlane.xlu0 %308 }
 0x193   : > { %v311_v25 = vmul.f32 0.015625, %v309_v24 }
 0x195   : > { %v312_v26 = vsub.f32 %v300_v19, %v311_v25 }
 0x197   : > { %v313_v27 = vmul.f32 %v312_v26, %v312_v26 }
 0x199   : > { %v314_v28 = vsel %vm306_vm2, %v313_v27, 0.0 }
 0x19a   : > { %315 = vadd.xlane.f32.xlu0 %v314_v28 }
 0x223   : > { %v316_v29 = vpop.xlane.xlu0 %315 }
 0x224   : > { %v317_v30 = vmul.f32 0.015625, %v316_v29 }
 0x226   : > { %v318_v31 = vadd.f32 1e-05, %v317_v30 }
 0x228   : > { %430 = vrsqrt.f32 %v318_v31 }
 0x235   : > { %v431_v32 = vpop.eup %430 }
 0x236   : > { %v320_v33 = vmul.f32 %v431_v32, %v312_v26 }
 0x238   : > { %v321_v34 = vmax.f32 %v320_v33, 0.0 }
 0x23a   : > { %v322_v35 = vpack.c.bf16 %v321_v34, %v321_v34 }
 0x23c   : > { %324 = vst.msk [vmem:[%s141_s20] sm:$0xf] %vm323_vm3, %v322_v35 }
 0x23d PF: > { %s12_s9 = sadd.s32 1, %s438_s9  }
 0x23e   : > { %p9_p4 = scmp.ge.s32.totalorder %s12_s9, 4  }
 0x240   :  { %11 = sbr.rel (!%p9_p4) target bundleno = 1 (0x1), region = 58 }

// kernel: context_unet_forward.12
= control target key start
LH: loop header
LB: loop body
LE: loop exit
PB: predicated region body
PF: predicated region fallthrough
CT: control target
= control target key end

     0   :  { %s496_s9 = smov 0   ;;  %s543_s0 = inlined_call_operand.vmem [shape: bf16[2,216,8], index: 0, kind: input, shape index: {}]   ;;  %s544_s1 = inlined_call_operand.vmem [shape: bf16[16,216], index: 1, kind: input, shape index: {}]   ;;  %s545_s2 = inlined_call_operand.vmem [shape: bf16[2,16,8], index: 2, kind: output, shape index: {}]  }
   0x1 LB: > { %s409_s10 = sadd.s32 4294967295, %s478_s9   ;;  %p413_p0 = scmp.ge.s32.totalorder %s478_s9, 1  ;;  %s478_s9 = sphi %s496_s9, %s12_s9  }
   0x2   : > { %p112_p1 = scmp.lt.s32.totalorder %s478_s9, 3 }
   0x4   : > { %p113_p2 = pnand %p413_p0, %p112_p1 }
   0x5   : > { %p134_p3 = scmp.lt.s32.totalorder (!%p113_p2), %s409_s10, 1 }
   0x6   : > { %116 = sbr.rel (%p113_p2) target bundleno = 577 (0x241), region = 28 }
   0xb   : > { %vm264_vm0 = vcmask 719872   ;;  %v480_v0 = vmov 0   ;;  %v467_v1 = vld [vmem:[%s544_s1 + $0x4] ss:$8 sps:$4 sm:$0xff]   ;;  %s547_s10 = smov (!%p134_p3, %s409_s10), 1  ;;  %vm268_vm1 = vcmask 1043456  }
   0xc   : > { %272 = vmatprep.subr.bf16.mxu0 %v480_v0  ;;  %433 = vmatprep.mubr.msk.bf16.mxu0 %vm264_vm0, %v467_v1  ;;  %s441_s13 = smul.u32 108, %s547_s10  ;;  %v465_v17 = vld [vmem:[%s544_s1] ss:$8 sps:$4 sm:$0xff]   ;;  %vm313_vm2 = vcmask 64512   ;;  %s438_s19 = sshll.u32 %s547_s10, 3  ;;  %vm351_vm3 = vcmask 60416  }
   0xd   : > { %s143_s22 = scalar_lea.vmem %s545_s2, %s438_s19 }
   0xe   : > { %s513_s16 = scalar_lea.vmem %s543_s0, %s441_s13 }
   0xf   : > { %v451_v2 = vld [vmem:[%s513_s16 + $0x38] sm:$0xff]   ;;  %v452_v3 = vld [vmem:[%s513_s16 + $0x30] sm:$0xff]   ;;  %v453_v4 = vld [vmem:[%s513_s16 + $0x28] sm:$0xff]  }
  0x10   : > { %273 = vmatpush1.bf16.msra.mxu0 %v451_v2  ;;  %v454_v5 = vld [vmem:[%s513_s16 + $0x20] sm:$0xff]   ;;  %v455_v6 = vld [vmem:[%s513_s16 + $0x18] sm:$0xff]   ;;  %v456_v7 = vld [vmem:[%s513_s16 + $0x10] sm:$0xff]  }
  0x11   : > { %274 = vmatprep.subr.bf16.mxu0 %v480_v0  ;;  %v457_v8 = vld [vmem:[%s513_s16 + $0x8] sm:$0xff]   ;;  %v458_v9 = vld [vmem:[%s513_s16] sm:$0xff]   ;;  %v461_v13 = vld [vmem:[%s513_s16 + $0x58] sm:$0xff]  }
  0x12   : > { %v459_v10 = vld [vmem:[%s513_s16 + $0x68] ss:$0 sps:$4 sm:$0xff]   ;;  %v460_v12 = vld [vmem:[%s513_s16 + $0x60] sm:$0xff]   ;;  %v462_v14 = vld [vmem:[%s513_s16 + $0x50] sm:$0xff]  }
  0x13   : > { %v270_v11 = vsel %vm268_vm1, %v459_v10, 0  ;;  %v463_v15 = vld [vmem:[%s513_s16 + $0x48] sm:$0xff]   ;;  %v464_v16 = vld [vmem:[%s513_s16 + $0x40] sm:$0xff]  }
  0x14   : > { %275 = vmatpush1.bf16.msra.mxu0 %v452_v3 }
  0x15   : > { %276 = vmatprep.subr.bf16.mxu0 %v480_v0 }
  0x18   : > { %277 = vmatpush1.bf16.msra.mxu0 %v453_v4 }
  0x19   : > { %278 = vmatprep.subr.bf16.mxu0 %v480_v0 }
  0x1c   : > { %279 = vmatpush1.bf16.msra.mxu0 %v454_v5 }
  0x1d   : > { %280 = vmatprep.subr.bf16.mxu0 %v480_v0 }
  0x20   : > { %281 = vmatpush1.bf16.msra.mxu0 %v455_v6 }
  0x21   : > { %282 = vmatprep.subr.bf16.mxu0 %v480_v0 }
  0x24   : > { %283 = vmatpush1.bf16.msra.mxu0 %v456_v7 }
  0x25   : > { %284 = vmatprep.subr.bf16.mxu0 %v480_v0 }
  0x28   : > { %285 = vmatpush1.bf16.msra.mxu0 %v457_v8 }
  0x29   : > { %286 = vmatprep.subr.bf16.mxu0 %v480_v0 }
  0x2c   : > { %287 = vmatpush1.bf16.msra.mxu0 %v458_v9 }
  0x2d   : > { %292 = vmatprep.subr.bf16.mxu0 %v480_v0 }
  0x30   : > { %293 = vmatpush2.bf16.msra.mxu0 %v270_v11 }
  0x31   : > { %294 = vmatprep.subr.bf16.mxu0 %v480_v0 }
  0x34   : > { %295 = vmatpush2.bf16.msra.mxu0 %v460_v12 }
  0x35   : > { %296 = vmatprep.subr.bf16.mxu0 %v480_v0 }
  0x38   : > { %297 = vmatpush2.bf16.msra.mxu0 %v461_v13 }
  0x39   : > { %298 = vmatprep.subr.bf16.mxu0 %v480_v0 }
  0x3c   : > { %299 = vmatpush2.bf16.msra.mxu0 %v462_v14 }
  0x3d   : > { %300 = vmatprep.subr.bf16.mxu0 %v480_v0 }
  0x40   : > { %301 = vmatpush2.bf16.msra.mxu0 %v463_v15 }
  0x41   : > { %302 = vmatprep.subr.bf16.mxu0 %v480_v0 }
  0x44   : > { %303 = vmatpush2.bf16.msra.mxu0 %v464_v16 }
  0x47   : > { %305 = vmatmul.mubr.bf16.vlgmr.msra.gmra.mxu0 %v465_v17 }
 0x107   : > { %v306_v18 = vpop.f32.mrf.mxu0 }
 0x108   : > { %v314_v19 = vsel %vm313_vm2, %v306_v18, 0.0 }
 0x109   : > { %315 = vadd.xlane.f32.xlu0 %v314_v19  ;;  %v308_v20 = vpop.f32.mrf.mxu0 }
 0x10b   : > { %v309_v21 = vpop.f32.mrf.mxu0 }
 0x10c   : > { %v317_v22 = vsel %vm313_vm2, %v309_v21, 0.0 }
 0x10d   : > { %318 = vadd.xlane.f32.xlu0 %v317_v22  ;;  %v311_v23 = vpop.f32.mrf.mxu0 }
 0x192   : > { %v316_v24 = vpop.xlane.xlu0 %315 }
 0x193   : > { %v321_v25 = vmul.f32 0.125, %v316_v24 }
 0x195   : > { %v323_v26 = vsub.f32 %v306_v18, %v321_v25 }
 0x196   : > { %v319_v27 = vpop.xlane.xlu0 %318 }
 0x197   : > { %v322_v28 = vmul.f32 0.125, %v319_v27  ;;  %v325_v29 = vmul.f32 %v323_v26, %v323_v26 }
 0x199   : > { %v324_v30 = vsub.f32 %v309_v21, %v322_v28  ;;  %v327_v31 = vsel %vm313_vm2, %v325_v29, 0.0 }
 0x19a   : > { %328 = vadd.xlane.f32.xlu1 %v327_v31 }
 0x19b   : > { %v326_v32 = vmul.f32 %v324_v30, %v324_v30 }
 0x19d   : > { %v330_v33 = vsel %vm313_vm2, %v326_v32, 0.0 }
 0x19e   : > { %331 = vadd.xlane.f32.xlu1 %v330_v33 }
 0x223   : > { %v329_v34 = vpop.xlane.xlu1 %328 }
 0x224   : > { %v333_v35 = vmul.f32 0.125, %v329_v34 }
 0x226   : > { %v335_v36 = vadd.f32 1e-05, %v333_v35 }
 0x227   : > { %v332_v37 = vpop.xlane.xlu1 %331 }
 0x228   : > { %468 = vrsqrt.f32 %v335_v36  ;;  %v334_v38 = vmul.f32 0.125, %v332_v37 }
 0x22a   : > { %v336_v39 = vadd.f32 1e-05, %v334_v38 }
 0x22c   : > { %470 = vrsqrt.f32 %v336_v39 }
 0x235   : > { %v469_v40 = vpop.eup %468 }
 0x236   : > { %v339_v41 = vmul.f32 %v469_v40, %v323_v26 }
 0x238   : > { %v341_v42 = vmax.f32 %v339_v41, 0.0 }
 0x239   : > { %v471_v43 = vpop.eup %470 }
 0x23a   : > { %v439_v44 = vpack.c.bf16 %v341_v42, %v341_v42  ;;  %v340_v45 = vmul.f32 %v471_v43, %v324_v30 }
 0x23c   : > { %352 = vst.msk [vmem:[%s143_s22] sm:$0xf] %vm351_vm3, %v439_v44  ;;  %v342_v46 = vmax.f32 %v340_v45, 0.0 }
 0x23e   : > { %v440_v47 = vpack.c.bf16 %v342_v46, %v342_v46 }
 0x240   : > { %353 = vst.msk [vmem:[%s143_s22 + $0x4] sm:$0xf] %vm351_vm3, %v440_v47 }
 0x241 PF: > { %s12_s9 = sadd.s32 1, %s478_s9  }
 0x242   : > { %p9_p4 = scmp.ge.s32.totalorder %s12_s9, 4  }
 0x244   :  { %11 = sbr.rel (!%p9_p4) target bundleno = 1 (0x1), region = 58 }

// kernel: context_unet_forward.13
= control target key start
LH: loop header
LB: loop body
LE: loop exit
PB: predicated region body
PF: predicated region fallthrough
CT: control target
= control target key end

     0   :  { %s692_s9 = smov 0   ;;  %s765_s0 = inlined_call_operand.vmem [shape: bf16[2,432,1], index: 0, kind: input, shape index: {}]   ;;  %s766_s1 = inlined_call_operand.vmem [shape: bf16[16,432], index: 1, kind: input, shape index: {}]   ;;  %s767_s2 = inlined_call_operand.vmem [shape: bf16[2,16,1], index: 2, kind: output, shape index: {}]  }
   0x1 LB: > { %s552_s10 = sadd.s32 4294967295, %s674_s9   ;;  %p556_p0 = scmp.ge.s32.totalorder %s674_s9, 1  ;;  %s674_s9 = sphi %s692_s9, %s12_s9  }
   0x2   : > { %p112_p1 = scmp.lt.s32.totalorder %s674_s9, 3 }
   0x4   : > { %p113_p2 = pnand %p556_p0, %p112_p1 }
   0x5   : > { %p134_p3 = scmp.lt.s32.totalorder (!%p113_p2), %s552_s10, 1 }
   0x6   : > { %116 = sbr.rel (%p113_p2) target bundleno = 285 (0x11d), region = 28 }
   0xb   : > { %v676_v0 = vmov 0   ;;  %v657_v1 = vld [vmem:[%s766_s1 + $0x4] ss:$16 sps:$4 sm:$0xff]   ;;  %vm384_vm0 = vcmask 392192   ;;  %s769_s10 = smov (!%p134_p3, %s552_s10), 1  ;;  %vm494_vm1 = vcmask 3072  }
   0xc   : > { %429 = vmatprep.subr.bf16.mxu1 %v676_v0  ;;  %v663_v2 = vld [vmem:[%s766_s1 + $0xc] ss:$16 sps:$4 sm:$0xff]   ;;  %420 = vmatprep.mubr.bf16.mxu0 %v657_v1  ;;  %s621_s15 = smul.u32 216, %s769_s10  ;;  %v655_v28 = vld [vmem:[%s766_s1] ss:$16 sps:$4 sm:$0xff]   ;;  %s596_s23 = sshll.u32 %s769_s10, 3 }
   0xd   : > { %591 = vmatprep.mubr.msk.bf16.mxu1 %vm384_vm0, %v663_v2  ;;  %v661_v31 = vld [vmem:[%s766_s1 + $0x8] ss:$16 sps:$4 sm:$0xff]   ;;  %s143_s26 = scalar_lea.vmem %s767_s2, %s596_s23 }
   0xe   : > { %s713_s18 = scalar_lea.vmem %s765_s0, %s621_s15 }
   0xf   : > { %v631_v3 = vld [vmem:[%s713_s18 + $0xb8] sm:$0xff]   ;;  %v634_v6 = vld [vmem:[%s713_s18 + $0xb0] sm:$0xff]   ;;  %v637_v9 = vld [vmem:[%s713_s18 + $0xa8] sm:$0xff]  }
  0x10   : > { %v632_v4 = vld [vmem:[%s713_s18 + $0x78] sm:$0xff]   ;;  %430 = vmatpush1.bf16.msra.mxu1 %v631_v3  ;;  %v635_v7 = vld [vmem:[%s713_s18 + $0x70] sm:$0xff]   ;;  %v638_v10 = vld [vmem:[%s713_s18 + $0x68] sm:$0xff]  }
  0x11   : > { %v633_v5 = vld [vmem:[%s713_s18 + $0x38] sm:$0xff]   ;;  %599 = vmatprep.subr.bf16.mxu0 %v632_v4  ;;  %431 = vmatprep.subr.bf16.mxu1 %v676_v0  ;;  %v636_v8 = vld [vmem:[%s713_s18 + $0x30] sm:$0xff]   ;;  %v639_v11 = vld [vmem:[%s713_s18 + $0x28] sm:$0xff]  }
  0x12   : > { %600 = vmatpush3.bf16.msra.mxu0 %v633_v5  ;;  %v640_v12 = vld [vmem:[%s713_s18 + $0xa0] sm:$0xff]   ;;  %v644_v15 = vld [vmem:[%s713_s18 + $0x58] sm:$0xff]   ;;  %v647_v18 = vld [vmem:[%s713_s18 + $0x50] sm:$0xff]  }
  0x13   : > { %601 = vmatprep.subr.bf16.mxu0 %v635_v7  ;;  %v641_v13 = vld [vmem:[%s713_s18 + $0x60] sm:$0xff]   ;;  %v643_v16 = vld [vmem:[%s713_s18 + $0x98] sm:$0xff]   ;;  %v646_v19 = vld [vmem:[%s713_s18 + $0x90] sm:$0xff]  }
  0x14   : > { %432 = vmatpush1.bf16.msra.mxu1 %v634_v6  ;;  %v642_v14 = vld [vmem:[%s713_s18 + $0x20] sm:$0xff]   ;;  %v645_v17 = vld [vmem:[%s713_s18 + $0x18] sm:$0xff]   ;;  %v648_v20 = vld [vmem:[%s713_s18 + $0x10] sm:$0xff]  }
  0x15   : > { %433 = vmatprep.subr.bf16.mxu1 %v676_v0  ;;  %v650_v21 = vld [vmem:[%s713_s18 + $0x48] sm:$0xff]   ;;  %v653_v24 = vld [vmem:[%s713_s18 + $0x40] sm:$0xff]   ;;  %v658_v27 = vld [vmem:[%s713_s18 + $0xd0] sm:$0xff]  }
  0x16   : > { %602 = vmatpush3.bf16.msra.mxu0 %v636_v8  ;;  %v649_v22 = vld [vmem:[%s713_s18 + $0x88] sm:$0xff]   ;;  %v652_v25 = vld [vmem:[%s713_s18 + $0x80] sm:$0xff]  }
  0x17   : > { %603 = vmatprep.subr.bf16.mxu0 %v638_v10  ;;  %v651_v23 = vld [vmem:[%s713_s18 + $0x8] sm:$0xff]   ;;  %v654_v26 = vld [vmem:[%s713_s18] sm:$0xff]  }
  0x18   : > { %434 = vmatpush1.bf16.msra.mxu1 %v637_v9  ;;  %v659_v29 = vld [vmem:[%s713_s18 + $0xc8] sm:$0xff]   ;;  %v660_v30 = vld [vmem:[%s713_s18 + $0xc0] sm:$0xff]  }
  0x19   : > { %435 = vmatprep.subr.bf16.mxu1 %v676_v0 }
  0x1a   : > { %604 = vmatpush3.bf16.msra.mxu0 %v639_v11 }
  0x1b   : > { %605 = vmatprep.subr.bf16.mxu0 %v641_v13 }
  0x1c   : > { %436 = vmatpush1.bf16.msra.mxu1 %v640_v12 }
  0x1d   : > { %437 = vmatprep.subr.bf16.mxu1 %v676_v0 }
  0x1e   : > { %606 = vmatpush3.bf16.msra.mxu0 %v642_v14 }
  0x1f   : > { %607 = vmatprep.subr.bf16.mxu0 %v644_v15 }
  0x20   : > { %438 = vmatpush1.bf16.msra.mxu1 %v643_v16 }
  0x21   : > { %439 = vmatprep.subr.bf16.mxu1 %v676_v0 }
  0x22   : > { %608 = vmatpush3.bf16.msra.mxu0 %v645_v17 }
  0x23   : > { %609 = vmatprep.subr.bf16.mxu0 %v647_v18 }
  0x24   : > { %440 = vmatpush1.bf16.msra.mxu1 %v646_v19 }
  0x25   : > { %441 = vmatprep.subr.bf16.mxu1 %v676_v0 }
  0x26   : > { %610 = vmatpush3.bf16.msra.mxu0 %v648_v20 }
  0x27   : > { %611 = vmatprep.subr.bf16.mxu0 %v650_v21 }
  0x28   : > { %442 = vmatpush1.bf16.msra.mxu1 %v649_v22 }
  0x29   : > { %443 = vmatprep.subr.bf16.mxu1 %v676_v0 }
  0x2a   : > { %612 = vmatpush3.bf16.msra.mxu0 %v651_v23 }
  0x2b   : > { %613 = vmatprep.subr.bf16.mxu0 %v653_v24 }
  0x2c   : > { %444 = vmatpush1.bf16.msra.mxu1 %v652_v25 }
  0x2d   : > { %455 = vmatprep.subr.bf16.mxu1 %v676_v0 }
  0x2e   : > { %614 = vmatpush3.bf16.msra.mxu0 %v654_v26 }
  0x30   : > { %456 = vmatpush2.bf16.msra.mxu1 %v658_v27 }
  0x31   : > { %421 = vmatmul.mubr.bf16.vlgmr.msra.gmra.mxu0 %v655_v28  ;;  %457 = vmatprep.subr.bf16.mxu1 %v676_v0 }
  0x34   : > { %458 = vmatpush2.bf16.msra.mxu1 %v659_v29 }
  0x35   : > { %459 = vmatprep.subr.bf16.mxu1 %v676_v0 }
  0x38   : > { %460 = vmatpush2.bf16.msra.mxu1 %v660_v30 }
  0x3b   : > { %462 = vmatmul.mubr.bf16.vlgmr.msra.gmra.mxu1 %v661_v31 }
  0xf1   : > { %v615_v32 = vpop.f32.mrf.mxu0 }
  0xf3   : > { %v616_v33 = vpop.f32.mrf.mxu0 }
  0xf4   : > { %v617_v35 = vadd.f32 %v616_v33, %v615_v32 }
  0xf5   : > { %v618_v34 = vpop.f32.mrf.mxu0 }
  0xf7   : > { %v619_v36 = vpop.f32.mrf.mxu0 }
  0xf8   : > { %v620_v40 = vadd.f32 %v619_v36, %v618_v34 }
  0xfb   : > { %v463_v37 = vpop.f32.mrf.mxu1 }
  0xfc   : > { %v464_v38 = vadd.f32 %v617_v35, %v463_v37 }
  0xfd   : > { %v465_v39 = vpop.f32.mrf.mxu1 }
  0xfe   : > { %v472_v41 = vsub.f32 %v464_v38, %v464_v38 }
  0xff   : > { %v466_v42 = vpop.f32.mrf.mxu1 }
 0x100   : > { %v474_v43 = vmul.f32 %v472_v41, %v472_v41  ;;  %v467_v44 = vadd.f32 %v620_v40, %v466_v42 }
 0x101   : > { %v468_v45 = vpop.f32.mrf.mxu1 }
 0x102   : > { %v478_v46 = vadd.f32 1e-05, %v474_v43  ;;  %v473_v47 = vsub.f32 %v467_v44, %v467_v44 }
 0x104   : > { %664 = vrsqrt.f32 %v478_v46  ;;  %v475_v48 = vmul.f32 %v473_v47, %v473_v47 }
 0x106   : > { %v479_v49 = vadd.f32 1e-05, %v475_v48 }
 0x108   : > { %666 = vrsqrt.f32 %v479_v49 }
 0x111   : > { %v665_v50 = vpop.eup %664 }
 0x112   : > { %v482_v51 = vmul.f32 %v665_v50, %v472_v41 }
 0x114   : > { %v484_v52 = vmax.f32 %v482_v51, 0.0 }
 0x115   : > { %v667_v53 = vpop.eup %666 }
 0x116   : > { %v597_v54 = vpack.c.bf16 %v484_v52, %v484_v52  ;;  %v483_v55 = vmul.f32 %v667_v53, %v473_v47 }
 0x118   : > { %495 = vst.msk [vmem:[%s143_s26] sm:$0xf] %vm494_vm1, %v597_v54  ;;  %v485_v56 = vmax.f32 %v483_v55, 0.0 }
 0x11a   : > { %v598_v57 = vpack.c.bf16 %v485_v56, %v485_v56 }
 0x11c   : > { %496 = vst.msk [vmem:[%s143_s26 + $0x4] sm:$0xf] %vm494_vm1, %v598_v57 }
 0x11d PF: > { %s12_s9 = sadd.s32 1, %s674_s9  }
 0x11e   : > { %p9_p4 = scmp.ge.s32.totalorder %s12_s9, 4  }
 0x120   :  { %11 = sbr.rel (!%p9_p4) target bundleno = 1 (0x1), region = 58 }

// kernel: context_unet_forward.14
= control target key start
LH: loop header
LB: loop body
LE: loop exit
PB: predicated region body
PF: predicated region fallthrough
CT: control target
= control target key end

     0   :  { %s1154_s9 = smov 0   ;;  %s1256_s0 = inlined_call_operand.vmem [shape: bf16[2,864,8], index: 0, kind: input, shape index: {}]   ;;  %s1257_s1 = inlined_call_operand.vmem [shape: bf16[16,864], index: 1, kind: input, shape index: {}]   ;;  %s1258_s2 = inlined_call_operand.vmem [shape: bf16[2,16,8], index: 2, kind: output, shape index: {}]  }
   0x1 LB: > { %s884_s10 = sadd.s32 4294967295, %s1135_s9   ;;  %p888_p0 = scmp.ge.s32.totalorder %s1135_s9, 1  ;;  %s1135_s9 = sphi %s1154_s9, %s12_s9  }
   0x2   : > { %p112_p1 = scmp.lt.s32.totalorder %s1135_s9, 3 }
   0x4   : > { %p113_p2 = pnand %p888_p0, %p112_p1 }
   0x5   : > { %p134_p3 = scmp.lt.s32.totalorder (!%p113_p2), %s884_s10, 1 }
   0x6   : > { %116 = sbr.rel (%p113_p2) target bundleno = 595 (0x253), region = 28 }
   0xb   : > { %v1095_v0 = vld [vmem:[%s1257_s1 + $0x4] ss:$28 sps:$4 sm:$0xff]   ;;  %s1260_s10 = smov (!%p134_p3, %s884_s10), 1  ;;  %v1098_v1 = vld [vmem:[%s1257_s1 + $0xc] ss:$28 sps:$4 sm:$0xff]   ;;  %v1137_v40 = vmov 0.0  }
   0xc   : > { %656 = vmatprep.mubr.bf16.mxu0 %v1095_v0  ;;  %s1050_s15 = smul.u32 432, %s1260_s10  ;;  %697 = vmatprep.mubr.bf16.mxu1 %v1098_v1  ;;  %v1093_v32 = vld [vmem:[%s1257_s1] ss:$28 sps:$4 sm:$0xff]   ;;  %v1096_v34 = vld [vmem:[%s1257_s1 + $0x8] ss:$28 sps:$4 sm:$0xff]   ;;  %vm1138_vm0 = vmmov 0  }
   0xd   : > { %v1123_v36 = vld [vmem:[%s1257_s1 + $0x14] ss:$28 sps:$4 sm:$0xff]   ;;  %vm620_vm1 = vcmask 785408   ;;  %vm788_vm2 = vcmask 64512   ;;  %s958_s29 = sshll.u32 %s1260_s10, 3  ;;  %vm826_vm3 = vcmask 60416  }
   0xe   : > { %s1174_s18 = scalar_lea.vmem %s1256_s0, %s1050_s15  ;;  %v1124_v59 = vld [vmem:[%s1257_s1 + $0x18] ss:$28 sps:$4 sm:$0xff]   ;;  %v1121_v61 = vld [vmem:[%s1257_s1 + $0x10] ss:$28 sps:$4 sm:$0xff]   ;;  %s143_s4 = scalar_lea.vmem %s1258_s2, %s958_s29 }
   0xf   : > { %v1061_v2 = vld [vmem:[%s1174_s18 + $0x78] sm:$0xff]   ;;  %v1065_v6 = vld [vmem:[%s1174_s18 + $0x70] sm:$0xff]   ;;  %v1069_v10 = vld [vmem:[%s1174_s18 + $0x68] sm:$0xff]  }
  0x10   : > { %v1062_v3 = vld [vmem:[%s1174_s18 + $0xf8] sm:$0xff]   ;;  %961 = vmatprep.subr.bf16.mxu0 %v1061_v2  ;;  %v1066_v7 = vld [vmem:[%s1174_s18 + $0xf0] sm:$0xff]   ;;  %v1070_v11 = vld [vmem:[%s1174_s18 + $0xe8] sm:$0xff]  }
  0x11   : > { %v1063_v4 = vld [vmem:[%s1174_s18 + $0x38] sm:$0xff]   ;;  %983 = vmatprep.subr.bf16.mxu1 %v1062_v3  ;;  %v1067_v8 = vld [vmem:[%s1174_s18 + $0x30] sm:$0xff]   ;;  %v1071_v12 = vld [vmem:[%s1174_s18 + $0x28] sm:$0xff]  }
  0x12   : > { %v1064_v5 = vld [vmem:[%s1174_s18 + $0xb8] sm:$0xff]   ;;  %962 = vmatpush3.bf16.msra.mxu0 %v1063_v4  ;;  %v1068_v9 = vld [vmem:[%s1174_s18 + $0xb0] sm:$0xff]   ;;  %v1072_v13 = vld [vmem:[%s1174_s18 + $0xa8] sm:$0xff]  }
  0x13   : > { %984 = vmatpush3.bf16.msra.mxu1 %v1064_v5  ;;  %963 = vmatprep.subr.bf16.mxu0 %v1065_v6  ;;  %v1073_v14 = vld [vmem:[%s1174_s18 + $0x60] sm:$0xff]   ;;  %v1077_v18 = vld [vmem:[%s1174_s18 + $0x58] sm:$0xff]   ;;  %v1081_v22 = vld [vmem:[%s1174_s18 + $0x50] sm:$0xff]  }
  0x14   : > { %985 = vmatprep.subr.bf16.mxu1 %v1066_v7  ;;  %v1074_v15 = vld [vmem:[%s1174_s18 + $0xe0] sm:$0xff]   ;;  %v1078_v19 = vld [vmem:[%s1174_s18 + $0xd8] sm:$0xff]   ;;  %v1082_v23 = vld [vmem:[%s1174_s18 + $0xd0] sm:$0xff]  }
  0x15   : > { %v1075_v16 = vld [vmem:[%s1174_s18 + $0x20] sm:$0xff]   ;;  %v1079_v20 = vld [vmem:[%s1174_s18 + $0x18] sm:$0xff]   ;;  %v1083_v24 = vld [vmem:[%s1174_s18 + $0x10] sm:$0xff]  }
  0x16   : > { %964 = vmatpush3.bf16.msra.mxu0 %v1067_v8  ;;  %v1076_v17 = vld [vmem:[%s1174_s18 + $0xa0] sm:$0xff]   ;;  %v1080_v21 = vld [vmem:[%s1174_s18 + $0x98] sm:$0xff]   ;;  %v1084_v25 = vld [vmem:[%s1174_s18 + $0x90] sm:$0xff]  }
  0x17   : > { %986 = vmatpush3.bf16.msra.mxu1 %v1068_v9  ;;  %965 = vmatprep.subr.bf16.mxu0 %v1069_v10  ;;  %v1085_v26 = vld [vmem:[%s1174_s18 + $0x48] sm:$0xff]   ;;  %v1089_v30 = vld [vmem:[%s1174_s18 + $0x40] sm:$0xff]   ;;  %v1099_v37 = vld [vmem:[%s1174_s18 + $0x178] sm:$0xff]  }
  0x18   : > { %987 = vmatprep.subr.bf16.mxu1 %v1070_v11  ;;  %v1086_v27 = vld [vmem:[%s1174_s18 + $0xc8] sm:$0xff]   ;;  %v1090_v31 = vld [vmem:[%s1174_s18 + $0xc0] sm:$0xff]   ;;  %v1100_v38 = vld [vmem:[%s1174_s18 + $0x138] sm:$0xff]  }
  0x19   : > { %v1087_v28 = vld [vmem:[%s1174_s18 + $0x8] sm:$0xff]   ;;  %v1091_v33 = vld [vmem:[%s1174_s18] sm:$0xff]   ;;  %v1101_v39 = vld [vmem:[%s1174_s18 + $0x170] sm:$0xff]  }
  0x1a   : > { %966 = vmatpush3.bf16.msra.mxu0 %v1071_v12  ;;  %v1088_v29 = vld [vmem:[%s1174_s18 + $0x88] sm:$0xff]   ;;  %v1092_v35 = vld [vmem:[%s1174_s18 + $0x80] sm:$0xff]   ;;  %v1102_v41 = vld [vmem:[%s1174_s18 + $0x130] sm:$0xff]  }
  0x1b   : > { %988 = vmatpush3.bf16.msra.mxu1 %v1072_v13  ;;  %967 = vmatprep.subr.bf16.mxu0 %v1073_v14  ;;  %v1103_v42 = vld [vmem:[%s1174_s18 + $0x168] sm:$0xff]   ;;  %v1106_v45 = vld [vmem:[%s1174_s18 + $0x160] sm:$0xff]   ;;  %v1111_v48 = vld [vmem:[%s1174_s18 + $0x198] sm:$0xff]  }
  0x1c   : > { %989 = vmatprep.subr.bf16.mxu1 %v1074_v15  ;;  %v1105_v43 = vld [vmem:[%s1174_s18 + $0x1a8] sm:$0xff]   ;;  %v1108_v46 = vld [vmem:[%s1174_s18 + $0x1a0] sm:$0xff]   ;;  %v1109_v49 = vld [vmem:[%s1174_s18 + $0x158] sm:$0xff]  }
  0x1d   : > { %v1104_v44 = vld [vmem:[%s1174_s18 + $0x128] sm:$0xff]   ;;  %v1107_v47 = vld [vmem:[%s1174_s18 + $0x120] sm:$0xff]   ;;  %v1110_v50 = vld [vmem:[%s1174_s18 + $0x118] sm:$0xff]  }
  0x1e   : > { %968 = vmatpush3.bf16.msra.mxu0 %v1075_v16  ;;  %v1114_v51 = vld [vmem:[%s1174_s18 + $0x190] sm:$0xff]   ;;  %v1117_v54 = vld [vmem:[%s1174_s18 + $0x188] sm:$0xff]   ;;  %v1120_v57 = vld [vmem:[%s1174_s18 + $0x180] sm:$0xff]  }
  0x1f   : > { %990 = vmatpush3.bf16.msra.mxu1 %v1076_v17  ;;  %969 = vmatprep.subr.bf16.mxu0 %v1077_v18  ;;  %v1112_v52 = vld [vmem:[%s1174_s18 + $0x150] sm:$0xff]   ;;  %v1115_v55 = vld [vmem:[%s1174_s18 + $0x148] sm:$0xff]   ;;  %v1118_v58 = vld [vmem:[%s1174_s18 + $0x140] sm:$0xff]  }
  0x20   : > { %991 = vmatprep.subr.bf16.mxu1 %v1078_v19  ;;  %v1113_v53 = vld [vmem:[%s1174_s18 + $0x110] sm:$0xff]   ;;  %v1116_v56 = vld [vmem:[%s1174_s18 + $0x108] sm:$0xff]   ;;  %v1119_v60 = vld [vmem:[%s1174_s18 + $0x100] sm:$0xff]  }
  0x22   : > { %970 = vmatpush3.bf16.msra.mxu0 %v1079_v20 }
  0x23   : > { %992 = vmatpush3.bf16.msra.mxu1 %v1080_v21  ;;  %971 = vmatprep.subr.bf16.mxu0 %v1081_v22 }
  0x24   : > { %993 = vmatprep.subr.bf16.mxu1 %v1082_v23 }
  0x26   : > { %972 = vmatpush3.bf16.msra.mxu0 %v1083_v24 }
  0x27   : > { %994 = vmatpush3.bf16.msra.mxu1 %v1084_v25  ;;  %973 = vmatprep.subr.bf16.mxu0 %v1085_v26 }
  0x28   : > { %995 = vmatprep.subr.bf16.mxu1 %v1086_v27 }
  0x2a   : > { %974 = vmatpush3.bf16.msra.mxu0 %v1087_v28 }
  0x2b   : > { %996 = vmatpush3.bf16.msra.mxu1 %v1088_v29  ;;  %975 = vmatprep.subr.bf16.mxu0 %v1089_v30 }
  0x2c   : > { %997 = vmatprep.subr.bf16.mxu1 %v1090_v31 }
  0x2e   : > { %976 = vmatpush3.bf16.msra.mxu0 %v1091_v33 }
  0x2f   : > { %998 = vmatpush3.bf16.msra.mxu1 %v1092_v35  ;;  %1005 = vmatprep.subr.bf16.mxu0 %v1099_v37 }
  0x30   : > { %1034 = vmatprep.subr.bf16.mxu1 %v1137_v40 }
  0x31   : > { %657 = vmatmul.mubr.bf16.vlgmr.msra.gmra.mxu0 %v1093_v32 }
  0x32   : > { %698 = vmatmul.mubr.bf16.vlgmr.msra.gmra.mxu1 %v1096_v34  ;;  %1006 = vmatpush3.bf16.msra.mxu0 %v1100_v38 }
  0x33   : > { %1007 = vmatprep.subr.bf16.mxu0 %v1101_v39  ;;  %738 = vmatprep.mubr.bf16.mxu0 %v1123_v36 }
  0x34   : > { %1046 = vmatprep.mubr.msk.bf16.mxu1 %vm1138_vm0, %v1137_v40  ;;  %1035 = vmatpush3.bf16.msra.mxu1 %v1105_v43 }
  0x35   : > { %1036 = vmatprep.subr.bf16.mxu1 %v1137_v40 }
  0x36   : > { %1008 = vmatpush3.bf16.msra.mxu0 %v1102_v41 }
  0x37   : > { %1009 = vmatprep.subr.bf16.mxu0 %v1103_v42 }
  0x38   : > { %1037 = vmatpush3.bf16.msra.mxu1 %v1108_v46 }
  0x39   : > { %1038 = vmatprep.subr.bf16.mxu1 %v1137_v40 }
  0x3a   : > { %1010 = vmatpush3.bf16.msra.mxu0 %v1104_v44 }
  0x3b   : > { %1011 = vmatprep.subr.bf16.mxu0 %v1106_v45 }
  0x3c   : > { %1039 = vmatpush3.bf16.msra.mxu1 %v1111_v48 }
  0x3d   : > { %1040 = vmatprep.subr.bf16.mxu1 %v1137_v40 }
  0x3e   : > { %1012 = vmatpush3.bf16.msra.mxu0 %v1107_v47 }
  0x3f   : > { %1013 = vmatprep.subr.bf16.mxu0 %v1109_v49 }
  0x40   : > { %1041 = vmatpush3.bf16.msra.mxu1 %v1114_v51 }
  0x41   : > { %1042 = vmatprep.subr.bf16.mxu1 %v1137_v40 }
  0x42   : > { %1014 = vmatpush3.bf16.msra.mxu0 %v1110_v50 }
  0x43   : > { %1015 = vmatprep.subr.bf16.mxu0 %v1112_v52 }
  0x44   : > { %1043 = vmatpush3.bf16.msra.mxu1 %v1117_v54 }
  0x45   : > { %1044 = vmatprep.subr.bf16.mxu1 %v1137_v40 }
  0x46   : > { %1016 = vmatpush3.bf16.msra.mxu0 %v1113_v53 }
  0x47   : > { %1017 = vmatprep.subr.bf16.mxu0 %v1115_v55 }
  0x48   : > { %1045 = vmatpush3.bf16.msra.mxu1 %v1120_v57 }
  0x4a   : > { %1018 = vmatpush3.bf16.msra.mxu0 %v1116_v56 }
  0x4b   : > { %1019 = vmatprep.subr.bf16.mxu0 %v1118_v58  ;;  %1047 = vmatmul.mubr.msk.bf16.vlgmr.msra.gmra.mxu1 %vm620_vm1, %v1124_v59 }
  0x4e   : > { %1020 = vmatpush3.bf16.msra.mxu0 %v1119_v60 }
  0x51   : > { %739 = vmatmul.mubr.bf16.vlgmr.msra.gmra.mxu0 %v1121_v61 }
  0xf1   : > { %v977_v63 = vpop.f32.mrf.mxu0 }
  0xf2   : > { %v999_v62 = vpop.f32.mrf.mxu1 }
  0xf3   : > { %v978_v1 = vpop.f32.mrf.mxu0 }
  0xf4   : > { %v1000_v0 = vpop.f32.mrf.mxu1  ;;  %v979_v8 = vadd.f32 %v978_v1, %v977_v63 }
  0xf5   : > { %v980_v3 = vpop.f32.mrf.mxu0  ;;  %v1001_v9 = vadd.f32 %v1000_v0, %v999_v62 }
  0xf6   : > { %v1002_v2 = vpop.f32.mrf.mxu1 }
  0xf7   : > { %v981_v6 = vpop.f32.mrf.mxu0  ;;  %v700_v14 = vadd.f32 %v1001_v9, %v979_v8 }
  0xf8   : > { %v1003_v4 = vpop.f32.mrf.mxu1  ;;  %v982_v15 = vadd.f32 %v981_v6, %v980_v3 }
  0xf9   : > { %v1004_v16 = vadd.f32 %v1003_v4, %v1002_v2 }
  0xfb   : > { %v703_v21 = vadd.f32 %v1004_v16, %v982_v15 }
 0x10b   : > { %v781_v5 = vpop.f32.mrf.mxu1 }
 0x10d   : > { %v1048_v7 = vpop.f32.mrf.mxu1 }
 0x10f   : > { %v784_v11 = vpop.f32.mrf.mxu1 }
 0x111   : > { %v1021_v10 = vpop.f32.mrf.mxu0  ;;  %v1049_v13 = vpop.f32.mrf.mxu1 }
 0x113   : > { %v1022_v12 = vpop.f32.mrf.mxu0 }
 0x114   : > { %v1023_v17 = vadd.f32 %v1022_v12, %v1021_v10 }
 0x115   : > { %v1024_v18 = vpop.f32.mrf.mxu0 }
 0x116   : > { %v741_v19 = vadd.f32 %v1023_v17, %v700_v14 }
 0x117   : > { %v1025_v20 = vpop.f32.mrf.mxu0 }
 0x118   : > { %v1026_v22 = vadd.f32 %v1025_v20, %v1024_v18  ;;  %v782_v23 = vadd.f32 %v781_v5, %v741_v19 }
 0x11a   : > { %v744_v24 = vadd.f32 %v1026_v22, %v703_v21  ;;  %v789_v25 = vsel %vm788_vm2, %v782_v23, 0.0 }
 0x11b   : > { %790 = vadd.xlane.f32.xlu0 %v789_v25 }
 0x11c   : > { %v785_v26 = vadd.f32 %v784_v11, %v744_v24 }
 0x11e   : > { %v792_v27 = vsel %vm788_vm2, %v785_v26, 0.0 }
 0x11f   : > { %793 = vadd.xlane.f32.xlu0 %v792_v27 }
 0x1a4   : > { %v791_v28 = vpop.xlane.xlu0 %790 }
 0x1a5   : > { %v796_v29 = vmul.f32 0.125, %v791_v28 }
 0x1a7   : > { %v798_v30 = vsub.f32 %v782_v23, %v796_v29 }
 0x1a8   : > { %v794_v31 = vpop.xlane.xlu0 %793 }
 0x1a9   : > { %v797_v32 = vmul.f32 0.125, %v794_v31  ;;  %v800_v33 = vmul.f32 %v798_v30, %v798_v30 }
 0x1ab   : > { %v799_v34 = vsub.f32 %v785_v26, %v797_v32  ;;  %v802_v35 = vsel %vm788_vm2, %v800_v33, 0.0 }
 0x1ac   : > { %803 = vadd.xlane.f32.xlu1 %v802_v35 }
 0x1ad   : > { %v801_v36 = vmul.f32 %v799_v34, %v799_v34 }
 0x1af   : > { %v805_v37 = vsel %vm788_vm2, %v801_v36, 0.0 }
 0x1b0   : > { %806 = vadd.xlane.f32.xlu1 %v805_v37 }
 0x235   : > { %v804_v38 = vpop.xlane.xlu1 %803 }
 0x236   : > { %v808_v39 = vmul.f32 0.125, %v804_v38 }
 0x238   : > { %v810_v40 = vadd.f32 1e-05, %v808_v39 }
 0x239   : > { %v807_v41 = vpop.xlane.xlu1 %806 }
 0x23a   : > { %1125 = vrsqrt.f32 %v810_v40  ;;  %v809_v42 = vmul.f32 0.125, %v807_v41 }
 0x23c   : > { %v811_v43 = vadd.f32 1e-05, %v809_v42 }
 0x23e   : > { %1127 = vrsqrt.f32 %v811_v43 }
 0x247   : > { %v1126_v44 = vpop.eup %1125 }
 0x248   : > { %v814_v45 = vmul.f32 %v1126_v44, %v798_v30 }
 0x24a   : > { %v816_v46 = vmax.f32 %v814_v45, 0.0 }
 0x24b   : > { %v1128_v47 = vpop.eup %1127 }
 0x24c   : > { %v959_v48 = vpack.c.bf16 %v816_v46, %v816_v46  ;;  %v815_v49 = vmul.f32 %v1128_v47, %v799_v34 }
 0x24e   : > { %827 = vst.msk [vmem:[%s143_s4] sm:$0xf] %vm826_vm3, %v959_v48  ;;  %v817_v50 = vmax.f32 %v815_v49, 0.0 }
 0x250   : > { %v960_v51 = vpack.c.bf16 %v817_v50, %v817_v50 }
 0x252   : > { %828 = vst.msk [vmem:[%s143_s4 + $0x4] sm:$0xf] %vm826_vm3, %v960_v51 }
 0x253 PF: > { %s12_s9 = sadd.s32 1, %s1135_s9  }
 0x254   : > { %p9_p4 = scmp.ge.s32.totalorder %s12_s9, 4  }
 0x256   :  { %11 = sbr.rel (!%p9_p4) target bundleno = 1 (0x1), region = 58 }

// kernel: context_unet_forward.15
= control target key start
LH: loop header
LB: loop body
LE: loop exit
PB: predicated region body
PF: predicated region fallthrough
CT: control target
= control target key end

     0   :  { %s874_s9 = smov 0   ;;  %s968_s0 = inlined_call_operand.vmem [shape: bf16[2,648,64], index: 0, kind: input, shape index: {}]   ;;  %s969_s1 = inlined_call_operand.vmem [shape: bf16[8,648], index: 1, kind: input, shape index: {}]   ;;  %s970_s2 = inlined_call_operand.vmem [shape: bf16[2,8,64], index: 2, kind: output, shape index: {}]  }
   0x1 LB: > { %s690_s10 = sadd.s32 4294967295, %s856_s9   ;;  %p694_p0 = scmp.ge.s32.totalorder %s856_s9, 1  ;;  %s856_s9 = sphi %s874_s9, %s12_s9  }
   0x2   : > { %p112_p1 = scmp.lt.s32.totalorder %s856_s9, 3 }
   0x4   : > { %p113_p2 = pnand %p694_p0, %p112_p1 }
   0x5   : > { %p133_p3 = scmp.lt.s32.totalorder (!%p113_p2), %s690_s10, 1 }
   0x6   : > { %116 = sbr.rel (%p113_p2) target bundleno = 590 (0x24e), region = 28 }
   0xb   : > { %v885_v0 = vld [vmem:[%s969_s1] sm:$0xff]  ;;  %v890_v1 = vld [vmem:[%s969_s1 + $0x10] sm:$0xff]  ;;  %v858_v2 = vmov 0   ;;  %s972_s10 = smov (!%p133_p3, %s690_s10), 1  ;;  %vm490_vm0 = vcmask 64512   ;;  %v144_v26 = vld [vmem:[%s969_s1 + $0x8] sm:$0xff] }
   0xc   : > { %578 = vmatprep.subr.bf16.mxu0 %v858_v2  ;;  %v698_v3 = vcombine.high %v885_v0, %v885_v0  ;;  %v702_v4 = vcombine.high %v890_v1, %v890_v1  ;;  %s791_s15 = smul.u32 324, %s972_s10  ;;  %v697_v27 = vcombine.low %v885_v0, %v885_v0  ;;  %v700_v31 = vcombine.high %v144_v26, %v144_v26  ;;  %s696_s21 = sshll.u32 %s972_s10, 2 }
   0xd   : > { %vm494_vm1 = vcmask 1043456   ;;  %v701_v45 = vcombine.low %v890_v1, %v890_v1  ;;  %v699_v51 = vcombine.low %v144_v26, %v144_v26  ;;  %vm618_vm2 = vcmask 523264   ;;  %s141_s24 = scalar_lea.vmem %s970_s2, %s696_s21 }
   0xe   : > { %530 = vmatprep.mubr.bf16.mxu1 %v698_v3  ;;  %744 = vmatprep.mubr.msk.bf16.mxu0 %vm490_vm0, %v702_v4  ;;  %s903_s18 = scalar_lea.vmem %s968_s0, %s791_s15  ;;  %vm635_vm3 = vcmask 519168  }
   0xf   : > { %v801_v5 = vld [vmem:[%s903_s18 + $0x78] sm:$0xff]   ;;  %v803_v7 = vld [vmem:[%s903_s18 + $0x70] sm:$0xff]   ;;  %v805_v9 = vld [vmem:[%s903_s18 + $0x68] sm:$0xff]  }
  0x10   : > { %v802_v6 = vld [vmem:[%s903_s18 + $0x38] sm:$0xff]   ;;  %747 = vmatprep.subr.bf16.mxu1 %v801_v5  ;;  %v804_v8 = vld [vmem:[%s903_s18 + $0x30] sm:$0xff]   ;;  %v806_v10 = vld [vmem:[%s903_s18 + $0x28] sm:$0xff]  }
  0x11   : > { %748 = vmatpush3.bf16.msra.mxu1 %v802_v6  ;;  %v807_v11 = vld [vmem:[%s903_s18 + $0x60] sm:$0xff]   ;;  %v809_v13 = vld [vmem:[%s903_s18 + $0x58] sm:$0xff]   ;;  %v811_v15 = vld [vmem:[%s903_s18 + $0x50] sm:$0xff]  }
  0x12   : > { %749 = vmatprep.subr.bf16.mxu1 %v803_v7  ;;  %v808_v12 = vld [vmem:[%s903_s18 + $0x20] sm:$0xff]   ;;  %v810_v14 = vld [vmem:[%s903_s18 + $0x18] sm:$0xff]   ;;  %v812_v17 = vld [vmem:[%s903_s18 + $0x10] sm:$0xff]  }
  0x13   : > { %v817_v16 = vld [vmem:[%s903_s18 + $0x138] sm:$0xff]   ;;  %v822_v18 = vld [vmem:[%s903_s18 + $0x130] sm:$0xff]   ;;  %v813_v19 = vld [vmem:[%s903_s18 + $0x48] sm:$0xff]  }
  0x14   : > { %579 = vmatpush1.bf16.msra.mxu0 %v817_v16  ;;  %v825_v20 = vld [vmem:[%s903_s18 + $0x128] sm:$0xff]   ;;  %v815_v22 = vld [vmem:[%s903_s18 + $0x40] sm:$0xff]   ;;  %v820_v25 = vld [vmem:[%s903_s18 + $0xf8] sm:$0xff]  }
  0x15   : > { %750 = vmatpush3.bf16.msra.mxu1 %v804_v8  ;;  %580 = vmatprep.subr.bf16.mxu0 %v858_v2  ;;  %v814_v21 = vld [vmem:[%s903_s18 + $0x8] sm:$0xff]   ;;  %v828_v23 = vld [vmem:[%s903_s18 + $0x120] sm:$0xff]   ;;  %v831_v28 = vld [vmem:[%s903_s18 + $0x118] sm:$0xff]  }
  0x16   : > { %751 = vmatprep.subr.bf16.mxu1 %v805_v9  ;;  %v816_v24 = vld [vmem:[%s903_s18] sm:$0xff]   ;;  %v821_v29 = vld [vmem:[%s903_s18 + $0xb8] sm:$0xff]   ;;  %v823_v30 = vld [vmem:[%s903_s18 + $0xf0] sm:$0xff]  }
  0x17   : > { %v834_v32 = vld [vmem:[%s903_s18 + $0x110] sm:$0xff]   ;;  %v826_v34 = vld [vmem:[%s903_s18 + $0xe8] sm:$0xff]   ;;  %v829_v37 = vld [vmem:[%s903_s18 + $0xe0] sm:$0xff]  }
  0x18   : > { %581 = vmatpush1.bf16.msra.mxu0 %v822_v18  ;;  %v824_v33 = vld [vmem:[%s903_s18 + $0xb0] sm:$0xff]   ;;  %v837_v35 = vld [vmem:[%s903_s18 + $0x108] sm:$0xff]   ;;  %v840_v38 = vld [vmem:[%s903_s18 + $0x100] sm:$0xff]  }
  0x19   : > { %752 = vmatpush3.bf16.msra.mxu1 %v806_v10  ;;  %582 = vmatprep.subr.bf16.mxu0 %v858_v2  ;;  %v827_v36 = vld [vmem:[%s903_s18 + $0xa8] sm:$0xff]   ;;  %v830_v39 = vld [vmem:[%s903_s18 + $0xa0] sm:$0xff]   ;;  %v832_v41 = vld [vmem:[%s903_s18 + $0xd8] sm:$0xff]  }
  0x1a   : > { %753 = vmatprep.subr.bf16.mxu1 %v807_v11  ;;  %v843_v40 = vld [vmem:[%s903_s18 + $0x140] ss:$0 sps:$4 sm:$0xff]   ;;  %v833_v42 = vld [vmem:[%s903_s18 + $0x98] sm:$0xff]   ;;  %v835_v44 = vld [vmem:[%s903_s18 + $0xd0] sm:$0xff]  }
  0x1b   : > { %v496_v43 = vsel %vm494_vm1, %v843_v40, 0  ;;  %v836_v46 = vld [vmem:[%s903_s18 + $0x90] sm:$0xff]   ;;  %v838_v47 = vld [vmem:[%s903_s18 + $0xc8] sm:$0xff]   ;;  %v841_v49 = vld [vmem:[%s903_s18 + $0xc0] sm:$0xff]  }
  0x1c   : > { %583 = vmatpush1.bf16.msra.mxu0 %v825_v20  ;;  %v839_v48 = vld [vmem:[%s903_s18 + $0x88] sm:$0xff]   ;;  %v842_v50 = vld [vmem:[%s903_s18 + $0x80] sm:$0xff]  }
  0x1d   : > { %754 = vmatpush3.bf16.msra.mxu1 %v808_v12  ;;  %584 = vmatprep.subr.bf16.mxu0 %v858_v2 }
  0x1e   : > { %755 = vmatprep.subr.bf16.mxu1 %v809_v13 }
  0x20   : > { %585 = vmatpush1.bf16.msra.mxu0 %v828_v23 }
  0x21   : > { %756 = vmatpush3.bf16.msra.mxu1 %v810_v14  ;;  %586 = vmatprep.subr.bf16.mxu0 %v858_v2 }
  0x22   : > { %757 = vmatprep.subr.bf16.mxu1 %v811_v15 }
  0x24   : > { %587 = vmatpush1.bf16.msra.mxu0 %v831_v28 }
  0x25   : > { %758 = vmatpush3.bf16.msra.mxu1 %v812_v17  ;;  %588 = vmatprep.subr.bf16.mxu0 %v858_v2 }
  0x26   : > { %759 = vmatprep.subr.bf16.mxu1 %v813_v19 }
  0x28   : > { %589 = vmatpush1.bf16.msra.mxu0 %v834_v32 }
  0x29   : > { %760 = vmatpush3.bf16.msra.mxu1 %v814_v21  ;;  %590 = vmatprep.subr.bf16.mxu0 %v858_v2 }
  0x2a   : > { %761 = vmatprep.subr.bf16.mxu1 %v815_v22 }
  0x2c   : > { %591 = vmatpush1.bf16.msra.mxu0 %v837_v35 }
  0x2d   : > { %762 = vmatpush3.bf16.msra.mxu1 %v816_v24  ;;  %592 = vmatprep.subr.bf16.mxu0 %v858_v2 }
  0x2e   : > { %769 = vmatprep.subr.bf16.mxu1 %v820_v25 }
  0x30   : > { %531 = vmatmul.mubr.bf16.vlgmr.msra.gmra.mxu1 %v697_v27  ;;  %593 = vmatpush1.bf16.msra.mxu0 %v840_v38 }
  0x31   : > { %770 = vmatpush3.bf16.msra.mxu1 %v821_v29  ;;  %570 = vmatprep.mubr.bf16.mxu1 %v700_v31 }
  0x32   : > { %771 = vmatprep.subr.bf16.mxu1 %v823_v30  ;;  %608 = vmatprep.subr.bf16.mxu0 %v858_v2 }
  0x34   : > { %609 = vmatpush2.bf16.msra.mxu0 %v496_v43 }
  0x35   : > { %772 = vmatpush3.bf16.msra.mxu1 %v824_v33 }
  0x36   : > { %773 = vmatprep.subr.bf16.mxu1 %v826_v34 }
  0x37   : > { %611 = vmatmul.mubr.bf16.vlgmr.msra.gmra.mxu0 %v701_v45 }
  0x39   : > { %774 = vmatpush3.bf16.msra.mxu1 %v827_v36 }
  0x3a   : > { %775 = vmatprep.subr.bf16.mxu1 %v829_v37 }
  0x3d   : > { %776 = vmatpush3.bf16.msra.mxu1 %v830_v39 }
  0x3e   : > { %777 = vmatprep.subr.bf16.mxu1 %v832_v41 }
  0x41   : > { %778 = vmatpush3.bf16.msra.mxu1 %v833_v42 }
  0x42   : > { %779 = vmatprep.subr.bf16.mxu1 %v835_v44 }
  0x45   : > { %780 = vmatpush3.bf16.msra.mxu1 %v836_v46 }
  0x46   : > { %781 = vmatprep.subr.bf16.mxu1 %v838_v47 }
  0x49   : > { %782 = vmatpush3.bf16.msra.mxu1 %v839_v48 }
  0x4a   : > { %783 = vmatprep.subr.bf16.mxu1 %v841_v49 }
  0x4d   : > { %784 = vmatpush3.bf16.msra.mxu1 %v842_v50 }
  0x50   : > { %571 = vmatmul.mubr.bf16.vlgmr.msra.gmra.mxu1 %v699_v51 }
  0xf0   : > { %v763_v52 = vpop.f32.mrf.mxu1 }
  0xf2   : > { %v764_v53 = vpop.f32.mrf.mxu1 }
  0xf3   : > { %v765_v62 = vadd.f32 %v764_v53, %v763_v52 }
  0xf4   : > { %v766_v54 = vpop.f32.mrf.mxu1 }
  0xf6   : > { %v767_v55 = vpop.f32.mrf.mxu1 }
  0xf7   : > { %v612_v56 = vpop.f32.mrf.mxu0 }
  0xf9   : > { %v614_v57 = vpop.f32.mrf.mxu0 }
  0xfb   : > { %v615_v58 = vpop.f32.mrf.mxu0 }
  0xfd   : > { %v616_v59 = vpop.f32.mrf.mxu0 }
 0x110   : > { %v785_v60 = vpop.f32.mrf.mxu1 }
 0x112   : > { %v786_v61 = vpop.f32.mrf.mxu1 }
 0x113   : > { %v787_v63 = vadd.f32 %v786_v61, %v785_v60 }
 0x114   : > { %v788_v0 = vpop.f32.mrf.mxu1 }
 0x115   : > { %v573_v1 = vadd.f32 %v787_v63, %v765_v62 }
 0x116   : > { %v789_v2 = vpop.f32.mrf.mxu1 }
 0x117   : > { %v613_v3 = vadd.f32 %v612_v56, %v573_v1 }
 0x119   : > { %v619_v4 = vsel %vm618_vm2, %v613_v3, 0.0 }
 0x11a   : > { %620 = vadd.xlane.f32.xlu0 %v619_v4 }
 0x1a3   : > { %v621_v5 = vpop.xlane.xlu0 %620 }
 0x1a4   : > { %v623_v6 = vmul.f32 0.015625, %v621_v5 }
 0x1a6   : > { %v624_v7 = vsub.f32 %v613_v3, %v623_v6 }
 0x1a8   : > { %v625_v8 = vmul.f32 %v624_v7, %v624_v7 }
 0x1aa   : > { %v626_v9 = vsel %vm618_vm2, %v625_v8, 0.0 }
 0x1ab   : > { %627 = vadd.xlane.f32.xlu0 %v626_v9 }
 0x234   : > { %v628_v10 = vpop.xlane.xlu0 %627 }
 0x235   : > { %v629_v11 = vmul.f32 0.015625, %v628_v10 }
 0x237   : > { %v630_v12 = vadd.f32 1e-05, %v629_v11 }
 0x239   : > { %848 = vrsqrt.f32 %v630_v12 }
 0x246   : > { %v849_v13 = vpop.eup %848 }
 0x247   : > { %v632_v14 = vmul.f32 %v849_v13, %v624_v7 }
 0x249   : > { %v633_v15 = vmax.f32 %v632_v14, 0.0 }
 0x24b   : > { %v634_v16 = vpack.c.bf16 %v633_v15, %v633_v15 }
 0x24d   : > { %636 = vst.msk [vmem:[%s141_s24] sm:$0xf] %vm635_vm3, %v634_v16 }
 0x24e PF: > { %s12_s9 = sadd.s32 1, %s856_s9  }
 0x24f   : > { %p9_p4 = scmp.ge.s32.totalorder %s12_s9, 4  }
 0x251   :  { %11 = sbr.rel (!%p9_p4) target bundleno = 1 (0x1), region = 58 }

// kernel: context_unet_forward.16
= control target key start
LH: loop header
LB: loop body
LE: loop exit
PB: predicated region body
PF: predicated region fallthrough
CT: control target
= control target key end

     0   :  { %s1409_s9 = smov 0   ;;  %s1576_s0 = inlined_call_operand.vmem [shape: bf16[2,432,512], index: 0, kind: input, shape index: {}]   ;;  %s1577_s1 = inlined_call_operand.vmem [shape: bf16[8,432], index: 1, kind: input, shape index: {}]   ;;  %s1578_s2 = inlined_call_operand.vmem [shape: bf16[2,8,512], index: 2, kind: output, shape index: {}]  }
   0x1 LB: > { %s1080_s10 = sadd.s32 4294967295, %s1392_s9   ;;  %p1084_p0 = scmp.ge.s32.totalorder %s1392_s9, 1  ;;  %s1392_s9 = sphi %s1409_s9, %s12_s9  }
   0x2   : > { %p112_p1 = scmp.lt.s32.totalorder %s1392_s9, 3 }
   0x4   : > { %p113_p2 = pnand %p1084_p0, %p112_p1 }
   0x5   : > { %p134_p3 = scmp.lt.s32.totalorder (!%p113_p2), %s1080_s10, 1 }
   0x6   : > { %116 = sbr.rel (%p113_p2) target bundleno = 637 (0x27d), region = 28 }
   0xb   : > { %v1420_v0 = vld [vmem:[%s1577_s1 + $0x8] sm:$0xff]  ;;  %vm808_vm0 = vcmask 392192   ;;  %v1425_v1 = vld [vmem:[%s1577_s1] sm:$0xff]  ;;  %s1580_s10 = smov (!%p134_p3, %s1080_s10), 1 }
   0xc   : > { %v1429_v2 = vcombine.high %v1420_v0, %v1420_v0  ;;  %v1433_v3 = vcombine.high %v1425_v1, %v1425_v1  ;;  %s1209_s15 = smul.u32 864, %s1580_s10  ;;  %v1494_v50 = vcombine.low %v1420_v0, %v1420_v0  ;;  %s1206_s19 = sshll.u32 %s1580_s10, 4 }
   0xd   : > { %s143_s22 = scalar_lea.vmem %s1578_s2, %s1206_s19 }
   0xe   : > { %1200 = vmatprep.mubr.msk.bf16.mxu1 %vm808_vm0, %v1429_v2  ;;  %844 = vmatprep.mubr.bf16.mxu0 %v1433_v3  ;;  %s1444_s18 = scalar_lea.vmem %s1576_s0, %s1209_s15 }
   0xf   : > { %v1218_v4 = vld [vmem:[%s1444_s18 + $0xe4] ss:$16 sps:$4 sm:$0xff]   ;;  %v1222_v6 = vld [vmem:[%s1444_s18 + $0xe0] ss:$16 sps:$4 sm:$0xff]   ;;  %v1290_v49 = vld [vmem:[%s1444_s18 + $0xec] ss:$16 sps:$4 sm:$0xff]  }
  0x10   : > { %v1220_v5 = vld [vmem:[%s1444_s18 + $0x2e4] ss:$16 sps:$4 sm:$0xff]   ;;  %812 = vmatprep.subr.bf16.mxu0 %v1218_v4  ;;  %v1223_v7 = vld [vmem:[%s1444_s18 + $0x2e0] ss:$16 sps:$4 sm:$0xff]   ;;  %v1288_v51 = vld [vmem:[%s1444_s18 + $0xe8] ss:$16 sps:$4 sm:$0xff]  }
  0x11   : > { %853 = vmatprep.subr.bf16.mxu1 %v1220_v5  ;;  %v1224_v8 = vld [vmem:[%s1444_s18 + $0xc4] ss:$16 sps:$4 sm:$0xff]   ;;  %813 = vmatpush1.bf16.msra.mxu0 %v1222_v6  ;;  %v1228_v10 = vld [vmem:[%s1444_s18 + $0xc0] ss:$16 sps:$4 sm:$0xff]   ;;  %v1296_v54 = vld [vmem:[%s1444_s18 + $0xcc] ss:$16 sps:$4 sm:$0xff]  }
  0x12   : > { %854 = vmatpush1.bf16.msra.mxu1 %v1223_v7  ;;  %v1226_v9 = vld [vmem:[%s1444_s18 + $0x2c4] ss:$16 sps:$4 sm:$0xff]   ;;  %814 = vmatprep.subr.bf16.mxu0 %v1224_v8  ;;  %v1229_v11 = vld [vmem:[%s1444_s18 + $0x2c0] ss:$16 sps:$4 sm:$0xff]   ;;  %v1294_v55 = vld [vmem:[%s1444_s18 + $0xc8] ss:$16 sps:$4 sm:$0xff]  }
  0x13   : > { %855 = vmatprep.subr.bf16.mxu1 %v1226_v9  ;;  %v1230_v12 = vld [vmem:[%s1444_s18 + $0xa4] ss:$16 sps:$4 sm:$0xff]   ;;  %v1234_v14 = vld [vmem:[%s1444_s18 + $0xa0] ss:$16 sps:$4 sm:$0xff]   ;;  %v1302_v58 = vld [vmem:[%s1444_s18 + $0xac] ss:$16 sps:$4 sm:$0xff]   ;;  %v1520_v9 = vcombine.low %v1425_v1, %v1425_v1 }
  0x14   : > { %v1232_v13 = vld [vmem:[%s1444_s18 + $0x2a4] ss:$16 sps:$4 sm:$0xff]   ;;  %v1235_v15 = vld [vmem:[%s1444_s18 + $0x2a0] ss:$16 sps:$4 sm:$0xff]   ;;  %v1300_v59 = vld [vmem:[%s1444_s18 + $0xa8] ss:$16 sps:$4 sm:$0xff]  }
  0x15   : > { %815 = vmatpush1.bf16.msra.mxu0 %v1228_v10  ;;  %v1236_v16 = vld [vmem:[%s1444_s18 + $0x84] ss:$16 sps:$4 sm:$0xff]   ;;  %v1240_v18 = vld [vmem:[%s1444_s18 + $0x80] ss:$16 sps:$4 sm:$0xff]   ;;  %v1308_v62 = vld [vmem:[%s1444_s18 + $0x8c] ss:$16 sps:$4 sm:$0xff]  }
  0x16   : > { %856 = vmatpush1.bf16.msra.mxu1 %v1229_v11  ;;  %816 = vmatprep.subr.bf16.mxu0 %v1230_v12  ;;  %v1238_v17 = vld [vmem:[%s1444_s18 + $0x284] ss:$16 sps:$4 sm:$0xff]   ;;  %v1241_v19 = vld [vmem:[%s1444_s18 + $0x280] ss:$16 sps:$4 sm:$0xff]   ;;  %v1306_v63 = vld [vmem:[%s1444_s18 + $0x88] ss:$16 sps:$4 sm:$0xff]  }
  0x17   : > { %857 = vmatprep.subr.bf16.mxu1 %v1232_v13  ;;  %v1242_v20 = vld [vmem:[%s1444_s18 + $0x64] ss:$16 sps:$4 sm:$0xff]   ;;  %v1246_v22 = vld [vmem:[%s1444_s18 + $0x60] ss:$16 sps:$4 sm:$0xff]   ;;  %v1314_v4 = vld [vmem:[%s1444_s18 + $0x6c] ss:$16 sps:$4 sm:$0xff]  }
  0x18   : > { %v1244_v21 = vld [vmem:[%s1444_s18 + $0x264] ss:$16 sps:$4 sm:$0xff]   ;;  %v1247_v23 = vld [vmem:[%s1444_s18 + $0x260] ss:$16 sps:$4 sm:$0xff]   ;;  %v1312_v5 = vld [vmem:[%s1444_s18 + $0x68] ss:$16 sps:$4 sm:$0xff]  }
  0x19   : > { %817 = vmatpush1.bf16.msra.mxu0 %v1234_v14  ;;  %v1248_v24 = vld [vmem:[%s1444_s18 + $0x44] ss:$16 sps:$4 sm:$0xff]   ;;  %v1252_v26 = vld [vmem:[%s1444_s18 + $0x40] ss:$16 sps:$4 sm:$0xff]   ;;  %v1320_v7 = vld [vmem:[%s1444_s18 + $0x4c] ss:$16 sps:$4 sm:$0xff]  }
  0x1a   : > { %858 = vmatpush1.bf16.msra.mxu1 %v1235_v15  ;;  %818 = vmatprep.subr.bf16.mxu0 %v1236_v16  ;;  %v1250_v25 = vld [vmem:[%s1444_s18 + $0x244] ss:$16 sps:$4 sm:$0xff]   ;;  %v1253_v27 = vld [vmem:[%s1444_s18 + $0x240] ss:$16 sps:$4 sm:$0xff]   ;;  %v1323_v8 = vld [vmem:[%s1444_s18 + $0x2ec] ss:$16 sps:$4 sm:$0xff]  }
  0x1b   : > { %859 = vmatprep.subr.bf16.mxu1 %v1238_v17  ;;  %v1254_v28 = vld [vmem:[%s1444_s18 + $0x24] ss:$16 sps:$4 sm:$0xff]   ;;  %v1258_v30 = vld [vmem:[%s1444_s18 + $0x20] ss:$16 sps:$4 sm:$0xff]   ;;  %v1318_v10 = vld [vmem:[%s1444_s18 + $0x48] ss:$16 sps:$4 sm:$0xff]  }
  0x1c   : > { %v1256_v29 = vld [vmem:[%s1444_s18 + $0x224] ss:$16 sps:$4 sm:$0xff]   ;;  %v1259_v31 = vld [vmem:[%s1444_s18 + $0x220] ss:$16 sps:$4 sm:$0xff]   ;;  %v1321_v11 = vld [vmem:[%s1444_s18 + $0x2e8] ss:$16 sps:$4 sm:$0xff]  }
  0x1d   : > { %819 = vmatpush1.bf16.msra.mxu0 %v1240_v18  ;;  %v1260_v32 = vld [vmem:[%s1444_s18 + $0x4] ss:$16 sps:$4 sm:$0xff]   ;;  %v1264_v34 = vld [vmem:[%s1444_s18] ss:$16 sps:$4 sm:$0xff]   ;;  %v1326_v12 = vld [vmem:[%s1444_s18 + $0x2c] ss:$16 sps:$4 sm:$0xff]  }
  0x1e   : > { %860 = vmatpush1.bf16.msra.mxu1 %v1241_v19  ;;  %820 = vmatprep.subr.bf16.mxu0 %v1242_v20  ;;  %v1262_v33 = vld [vmem:[%s1444_s18 + $0x204] ss:$16 sps:$4 sm:$0xff]   ;;  %v1265_v35 = vld [vmem:[%s1444_s18 + $0x200] ss:$16 sps:$4 sm:$0xff]   ;;  %v1329_v13 = vld [vmem:[%s1444_s18 + $0x2cc] ss:$16 sps:$4 sm:$0xff]  }
  0x1f   : > { %861 = vmatprep.subr.bf16.mxu1 %v1244_v21  ;;  %v1266_v36 = vld [vmem:[%s1444_s18 + $0x1e4] ss:$16 sps:$4 sm:$0xff]   ;;  %v1270_v38 = vld [vmem:[%s1444_s18 + $0x1e0] ss:$16 sps:$4 sm:$0xff]   ;;  %v1324_v14 = vld [vmem:[%s1444_s18 + $0x28] ss:$16 sps:$4 sm:$0xff]  }
  0x20   : > { %v1268_v37 = vld [vmem:[%s1444_s18 + $0x344] ss:$16 sps:$4 sm:$0xff]   ;;  %v1271_v39 = vld [vmem:[%s1444_s18 + $0x340] ss:$16 sps:$4 sm:$0xff]   ;;  %v1327_v15 = vld [vmem:[%s1444_s18 + $0x2c8] ss:$16 sps:$4 sm:$0xff]  }
  0x21   : > { %821 = vmatpush1.bf16.msra.mxu0 %v1246_v22  ;;  %v1272_v40 = vld [vmem:[%s1444_s18 + $0x1c4] ss:$16 sps:$4 sm:$0xff]   ;;  %v1276_v42 = vld [vmem:[%s1444_s18 + $0x1c0] ss:$16 sps:$4 sm:$0xff]   ;;  %v1332_v1 = vld [vmem:[%s1444_s18 + $0xc] ss:$16 sps:$4 sm:$0xff]  }
  0x22   : > { %862 = vmatpush1.bf16.msra.mxu1 %v1247_v23  ;;  %822 = vmatprep.subr.bf16.mxu0 %v1248_v24  ;;  %v1274_v41 = vld [vmem:[%s1444_s18 + $0x324] ss:$16 sps:$4 sm:$0xff]   ;;  %v1277_v43 = vld [vmem:[%s1444_s18 + $0x320] ss:$16 sps:$4 sm:$0xff]   ;;  %v1335_v16 = vld [vmem:[%s1444_s18 + $0x2ac] ss:$16 sps:$4 sm:$0xff]  }
  0x23   : > { %863 = vmatprep.subr.bf16.mxu1 %v1250_v25  ;;  %v1278_v44 = vld [vmem:[%s1444_s18 + $0x1a4] ss:$16 sps:$4 sm:$0xff]   ;;  %v1282_v46 = vld [vmem:[%s1444_s18 + $0x1a0] ss:$16 sps:$4 sm:$0xff]   ;;  %v1330_v17 = vld [vmem:[%s1444_s18 + $0x8] ss:$16 sps:$4 sm:$0xff]  }
  0x24   : > { %v1280_v45 = vld [vmem:[%s1444_s18 + $0x304] ss:$16 sps:$4 sm:$0xff]   ;;  %v1283_v47 = vld [vmem:[%s1444_s18 + $0x300] ss:$16 sps:$4 sm:$0xff]   ;;  %v1333_v18 = vld [vmem:[%s1444_s18 + $0x2a8] ss:$16 sps:$4 sm:$0xff]  }
  0x25   : > { %823 = vmatpush1.bf16.msra.mxu0 %v1252_v26  ;;  %v1286_v48 = vld [vmem:[%s1444_s18 + $0x184] ss:$16 sps:$4 sm:$0xff]   ;;  %v1291_v52 = vld [vmem:[%s1444_s18 + $0x180] ss:$16 sps:$4 sm:$0xff]   ;;  %v1338_v19 = vld [vmem:[%s1444_s18 + $0x1ec] ss:$16 sps:$4 sm:$0xff]  }
  0x26   : > { %864 = vmatpush1.bf16.msra.mxu1 %v1253_v27  ;;  %824 = vmatprep.subr.bf16.mxu0 %v1254_v28  ;;  %v1292_v53 = vld [vmem:[%s1444_s18 + $0x164] ss:$16 sps:$4 sm:$0xff]   ;;  %v1297_v56 = vld [vmem:[%s1444_s18 + $0x160] ss:$16 sps:$4 sm:$0xff]   ;;  %v1341_v20 = vld [vmem:[%s1444_s18 + $0x28c] ss:$16 sps:$4 sm:$0xff]  }
  0x27   : > { %865 = vmatprep.subr.bf16.mxu1 %v1256_v29  ;;  %v1298_v57 = vld [vmem:[%s1444_s18 + $0x144] ss:$16 sps:$4 sm:$0xff]   ;;  %v1303_v60 = vld [vmem:[%s1444_s18 + $0x140] ss:$16 sps:$4 sm:$0xff]   ;;  %v1336_v21 = vld [vmem:[%s1444_s18 + $0x1e8] ss:$16 sps:$4 sm:$0xff]  }
  0x28   : > { %v1304_v61 = vld [vmem:[%s1444_s18 + $0x124] ss:$16 sps:$4 sm:$0xff]   ;;  %v1309_v0 = vld [vmem:[%s1444_s18 + $0x120] ss:$16 sps:$4 sm:$0xff]   ;;  %v1339_v22 = vld [vmem:[%s1444_s18 + $0x288] ss:$16 sps:$4 sm:$0xff]  }
  0x29   : > { %825 = vmatpush1.bf16.msra.mxu0 %v1258_v30  ;;  %v1315_v6 = vld [vmem:[%s1444_s18 + $0x100] ss:$16 sps:$4 sm:$0xff]   ;;  %v1347_v23 = vld [vmem:[%s1444_s18 + $0x26c] ss:$16 sps:$4 sm:$0xff]   ;;  %v1342_v24 = vld [vmem:[%s1444_s18 + $0x1c8] ss:$16 sps:$4 sm:$0xff]  }
  0x2a   : > { %866 = vmatpush1.bf16.msra.mxu1 %v1259_v31  ;;  %826 = vmatprep.subr.bf16.mxu0 %v1260_v32  ;;  %v1345_v25 = vld [vmem:[%s1444_s18 + $0x268] ss:$16 sps:$4 sm:$0xff]   ;;  %v1350_v26 = vld [vmem:[%s1444_s18 + $0x1ac] ss:$16 sps:$4 sm:$0xff]  }
  0x2b   : > { %867 = vmatprep.subr.bf16.mxu1 %v1262_v33  ;;  %v1353_v27 = vld [vmem:[%s1444_s18 + $0x24c] ss:$16 sps:$4 sm:$0xff]   ;;  %v1348_v28 = vld [vmem:[%s1444_s18 + $0x1a8] ss:$16 sps:$4 sm:$0xff]  }
  0x2c   : > { %v1351_v29 = vld [vmem:[%s1444_s18 + $0x248] ss:$16 sps:$4 sm:$0xff]   ;;  %v1356_v30 = vld [vmem:[%s1444_s18 + $0x18c] ss:$16 sps:$4 sm:$0xff]  }
  0x2d   : > { %827 = vmatpush1.bf16.msra.mxu0 %v1264_v34  ;;  %v1359_v31 = vld [vmem:[%s1444_s18 + $0x22c] ss:$16 sps:$4 sm:$0xff]   ;;  %v1354_v32 = vld [vmem:[%s1444_s18 + $0x188] ss:$16 sps:$4 sm:$0xff]  }
  0x2e   : > { %868 = vmatpush1.bf16.msra.mxu1 %v1265_v35  ;;  %828 = vmatprep.subr.bf16.mxu0 %v1266_v36  ;;  %v1357_v33 = vld [vmem:[%s1444_s18 + $0x228] ss:$16 sps:$4 sm:$0xff]   ;;  %v1362_v34 = vld [vmem:[%s1444_s18 + $0x16c] ss:$16 sps:$4 sm:$0xff]  }
  0x2f   : > { %879 = vmatprep.subr.bf16.mxu1 %v1268_v37  ;;  %v1365_v35 = vld [vmem:[%s1444_s18 + $0x20c] ss:$16 sps:$4 sm:$0xff]   ;;  %v1360_v36 = vld [vmem:[%s1444_s18 + $0x168] ss:$16 sps:$4 sm:$0xff]  }
  0x30   : > { %v1363_v37 = vld [vmem:[%s1444_s18 + $0x208] ss:$16 sps:$4 sm:$0xff]  }
  0x31   : > { %829 = vmatpush2.bf16.msra.mxu0 %v1270_v38  ;;  %v1368_v38 = vld [vmem:[%s1444_s18 + $0x14c] ss:$16 sps:$4 sm:$0xff]  }
  0x32   : > { %880 = vmatpush2.bf16.msra.mxu1 %v1271_v39  ;;  %830 = vmatprep.subr.bf16.mxu0 %v1272_v40  ;;  %v1371_v39 = vld [vmem:[%s1444_s18 + $0x34c] ss:$16 sps:$4 sm:$0xff]   ;;  %v1366_v40 = vld [vmem:[%s1444_s18 + $0x148] ss:$16 sps:$4 sm:$0xff]  }
  0x33   : > { %881 = vmatprep.subr.bf16.mxu1 %v1274_v41  ;;  %v1369_v41 = vld [vmem:[%s1444_s18 + $0x348] ss:$16 sps:$4 sm:$0xff]  }
  0x35   : > { %831 = vmatpush2.bf16.msra.mxu0 %v1276_v42  ;;  %v1374_v42 = vld [vmem:[%s1444_s18 + $0x12c] ss:$16 sps:$4 sm:$0xff]  }
  0x36   : > { %882 = vmatpush2.bf16.msra.mxu1 %v1277_v43  ;;  %832 = vmatprep.subr.bf16.mxu0 %v1278_v44  ;;  %v1377_v43 = vld [vmem:[%s1444_s18 + $0x32c] ss:$16 sps:$4 sm:$0xff]   ;;  %v1372_v44 = vld [vmem:[%s1444_s18 + $0x128] ss:$16 sps:$4 sm:$0xff]  }
  0x37   : > { %883 = vmatprep.subr.bf16.mxu1 %v1280_v45  ;;  %v1375_v45 = vld [vmem:[%s1444_s18 + $0x328] ss:$16 sps:$4 sm:$0xff]  }
  0x39   : > { %833 = vmatpush2.bf16.msra.mxu0 %v1282_v46  ;;  %v1380_v46 = vld [vmem:[%s1444_s18 + $0x10c] ss:$16 sps:$4 sm:$0xff]  }
  0x3a   : > { %884 = vmatpush2.bf16.msra.mxu1 %v1283_v47  ;;  %834 = vmatprep.subr.bf16.mxu0 %v1286_v48  ;;  %v1383_v47 = vld [vmem:[%s1444_s18 + $0x30c] ss:$16 sps:$4 sm:$0xff]   ;;  %v1378_v48 = vld [vmem:[%s1444_s18 + $0x108] ss:$16 sps:$4 sm:$0xff]  }
  0x3b   : > { %894 = vmatprep.subr.bf16.mxu1 %v1290_v49  ;;  %v1381_v49 = vld [vmem:[%s1444_s18 + $0x308] ss:$16 sps:$4 sm:$0xff]  }
  0x3d   : > { %886 = vmatmul.mubr.bf16.vlgmr.msra.gmra.mxu1 %v1494_v50  ;;  %835 = vmatpush2.bf16.msra.mxu0 %v1291_v52 }
  0x3e   : > { %895 = vmatpush1.bf16.msra.mxu1 %v1288_v51  ;;  %836 = vmatprep.subr.bf16.mxu0 %v1292_v53 }
  0x3f   : > { %896 = vmatprep.subr.bf16.mxu1 %v1296_v54  ;;  %926 = vmatprep.mubr.bf16.mxu1 %v1433_v3  ;;  %v1310_v3 = vld [vmem:[%s1444_s18 + $0x104] ss:$16 sps:$4 sm:$0xff]  }
  0x41   : > { %837 = vmatpush2.bf16.msra.mxu0 %v1297_v56 }
  0x42   : > { %897 = vmatpush1.bf16.msra.mxu1 %v1294_v55  ;;  %838 = vmatprep.subr.bf16.mxu0 %v1298_v57 }
  0x43   : > { %898 = vmatprep.subr.bf16.mxu1 %v1302_v58 }
  0x45   : > { %839 = vmatpush2.bf16.msra.mxu0 %v1303_v60 }
  0x46   : > { %899 = vmatpush1.bf16.msra.mxu1 %v1300_v59  ;;  %840 = vmatprep.subr.bf16.mxu0 %v1304_v61 }
  0x47   : > { %900 = vmatprep.subr.bf16.mxu1 %v1308_v62 }
  0x49   : > { %841 = vmatpush2.bf16.msra.mxu0 %v1309_v0 }
  0x4a   : > { %901 = vmatpush1.bf16.msra.mxu1 %v1306_v63  ;;  %842 = vmatprep.subr.bf16.mxu0 %v1310_v3 }
  0x4b   : > { %902 = vmatprep.subr.bf16.mxu1 %v1314_v4 }
  0x4d   : > { %843 = vmatpush2.bf16.msra.mxu0 %v1315_v6 }
  0x4e   : > { %903 = vmatpush1.bf16.msra.mxu1 %v1312_v5  ;;  %935 = vmatprep.subr.bf16.mxu0 %v1323_v8 }
  0x4f   : > { %904 = vmatprep.subr.bf16.mxu1 %v1320_v7 }
  0x50   : > { %845 = vmatmul.mubr.bf16.vlgmr.msra.gmra.mxu0 %v1520_v9 }
  0x51   : > { %936 = vmatpush1.bf16.msra.mxu0 %v1321_v11  ;;  %1201 = vmatprep.mubr.msk.bf16.mxu0 %vm808_vm0, %v1429_v2  ;;  %v1344_v2 = vld [vmem:[%s1444_s18 + $0x1cc] ss:$16 sps:$4 sm:$0xff]  }
  0x52   : > { %905 = vmatpush1.bf16.msra.mxu1 %v1318_v10  ;;  %937 = vmatprep.subr.bf16.mxu0 %v1329_v13 }
  0x53   : > { %906 = vmatprep.subr.bf16.mxu1 %v1326_v12 }
  0x55   : > { %938 = vmatpush1.bf16.msra.mxu0 %v1327_v15 }
  0x56   : > { %907 = vmatpush1.bf16.msra.mxu1 %v1324_v14  ;;  %939 = vmatprep.subr.bf16.mxu0 %v1335_v16 }
  0x57   : > { %908 = vmatprep.subr.bf16.mxu1 %v1332_v1 }
  0x59   : > { %940 = vmatpush1.bf16.msra.mxu0 %v1333_v18 }
  0x5a   : > { %909 = vmatpush1.bf16.msra.mxu1 %v1330_v17  ;;  %941 = vmatprep.subr.bf16.mxu0 %v1341_v20 }
  0x5b   : > { %910 = vmatprep.subr.bf16.mxu1 %v1338_v19 }
  0x5d   : > { %942 = vmatpush1.bf16.msra.mxu0 %v1339_v22 }
  0x5e   : > { %911 = vmatpush2.bf16.msra.mxu1 %v1336_v21  ;;  %943 = vmatprep.subr.bf16.mxu0 %v1347_v23 }
  0x5f   : > { %912 = vmatprep.subr.bf16.mxu1 %v1344_v2 }
  0x61   : > { %944 = vmatpush1.bf16.msra.mxu0 %v1345_v25 }
  0x62   : > { %913 = vmatpush2.bf16.msra.mxu1 %v1342_v24  ;;  %945 = vmatprep.subr.bf16.mxu0 %v1353_v27 }
  0x63   : > { %914 = vmatprep.subr.bf16.mxu1 %v1350_v26 }
  0x65   : > { %946 = vmatpush1.bf16.msra.mxu0 %v1351_v29 }
  0x66   : > { %915 = vmatpush2.bf16.msra.mxu1 %v1348_v28  ;;  %947 = vmatprep.subr.bf16.mxu0 %v1359_v31 }
  0x67   : > { %916 = vmatprep.subr.bf16.mxu1 %v1356_v30 }
  0x69   : > { %948 = vmatpush1.bf16.msra.mxu0 %v1357_v33 }
  0x6a   : > { %917 = vmatpush2.bf16.msra.mxu1 %v1354_v32  ;;  %949 = vmatprep.subr.bf16.mxu0 %v1365_v35 }
  0x6b   : > { %918 = vmatprep.subr.bf16.mxu1 %v1362_v34 }
  0x6d   : > { %950 = vmatpush1.bf16.msra.mxu0 %v1363_v37 }
  0x6e   : > { %919 = vmatpush2.bf16.msra.mxu1 %v1360_v36  ;;  %961 = vmatprep.subr.bf16.mxu0 %v1371_v39 }
  0x6f   : > { %920 = vmatprep.subr.bf16.mxu1 %v1368_v38 }
  0x71   : > { %962 = vmatpush2.bf16.msra.mxu0 %v1369_v41 }
  0x72   : > { %921 = vmatpush2.bf16.msra.mxu1 %v1366_v40  ;;  %963 = vmatprep.subr.bf16.mxu0 %v1377_v43 }
  0x73   : > { %922 = vmatprep.subr.bf16.mxu1 %v1374_v42 }
  0x75   : > { %964 = vmatpush2.bf16.msra.mxu0 %v1375_v45 }
  0x76   : > { %923 = vmatpush2.bf16.msra.mxu1 %v1372_v44  ;;  %965 = vmatprep.subr.bf16.mxu0 %v1383_v47 }
  0x77   : > { %924 = vmatprep.subr.bf16.mxu1 %v1380_v46 }
  0x79   : > { %966 = vmatpush2.bf16.msra.mxu0 %v1381_v49 }
  0x7a   : > { %925 = vmatpush2.bf16.msra.mxu1 %v1378_v48 }
  0x7c   : > { %968 = vmatmul.mubr.bf16.vlgmr.msra.gmra.mxu0 %v1494_v50 }
  0x7d   : > { %927 = vmatmul.mubr.bf16.vlgmr.msra.gmra.mxu1 %v1520_v9 }
  0xfd   : > { %v887_v51 = vpop.f32.mrf.mxu1 }
  0xff   : > { %v889_v52 = vpop.f32.mrf.mxu1 }
 0x101   : > { %v891_v53 = vpop.f32.mrf.mxu1 }
 0x103   : > { %v892_v54 = vpop.f32.mrf.mxu1 }
 0x110   : > { %v846_v55 = vpop.f32.mrf.mxu0 }
 0x111   : > { %v888_v60 = vadd.f32 %v887_v51, %v846_v55 }
 0x112   : > { %v848_v56 = vpop.f32.mrf.mxu0 }
 0x113   : > { %v890_v59 = vadd.f32 %v889_v52, %v848_v56 }
 0x114   : > { %v850_v57 = vpop.f32.mrf.mxu0 }
 0x115   : > { %v976_v63 = vadd.f32 %v890_v59, %v888_v60 }
 0x116   : > { %v851_v58 = vpop.f32.mrf.mxu0 }
 0x13c   : > { %v969_v62 = vpop.f32.mrf.mxu0 }
 0x13d   : > { %v928_v61 = vpop.f32.mrf.mxu1 }
 0x13e   : > { %v970_v0 = vadd.f32 %v969_v62, %v928_v61  ;;  %v971_v4 = vpop.f32.mrf.mxu0 }
 0x13f   : > { %v930_v3 = vpop.f32.mrf.mxu1 }
 0x140   : > { %v972_v5 = vadd.f32 %v971_v4, %v930_v3  ;;  %v977_v6 = vadd.f32 %v976_v63, %v970_v0  ;;  %v973_v50 = vpop.f32.mrf.mxu0 }
 0x141   : > { %v932_v7 = vpop.f32.mrf.mxu1 }
 0x142   : > { %v978_v8 = vadd.f32 %v977_v6, %v972_v5  ;;  %v974_v10 = vpop.f32.mrf.mxu0 }
 0x143   : > { %v933_v9 = vpop.f32.mrf.mxu1 }
 0x144   : > { %979 = vadd.xlane.f32.xlu0 %v978_v8 }
 0x1cd   : > { %v980_v11 = vpop.xlane.xlu0 %979 }
 0x1ce   : > { %v982_v12 = vmul.f32 0.001953125, %v980_v11 }
 0x1d0   : > { %v983_v13 = vsub.f32 %v888_v60, %v982_v12  ;;  %v984_v14 = vsub.f32 %v890_v59, %v982_v12  ;;  %v985_v15 = vsub.f32 %v970_v0, %v982_v12  ;;  %v986_v1 = vsub.f32 %v972_v5, %v982_v12 }
 0x1d2   : > { %v987_v16 = vmul.f32 %v983_v13, %v983_v13  ;;  %v988_v17 = vmul.f32 %v984_v14, %v984_v14  ;;  %v989_v18 = vmul.f32 %v985_v15, %v985_v15  ;;  %v990_v20 = vmul.f32 %v986_v1, %v986_v1 }
 0x1d4   : > { %v991_v19 = vadd.f32 %v988_v17, %v987_v16 }
 0x1d6   : > { %v992_v21 = vadd.f32 %v991_v19, %v989_v18 }
 0x1d8   : > { %v993_v22 = vadd.f32 %v992_v21, %v990_v20 }
 0x1da   : > { %994 = vadd.xlane.f32.xlu0 %v993_v22 }
 0x263   : > { %v995_v2 = vpop.xlane.xlu0 %994 }
 0x264   : > { %v996_v23 = vmul.f32 0.001953125, %v995_v2 }
 0x266   : > { %v997_v24 = vadd.f32 1e-05, %v996_v23 }
 0x268   : > { %1384 = vrsqrt.f32 %v997_v24 }
 0x275   : > { %v1385_v25 = vpop.eup %1384 }
 0x276   : > { %v999_v26 = vmul.f32 %v1385_v25, %v983_v13  ;;  %v1000_v27 = vmul.f32 %v1385_v25, %v984_v14  ;;  %v1001_v28 = vmul.f32 %v1385_v25, %v985_v15  ;;  %v1002_v29 = vmul.f32 %v1385_v25, %v986_v1 }
 0x278   : > { %v1003_v30 = vmax.f32 %v999_v26, 0.0  ;;  %v1004_v31 = vmax.f32 %v1000_v27, 0.0  ;;  %v1005_v32 = vmax.f32 %v1001_v28, 0.0  ;;  %v1006_v33 = vmax.f32 %v1002_v29, 0.0 }
 0x27a   : > { %v1207_v34 = vpack.c.bf16 %v1004_v31, %v1003_v30  ;;  %v1208_v35 = vpack.c.bf16 %v1006_v33, %v1005_v32 }
 0x27c   : > { %1023 = vst [vmem:[%s143_s22] sm:$0xff] %v1207_v34  ;;  %1024 = vst [vmem:[%s143_s22 + $0x8] sm:$0xff] %v1208_v35 }
 0x27d PF: > { %s12_s9 = sadd.s32 1, %s1392_s9  }
 0x27e   : > { %p9_p4 = scmp.ge.s32.totalorder %s12_s9, 4  }
 0x280   :  { %11 = sbr.rel (!%p9_p4) target bundleno = 1 (0x1), region = 58 }

// kernel: context_unet_forward.17
= control target key start
LH: loop header
LB: loop body
LE: loop exit
PB: predicated region body
PF: predicated region fallthrough
CT: control target
= control target key end

     0   :  { %s8122_s12 = smov 0   ;;  %s9500_s0 = inlined_call_operand.vmem [shape: bf16[2,324,4096], index: 0, kind: input, shape index: {}]   ;;  %s9501_s1 = inlined_call_operand.vmem [shape: bf16[4,324], index: 1, kind: input, shape index: {}]   ;;  %s9502_s2 = inlined_call_operand.vmem [shape: f32[2,4], index: 2, kind: input, shape index: {}]   ;;  %s9503_s3 = inlined_call_operand.vmem [shape: f32[2,2,4096], index: 3, kind: output, shape index: {}]  }
   0x1 LB: > { %s7281_s13 = sadd.s32 4294967295, %s8097_s12   ;;  %p7285_p0 = scmp.ge.s32.totalorder %s8097_s12, 1  ;;  %s8097_s12 = sphi %s8122_s12, %s13_s12  }
   0x2   : > { %p137_p1 = scmp.lt.s32.totalorder %s8097_s12, 3 }
   0x4   : > { %p138_p2 = pnand %p7285_p0, %p137_p1 }
   0x5   : > { %p161_p3 = scmp.lt.s32.totalorder (!%p138_p2), %s7281_s13, 1 }
   0x6   : > { %141 = sbr.rel (%p138_p2) target bundleno = 1492 (0x5d4), region = 32 }
   0xb   : > { %v834_v0 = vlaneseq  ;;  %v8099_v1 = vmov 0   ;;  %s9505_s13 = smov (!%p161_p3, %s7281_s13), 1  ;;  %v8100_v2 = vmov 1983009808   ;;  %v8142_v6 = vld [vmem:[%s9501_s1] sm:$0x3f] }
   0xc   : > { %4302 = vmatprep.mubr.bf16.mxu1 %v8099_v1  ;;  %v832_v3 = vunpack.c.l.s4 %v8100_v2  ;;  %s8044_s14 = smul.u32 5248, %s9505_s13  ;;  %vm4132_vm0 = vcmask 1041408   ;;  %v830_v52 = vcombine.high %v8142_v6, %v8142_v6  ;;  %vm4128_vm1 = vcmask 556032   ;;  %s8043_s22 = sshll.u32 %s9505_s13, 6 }
   0xd   : > { %v835_v4 = vshrl.u32 %v834_v0, 7  ;;  %vm5541_vm2 = vcmask 1043456   ;;  %vm5806_vm3 = vcmask 31744   ;;  %s9473_s25 = scalar_lea.vmem %s9503_s3, %s8043_s22 }
   0xe   : > { %v833_v5 = vunpack.c.0.s8 %v832_v3  ;;  %s8137_s17 = scalar_lea.vmem %s9500_s0, %s8044_s14 }
   0xf   : > { %v397_v7 = vld [vmem:[%s8137_s17 + $0x700] sm:$0xff]  ;;  %v398_v50 = vld [vmem:[%s8137_s17 + $0x708] sm:$0xff] }
  0x10   : > { %v413_v8 = vld [vmem:[%s8137_s17 + $0x780] sm:$0xff]  ;;  %v8147_v10 = vsub.s32 %v833_v5, %v835_v4  ;;  %v414_v51 = vld [vmem:[%s8137_s17 + $0x788] sm:$0xff] }
  0x11   : > { %v813_v9 = vld [vmem:[%s8137_s17 + $0x1400] sm:$0x33]  ;;  %v7514_v11 = vcombine.high %v397_v7, %v413_v8  ;;  %v7513_v13 = vcombine.low %v397_v7, %v413_v8  ;;  %v7516_v56 = vcombine.high %v398_v50, %v414_v51  ;;  %v366_v59 = vld [vmem:[%s8137_s17 + $0x608] sm:$0xff]  ;;  %v7515_v62 = vcombine.low %v398_v50, %v414_v51 }
  0x12   : > { %v7930_v12 = vcombine.high %v813_v9, %v813_v9  ;;  %v7929_v14 = vcombine.low %v813_v9, %v813_v9  ;;  %v365_v15 = vld [vmem:[%s8137_s17 + $0x600] sm:$0xff]  ;;  %v8157_v22 = vrot.slane %v8142_v6, %v8147_v10  ;;  %v382_v60 = vld [vmem:[%s8137_s17 + $0x688] sm:$0xff]  ;;  %v8187_v61 = vrot.slane %v830_v52, %v8147_v10 }
  0x13   : > { %v381_v16 = vld [vmem:[%s8137_s17 + $0x680] sm:$0xff]  ;;  %4229 = vmatprep.subr.bf16.mxu0 %v7514_v11  ;;  %v7484_v2 = vcombine.high %v366_v59, %v382_v60  ;;  %v334_v5 = vld [vmem:[%s8137_s17 + $0x508] sm:$0xff]  ;;  %v7483_v7 = vcombine.low %v366_v59, %v382_v60 }
  0x14   : > { %v781_v17 = vld [vmem:[%s8137_s17 + $0x1300] sm:$0xff]  ;;  %v7482_v18 = vcombine.high %v365_v15, %v381_v16  ;;  %7961 = vmatprep.subr.msk.bf16.mxu1 %vm4132_vm0, %v7930_v12  ;;  %v4134_v23 = vsel %vm4132_vm0, %v7929_v14, 0  ;;  %4230 = vmatpush1.bf16.msra.mxu0 %v7513_v13  ;;  %v7481_v27 = vcombine.low %v365_v15, %v381_v16  ;;  %v8169_v35 = vcombine.high %v8157_v22, %v8157_v22  ;;  %v350_v6 = vld [vmem:[%s8137_s17 + $0x588] sm:$0xff] }
  0x15   : > { %v797_v19 = vld [vmem:[%s8137_s17 + $0x1380] sm:$0xff]  ;;  %4277 = vmatpush1.bf16.msra.mxu1 %v4134_v23  ;;  %v7452_v11 = vcombine.high %v334_v5, %v350_v6  ;;  %v302_v14 = vld [vmem:[%s8137_s17 + $0x408] sm:$0xff]  ;;  %v7451_v16 = vcombine.low %v334_v5, %v350_v6 }
  0x16   : > { %v333_v20 = vld [vmem:[%s8137_s17 + $0x500] sm:$0xff]  ;;  %v7898_v24 = vcombine.high %v781_v17, %v797_v19  ;;  %v7897_v28 = vcombine.low %v781_v17, %v797_v19  ;;  %4231 = vmatprep.subr.bf16.mxu0 %v7482_v18  ;;  %4261 = vmatprep.mubr.bf16.mxu0 %v8169_v35  ;;  %v318_v15 = vld [vmem:[%s8137_s17 + $0x488] sm:$0xff] }
  0x17   : > { %v349_v21 = vld [vmem:[%s8137_s17 + $0x580] sm:$0xff]  ;;  %v7420_v19 = vcombine.high %v302_v14, %v318_v15  ;;  %v270_v23 = vld [vmem:[%s8137_s17 + $0x308] sm:$0xff] }
  0x18   : > { %v749_v25 = vld [vmem:[%s8137_s17 + $0x1200] sm:$0xff]  ;;  %4278 = vmatprep.subr.bf16.mxu1 %v7898_v24  ;;  %v7450_v29 = vcombine.high %v333_v20, %v349_v21  ;;  %4232 = vmatpush1.bf16.msra.mxu0 %v7481_v27  ;;  %v7449_v36 = vcombine.low %v333_v20, %v349_v21  ;;  %v286_v24 = vld [vmem:[%s8137_s17 + $0x388] sm:$0xff] }
  0x19   : > { %v765_v26 = vld [vmem:[%s8137_s17 + $0x1280] sm:$0xff]  ;;  %4279 = vmatpush1.bf16.msra.mxu1 %v7897_v28  ;;  %v7388_v28 = vcombine.high %v270_v23, %v286_v24 }
  0x1a   : > { %v7866_v30 = vcombine.high %v749_v25, %v765_v26  ;;  %v301_v31 = vld [vmem:[%s8137_s17 + $0x400] sm:$0xff]  ;;  %v7865_v37 = vcombine.low %v749_v25, %v765_v26  ;;  %4233 = vmatprep.subr.bf16.mxu0 %v7450_v29  ;;  %v7419_v25 = vcombine.low %v302_v14, %v318_v15 }
  0x1b   : > { %v317_v32 = vld [vmem:[%s8137_s17 + $0x480] sm:$0xff] }
  0x1c   : > { %v717_v33 = vld [vmem:[%s8137_s17 + $0x1100] sm:$0xff]  ;;  %4280 = vmatprep.subr.bf16.mxu1 %v7866_v30  ;;  %v7418_v38 = vcombine.high %v301_v31, %v317_v32  ;;  %4234 = vmatpush1.bf16.msra.mxu0 %v7449_v36  ;;  %v7417_v44 = vcombine.low %v301_v31, %v317_v32  ;;  %v238_v31 = vld [vmem:[%s8137_s17 + $0x208] sm:$0xff] }
  0x1d   : > { %v733_v34 = vld [vmem:[%s8137_s17 + $0x1180] sm:$0xff]  ;;  %4281 = vmatpush1.bf16.msra.mxu1 %v7865_v37  ;;  %v254_v32 = vld [vmem:[%s8137_s17 + $0x288] sm:$0xff] }
  0x1e   : > { %v7834_v39 = vcombine.high %v717_v33, %v733_v34  ;;  %v269_v40 = vld [vmem:[%s8137_s17 + $0x300] sm:$0xff]  ;;  %v7833_v45 = vcombine.low %v717_v33, %v733_v34  ;;  %4235 = vmatprep.subr.bf16.mxu0 %v7418_v38  ;;  %v7387_v33 = vcombine.low %v270_v23, %v286_v24  ;;  %v7356_v37 = vcombine.high %v238_v31, %v254_v32 }
  0x1f   : > { %v285_v41 = vld [vmem:[%s8137_s17 + $0x380] sm:$0xff] }
  0x20   : > { %v685_v42 = vld [vmem:[%s8137_s17 + $0x1000] sm:$0xff]  ;;  %4282 = vmatprep.subr.bf16.mxu1 %v7834_v39  ;;  %v7386_v46 = vcombine.high %v269_v40, %v285_v41  ;;  %4236 = vmatpush1.bf16.msra.mxu0 %v7417_v44  ;;  %v7385_v53 = vcombine.low %v269_v40, %v285_v41  ;;  %v206_v40 = vld [vmem:[%s8137_s17 + $0x108] sm:$0xff] }
  0x21   : > { %v701_v43 = vld [vmem:[%s8137_s17 + $0x1080] sm:$0xff]  ;;  %4283 = vmatpush1.bf16.msra.mxu1 %v7833_v45  ;;  %v222_v41 = vld [vmem:[%s8137_s17 + $0x188] sm:$0xff] }
  0x22   : > { %v7802_v47 = vcombine.high %v685_v42, %v701_v43  ;;  %v237_v48 = vld [vmem:[%s8137_s17 + $0x200] sm:$0xff]  ;;  %v7801_v54 = vcombine.low %v685_v42, %v701_v43  ;;  %4237 = vmatprep.subr.bf16.mxu0 %v7386_v46  ;;  %v7355_v42 = vcombine.low %v238_v31, %v254_v32  ;;  %v7324_v45 = vcombine.high %v206_v40, %v222_v41 }
  0x23   : > { %v253_v49 = vld [vmem:[%s8137_s17 + $0x280] sm:$0xff]  ;;  %v7323_v50 = vcombine.low %v206_v40, %v222_v41 }
  0x24   : > { %4284 = vmatprep.subr.bf16.mxu1 %v7802_v47  ;;  %v7354_v55 = vcombine.high %v237_v48, %v253_v49  ;;  %v205_v57 = vld [vmem:[%s8137_s17 + $0x100] sm:$0xff]  ;;  %4238 = vmatpush1.bf16.msra.mxu0 %v7385_v53  ;;  %v7353_v63 = vcombine.low %v237_v48, %v253_v49  ;;  %v174_v48 = vld [vmem:[%s8137_s17 + $0x8] sm:$0xff] }
  0x25   : > { %v221_v58 = vld [vmem:[%s8137_s17 + $0x180] sm:$0xff]  ;;  %4285 = vmatpush1.bf16.msra.mxu1 %v7801_v54  ;;  %v190_v49 = vld [vmem:[%s8137_s17 + $0x88] sm:$0xff] }
  0x26   : > { %4239 = vmatprep.subr.bf16.mxu0 %v7354_v55  ;;  %4311 = vmatprep.subr.bf16.mxu1 %v7516_v56  ;;  %v7322_v0 = vcombine.high %v205_v57, %v221_v58  ;;  %v173_v3 = vld [vmem:[%s8137_s17] sm:$0xff]  ;;  %v7321_v8 = vcombine.low %v205_v57, %v221_v58  ;;  %v7292_v53 = vcombine.high %v174_v48, %v190_v49  ;;  %v654_v56 = vld [vmem:[%s8137_s17 + $0xf08] sm:$0xff] }
  0x27   : > { %v189_v4 = vld [vmem:[%s8137_s17 + $0x80] sm:$0xff]  ;;  %v670_v57 = vld [vmem:[%s8137_s17 + $0xf88] sm:$0xff]  ;;  %v7291_v58 = vcombine.low %v174_v48, %v190_v49 }
  0x28   : > { %7962 = vmatmul.mubr.msk.bf16.vlgmr.msra.gmra.mxu1 %vm4128_vm1, %v8187_v61  ;;  %4240 = vmatpush1.bf16.msra.mxu0 %v7353_v63  ;;  %v7290_v9 = vcombine.high %v173_v3, %v189_v4  ;;  %v653_v12 = vld [vmem:[%s8137_s17 + $0xf00] sm:$0xff]  ;;  %v7289_v17 = vcombine.low %v173_v3, %v189_v4  ;;  %v638_v3 = vld [vmem:[%s8137_s17 + $0xe88] sm:$0xff]  ;;  %v7771_v4 = vcombine.low %v654_v56, %v670_v57 }
  0x29   : > { %4312 = vmatpush1.bf16.msra.mxu1 %v7515_v62  ;;  %4241 = vmatprep.subr.bf16.mxu0 %v7322_v0  ;;  %v669_v13 = vld [vmem:[%s8137_s17 + $0xf80] sm:$0xff]  ;;  %v7772_v62 = vcombine.high %v654_v56, %v670_v57 }
  0x2a   : > { %4313 = vmatprep.subr.bf16.mxu1 %v7484_v2  ;;  %4343 = vmatprep.mubr.bf16.mxu1 %v8169_v35  ;;  %v7770_v18 = vcombine.high %v653_v12, %v669_v13  ;;  %v621_v20 = vld [vmem:[%s8137_s17 + $0xe00] sm:$0xff]  ;;  %v7769_v26 = vcombine.low %v653_v12, %v669_v13  ;;  %v622_v2 = vld [vmem:[%s8137_s17 + $0xe08] sm:$0xff] }
  0x2b   : > { %v637_v21 = vld [vmem:[%s8137_s17 + $0xe80] sm:$0xff]  ;;  %v606_v12 = vld [vmem:[%s8137_s17 + $0xd88] sm:$0xff]  ;;  %v7739_v13 = vcombine.low %v622_v2, %v638_v3 }
  0x2c   : > { %4242 = vmatpush1.bf16.msra.mxu0 %v7321_v8  ;;  %v7738_v27 = vcombine.high %v621_v20, %v637_v21  ;;  %v589_v29 = vld [vmem:[%s8137_s17 + $0xd00] sm:$0xff]  ;;  %v7737_v34 = vcombine.low %v621_v20, %v637_v21 }
  0x2d   : > { %4314 = vmatpush1.bf16.msra.mxu1 %v7483_v7  ;;  %4243 = vmatprep.subr.bf16.mxu0 %v7290_v9  ;;  %v605_v30 = vld [vmem:[%s8137_s17 + $0xd80] sm:$0xff]  ;;  %v7740_v7 = vcombine.high %v622_v2, %v638_v3 }
  0x2e   : > { %4315 = vmatprep.subr.bf16.mxu1 %v7452_v11  ;;  %v7706_v36 = vcombine.high %v589_v29, %v605_v30  ;;  %v557_v38 = vld [vmem:[%s8137_s17 + $0xc00] sm:$0xff]  ;;  %v7705_v43 = vcombine.low %v589_v29, %v605_v30  ;;  %v590_v11 = vld [vmem:[%s8137_s17 + $0xd08] sm:$0xff] }
  0x2f   : > { %v573_v39 = vld [vmem:[%s8137_s17 + $0xc80] sm:$0xff]  ;;  %v7707_v20 = vcombine.low %v590_v11, %v606_v12  ;;  %v798_v29 = vld [vmem:[%s8137_s17 + $0x1388] sm:$0xff] }
  0x30   : > { %4244 = vmatpush1.bf16.msra.mxu0 %v7289_v17  ;;  %v7674_v44 = vcombine.high %v557_v38, %v573_v39  ;;  %v525_v46 = vld [vmem:[%s8137_s17 + $0xb00] sm:$0xff]  ;;  %v7673_v51 = vcombine.low %v557_v38, %v573_v39  ;;  %v558_v17 = vld [vmem:[%s8137_s17 + $0xc08] sm:$0xff] }
  0x31   : > { %4316 = vmatpush1.bf16.msra.mxu1 %v7451_v16  ;;  %4245 = vmatprep.subr.bf16.mxu0 %v7770_v18  ;;  %v541_v47 = vld [vmem:[%s8137_s17 + $0xb80] sm:$0xff]  ;;  %v7708_v16 = vcombine.high %v590_v11, %v606_v12  ;;  %v574_v18 = vld [vmem:[%s8137_s17 + $0xc88] sm:$0xff] }
  0x32   : > { %4317 = vmatprep.subr.bf16.mxu1 %v7420_v19  ;;  %v7642_v52 = vcombine.high %v525_v46, %v541_v47  ;;  %v493_v54 = vld [vmem:[%s8137_s17 + $0xa00] sm:$0xff]  ;;  %v7641_v59 = vcombine.low %v525_v46, %v541_v47  ;;  %v814_v19 = vld [vmem:[%s8137_s17 + $0x1408] sm:$0x33]  ;;  %v7676_v23 = vcombine.high %v558_v17, %v574_v18  ;;  %v7675_v30 = vcombine.low %v558_v17, %v574_v18  ;;  %v767_v17 = vld [vmem:[%s8137_s17 + $0x1290] sm:$0xff] }
  0x33   : > { %v509_v55 = vld [vmem:[%s8137_s17 + $0xa80] sm:$0xff]  ;;  %v7932_v24 = vcombine.high %v814_v19, %v814_v19  ;;  %v766_v38 = vld [vmem:[%s8137_s17 + $0x1288] sm:$0xff] }
  0x34   : > { %4246 = vmatpush2.bf16.msra.mxu0 %v7769_v26  ;;  %v7610_v60 = vcombine.high %v493_v54, %v509_v55  ;;  %v461_v63 = vld [vmem:[%s8137_s17 + $0x900] sm:$0xff]  ;;  %v7609_v5 = vcombine.low %v493_v54, %v509_v55  ;;  %v526_v26 = vld [vmem:[%s8137_s17 + $0xb08] sm:$0xff] }
  0x35   : > { %4318 = vmatpush1.bf16.msra.mxu1 %v7419_v25  ;;  %4247 = vmatprep.subr.bf16.mxu0 %v7738_v27  ;;  %v477_v0 = vld [vmem:[%s8137_s17 + $0x980] sm:$0xff]  ;;  %v7931_v25 = vcombine.low %v814_v19, %v814_v19  ;;  %v542_v27 = vld [vmem:[%s8137_s17 + $0xb88] sm:$0xff] }
  0x36   : > { %4319 = vmatprep.subr.bf16.mxu1 %v7388_v28  ;;  %v7578_v6 = vcombine.high %v461_v63, %v477_v0  ;;  %v429_v8 = vld [vmem:[%s8137_s17 + $0x800] sm:$0xff]  ;;  %v7577_v14 = vcombine.low %v461_v63, %v477_v0  ;;  %v782_v28 = vld [vmem:[%s8137_s17 + $0x1308] sm:$0xff]  ;;  %v7644_v32 = vcombine.high %v526_v26, %v542_v27  ;;  %v7643_v39 = vcombine.low %v526_v26, %v542_v27  ;;  %v735_v26 = vld [vmem:[%s8137_s17 + $0x1190] sm:$0xff] }
  0x37   : > { %v445_v9 = vld [vmem:[%s8137_s17 + $0x880] sm:$0xff]  ;;  %v4140_v31 = vsel %vm4132_vm0, %v7931_v25, 0  ;;  %v7899_v40 = vcombine.low %v782_v28, %v798_v29  ;;  %v734_v46 = vld [vmem:[%s8137_s17 + $0x1188] sm:$0xff]  ;;  %v719_v25 = vld [vmem:[%s8137_s17 + $0x1110] sm:$0xff] }
  0x38   : > { %4248 = vmatpush2.bf16.msra.mxu0 %v7737_v34  ;;  %v7546_v15 = vcombine.high %v429_v8, %v445_v9  ;;  %v7545_v21 = vcombine.low %v429_v8, %v445_v9  ;;  %v494_v34 = vld [vmem:[%s8137_s17 + $0xa08] sm:$0xff]  ;;  %v799_v8 = vld [vmem:[%s8137_s17 + $0x1390] sm:$0xff] }
  0x39   : > { %4320 = vmatpush1.bf16.msra.mxu1 %v7387_v33  ;;  %4249 = vmatprep.subr.bf16.mxu0 %v7706_v36  ;;  %v7900_v33 = vcombine.high %v782_v28, %v798_v29  ;;  %v510_v36 = vld [vmem:[%s8137_s17 + $0xa88] sm:$0xff] }
  0x3a   : > { %4321 = vmatprep.subr.bf16.mxu1 %v7356_v37  ;;  %v750_v37 = vld [vmem:[%s8137_s17 + $0x1208] sm:$0xff]  ;;  %v7612_v41 = vcombine.high %v494_v34, %v510_v36  ;;  %v7611_v47 = vcombine.low %v494_v34, %v510_v36  ;;  %v703_v34 = vld [vmem:[%s8137_s17 + $0x1090] sm:$0xff] }
  0x3b   : > { %v7867_v48 = vcombine.low %v750_v37, %v766_v38  ;;  %v702_v54 = vld [vmem:[%s8137_s17 + $0x1088] sm:$0xff] }
  0x3c   : > { %4250 = vmatpush2.bf16.msra.mxu0 %v7705_v43  ;;  %v462_v43 = vld [vmem:[%s8137_s17 + $0x908] sm:$0xff] }
  0x3d   : > { %4322 = vmatpush1.bf16.msra.mxu1 %v7355_v42  ;;  %4251 = vmatprep.subr.bf16.mxu0 %v7674_v44  ;;  %v7868_v42 = vcombine.high %v750_v37, %v766_v38  ;;  %v478_v44 = vld [vmem:[%s8137_s17 + $0x988] sm:$0xff]  ;;  %v7837_v37 = vcombine.low %v719_v25, %v735_v26 }
  0x3e   : > { %4323 = vmatprep.subr.bf16.mxu1 %v7324_v45  ;;  %v718_v45 = vld [vmem:[%s8137_s17 + $0x1108] sm:$0xff]  ;;  %v7580_v49 = vcombine.high %v462_v43, %v478_v44  ;;  %v7579_v55 = vcombine.low %v462_v43, %v478_v44  ;;  %v416_v43 = vld [vmem:[%s8137_s17 + $0x798] sm:$0xff] }
  0x3f   : > { %v7835_v56 = vcombine.low %v718_v45, %v734_v46 }
  0x40   : > { %4252 = vmatpush2.bf16.msra.mxu0 %v7673_v51  ;;  %v430_v51 = vld [vmem:[%s8137_s17 + $0x808] sm:$0xff] }
  0x41   : > { %4324 = vmatpush1.bf16.msra.mxu1 %v7323_v50  ;;  %4253 = vmatprep.subr.bf16.mxu0 %v7642_v52  ;;  %v7836_v50 = vcombine.high %v718_v45, %v734_v46  ;;  %v446_v52 = vld [vmem:[%s8137_s17 + $0x888] sm:$0xff] }
  0x42   : > { %4325 = vmatprep.subr.bf16.mxu1 %v7292_v53  ;;  %v686_v53 = vld [vmem:[%s8137_s17 + $0x1008] sm:$0xff]  ;;  %v7548_v57 = vcombine.high %v430_v51, %v446_v52  ;;  %v7547_v63 = vcombine.low %v430_v51, %v446_v52  ;;  %v384_v51 = vld [vmem:[%s8137_s17 + $0x698] sm:$0xff] }
  0x43   : > { %v7803_v0 = vcombine.low %v686_v53, %v702_v54 }
  0x44   : > { %4254 = vmatpush2.bf16.msra.mxu0 %v7641_v59  ;;  %v399_v59 = vld [vmem:[%s8137_s17 + $0x710] sm:$0xff] }
  0x45   : > { %4326 = vmatpush1.bf16.msra.mxu1 %v7291_v58  ;;  %4255 = vmatprep.subr.bf16.mxu0 %v7610_v60  ;;  %v7804_v58 = vcombine.high %v686_v53, %v702_v54  ;;  %v415_v60 = vld [vmem:[%s8137_s17 + $0x790] sm:$0xff] }
  0x46   : > { %4327 = vmatprep.subr.bf16.mxu1 %v7772_v62  ;;  %v815_v62 = vld [vmem:[%s8137_s17 + $0x1410] sm:$0x33]  ;;  %v7518_v2 = vcombine.high %v399_v59, %v415_v60  ;;  %v7517_v9 = vcombine.low %v399_v59, %v415_v60  ;;  %v352_v59 = vld [vmem:[%s8137_s17 + $0x598] sm:$0xff] }
  0x47   : > { %v7934_v3 = vcombine.high %v815_v62, %v815_v62 }
  0x48   : > { %4256 = vmatpush2.bf16.msra.mxu0 %v7609_v5  ;;  %v367_v5 = vld [vmem:[%s8137_s17 + $0x610] sm:$0xff] }
  0x49   : > { %4328 = vmatpush2.bf16.msra.mxu1 %v7771_v4  ;;  %4257 = vmatprep.subr.bf16.mxu0 %v7578_v6  ;;  %v7933_v4 = vcombine.low %v815_v62, %v815_v62  ;;  %v383_v6 = vld [vmem:[%s8137_s17 + $0x690] sm:$0xff] }
  0x4a   : > { %4329 = vmatprep.subr.bf16.mxu1 %v7740_v7  ;;  %v783_v7 = vld [vmem:[%s8137_s17 + $0x1310] sm:$0xff]  ;;  %v7486_v12 = vcombine.high %v367_v5, %v383_v6  ;;  %v7485_v18 = vcombine.low %v367_v5, %v383_v6  ;;  %v320_v5 = vld [vmem:[%s8137_s17 + $0x498] sm:$0xff] }
  0x4b   : > { %v4146_v11 = vsel %vm4132_vm0, %v7933_v4, 0  ;;  %v7901_v19 = vcombine.low %v783_v7, %v799_v8  ;;  %v304_v4 = vld [vmem:[%s8137_s17 + $0x418] sm:$0xff] }
  0x4c   : > { %4258 = vmatpush2.bf16.msra.mxu0 %v7577_v14  ;;  %v335_v14 = vld [vmem:[%s8137_s17 + $0x510] sm:$0xff] }
  0x4d   : > { %4330 = vmatpush2.bf16.msra.mxu1 %v7739_v13  ;;  %4259 = vmatprep.subr.bf16.mxu0 %v7546_v15  ;;  %v7902_v13 = vcombine.high %v783_v7, %v799_v8  ;;  %v351_v15 = vld [vmem:[%s8137_s17 + $0x590] sm:$0xff] }
  0x4e   : > { %4331 = vmatprep.subr.bf16.mxu1 %v7708_v16  ;;  %v751_v16 = vld [vmem:[%s8137_s17 + $0x1210] sm:$0xff]  ;;  %v7453_v27 = vcombine.low %v335_v14, %v351_v15 }
  0x4f   : > { %v7869_v28 = vcombine.low %v751_v16, %v767_v17 }
  0x50   : > { %4260 = vmatpush2.bf16.msra.mxu0 %v7545_v21  ;;  %v7870_v21 = vcombine.high %v751_v16, %v767_v17  ;;  %v7423_v16 = vcombine.low %v304_v4, %v320_v5 }
  0x51   : > { %4332 = vmatpush2.bf16.msra.mxu1 %v7707_v20  ;;  %7963 = vmatprep.subr.msk.bf16.mxu0 %vm4132_vm0, %v7932_v24  ;;  %v7454_v20 = vcombine.high %v335_v14, %v351_v15  ;;  %v319_v24 = vld [vmem:[%s8137_s17 + $0x490] sm:$0xff]  ;;  %v288_v14 = vld [vmem:[%s8137_s17 + $0x398] sm:$0xff] }
  0x52   : > { %4333 = vmatprep.subr.bf16.mxu1 %v7676_v23  ;;  %v303_v23 = vld [vmem:[%s8137_s17 + $0x410] sm:$0xff] }
  0x53   : > { %4262 = vmatmul.mubr.bf16.vlgmr.msra.gmra.mxu0 %v8157_v22  ;;  %v7422_v29 = vcombine.high %v303_v23, %v319_v24  ;;  %v7421_v36 = vcombine.low %v303_v23, %v319_v24  ;;  %v256_v23 = vld [vmem:[%s8137_s17 + $0x298] sm:$0xff] }
  0x54   : > { %4359 = vmatpush1.bf16.msra.mxu0 %v4140_v31  ;;  %4384 = vmatprep.mubr.bf16.mxu0 %v8099_v1  ;;  %v271_v31 = vld [vmem:[%s8137_s17 + $0x310] sm:$0xff] }
  0x55   : > { %4334 = vmatpush2.bf16.msra.mxu1 %v7675_v30  ;;  %4360 = vmatprep.subr.bf16.mxu0 %v7900_v33  ;;  %v7838_v30 = vcombine.high %v719_v25, %v735_v26  ;;  %v687_v33 = vld [vmem:[%s8137_s17 + $0x1010] sm:$0xff] }
  0x56   : > { %4335 = vmatprep.subr.bf16.mxu1 %v7644_v32  ;;  %v287_v32 = vld [vmem:[%s8137_s17 + $0x390] sm:$0xff]  ;;  %v7805_v45 = vcombine.low %v687_v33, %v703_v34 }
  0x57   : > { %v7390_v38 = vcombine.high %v271_v31, %v287_v32  ;;  %v7389_v44 = vcombine.low %v271_v31, %v287_v32  ;;  %v224_v31 = vld [vmem:[%s8137_s17 + $0x198] sm:$0xff] }
  0x58   : > { %4361 = vmatpush1.bf16.msra.mxu0 %v7899_v40  ;;  %v239_v40 = vld [vmem:[%s8137_s17 + $0x210] sm:$0xff] }
  0x59   : > { %4336 = vmatpush2.bf16.msra.mxu1 %v7643_v39  ;;  %4362 = vmatprep.subr.bf16.mxu0 %v7868_v42  ;;  %v7806_v39 = vcombine.high %v687_v33, %v703_v34  ;;  %v400_v42 = vld [vmem:[%s8137_s17 + $0x718] sm:$0xff] }
  0x5a   : > { %4337 = vmatprep.subr.bf16.mxu1 %v7612_v41  ;;  %v255_v41 = vld [vmem:[%s8137_s17 + $0x290] sm:$0xff]  ;;  %v7519_v53 = vcombine.low %v400_v42, %v416_v43 }
  0x5b   : > { %v7358_v46 = vcombine.high %v239_v40, %v255_v41  ;;  %v7357_v52 = vcombine.low %v239_v40, %v255_v41  ;;  %v192_v40 = vld [vmem:[%s8137_s17 + $0x98] sm:$0xff] }
  0x5c   : > { %4363 = vmatpush1.bf16.msra.mxu0 %v7867_v48  ;;  %v207_v48 = vld [vmem:[%s8137_s17 + $0x110] sm:$0xff] }
  0x5d   : > { %4338 = vmatpush2.bf16.msra.mxu1 %v7611_v47  ;;  %4364 = vmatprep.subr.bf16.mxu0 %v7836_v50  ;;  %v7520_v47 = vcombine.high %v400_v42, %v416_v43  ;;  %v368_v50 = vld [vmem:[%s8137_s17 + $0x618] sm:$0xff] }
  0x5e   : > { %4339 = vmatprep.subr.bf16.mxu1 %v7580_v49  ;;  %v223_v49 = vld [vmem:[%s8137_s17 + $0x190] sm:$0xff]  ;;  %v7487_v62 = vcombine.low %v368_v50, %v384_v51 }
  0x5f   : > { %v7326_v54 = vcombine.high %v207_v48, %v223_v49  ;;  %v7325_v60 = vcombine.low %v207_v48, %v223_v49  ;;  %v672_v48 = vld [vmem:[%s8137_s17 + $0xf98] sm:$0xff] }
  0x60   : > { %4365 = vmatpush1.bf16.msra.mxu0 %v7835_v56  ;;  %v175_v56 = vld [vmem:[%s8137_s17 + $0x10] sm:$0xff] }
  0x61   : > { %4340 = vmatpush2.bf16.msra.mxu1 %v7579_v55  ;;  %4366 = vmatprep.subr.bf16.mxu0 %v7804_v58  ;;  %v7488_v55 = vcombine.high %v368_v50, %v384_v51  ;;  %v336_v58 = vld [vmem:[%s8137_s17 + $0x518] sm:$0xff] }
  0x62   : > { %4341 = vmatprep.subr.bf16.mxu1 %v7548_v57  ;;  %v191_v57 = vld [vmem:[%s8137_s17 + $0x90] sm:$0xff]  ;;  %v7455_v7 = vcombine.low %v336_v58, %v352_v59 }
  0x63   : > { %v7293_v6 = vcombine.low %v175_v56, %v191_v57 }
  0x64   : > { %4367 = vmatpush1.bf16.msra.mxu0 %v7803_v0  ;;  %v7456_v0 = vcombine.high %v336_v58, %v352_v59 }
  0x65   : > { %4342 = vmatpush2.bf16.msra.mxu1 %v7547_v63  ;;  %4393 = vmatprep.subr.bf16.mxu0 %v7518_v2  ;;  %v7294_v63 = vcombine.high %v175_v56, %v191_v57  ;;  %v655_v2 = vld [vmem:[%s8137_s17 + $0xf10] sm:$0xff]  ;;  %v640_v56 = vld [vmem:[%s8137_s17 + $0xe98] sm:$0xff] }
  0x66   : > { %7965 = vmatprep.subr.msk.bf16.mxu1 %vm4132_vm0, %v7934_v3  ;;  %v671_v3 = vld [vmem:[%s8137_s17 + $0xf90] sm:$0xff] }
  0x67   : > { %7964 = vmatmul.mubr.msk.bf16.vlgmr.msra.gmra.mxu0 %vm4128_vm1, %v8187_v61  ;;  %v7774_v8 = vcombine.high %v655_v2, %v671_v3  ;;  %v7773_v15 = vcombine.low %v655_v2, %v671_v3  ;;  %v608_v2 = vld [vmem:[%s8137_s17 + $0xd98] sm:$0xff] }
  0x68   : > { %4344 = vmatmul.mubr.bf16.vlgmr.msra.gmra.mxu1 %v8157_v22  ;;  %4394 = vmatpush1.bf16.msra.mxu0 %v7517_v9  ;;  %v7424_v9 = vcombine.high %v304_v4, %v320_v5 }
  0x69   : > { %4441 = vmatpush1.bf16.msra.mxu1 %v4146_v11  ;;  %4395 = vmatprep.subr.bf16.mxu0 %v7486_v12  ;;  %v623_v11 = vld [vmem:[%s8137_s17 + $0xe10] sm:$0xff] }
  0x6a   : > { %4442 = vmatprep.subr.bf16.mxu1 %v7902_v13  ;;  %4466 = vmatprep.mubr.bf16.mxu1 %v8099_v1  ;;  %v639_v12 = vld [vmem:[%s8137_s17 + $0xe90] sm:$0xff]  ;;  %v272_v13 = vld [vmem:[%s8137_s17 + $0x318] sm:$0xff] }
  0x6b   : > { %4425 = vmatprep.mubr.bf16.mxu0 %v8169_v35  ;;  %v7742_v17 = vcombine.high %v623_v11, %v639_v12  ;;  %v7741_v24 = vcombine.low %v623_v11, %v639_v12  ;;  %v7391_v25 = vcombine.low %v272_v13, %v288_v14 }
  0x6c   : > { %4396 = vmatpush1.bf16.msra.mxu0 %v7485_v18  ;;  %v7392_v18 = vcombine.high %v272_v13, %v288_v14 }
  0x6d   : > { %4443 = vmatpush1.bf16.msra.mxu1 %v7901_v19  ;;  %4397 = vmatprep.subr.bf16.mxu0 %v7454_v20  ;;  %v591_v19 = vld [vmem:[%s8137_s17 + $0xd10] sm:$0xff] }
  0x6e   : > { %4444 = vmatprep.subr.bf16.mxu1 %v7870_v21  ;;  %v607_v20 = vld [vmem:[%s8137_s17 + $0xd90] sm:$0xff]  ;;  %v240_v21 = vld [vmem:[%s8137_s17 + $0x218] sm:$0xff] }
  0x6f   : > { %v7710_v26 = vcombine.high %v591_v19, %v607_v20  ;;  %v7709_v32 = vcombine.low %v591_v19, %v607_v20  ;;  %v7359_v33 = vcombine.low %v240_v21, %v256_v23  ;;  %v800_v19 = vld [vmem:[%s8137_s17 + $0x1398] sm:$0xff] }
  0x70   : > { %4398 = vmatpush1.bf16.msra.mxu0 %v7453_v27  ;;  %v7360_v27 = vcombine.high %v240_v21, %v256_v23 }
  0x71   : > { %4445 = vmatpush1.bf16.msra.mxu1 %v7869_v28  ;;  %4399 = vmatprep.subr.bf16.mxu0 %v7422_v29  ;;  %v559_v28 = vld [vmem:[%s8137_s17 + $0xc10] sm:$0xff] }
  0x72   : > { %4446 = vmatprep.subr.bf16.mxu1 %v7838_v30  ;;  %v575_v29 = vld [vmem:[%s8137_s17 + $0xc90] sm:$0xff]  ;;  %v208_v30 = vld [vmem:[%s8137_s17 + $0x118] sm:$0xff] }
  0x73   : > { %v7678_v34 = vcombine.high %v559_v28, %v575_v29  ;;  %v7677_v41 = vcombine.low %v559_v28, %v575_v29  ;;  %v7327_v42 = vcombine.low %v208_v30, %v224_v31  ;;  %v768_v28 = vld [vmem:[%s8137_s17 + $0x1298] sm:$0xff] }
  0x74   : > { %4400 = vmatpush1.bf16.msra.mxu0 %v7421_v36  ;;  %v7328_v36 = vcombine.high %v208_v30, %v224_v31 }
  0x75   : > { %4447 = vmatpush1.bf16.msra.mxu1 %v7837_v37  ;;  %4401 = vmatprep.subr.bf16.mxu0 %v7390_v38  ;;  %v527_v37 = vld [vmem:[%s8137_s17 + $0xb10] sm:$0xff] }
  0x76   : > { %4448 = vmatprep.subr.bf16.mxu1 %v7806_v39  ;;  %v543_v38 = vld [vmem:[%s8137_s17 + $0xb90] sm:$0xff]  ;;  %v176_v39 = vld [vmem:[%s8137_s17 + $0x18] sm:$0xff] }
  0x77   : > { %v7646_v43 = vcombine.high %v527_v37, %v543_v38  ;;  %v7645_v49 = vcombine.low %v527_v37, %v543_v38  ;;  %v7295_v50 = vcombine.low %v176_v39, %v192_v40  ;;  %v736_v37 = vld [vmem:[%s8137_s17 + $0x1198] sm:$0xff] }
  0x78   : > { %4402 = vmatpush1.bf16.msra.mxu0 %v7389_v44  ;;  %v7296_v44 = vcombine.high %v176_v39, %v192_v40 }
  0x79   : > { %4449 = vmatpush1.bf16.msra.mxu1 %v7805_v45  ;;  %4403 = vmatprep.subr.bf16.mxu0 %v7358_v46  ;;  %v495_v45 = vld [vmem:[%s8137_s17 + $0xa10] sm:$0xff] }
  0x7a   : > { %4475 = vmatprep.subr.bf16.mxu1 %v7520_v47  ;;  %v511_v46 = vld [vmem:[%s8137_s17 + $0xa90] sm:$0xff]  ;;  %v656_v47 = vld [vmem:[%s8137_s17 + $0xf18] sm:$0xff] }
  0x7b   : > { %v7614_v51 = vcombine.high %v495_v45, %v511_v46  ;;  %v7613_v57 = vcombine.low %v495_v45, %v511_v46  ;;  %v7775_v58 = vcombine.low %v656_v47, %v672_v48  ;;  %v704_v45 = vld [vmem:[%s8137_s17 + $0x1098] sm:$0xff] }
  0x7c   : > { %7966 = vmatmul.mubr.msk.bf16.vlgmr.msra.gmra.mxu1 %vm4128_vm1, %v8187_v61  ;;  %4404 = vmatpush1.bf16.msra.mxu0 %v7357_v52  ;;  %v7776_v52 = vcombine.high %v656_v47, %v672_v48 }
  0x7d   : > { %4476 = vmatpush1.bf16.msra.mxu1 %v7519_v53  ;;  %4405 = vmatprep.subr.bf16.mxu0 %v7326_v54  ;;  %v463_v53 = vld [vmem:[%s8137_s17 + $0x910] sm:$0xff] }
  0x7e   : > { %4477 = vmatprep.subr.bf16.mxu1 %v7488_v55  ;;  %4507 = vmatprep.mubr.bf16.mxu1 %v8169_v35  ;;  %v479_v54 = vld [vmem:[%s8137_s17 + $0x990] sm:$0xff]  ;;  %v624_v55 = vld [vmem:[%s8137_s17 + $0xe18] sm:$0xff] }
  0x7f   : > { %v7582_v59 = vcombine.high %v463_v53, %v479_v54  ;;  %v7581_v3 = vcombine.low %v463_v53, %v479_v54  ;;  %v7743_v4 = vcombine.low %v624_v55, %v640_v56 }
  0x80   : > { %4406 = vmatpush1.bf16.msra.mxu0 %v7325_v60  ;;  %v7744_v60 = vcombine.high %v624_v55, %v640_v56 }
  0x81   : > { %4478 = vmatpush1.bf16.msra.mxu1 %v7487_v62  ;;  %4407 = vmatprep.subr.bf16.mxu0 %v7294_v63  ;;  %v431_v62 = vld [vmem:[%s8137_s17 + $0x810] sm:$0xff] }
  0x82   : > { %4479 = vmatprep.subr.bf16.mxu1 %v7456_v0  ;;  %v447_v63 = vld [vmem:[%s8137_s17 + $0x890] sm:$0xff]  ;;  %v592_v0 = vld [vmem:[%s8137_s17 + $0xd18] sm:$0xff] }
  0x83   : > { %v7550_v5 = vcombine.high %v431_v62, %v447_v63  ;;  %v7549_v11 = vcombine.low %v431_v62, %v447_v63  ;;  %v7711_v12 = vcombine.low %v592_v0, %v608_v2  ;;  %v801_v62 = vld [vmem:[%s8137_s17 + $0x13a0] sm:$0xff] }
  0x84   : > { %4408 = vmatpush1.bf16.msra.mxu0 %v7293_v6  ;;  %v7712_v6 = vcombine.high %v592_v0, %v608_v2 }
  0x85   : > { %4480 = vmatpush1.bf16.msra.mxu1 %v7455_v7  ;;  %4409 = vmatprep.subr.bf16.mxu0 %v7774_v8  ;;  %v560_v7 = vld [vmem:[%s8137_s17 + $0xc18] sm:$0xff] }
  0x86   : > { %4481 = vmatprep.subr.bf16.mxu1 %v7424_v9  ;;  %v576_v8 = vld [vmem:[%s8137_s17 + $0xc98] sm:$0xff] }
  0x87   : > { %v816_v9 = vld [vmem:[%s8137_s17 + $0x1418] sm:$0x33]  ;;  %v7680_v13 = vcombine.high %v560_v7, %v576_v8  ;;  %v7679_v20 = vcombine.low %v560_v7, %v576_v8  ;;  %v769_v7 = vld [vmem:[%s8137_s17 + $0x12a0] sm:$0xff] }
  0x88   : > { %4410 = vmatpush2.bf16.msra.mxu0 %v7773_v15  ;;  %v7936_v14 = vcombine.high %v816_v9, %v816_v9  ;;  %v7935_v15 = vcombine.low %v816_v9, %v816_v9 }
  0x89   : > { %4482 = vmatpush1.bf16.msra.mxu1 %v7423_v16  ;;  %4411 = vmatprep.subr.bf16.mxu0 %v7742_v17  ;;  %v528_v16 = vld [vmem:[%s8137_s17 + $0xb18] sm:$0xff] }
  0x8a   : > { %4483 = vmatprep.subr.bf16.mxu1 %v7392_v18  ;;  %v544_v17 = vld [vmem:[%s8137_s17 + $0xb98] sm:$0xff]  ;;  %v4152_v21 = vsel %vm4132_vm0, %v7935_v15, 0  ;;  %v721_v15 = vld [vmem:[%s8137_s17 + $0x1120] sm:$0xff] }
  0x8b   : > { %v784_v18 = vld [vmem:[%s8137_s17 + $0x1318] sm:$0xff]  ;;  %v7648_v23 = vcombine.high %v528_v16, %v544_v17  ;;  %v7647_v29 = vcombine.low %v528_v16, %v544_v17  ;;  %v737_v16 = vld [vmem:[%s8137_s17 + $0x11a0] sm:$0xff] }
  0x8c   : > { %4412 = vmatpush2.bf16.msra.mxu0 %v7741_v24  ;;  %v7904_v24 = vcombine.high %v784_v18, %v800_v19  ;;  %v7903_v30 = vcombine.low %v784_v18, %v800_v19 }
  0x8d   : > { %4484 = vmatpush1.bf16.msra.mxu1 %v7391_v25  ;;  %4413 = vmatprep.subr.bf16.mxu0 %v7710_v26  ;;  %v496_v25 = vld [vmem:[%s8137_s17 + $0xa18] sm:$0xff] }
  0x8e   : > { %4485 = vmatprep.subr.bf16.mxu1 %v7360_v27  ;;  %v512_v26 = vld [vmem:[%s8137_s17 + $0xa98] sm:$0xff] }
  0x8f   : > { %v752_v27 = vld [vmem:[%s8137_s17 + $0x1218] sm:$0xff]  ;;  %v7616_v31 = vcombine.high %v496_v25, %v512_v26  ;;  %v7615_v38 = vcombine.low %v496_v25, %v512_v26  ;;  %v705_v25 = vld [vmem:[%s8137_s17 + $0x10a0] sm:$0xff] }
  0x90   : > { %4414 = vmatpush2.bf16.msra.mxu0 %v7709_v32  ;;  %v7872_v32 = vcombine.high %v752_v27, %v768_v28  ;;  %v7871_v39 = vcombine.low %v752_v27, %v768_v28  ;;  %v7841_v27 = vcombine.low %v721_v15, %v737_v16 }
  0x91   : > { %4486 = vmatpush1.bf16.msra.mxu1 %v7359_v33  ;;  %4415 = vmatprep.subr.bf16.mxu0 %v7678_v34  ;;  %v464_v33 = vld [vmem:[%s8137_s17 + $0x918] sm:$0xff] }
  0x92   : > { %4487 = vmatprep.subr.bf16.mxu1 %v7328_v36  ;;  %v480_v34 = vld [vmem:[%s8137_s17 + $0x998] sm:$0xff] }
  0x93   : > { %v720_v36 = vld [vmem:[%s8137_s17 + $0x1118] sm:$0xff]  ;;  %v7584_v40 = vcombine.high %v464_v33, %v480_v34  ;;  %v7583_v46 = vcombine.low %v464_v33, %v480_v34  ;;  %v418_v33 = vld [vmem:[%s8137_s17 + $0x7a8] sm:$0xff] }
  0x94   : > { %4416 = vmatpush2.bf16.msra.mxu0 %v7677_v41  ;;  %v7840_v41 = vcombine.high %v720_v36, %v736_v37  ;;  %v7839_v47 = vcombine.low %v720_v36, %v736_v37 }
  0x95   : > { %4488 = vmatpush1.bf16.msra.mxu1 %v7327_v42  ;;  %4417 = vmatprep.subr.bf16.mxu0 %v7646_v43  ;;  %v432_v42 = vld [vmem:[%s8137_s17 + $0x818] sm:$0xff] }
  0x96   : > { %4489 = vmatprep.subr.bf16.mxu1 %v7296_v44  ;;  %v448_v43 = vld [vmem:[%s8137_s17 + $0x898] sm:$0xff] }
  0x97   : > { %v688_v44 = vld [vmem:[%s8137_s17 + $0x1018] sm:$0xff]  ;;  %v7552_v48 = vcombine.high %v432_v42, %v448_v43  ;;  %v7551_v53 = vcombine.low %v432_v42, %v448_v43  ;;  %v386_v42 = vld [vmem:[%s8137_s17 + $0x6a8] sm:$0xff] }
  0x98   : > { %4418 = vmatpush2.bf16.msra.mxu0 %v7645_v49  ;;  %v7808_v49 = vcombine.high %v688_v44, %v704_v45  ;;  %v7807_v54 = vcombine.low %v688_v44, %v704_v45 }
  0x99   : > { %4490 = vmatpush1.bf16.msra.mxu1 %v7295_v50  ;;  %4419 = vmatprep.subr.bf16.mxu0 %v7614_v51  ;;  %v401_v50 = vld [vmem:[%s8137_s17 + $0x720] sm:$0xff] }
  0x9a   : > { %4491 = vmatprep.subr.bf16.mxu1 %v7776_v52  ;;  %v417_v51 = vld [vmem:[%s8137_s17 + $0x7a0] sm:$0xff] }
  0x9b   : > { %v817_v52 = vld [vmem:[%s8137_s17 + $0x1420] sm:$0x33]  ;;  %v7522_v55 = vcombine.high %v401_v50, %v417_v51  ;;  %v7521_v63 = vcombine.low %v401_v50, %v417_v51  ;;  %v354_v50 = vld [vmem:[%s8137_s17 + $0x5a8] sm:$0xff] }
  0x9c   : > { %4420 = vmatpush2.bf16.msra.mxu0 %v7613_v57  ;;  %v7938_v56 = vcombine.high %v817_v52, %v817_v52  ;;  %v7937_v57 = vcombine.low %v817_v52, %v817_v52 }
  0x9d   : > { %4492 = vmatpush2.bf16.msra.mxu1 %v7775_v58  ;;  %4421 = vmatprep.subr.bf16.mxu0 %v7582_v59  ;;  %v369_v58 = vld [vmem:[%s8137_s17 + $0x620] sm:$0xff] }
  0x9e   : > { %4493 = vmatprep.subr.bf16.mxu1 %v7744_v60  ;;  %v385_v59 = vld [vmem:[%s8137_s17 + $0x6a0] sm:$0xff]  ;;  %v4158_v0 = vsel %vm4132_vm0, %v7937_v57, 0  ;;  %v306_v57 = vld [vmem:[%s8137_s17 + $0x428] sm:$0xff] }
  0x9f   : > { %v785_v60 = vld [vmem:[%s8137_s17 + $0x1320] sm:$0xff]  ;;  %v7490_v2 = vcombine.high %v369_v58, %v385_v59  ;;  %v7489_v8 = vcombine.low %v369_v58, %v385_v59  ;;  %v322_v58 = vld [vmem:[%s8137_s17 + $0x4a8] sm:$0xff] }
  0xa0   : > { %4422 = vmatpush2.bf16.msra.mxu0 %v7581_v3  ;;  %v7906_v3 = vcombine.high %v785_v60, %v801_v62  ;;  %v7905_v9 = vcombine.low %v785_v60, %v801_v62 }
  0xa1   : > { %4494 = vmatpush2.bf16.msra.mxu1 %v7743_v4  ;;  %4423 = vmatprep.subr.bf16.mxu0 %v7550_v5  ;;  %v337_v4 = vld [vmem:[%s8137_s17 + $0x520] sm:$0xff] }
  0xa2   : > { %4495 = vmatprep.subr.bf16.mxu1 %v7712_v6  ;;  %v353_v5 = vld [vmem:[%s8137_s17 + $0x5a0] sm:$0xff] }
  0xa3   : > { %v753_v6 = vld [vmem:[%s8137_s17 + $0x1220] sm:$0xff]  ;;  %v7457_v17 = vcombine.low %v337_v4, %v353_v5 }
  0xa4   : > { %4424 = vmatpush2.bf16.msra.mxu0 %v7549_v11  ;;  %v7458_v11 = vcombine.high %v337_v4, %v353_v5  ;;  %v7873_v18 = vcombine.low %v753_v6, %v769_v7  ;;  %v290_v4 = vld [vmem:[%s8137_s17 + $0x3a8] sm:$0xff] }
  0xa5   : > { %4496 = vmatpush2.bf16.msra.mxu1 %v7711_v12  ;;  %7967 = vmatprep.subr.msk.bf16.mxu0 %vm4132_vm0, %v7936_v14  ;;  %v7874_v12 = vcombine.high %v753_v6, %v769_v7  ;;  %v321_v14 = vld [vmem:[%s8137_s17 + $0x4a0] sm:$0xff]  ;;  %v7427_v6 = vcombine.low %v306_v57, %v322_v58 }
  0xa6   : > { %4497 = vmatprep.subr.bf16.mxu1 %v7680_v13  ;;  %v305_v13 = vld [vmem:[%s8137_s17 + $0x420] sm:$0xff] }
  0xa7   : > { %4426 = vmatmul.mubr.bf16.vlgmr.msra.gmra.mxu0 %v8157_v22  ;;  %v7426_v19 = vcombine.high %v305_v13, %v321_v14  ;;  %v7425_v26 = vcombine.low %v305_v13, %v321_v14  ;;  %v258_v13 = vld [vmem:[%s8137_s17 + $0x2a8] sm:$0xff] }
  0xa8   : > { %4523 = vmatpush1.bf16.msra.mxu0 %v4152_v21  ;;  %4548 = vmatprep.mubr.bf16.mxu0 %v8099_v1  ;;  %v273_v21 = vld [vmem:[%s8137_s17 + $0x320] sm:$0xff] }
  0xa9   : > { %4498 = vmatpush2.bf16.msra.mxu1 %v7679_v20  ;;  %4524 = vmatprep.subr.bf16.mxu0 %v7904_v24  ;;  %v7842_v20 = vcombine.high %v721_v15, %v737_v16  ;;  %v689_v24 = vld [vmem:[%s8137_s17 + $0x1020] sm:$0xff] }
  0xaa   : > { %4499 = vmatprep.subr.bf16.mxu1 %v7648_v23  ;;  %v289_v23 = vld [vmem:[%s8137_s17 + $0x3a0] sm:$0xff]  ;;  %v7809_v36 = vcombine.low %v689_v24, %v705_v25 }
  0xab   : > { %v7394_v28 = vcombine.high %v273_v21, %v289_v23  ;;  %v7393_v34 = vcombine.low %v273_v21, %v289_v23  ;;  %v226_v21 = vld [vmem:[%s8137_s17 + $0x1a8] sm:$0xff] }
  0xac   : > { %4525 = vmatpush1.bf16.msra.mxu0 %v7903_v30  ;;  %v241_v30 = vld [vmem:[%s8137_s17 + $0x220] sm:$0xff] }
  0xad   : > { %4500 = vmatpush2.bf16.msra.mxu1 %v7647_v29  ;;  %4526 = vmatprep.subr.bf16.mxu0 %v7872_v32  ;;  %v7810_v29 = vcombine.high %v689_v24, %v705_v25  ;;  %v402_v32 = vld [vmem:[%s8137_s17 + $0x728] sm:$0xff] }
  0xae   : > { %4501 = vmatprep.subr.bf16.mxu1 %v7616_v31  ;;  %v257_v31 = vld [vmem:[%s8137_s17 + $0x2a0] sm:$0xff]  ;;  %v7523_v44 = vcombine.low %v402_v32, %v418_v33 }
  0xaf   : > { %v7362_v37 = vcombine.high %v241_v30, %v257_v31  ;;  %v7361_v43 = vcombine.low %v241_v30, %v257_v31  ;;  %v194_v30 = vld [vmem:[%s8137_s17 + $0xa8] sm:$0xff] }
  0xb0   : > { %4527 = vmatpush1.bf16.msra.mxu0 %v7871_v39  ;;  %v209_v39 = vld [vmem:[%s8137_s17 + $0x120] sm:$0xff] }
  0xb1   : > { %4502 = vmatpush2.bf16.msra.mxu1 %v7615_v38  ;;  %4528 = vmatprep.subr.bf16.mxu0 %v7840_v41  ;;  %v7524_v38 = vcombine.high %v402_v32, %v418_v33  ;;  %v370_v41 = vld [vmem:[%s8137_s17 + $0x628] sm:$0xff] }
  0xb2   : > { %4503 = vmatprep.subr.bf16.mxu1 %v7584_v40  ;;  %v225_v40 = vld [vmem:[%s8137_s17 + $0x1a0] sm:$0xff]  ;;  %v7491_v52 = vcombine.low %v370_v41, %v386_v42 }
  0xb3   : > { %v7330_v45 = vcombine.high %v209_v39, %v225_v40  ;;  %v7329_v51 = vcombine.low %v209_v39, %v225_v40  ;;  %v674_v39 = vld [vmem:[%s8137_s17 + $0xfa8] sm:$0xff] }
  0xb4   : > { %4529 = vmatpush1.bf16.msra.mxu0 %v7839_v47  ;;  %v177_v47 = vld [vmem:[%s8137_s17 + $0x20] sm:$0xff] }
  0xb5   : > { %4504 = vmatpush2.bf16.msra.mxu1 %v7583_v46  ;;  %4530 = vmatprep.subr.bf16.mxu0 %v7808_v49  ;;  %v7492_v46 = vcombine.high %v370_v41, %v386_v42  ;;  %v338_v49 = vld [vmem:[%s8137_s17 + $0x528] sm:$0xff] }
  0xb6   : > { %4505 = vmatprep.subr.bf16.mxu1 %v7552_v48  ;;  %v193_v48 = vld [vmem:[%s8137_s17 + $0xa0] sm:$0xff]  ;;  %v7459_v60 = vcombine.low %v338_v49, %v354_v50 }
  0xb7   : > { %v7297_v59 = vcombine.low %v177_v47, %v193_v48 }
  0xb8   : > { %4531 = vmatpush1.bf16.msra.mxu0 %v7807_v54  ;;  %v7460_v54 = vcombine.high %v338_v49, %v354_v50  ;;  %v642_v49 = vld [vmem:[%s8137_s17 + $0xea8] sm:$0xff] }
  0xb9   : > { %4506 = vmatpush2.bf16.msra.mxu1 %v7551_v53  ;;  %4557 = vmatprep.subr.bf16.mxu0 %v7522_v55  ;;  %v7298_v53 = vcombine.high %v177_v47, %v193_v48  ;;  %v657_v55 = vld [vmem:[%s8137_s17 + $0xf20] sm:$0xff]  ;;  %v626_v48 = vld [vmem:[%s8137_s17 + $0xe28] sm:$0xff] }
  0xba   : > { %7969 = vmatprep.subr.msk.bf16.mxu1 %vm4132_vm0, %v7938_v56  ;;  %v673_v56 = vld [vmem:[%s8137_s17 + $0xfa0] sm:$0xff] }
  0xbb   : > { %7968 = vmatmul.mubr.msk.bf16.vlgmr.msra.gmra.mxu0 %vm4128_vm1, %v8187_v61  ;;  %v7778_v62 = vcombine.high %v657_v55, %v673_v56  ;;  %v7777_v5 = vcombine.low %v657_v55, %v673_v56  ;;  %v481_v47 = vld [vmem:[%s8137_s17 + $0x9a0] sm:$0xff]  ;;  %v7748_v55 = vcombine.high %v626_v48, %v642_v49 }
  0xbc   : > { %4508 = vmatmul.mubr.bf16.vlgmr.msra.gmra.mxu1 %v8157_v22  ;;  %4558 = vmatpush1.bf16.msra.mxu0 %v7521_v63  ;;  %v7428_v63 = vcombine.high %v306_v57, %v322_v58  ;;  %v433_v56 = vld [vmem:[%s8137_s17 + $0x820] sm:$0xff]  ;;  %v594_v58 = vld [vmem:[%s8137_s17 + $0xd28] sm:$0xff] }
  0xbd   : > { %4605 = vmatpush1.bf16.msra.mxu1 %v4158_v0  ;;  %4559 = vmatprep.subr.bf16.mxu0 %v7490_v2  ;;  %v625_v0 = vld [vmem:[%s8137_s17 + $0xe20] sm:$0xff] }
  0xbe   : > { %4606 = vmatprep.subr.bf16.mxu1 %v7906_v3  ;;  %4630 = vmatprep.mubr.bf16.mxu1 %v8099_v1  ;;  %v641_v2 = vld [vmem:[%s8137_s17 + $0xea0] sm:$0xff]  ;;  %v274_v3 = vld [vmem:[%s8137_s17 + $0x328] sm:$0xff] }
  0xbf   : > { %4589 = vmatprep.mubr.bf16.mxu0 %v8169_v35  ;;  %v7746_v7 = vcombine.high %v625_v0, %v641_v2  ;;  %v7745_v14 = vcombine.low %v625_v0, %v641_v2  ;;  %v7395_v15 = vcombine.low %v274_v3, %v290_v4  ;;  %v449_v57 = vld [vmem:[%s8137_s17 + $0x8a0] sm:$0xff]  ;;  %v562_v2 = vld [vmem:[%s8137_s17 + $0xc28] sm:$0xff] }
  0xc0   : > { %4560 = vmatpush1.bf16.msra.mxu0 %v7489_v8  ;;  %v7396_v8 = vcombine.high %v274_v3, %v290_v4  ;;  %v578_v3 = vld [vmem:[%s8137_s17 + $0xca8] sm:$0xff] }
  0xc1   : > { %4607 = vmatpush1.bf16.msra.mxu1 %v7905_v9  ;;  %4561 = vmatprep.subr.bf16.mxu0 %v7458_v11  ;;  %v593_v9 = vld [vmem:[%s8137_s17 + $0xd20] sm:$0xff]  ;;  %v818_v4 = vld [vmem:[%s8137_s17 + $0x1428] sm:$0x33] }
  0xc2   : > { %4608 = vmatprep.subr.bf16.mxu1 %v7874_v12  ;;  %v609_v11 = vld [vmem:[%s8137_s17 + $0xda0] sm:$0xff]  ;;  %v242_v12 = vld [vmem:[%s8137_s17 + $0x228] sm:$0xff] }
  0xc3   : > { %v7714_v16 = vcombine.high %v593_v9, %v609_v11  ;;  %v7713_v23 = vcombine.low %v593_v9, %v609_v11  ;;  %v7363_v24 = vcombine.low %v242_v12, %v258_v13  ;;  %v7939_v9 = vcombine.low %v818_v4, %v818_v4  ;;  %v530_v11 = vld [vmem:[%s8137_s17 + $0xb28] sm:$0xff] }
  0xc4   : > { %4562 = vmatpush1.bf16.msra.mxu0 %v7457_v17  ;;  %v7364_v17 = vcombine.high %v242_v12, %v258_v13  ;;  %v546_v12 = vld [vmem:[%s8137_s17 + $0xba8] sm:$0xff] }
  0xc5   : > { %4609 = vmatpush1.bf16.msra.mxu1 %v7873_v18  ;;  %4563 = vmatprep.subr.bf16.mxu0 %v7426_v19  ;;  %v561_v18 = vld [vmem:[%s8137_s17 + $0xc20] sm:$0xff]  ;;  %v786_v13 = vld [vmem:[%s8137_s17 + $0x1328] sm:$0xff] }
  0xc6   : > { %4610 = vmatprep.subr.bf16.mxu1 %v7842_v20  ;;  %v577_v19 = vld [vmem:[%s8137_s17 + $0xca0] sm:$0xff]  ;;  %v210_v20 = vld [vmem:[%s8137_s17 + $0x128] sm:$0xff] }
  0xc7   : > { %v7682_v25 = vcombine.high %v561_v18, %v577_v19  ;;  %v7681_v31 = vcombine.low %v561_v18, %v577_v19  ;;  %v7331_v32 = vcombine.low %v210_v20, %v226_v21  ;;  %v498_v19 = vld [vmem:[%s8137_s17 + $0xa28] sm:$0xff] }
  0xc8   : > { %4564 = vmatpush1.bf16.msra.mxu0 %v7425_v26  ;;  %v7332_v26 = vcombine.high %v210_v20, %v226_v21  ;;  %v514_v20 = vld [vmem:[%s8137_s17 + $0xaa8] sm:$0xff] }
  0xc9   : > { %4611 = vmatpush1.bf16.msra.mxu1 %v7841_v27  ;;  %4565 = vmatprep.subr.bf16.mxu0 %v7394_v28  ;;  %v529_v27 = vld [vmem:[%s8137_s17 + $0xb20] sm:$0xff]  ;;  %v754_v21 = vld [vmem:[%s8137_s17 + $0x1228] sm:$0xff] }
  0xca   : > { %4612 = vmatprep.subr.bf16.mxu1 %v7810_v29  ;;  %v545_v28 = vld [vmem:[%s8137_s17 + $0xba0] sm:$0xff]  ;;  %v178_v29 = vld [vmem:[%s8137_s17 + $0x28] sm:$0xff] }
  0xcb   : > { %v7650_v33 = vcombine.high %v529_v27, %v545_v28  ;;  %v7649_v41 = vcombine.low %v529_v27, %v545_v28  ;;  %v7299_v42 = vcombine.low %v178_v29, %v194_v30  ;;  %v466_v28 = vld [vmem:[%s8137_s17 + $0x928] sm:$0xff] }
  0xcc   : > { %4566 = vmatpush1.bf16.msra.mxu0 %v7393_v34  ;;  %v7300_v34 = vcombine.high %v178_v29, %v194_v30  ;;  %v482_v29 = vld [vmem:[%s8137_s17 + $0x9a8] sm:$0xff] }
  0xcd   : > { %4613 = vmatpush1.bf16.msra.mxu1 %v7809_v36  ;;  %4567 = vmatprep.subr.bf16.mxu0 %v7362_v37  ;;  %v497_v36 = vld [vmem:[%s8137_s17 + $0xa20] sm:$0xff]  ;;  %v722_v30 = vld [vmem:[%s8137_s17 + $0x1128] sm:$0xff] }
  0xce   : > { %4639 = vmatprep.subr.bf16.mxu1 %v7524_v38  ;;  %v513_v37 = vld [vmem:[%s8137_s17 + $0xaa0] sm:$0xff]  ;;  %v658_v38 = vld [vmem:[%s8137_s17 + $0xf28] sm:$0xff] }
  0xd0   : > { %7970 = vmatmul.mubr.msk.bf16.vlgmr.msra.gmra.mxu1 %vm4128_vm1, %v8187_v61  ;;  %4568 = vmatpush1.bf16.msra.mxu0 %v7361_v43 }
  0xd1   : > { %4640 = vmatpush1.bf16.msra.mxu1 %v7523_v44  ;;  %4569 = vmatprep.subr.bf16.mxu0 %v7330_v45  ;;  %v7618_v44 = vcombine.high %v497_v36, %v513_v37  ;;  %v7780_v45 = vcombine.high %v658_v38, %v674_v39 }
  0xd2   : > { %4641 = vmatprep.subr.bf16.mxu1 %v7492_v46  ;;  %4671 = vmatprep.mubr.bf16.mxu1 %v8169_v35  ;;  %v465_v46 = vld [vmem:[%s8137_s17 + $0x920] sm:$0xff] }
  0xd4   : > { %4570 = vmatpush1.bf16.msra.mxu0 %v7329_v51  ;;  %v7617_v51 = vcombine.low %v497_v36, %v513_v37  ;;  %v434_v37 = vld [vmem:[%s8137_s17 + $0x828] sm:$0xff] }
  0xd5   : > { %4642 = vmatpush1.bf16.msra.mxu1 %v7491_v52  ;;  %4571 = vmatprep.subr.bf16.mxu0 %v7298_v53  ;;  %v7779_v52 = vcombine.low %v658_v38, %v674_v39  ;;  %v450_v38 = vld [vmem:[%s8137_s17 + $0x8a8] sm:$0xff] }
  0xd6   : > { %4643 = vmatprep.subr.bf16.mxu1 %v7460_v54  ;;  %v7586_v54 = vcombine.high %v465_v46, %v481_v47  ;;  %v690_v39 = vld [vmem:[%s8137_s17 + $0x1028] sm:$0xff] }
  0xd8   : > { %4572 = vmatpush1.bf16.msra.mxu0 %v7297_v59  ;;  %v610_v59 = vld [vmem:[%s8137_s17 + $0xda8] sm:$0xff] }
  0xd9   : > { %4644 = vmatpush1.bf16.msra.mxu1 %v7459_v60  ;;  %4573 = vmatprep.subr.bf16.mxu0 %v7778_v62  ;;  %v7585_v60 = vcombine.low %v465_v46, %v481_v47  ;;  %v7747_v62 = vcombine.low %v626_v48, %v642_v49  ;;  %v7716_v0 = vcombine.high %v594_v58, %v610_v59  ;;  %v403_v47 = vld [vmem:[%s8137_s17 + $0x730] sm:$0xff] }
  0xda   : > { %4645 = vmatprep.subr.bf16.mxu1 %v7428_v63  ;;  %v7554_v63 = vcombine.high %v433_v56, %v449_v57  ;;  %v419_v48 = vld [vmem:[%s8137_s17 + $0x7b0] sm:$0xff] }
  0xdb   : > { %v819_v49 = vld [vmem:[%s8137_s17 + $0x1430] sm:$0x33] }
  0xdc   : > { %4574 = vmatpush2.bf16.msra.mxu0 %v7777_v5  ;;  %v7553_v5 = vcombine.low %v433_v56, %v449_v57  ;;  %v387_v56 = vld [vmem:[%s8137_s17 + $0x6b0] sm:$0xff] }
  0xdd   : > { %4646 = vmatpush1.bf16.msra.mxu1 %v7427_v6  ;;  %4575 = vmatprep.subr.bf16.mxu0 %v7746_v7  ;;  %v7715_v6 = vcombine.low %v594_v58, %v610_v59  ;;  %v7684_v7 = vcombine.high %v562_v2, %v578_v3  ;;  %v787_v57 = vld [vmem:[%s8137_s17 + $0x1330] sm:$0xff]  ;;  %v7525_v59 = vcombine.low %v403_v47, %v419_v48 }
  0xde   : > { %4647 = vmatprep.subr.bf16.mxu1 %v7396_v8  ;;  %v7940_v8 = vcombine.high %v818_v4, %v818_v4  ;;  %v803_v58 = vld [vmem:[%s8137_s17 + $0x13b0] sm:$0xff] }
  0xdf   : > { %v771_v4 = vld [vmem:[%s8137_s17 + $0x12b0] sm:$0xff] }
  0xe0   : > { %4576 = vmatpush2.bf16.msra.mxu0 %v7745_v14  ;;  %v802_v14 = vld [vmem:[%s8137_s17 + $0x13a8] sm:$0xff] }
  0xe1   : > { %4648 = vmatpush1.bf16.msra.mxu1 %v7395_v15  ;;  %4577 = vmatprep.subr.bf16.mxu0 %v7714_v16  ;;  %v7683_v15 = vcombine.low %v562_v2, %v578_v3  ;;  %v4164_v16 = vsel %vm4132_vm0, %v7939_v9, 0  ;;  %v7908_v18 = vcombine.high %v786_v13, %v802_v14  ;;  %v355_v2 = vld [vmem:[%s8137_s17 + $0x5b0] sm:$0xff] }
  0xe2   : > { %4649 = vmatprep.subr.bf16.mxu1 %v7364_v17  ;;  %v7652_v17 = vcombine.high %v530_v11, %v546_v12  ;;  %v755_v3 = vld [vmem:[%s8137_s17 + $0x1230] sm:$0xff] }
  0xe3   : > { %v307_v9 = vld [vmem:[%s8137_s17 + $0x430] sm:$0xff] }
  0xe4   : > { %4578 = vmatpush2.bf16.msra.mxu0 %v7713_v23  ;;  %v770_v23 = vld [vmem:[%s8137_s17 + $0x12a8] sm:$0xff] }
  0xe5   : > { %4650 = vmatpush1.bf16.msra.mxu1 %v7363_v24  ;;  %4579 = vmatprep.subr.bf16.mxu0 %v7682_v25  ;;  %v7651_v24 = vcombine.low %v530_v11, %v546_v12  ;;  %v7907_v25 = vcombine.low %v786_v13, %v802_v14  ;;  %v7876_v27 = vcombine.high %v754_v21, %v770_v23  ;;  %v323_v11 = vld [vmem:[%s8137_s17 + $0x4b0] sm:$0xff] }
  0xe6   : > { %4651 = vmatprep.subr.bf16.mxu1 %v7332_v26  ;;  %v7620_v26 = vcombine.high %v498_v19, %v514_v20  ;;  %v723_v12 = vld [vmem:[%s8137_s17 + $0x1130] sm:$0xff] }
  0xe7   : > { %v739_v13 = vld [vmem:[%s8137_s17 + $0x11b0] sm:$0xff] }
  0xe8   : > { %v8412_v40 = vpop.f32.mrf.mxu1  ;;  %4580 = vmatpush2.bf16.msra.mxu0 %v7681_v31  ;;  %v738_v31 = vld [vmem:[%s8137_s17 + $0x11a8] sm:$0xff] }
  0xe9   : > { %4652 = vmatpush1.bf16.msra.mxu1 %v7331_v32  ;;  %4581 = vmatprep.subr.bf16.mxu0 %v7650_v33  ;;  %v7619_v32 = vcombine.low %v498_v19, %v514_v20  ;;  %v7875_v33 = vcombine.low %v754_v21, %v770_v23  ;;  %v7844_v36 = vcombine.high %v722_v30, %v738_v31  ;;  %v275_v21 = vld [vmem:[%s8137_s17 + $0x330] sm:$0xff] }
  0xea   : > { %v8414_v43 = vpop.f32.mrf.mxu1  ;;  %4653 = vmatprep.subr.bf16.mxu1 %v7300_v34  ;;  %v7588_v34 = vcombine.high %v466_v28, %v482_v29  ;;  %v7430_v19 = vcombine.high %v307_v9, %v323_v11  ;;  %v7846_v20 = vcombine.high %v723_v12, %v739_v13 }
  0xec   : > { %v4308_v50 = vpop.f32.mrf.mxu1  ;;  %4582 = vmatpush2.bf16.msra.mxu0 %v7649_v41  ;;  %v706_v41 = vld [vmem:[%s8137_s17 + $0x10a8] sm:$0xff] }
  0xed   : > { %4654 = vmatpush1.bf16.msra.mxu1 %v7299_v42  ;;  %4583 = vmatprep.subr.bf16.mxu0 %v7618_v44  ;;  %v7587_v42 = vcombine.low %v466_v28, %v482_v29  ;;  %v7843_v44 = vcombine.low %v722_v30, %v738_v31  ;;  %v7812_v46 = vcombine.high %v690_v39, %v706_v41 }
  0xee   : > { %v4309_v53 = vpop.f32.mrf.mxu1  ;;  %4655 = vmatprep.subr.bf16.mxu1 %v7780_v45  ;;  %v7556_v45 = vcombine.high %v434_v37, %v450_v38  ;;  %v7555_v50 = vcombine.low %v434_v37, %v450_v38  ;;  %v7845_v28 = vcombine.low %v723_v12, %v739_v13  ;;  %v643_v12 = vld [vmem:[%s8137_s17 + $0xeb0] sm:$0xff]  ;;  %v276_v13 = vld [vmem:[%s8137_s17 + $0x338] sm:$0xff] }
  0xef   : > { %v7942_v53 = vcombine.high %v819_v49, %v819_v49 }
  0xf0   : > { %4584 = vmatpush2.bf16.msra.mxu0 %v7617_v51  ;;  %v7811_v51 = vcombine.low %v690_v39, %v706_v41  ;;  %v211_v41 = vld [vmem:[%s8137_s17 + $0x130] sm:$0xff] }
  0xf1   : > { %4656 = vmatpush2.bf16.msra.mxu1 %v7779_v52  ;;  %4585 = vmatprep.subr.bf16.mxu0 %v7586_v54  ;;  %v7526_v52 = vcombine.high %v403_v47, %v419_v48  ;;  %v7941_v54 = vcombine.low %v819_v49, %v819_v49 }
  0xf2   : > { %4657 = vmatprep.subr.bf16.mxu1 %v7748_v55  ;;  %v371_v55 = vld [vmem:[%s8137_s17 + $0x630] sm:$0xff] }
  0xf4   : > { %4586 = vmatpush2.bf16.msra.mxu0 %v7585_v60  ;;  %v4170_v60 = vsel %vm4132_vm0, %v7941_v54, 0 }
  0xf5   : > { %4658 = vmatpush2.bf16.msra.mxu1 %v7747_v62  ;;  %4587 = vmatprep.subr.bf16.mxu0 %v7554_v63  ;;  %v7494_v62 = vcombine.high %v371_v55, %v387_v56  ;;  %v7910_v63 = vcombine.high %v787_v57, %v803_v58 }
  0xf6   : > { %4659 = vmatprep.subr.bf16.mxu1 %v7716_v0  ;;  %v339_v0 = vld [vmem:[%s8137_s17 + $0x530] sm:$0xff] }
  0xf8   : > { %4588 = vmatpush2.bf16.msra.mxu0 %v7553_v5  ;;  %v7493_v5 = vcombine.low %v371_v55, %v387_v56 }
  0xf9   : > { %4660 = vmatpush2.bf16.msra.mxu1 %v7715_v6  ;;  %7971 = vmatprep.subr.msk.bf16.mxu0 %vm4132_vm0, %v7940_v8  ;;  %v7909_v6 = vcombine.low %v787_v57, %v803_v58  ;;  %v7878_v8 = vcombine.high %v755_v3, %v771_v4  ;;  %v659_v58 = vld [vmem:[%s8137_s17 + $0xf30] sm:$0xff] }
  0xfa   : > { %4661 = vmatprep.subr.bf16.mxu1 %v7684_v7  ;;  %v7462_v7 = vcombine.high %v339_v0, %v355_v2 }
  0xfb   : > { %4590 = vmatmul.mubr.bf16.vlgmr.msra.gmra.mxu0 %v8157_v22 }
  0xfc   : > { %4687 = vmatpush1.bf16.msra.mxu0 %v4164_v16  ;;  %4712 = vmatprep.mubr.bf16.mxu0 %v8099_v1  ;;  %v7461_v16 = vcombine.low %v339_v0, %v355_v2 }
  0xfd   : > { %4662 = vmatpush2.bf16.msra.mxu1 %v7683_v15  ;;  %4688 = vmatprep.subr.bf16.mxu0 %v7908_v18 }
  0xfe   : > { %4663 = vmatprep.subr.bf16.mxu1 %v7652_v17  ;;  %v7877_v17 = vcombine.low %v755_v3, %v771_v4 }
 0x100   : > { %4689 = vmatpush1.bf16.msra.mxu0 %v7907_v25  ;;  %v707_v25 = vld [vmem:[%s8137_s17 + $0x10b0] sm:$0xff] }
 0x101   : > { %4664 = vmatpush2.bf16.msra.mxu1 %v7651_v24  ;;  %4690 = vmatprep.subr.bf16.mxu0 %v7876_v27  ;;  %v291_v24 = vld [vmem:[%s8137_s17 + $0x3b0] sm:$0xff]  ;;  %v7429_v27 = vcombine.low %v307_v9, %v323_v11 }
 0x102   : > { %4665 = vmatprep.subr.bf16.mxu1 %v7620_v26  ;;  %v7398_v30 = vcombine.high %v275_v21, %v291_v24  ;;  %v627_v9 = vld [vmem:[%s8137_s17 + $0xe30] sm:$0xff] }
 0x104   : > { %4691 = vmatpush1.bf16.msra.mxu0 %v7875_v33  ;;  %v404_v33 = vld [vmem:[%s8137_s17 + $0x738] sm:$0xff] }
 0x105   : > { %4666 = vmatpush2.bf16.msra.mxu1 %v7619_v32  ;;  %4692 = vmatprep.subr.bf16.mxu0 %v7844_v36  ;;  %v259_v32 = vld [vmem:[%s8137_s17 + $0x2b0] sm:$0xff]  ;;  %v7397_v36 = vcombine.low %v275_v21, %v291_v24  ;;  %v7750_v24 = vcombine.high %v627_v9, %v643_v12 }
 0x106   : > { %4667 = vmatprep.subr.bf16.mxu1 %v7588_v34  ;;  %v420_v34 = vld [vmem:[%s8137_s17 + $0x7b8] sm:$0xff] }
 0x107   : > { %v7528_v39 = vcombine.high %v404_v33, %v420_v34  ;;  %v7527_v47 = vcombine.low %v404_v33, %v420_v34  ;;  %v579_v33 = vld [vmem:[%s8137_s17 + $0xcb0] sm:$0xff]  ;;  %v212_v34 = vld [vmem:[%s8137_s17 + $0x138] sm:$0xff] }
 0x108   : > { %4693 = vmatpush1.bf16.msra.mxu0 %v7843_v44  ;;  %v372_v44 = vld [vmem:[%s8137_s17 + $0x638] sm:$0xff] }
 0x109   : > { %4668 = vmatpush2.bf16.msra.mxu1 %v7587_v42  ;;  %4694 = vmatprep.subr.bf16.mxu0 %v7812_v46  ;;  %v227_v42 = vld [vmem:[%s8137_s17 + $0x1b0] sm:$0xff] }
 0x10a   : > { %4669 = vmatprep.subr.bf16.mxu1 %v7556_v45  ;;  %v388_v45 = vld [vmem:[%s8137_s17 + $0x6b8] sm:$0xff]  ;;  %v7334_v48 = vcombine.high %v211_v41, %v227_v42  ;;  %v7333_v54 = vcombine.low %v211_v41, %v227_v42  ;;  %v531_v42 = vld [vmem:[%s8137_s17 + $0xb30] sm:$0xff] }
 0x10b   : > { %v7496_v49 = vcombine.high %v372_v44, %v388_v45  ;;  %v7495_v55 = vcombine.low %v372_v44, %v388_v45  ;;  %v547_v44 = vld [vmem:[%s8137_s17 + $0xbb0] sm:$0xff]  ;;  %v180_v45 = vld [vmem:[%s8137_s17 + $0x38] sm:$0xff] }
 0x10c   : > { %4695 = vmatpush1.bf16.msra.mxu0 %v7811_v51  ;;  %v195_v51 = vld [vmem:[%s8137_s17 + $0xb0] sm:$0xff] }
 0x10d   : > { %4670 = vmatpush2.bf16.msra.mxu1 %v7555_v50  ;;  %4721 = vmatprep.subr.bf16.mxu0 %v7526_v52  ;;  %v179_v50 = vld [vmem:[%s8137_s17 + $0x30] sm:$0xff]  ;;  %v340_v52 = vld [vmem:[%s8137_s17 + $0x538] sm:$0xff] }
 0x10e   : > { %7973 = vmatprep.subr.msk.bf16.mxu1 %vm4132_vm0, %v7942_v53  ;;  %v356_v53 = vld [vmem:[%s8137_s17 + $0x5b8] sm:$0xff]  ;;  %v7302_v56 = vcombine.high %v179_v50, %v195_v51  ;;  %v7301_v3 = vcombine.low %v179_v50, %v195_v51  ;;  %v499_v51 = vld [vmem:[%s8137_s17 + $0xa30] sm:$0xff] }
 0x10f   : > { %7972 = vmatmul.mubr.msk.bf16.vlgmr.msra.gmra.mxu0 %vm4128_vm1, %v8187_v61  ;;  %v7464_v57 = vcombine.high %v340_v52, %v356_v53  ;;  %v7463_v4 = vcombine.low %v340_v52, %v356_v53  ;;  %v515_v52 = vld [vmem:[%s8137_s17 + $0xab0] sm:$0xff]  ;;  %v660_v53 = vld [vmem:[%s8137_s17 + $0xf38] sm:$0xff] }
 0x110   : > { %4672 = vmatmul.mubr.bf16.vlgmr.msra.gmra.mxu1 %v8157_v22  ;;  %4722 = vmatpush1.bf16.msra.mxu0 %v7525_v59  ;;  %v675_v59 = vld [vmem:[%s8137_s17 + $0xfb0] sm:$0xff] }
 0x111   : > { %4769 = vmatpush1.bf16.msra.mxu1 %v4170_v60  ;;  %4723 = vmatprep.subr.bf16.mxu0 %v7494_v62  ;;  %v308_v60 = vld [vmem:[%s8137_s17 + $0x438] sm:$0xff] }
 0x112   : > { %4770 = vmatprep.subr.bf16.mxu1 %v7910_v63  ;;  %4794 = vmatprep.mubr.bf16.mxu1 %v8099_v1  ;;  %v324_v62 = vld [vmem:[%s8137_s17 + $0x4b8] sm:$0xff] }
 0x113   : > { %4753 = vmatprep.mubr.bf16.mxu0 %v8169_v35  ;;  %v4263_v14 = vpop.f32.mrf.mxu0 }
 0x114   : > { %v8470_v15 = vadd.f32 %v8412_v40, %v4263_v14  ;;  %4724 = vmatpush1.bf16.msra.mxu0 %v7493_v5  ;;  %v691_v40 = vld [vmem:[%s8137_s17 + $0x1030] sm:$0xff]  ;;  %v292_v14 = vld [vmem:[%s8137_s17 + $0x3b8] sm:$0xff] }
 0x115   : > { %4771 = vmatpush1.bf16.msra.mxu1 %v7909_v6  ;;  %v4265_v18 = vpop.f32.mrf.mxu0  ;;  %4725 = vmatprep.subr.bf16.mxu0 %v7462_v7  ;;  %v7814_v31 = vcombine.high %v691_v40, %v707_v25  ;;  %v7813_v37 = vcombine.low %v691_v40, %v707_v25  ;;  %v7782_v7 = vcombine.high %v659_v58, %v675_v59  ;;  %v595_v25 = vld [vmem:[%s8137_s17 + $0xd30] sm:$0xff] }
 0x116   : > { %4772 = vmatprep.subr.bf16.mxu1 %v7878_v8  ;;  %v8474_v23 = vadd.f32 %v8414_v43, %v4265_v18  ;;  %v243_v43 = vld [vmem:[%s8137_s17 + $0x230] sm:$0xff]  ;;  %v7432_v8 = vcombine.high %v308_v60, %v324_v62  ;;  %v7781_v18 = vcombine.low %v659_v58, %v675_v59  ;;  %v7400_v40 = vcombine.high %v276_v13, %v292_v14 }
 0x117   : > { %v4267_v26 = vpop.f32.mrf.mxu0  ;;  %v7366_v38 = vcombine.high %v243_v43, %v259_v32  ;;  %v7365_v46 = vcombine.low %v243_v43, %v259_v32  ;;  %v563_v32 = vld [vmem:[%s8137_s17 + $0xc30] sm:$0xff]  ;;  %v7622_v59 = vcombine.high %v499_v51, %v515_v52 }
 0x118   : > { %4726 = vmatpush1.bf16.msra.mxu0 %v7461_v16  ;;  %v611_v26 = vld [vmem:[%s8137_s17 + $0xdb0] sm:$0xff] }
 0x119   : > { %4773 = vmatpush1.bf16.msra.mxu1 %v7877_v17  ;;  %v4268_v29 = vpop.f32.mrf.mxu0  ;;  %4727 = vmatprep.subr.bf16.mxu0 %v7430_v19  ;;  %v7431_v19 = vcombine.low %v308_v60, %v324_v62  ;;  %v467_v62 = vld [vmem:[%s8137_s17 + $0x930] sm:$0xff] }
 0x11a   : > { %4774 = vmatprep.subr.bf16.mxu1 %v7846_v20  ;;  %v7749_v29 = vcombine.low %v627_v9, %v643_v12  ;;  %v435_v12 = vld [vmem:[%s8137_s17 + $0x830] sm:$0xff] }
 0x11c   : > { %4728 = vmatpush1.bf16.msra.mxu0 %v7429_v27  ;;  %v244_v27 = vld [vmem:[%s8137_s17 + $0x238] sm:$0xff] }
 0x11d   : > { %4775 = vmatpush1.bf16.msra.mxu1 %v7845_v28  ;;  %4729 = vmatprep.subr.bf16.mxu0 %v7398_v30  ;;  %v260_v28 = vld [vmem:[%s8137_s17 + $0x2b8] sm:$0xff]  ;;  %v7399_v30 = vcombine.low %v276_v13, %v292_v14  ;;  %v451_v13 = vld [vmem:[%s8137_s17 + $0x8b0] sm:$0xff] }
 0x11e   : > { %4776 = vmatprep.subr.bf16.mxu1 %v7814_v31  ;;  %v7718_v31 = vcombine.high %v595_v25, %v611_v26  ;;  %v7368_v43 = vcombine.high %v244_v27, %v260_v28  ;;  %v596_v14 = vld [vmem:[%s8137_s17 + $0xd38] sm:$0xff] }
 0x120   : > { %4730 = vmatpush1.bf16.msra.mxu0 %v7397_v36  ;;  %v228_v36 = vld [vmem:[%s8137_s17 + $0x1b8] sm:$0xff] }
 0x121   : > { %4777 = vmatpush1.bf16.msra.mxu1 %v7813_v37  ;;  %4731 = vmatprep.subr.bf16.mxu0 %v7366_v38  ;;  %v7717_v37 = vcombine.low %v595_v25, %v611_v26  ;;  %v7367_v38 = vcombine.low %v244_v27, %v260_v28  ;;  %v7336_v41 = vcombine.high %v212_v34, %v228_v36 }
 0x122   : > { %4803 = vmatprep.subr.bf16.mxu1 %v7528_v39  ;;  %v7686_v39 = vcombine.high %v563_v32, %v579_v33  ;;  %v7557_v25 = vcombine.low %v435_v12, %v451_v13 }
 0x124   : > { %7974 = vmatmul.mubr.msk.bf16.vlgmr.msra.gmra.mxu1 %vm4128_vm1, %v8187_v61  ;;  %4732 = vmatpush1.bf16.msra.mxu0 %v7365_v46  ;;  %v196_v46 = vld [vmem:[%s8137_s17 + $0xb8] sm:$0xff] }
 0x125   : > { %4804 = vmatpush1.bf16.msra.mxu1 %v7527_v47  ;;  %4733 = vmatprep.subr.bf16.mxu0 %v7334_v48  ;;  %v7685_v47 = vcombine.low %v563_v32, %v579_v33  ;;  %v7335_v48 = vcombine.low %v212_v34, %v228_v36  ;;  %v7304_v50 = vcombine.high %v180_v45, %v196_v46  ;;  %v804_v32 = vld [vmem:[%s8137_s17 + $0x13b8] sm:$0xff] }
 0x126   : > { %4805 = vmatprep.subr.bf16.mxu1 %v7496_v49  ;;  %4835 = vmatprep.mubr.bf16.mxu1 %v8169_v35  ;;  %v7654_v49 = vcombine.high %v531_v42, %v547_v44 }
 0x127   : > { %v4386_v0 = vpop.f32.mrf.mxu0 }
 0x128   : > { %v4345_v63 = vpop.f32.mrf.mxu1  ;;  %4734 = vmatpush1.bf16.msra.mxu0 %v7333_v54  ;;  %v676_v54 = vld [vmem:[%s8137_s17 + $0xfb8] sm:$0xff] }
 0x129   : > { %v8498_v2 = vadd.f32 %v4386_v0, %v4345_v63  ;;  %4806 = vmatpush1.bf16.msra.mxu1 %v7495_v55  ;;  %v4388_v6 = vpop.f32.mrf.mxu0  ;;  %4735 = vmatprep.subr.bf16.mxu0 %v7302_v56  ;;  %v7653_v56 = vcombine.low %v531_v42, %v547_v44  ;;  %v7784_v60 = vcombine.high %v660_v53, %v676_v54  ;;  %v483_v63 = vld [vmem:[%s8137_s17 + $0x9b0] sm:$0xff]  ;;  %v628_v0 = vld [vmem:[%s8137_s17 + $0xe38] sm:$0xff] }
 0x12a   : > { %v4347_v5 = vpop.f32.mrf.mxu1  ;;  %4807 = vmatprep.subr.bf16.mxu1 %v7464_v57  ;;  %v7303_v57 = vcombine.low %v180_v45, %v196_v46  ;;  %v772_v42 = vld [vmem:[%s8137_s17 + $0x12b8] sm:$0xff] }
 0x12b   : > { %v8501_v11 = vadd.f32 %v4388_v6, %v4347_v5  ;;  %v4390_v17 = vpop.f32.mrf.mxu0  ;;  %v7621_v5 = vcombine.low %v499_v51, %v515_v52  ;;  %v7783_v6 = vcombine.low %v660_v53, %v676_v54  ;;  %v740_v51 = vld [vmem:[%s8137_s17 + $0x11b8] sm:$0xff] }
 0x12c   : > { %v4349_v16 = vpop.f32.mrf.mxu1  ;;  %4736 = vmatpush1.bf16.msra.mxu0 %v7301_v3  ;;  %v644_v3 = vld [vmem:[%s8137_s17 + $0xeb8] sm:$0xff]  ;;  %v7589_v17 = vcombine.low %v467_v62, %v483_v63 }
 0x12d   : > { %4808 = vmatpush1.bf16.msra.mxu1 %v7463_v4  ;;  %v4391_v21 = vpop.f32.mrf.mxu0  ;;  %4737 = vmatprep.subr.bf16.mxu0 %v7782_v7  ;;  %v7752_v9 = vcombine.high %v628_v0, %v644_v3  ;;  %v612_v16 = vld [vmem:[%s8137_s17 + $0xdb8] sm:$0xff] }
 0x12e   : > { %v4350_v20 = vpop.f32.mrf.mxu1  ;;  %4809 = vmatprep.subr.bf16.mxu1 %v7432_v8  ;;  %v7590_v8 = vcombine.high %v467_v62, %v483_v63  ;;  %v564_v21 = vld [vmem:[%s8137_s17 + $0xc38] sm:$0xff]  ;;  %v7719_v26 = vcombine.low %v596_v14, %v612_v16 }
 0x12f   : > { %v7720_v20 = vcombine.high %v596_v14, %v612_v16  ;;  %v708_v62 = vld [vmem:[%s8137_s17 + $0x10b8] sm:$0xff]  ;;  %v373_v16 = vld [vmem:[%s8137_s17 + $0x640] sm:$0xff] }
 0x130   : > { %4738 = vmatpush2.bf16.msra.mxu0 %v7781_v18  ;;  %v7751_v18 = vcombine.low %v628_v0, %v644_v3 }
 0x131   : > { %4810 = vmatpush1.bf16.msra.mxu1 %v7431_v19  ;;  %4739 = vmatprep.subr.bf16.mxu0 %v7750_v24  ;;  %v7558_v19 = vcombine.high %v435_v12, %v451_v13  ;;  %v580_v24 = vld [vmem:[%s8137_s17 + $0xcb8] sm:$0xff] }
 0x132   : > { %4811 = vmatprep.subr.bf16.mxu1 %v7400_v40  ;;  %v820_v40 = vld [vmem:[%s8137_s17 + $0x1438] sm:$0x33]  ;;  %v7688_v27 = vcombine.high %v564_v21, %v580_v24  ;;  %v7687_v33 = vcombine.low %v564_v21, %v580_v24 }
 0x133   : > { %v7944_v28 = vcombine.high %v820_v40, %v820_v40 }
 0x134   : > { %4740 = vmatpush2.bf16.msra.mxu0 %v7749_v29  ;;  %v7943_v29 = vcombine.low %v820_v40, %v820_v40 }
 0x135   : > { %4812 = vmatpush1.bf16.msra.mxu1 %v7399_v30  ;;  %4741 = vmatprep.subr.bf16.mxu0 %v7718_v31  ;;  %v532_v30 = vld [vmem:[%s8137_s17 + $0xb38] sm:$0xff] }
 0x136   : > { %4813 = vmatprep.subr.bf16.mxu1 %v7368_v43  ;;  %v548_v31 = vld [vmem:[%s8137_s17 + $0xbb8] sm:$0xff]  ;;  %v4176_v34 = vsel %vm4132_vm0, %v7943_v29, 0 }
 0x137   : > { %v788_v43 = vld [vmem:[%s8137_s17 + $0x1338] sm:$0xff]  ;;  %v7656_v36 = vcombine.high %v532_v30, %v548_v31  ;;  %v7655_v44 = vcombine.low %v532_v30, %v548_v31 }
 0x138   : > { %4742 = vmatpush2.bf16.msra.mxu0 %v7717_v37  ;;  %v7912_v37 = vcombine.high %v788_v43, %v804_v32  ;;  %v7911_v45 = vcombine.low %v788_v43, %v804_v32  ;;  %v309_v32 = vld [vmem:[%s8137_s17 + $0x440] sm:$0xff] }
 0x139   : > { %4814 = vmatpush1.bf16.msra.mxu1 %v7367_v38  ;;  %4743 = vmatprep.subr.bf16.mxu0 %v7686_v39  ;;  %v500_v38 = vld [vmem:[%s8137_s17 + $0xa38] sm:$0xff] }
 0x13a   : > { %4815 = vmatprep.subr.bf16.mxu1 %v7336_v41  ;;  %v516_v39 = vld [vmem:[%s8137_s17 + $0xab8] sm:$0xff] }
 0x13b   : > { %v756_v41 = vld [vmem:[%s8137_s17 + $0x1238] sm:$0xff]  ;;  %v7624_v46 = vcombine.high %v500_v38, %v516_v39  ;;  %v7623_v52 = vcombine.low %v500_v38, %v516_v39 }
 0x13c   : > { %v8522_v55 = vpop.f32.mrf.mxu1  ;;  %4744 = vmatpush2.bf16.msra.mxu0 %v7685_v47  ;;  %v7880_v47 = vcombine.high %v756_v41, %v772_v42  ;;  %v7879_v53 = vcombine.low %v756_v41, %v772_v42 }
 0x13d   : > { %4816 = vmatpush1.bf16.msra.mxu1 %v7335_v48  ;;  %4745 = vmatprep.subr.bf16.mxu0 %v7654_v49  ;;  %v468_v48 = vld [vmem:[%s8137_s17 + $0x938] sm:$0xff] }
 0x13e   : > { %v8524_v58 = vpop.f32.mrf.mxu1  ;;  %4817 = vmatprep.subr.bf16.mxu1 %v7304_v50  ;;  %v484_v49 = vld [vmem:[%s8137_s17 + $0x9b8] sm:$0xff] }
 0x13f   : > { %v724_v50 = vld [vmem:[%s8137_s17 + $0x1138] sm:$0xff]  ;;  %v7592_v54 = vcombine.high %v468_v48, %v484_v49  ;;  %v7591_v63 = vcombine.low %v468_v48, %v484_v49  ;;  %v293_v48 = vld [vmem:[%s8137_s17 + $0x3c0] sm:$0xff] }
 0x140   : > { %v4472_v4 = vpop.f32.mrf.mxu1  ;;  %4746 = vmatpush2.bf16.msra.mxu0 %v7653_v56  ;;  %v7848_v56 = vcombine.high %v724_v50, %v740_v51  ;;  %v7847_v0 = vcombine.low %v724_v50, %v740_v51  ;;  %v709_v49 = vld [vmem:[%s8137_s17 + $0x10c0] sm:$0xff] }
 0x141   : > { %4818 = vmatpush1.bf16.msra.mxu1 %v7303_v57  ;;  %4747 = vmatprep.subr.bf16.mxu0 %v7622_v59  ;;  %v436_v57 = vld [vmem:[%s8137_s17 + $0x838] sm:$0xff] }
 0x142   : > { %v4473_v7 = vpop.f32.mrf.mxu1  ;;  %4819 = vmatprep.subr.bf16.mxu1 %v7784_v60  ;;  %v452_v59 = vld [vmem:[%s8137_s17 + $0x8b8] sm:$0xff] }
 0x143   : > { %v692_v60 = vld [vmem:[%s8137_s17 + $0x1038] sm:$0xff]  ;;  %v7560_v3 = vcombine.high %v436_v57, %v452_v59  ;;  %v821_v7 = vld [vmem:[%s8137_s17 + $0x1440] sm:$0x33] }
 0x144   : > { %4748 = vmatpush2.bf16.msra.mxu0 %v7621_v5  ;;  %v7816_v4 = vcombine.high %v692_v60, %v708_v62  ;;  %v405_v5 = vld [vmem:[%s8137_s17 + $0x740] sm:$0xff]  ;;  %v7946_v13 = vcombine.high %v821_v7, %v821_v7  ;;  %v7945_v14 = vcombine.low %v821_v7, %v821_v7  ;;  %v390_v7 = vld [vmem:[%s8137_s17 + $0x6c8] sm:$0xff] }
 0x145   : > { %4820 = vmatpush2.bf16.msra.mxu1 %v7783_v6  ;;  %4749 = vmatprep.subr.bf16.mxu0 %v7590_v8  ;;  %v421_v6 = vld [vmem:[%s8137_s17 + $0x7c0] sm:$0xff]  ;;  %v7559_v8 = vcombine.low %v436_v57, %v452_v59  ;;  %v406_v59 = vld [vmem:[%s8137_s17 + $0x748] sm:$0xff] }
 0x146   : > { %4821 = vmatprep.subr.bf16.mxu1 %v7752_v9  ;;  %v7815_v9 = vcombine.low %v692_v60, %v708_v62  ;;  %v7530_v12 = vcombine.high %v405_v5, %v421_v6  ;;  %v4182_v21 = vsel %vm4132_vm0, %v7945_v14, 0  ;;  %v261_v57 = vld [vmem:[%s8137_s17 + $0x2c0] sm:$0xff]  ;;  %v422_v60 = vld [vmem:[%s8137_s17 + $0x7c8] sm:$0xff] }
 0x147   : > { %v181_v14 = vld [vmem:[%s8137_s17 + $0x40] sm:$0xff] }
 0x148   : > { %4750 = vmatpush2.bf16.msra.mxu0 %v7589_v17  ;;  %v389_v17 = vld [vmem:[%s8137_s17 + $0x6c0] sm:$0xff] }
 0x149   : > { %4822 = vmatpush2.bf16.msra.mxu1 %v7751_v18  ;;  %4751 = vmatprep.subr.bf16.mxu0 %v7558_v19  ;;  %v789_v18 = vld [vmem:[%s8137_s17 + $0x1340] sm:$0xff]  ;;  %v7498_v24 = vcombine.high %v373_v16, %v389_v17  ;;  %v7497_v29 = vcombine.low %v373_v16, %v389_v17  ;;  %v342_v17 = vld [vmem:[%s8137_s17 + $0x548] sm:$0xff] }
 0x14a   : > { %4823 = vmatprep.subr.bf16.mxu1 %v7720_v20  ;;  %v805_v19 = vld [vmem:[%s8137_s17 + $0x13c0] sm:$0xff]  ;;  %v7529_v20 = vcombine.low %v405_v5, %v421_v6  ;;  %v374_v6 = vld [vmem:[%s8137_s17 + $0x648] sm:$0xff] }
 0x14b   : > { %v7914_v40 = vcombine.high %v789_v18, %v805_v19  ;;  %v7913_v30 = vcombine.low %v789_v18, %v805_v19  ;;  %v229_v5 = vld [vmem:[%s8137_s17 + $0x1c0] sm:$0xff]  ;;  %v358_v18 = vld [vmem:[%s8137_s17 + $0x5c8] sm:$0xff] }
 0x14c   : > { %4752 = vmatpush2.bf16.msra.mxu0 %v7557_v25  ;;  %v341_v25 = vld [vmem:[%s8137_s17 + $0x540] sm:$0xff] }
 0x14d   : > { %4824 = vmatpush2.bf16.msra.mxu1 %v7719_v26  ;;  %7975 = vmatprep.subr.msk.bf16.mxu0 %vm4132_vm0, %v7944_v28  ;;  %v357_v26 = vld [vmem:[%s8137_s17 + $0x5c0] sm:$0xff] }
 0x14e   : > { %4825 = vmatprep.subr.bf16.mxu1 %v7688_v27  ;;  %v757_v27 = vld [vmem:[%s8137_s17 + $0x1240] sm:$0xff]  ;;  %v7466_v31 = vcombine.high %v341_v25, %v357_v26  ;;  %v7465_v39 = vcombine.low %v341_v25, %v357_v26  ;;  %v310_v26 = vld [vmem:[%s8137_s17 + $0x448] sm:$0xff] }
 0x14f   : > { %4754 = vmatmul.mubr.bf16.vlgmr.msra.gmra.mxu0 %v8157_v22  ;;  %v773_v28 = vld [vmem:[%s8137_s17 + $0x12c0] sm:$0xff] }
 0x150   : > { %4851 = vmatpush1.bf16.msra.mxu0 %v4176_v34  ;;  %4876 = vmatprep.mubr.bf16.mxu0 %v8099_v1  ;;  %v7882_v43 = vcombine.high %v757_v27, %v773_v28  ;;  %v725_v34 = vld [vmem:[%s8137_s17 + $0x1140] sm:$0xff]  ;;  %v7881_v41 = vcombine.low %v757_v27, %v773_v28  ;;  %v326_v27 = vld [vmem:[%s8137_s17 + $0x4c8] sm:$0xff] }
 0x151   : > { %4826 = vmatpush2.bf16.msra.mxu1 %v7687_v33  ;;  %4852 = vmatprep.subr.bf16.mxu0 %v7912_v37  ;;  %v325_v33 = vld [vmem:[%s8137_s17 + $0x4c0] sm:$0xff] }
 0x152   : > { %4827 = vmatprep.subr.bf16.mxu1 %v7656_v36  ;;  %v741_v36 = vld [vmem:[%s8137_s17 + $0x11c0] sm:$0xff]  ;;  %v7433_v51 = vcombine.low %v309_v32, %v325_v33 }
 0x153   : > { %v197_v16 = vld [vmem:[%s8137_s17 + $0xc0] sm:$0xff] }
 0x154   : > { %4853 = vmatpush1.bf16.msra.mxu0 %v7911_v45  ;;  %v7850_v45 = vcombine.high %v725_v34, %v741_v36  ;;  %v677_v25 = vld [vmem:[%s8137_s17 + $0xfc0] sm:$0xff] }
 0x155   : > { %4828 = vmatpush2.bf16.msra.mxu1 %v7655_v44  ;;  %4854 = vmatprep.subr.bf16.mxu0 %v7880_v47  ;;  %v7434_v44 = vcombine.high %v309_v32, %v325_v33 }
 0x156   : > { %4829 = vmatprep.subr.bf16.mxu1 %v7624_v46  ;;  %v277_v46 = vld [vmem:[%s8137_s17 + $0x340] sm:$0xff] }
 0x157   : > { %v7401_v62 = vcombine.low %v277_v46, %v293_v48 }
 0x158   : > { %4855 = vmatpush1.bf16.msra.mxu0 %v7879_v53 }
 0x159   : > { %4830 = vmatpush2.bf16.msra.mxu1 %v7623_v52  ;;  %4856 = vmatprep.subr.bf16.mxu0 %v7848_v56  ;;  %v7849_v52 = vcombine.low %v725_v34, %v741_v36  ;;  %v7436_v36 = vcombine.high %v310_v26, %v326_v27 }
 0x15a   : > { %4831 = vmatprep.subr.bf16.mxu1 %v7592_v54  ;;  %v7402_v54 = vcombine.high %v277_v46, %v293_v48 }
 0x15c   : > { %4857 = vmatpush1.bf16.msra.mxu0 %v7847_v0 }
 0x15d   : > { %4832 = vmatpush2.bf16.msra.mxu1 %v7591_v63  ;;  %4858 = vmatprep.subr.bf16.mxu0 %v7816_v4  ;;  %v213_v4 = vld [vmem:[%s8137_s17 + $0x140] sm:$0xff] }
 0x15e   : > { %4833 = vmatprep.subr.bf16.mxu1 %v7560_v3  ;;  %v7532_v3 = vcombine.high %v406_v59, %v422_v60  ;;  %v7337_v19 = vcombine.low %v213_v4, %v229_v5 }
 0x160   : > { %4859 = vmatpush1.bf16.msra.mxu0 %v7815_v9  ;;  %v7531_v9 = vcombine.low %v406_v59, %v422_v60 }
 0x161   : > { %4834 = vmatpush2.bf16.msra.mxu1 %v7559_v8  ;;  %4885 = vmatprep.subr.bf16.mxu0 %v7530_v12  ;;  %v7338_v12 = vcombine.high %v213_v4, %v229_v5  ;;  %v230_v4 = vld [vmem:[%s8137_s17 + $0x1c8] sm:$0xff] }
 0x162   : > { %7977 = vmatprep.subr.msk.bf16.mxu1 %vm4132_vm0, %v7946_v13  ;;  %v7500_v13 = vcombine.high %v374_v6, %v390_v7 }
 0x163   : > { %7976 = vmatmul.mubr.msk.bf16.vlgmr.msra.gmra.mxu0 %vm4128_vm1, %v8187_v61 }
 0x164   : > { %4836 = vmatmul.mubr.bf16.vlgmr.msra.gmra.mxu1 %v8157_v22  ;;  %4886 = vmatpush1.bf16.msra.mxu0 %v7529_v20  ;;  %v7499_v20 = vcombine.low %v374_v6, %v390_v7 }
 0x165   : > { %4933 = vmatpush1.bf16.msra.mxu1 %v4182_v21  ;;  %4887 = vmatprep.subr.bf16.mxu0 %v7498_v24  ;;  %v7306_v21 = vcombine.high %v181_v14, %v197_v16  ;;  %v7468_v24 = vcombine.high %v342_v17, %v358_v18 }
 0x166   : > { %4934 = vmatprep.subr.bf16.mxu1 %v7914_v40  ;;  %4958 = vmatprep.mubr.bf16.mxu1 %v8099_v1  ;;  %v661_v40 = vld [vmem:[%s8137_s17 + $0xf40] sm:$0xff] }
 0x167   : > { %4917 = vmatprep.mubr.bf16.mxu0 %v8169_v35  ;;  %v4427_v37 = vpop.f32.mrf.mxu0  ;;  %v7786_v34 = vcombine.high %v661_v40, %v677_v25  ;;  %v7785_v48 = vcombine.low %v661_v40, %v677_v25  ;;  %v678_v40 = vld [vmem:[%s8137_s17 + $0xfc8] sm:$0xff] }
 0x168   : > { %v8580_v38 = vadd.f32 %v8522_v55, %v4427_v37  ;;  %4888 = vmatpush1.bf16.msra.mxu0 %v7497_v29  ;;  %v693_v55 = vld [vmem:[%s8137_s17 + $0x1040] sm:$0xff] }
 0x169   : > { %4935 = vmatpush1.bf16.msra.mxu1 %v7913_v30  ;;  %v4429_v42 = vpop.f32.mrf.mxu0  ;;  %4889 = vmatprep.subr.bf16.mxu0 %v7466_v31  ;;  %v7818_v56 = vcombine.high %v693_v55, %v709_v49  ;;  %v7817_v63 = vcombine.low %v693_v55, %v709_v49  ;;  %v7305_v31 = vcombine.low %v181_v14, %v197_v16  ;;  %v629_v37 = vld [vmem:[%s8137_s17 + $0xe40] sm:$0xff]  ;;  %v198_v14 = vld [vmem:[%s8137_s17 + $0xc8] sm:$0xff] }
 0x16a   : > { %4936 = vmatprep.subr.bf16.mxu1 %v7882_v43  ;;  %v8584_v47 = vadd.f32 %v8524_v58, %v4429_v42  ;;  %v245_v58 = vld [vmem:[%s8137_s17 + $0x240] sm:$0xff]  ;;  %v7467_v43 = vcombine.low %v342_v17, %v358_v18  ;;  %v278_v42 = vld [vmem:[%s8137_s17 + $0x348] sm:$0xff]  ;;  %v7435_v55 = vcombine.low %v310_v26, %v326_v27 }
 0x16b   : > { %v4431_v50 = vpop.f32.mrf.mxu0  ;;  %v7370_v0 = vcombine.high %v245_v58, %v261_v57  ;;  %v7369_v8 = vcombine.low %v245_v58, %v261_v57  ;;  %v262_v58 = vld [vmem:[%s8137_s17 + $0x2c8] sm:$0xff] }
 0x16c   : > { %4890 = vmatpush1.bf16.msra.mxu0 %v7465_v39 }
 0x16d   : > { %4937 = vmatpush1.bf16.msra.mxu1 %v7881_v41  ;;  %v4432_v53 = vpop.f32.mrf.mxu0  ;;  %4891 = vmatprep.subr.bf16.mxu0 %v7434_v44  ;;  %v645_v41 = vld [vmem:[%s8137_s17 + $0xec0] sm:$0xff]  ;;  %v294_v44 = vld [vmem:[%s8137_s17 + $0x3c8] sm:$0xff] }
 0x16e   : > { %4938 = vmatprep.subr.bf16.mxu1 %v7850_v45  ;;  %v597_v53 = vld [vmem:[%s8137_s17 + $0xd40] sm:$0xff]  ;;  %v7753_v57 = vcombine.low %v629_v37, %v645_v41  ;;  %v7403_v59 = vcombine.low %v278_v42, %v294_v44 }
 0x170   : > { %4892 = vmatpush1.bf16.msra.mxu0 %v7433_v51  ;;  %v7754_v51 = vcombine.high %v629_v37, %v645_v41 }
 0x171   : > { %4939 = vmatpush1.bf16.msra.mxu1 %v7849_v52  ;;  %4893 = vmatprep.subr.bf16.mxu0 %v7402_v54  ;;  %v7404_v52 = vcombine.high %v278_v42, %v294_v44  ;;  %v613_v54 = vld [vmem:[%s8137_s17 + $0xdc0] sm:$0xff] }
 0x172   : > { %4940 = vmatprep.subr.bf16.mxu1 %v7818_v56  ;;  %v246_v56 = vld [vmem:[%s8137_s17 + $0x248] sm:$0xff]  ;;  %v7722_v60 = vcombine.high %v597_v53, %v613_v54  ;;  %v7721_v5 = vcombine.low %v597_v53, %v613_v54 }
 0x173   : > { %v7371_v6 = vcombine.low %v246_v56, %v262_v58  ;;  %v566_v54 = vld [vmem:[%s8137_s17 + $0xc48] sm:$0xff] }
 0x174   : > { %4894 = vmatpush1.bf16.msra.mxu0 %v7401_v62  ;;  %v7372_v62 = vcombine.high %v246_v56, %v262_v58  ;;  %v582_v56 = vld [vmem:[%s8137_s17 + $0xcc8] sm:$0xff] }
 0x175   : > { %4941 = vmatpush1.bf16.msra.mxu1 %v7817_v63  ;;  %4895 = vmatprep.subr.bf16.mxu0 %v7370_v0  ;;  %v565_v63 = vld [vmem:[%s8137_s17 + $0xc40] sm:$0xff]  ;;  %v822_v58 = vld [vmem:[%s8137_s17 + $0x1448] sm:$0x33] }
 0x176   : > { %4967 = vmatprep.subr.bf16.mxu1 %v7532_v3  ;;  %v581_v0 = vld [vmem:[%s8137_s17 + $0xcc0] sm:$0xff]  ;;  %v214_v3 = vld [vmem:[%s8137_s17 + $0x148] sm:$0xff] }
 0x177   : > { %v7690_v7 = vcombine.high %v565_v63, %v581_v0  ;;  %v7689_v16 = vcombine.low %v565_v63, %v581_v0  ;;  %v7339_v17 = vcombine.low %v214_v3, %v230_v4  ;;  %v7947_v63 = vcombine.low %v822_v58, %v822_v58  ;;  %v534_v0 = vld [vmem:[%s8137_s17 + $0xb48] sm:$0xff] }
 0x178   : > { %7978 = vmatmul.mubr.msk.bf16.vlgmr.msra.gmra.mxu1 %vm4128_vm1, %v8187_v61  ;;  %4896 = vmatpush1.bf16.msra.mxu0 %v7369_v8  ;;  %v7340_v8 = vcombine.high %v214_v3, %v230_v4  ;;  %v550_v3 = vld [vmem:[%s8137_s17 + $0xbc8] sm:$0xff] }
 0x179   : > { %4968 = vmatpush1.bf16.msra.mxu1 %v7531_v9  ;;  %4897 = vmatprep.subr.bf16.mxu0 %v7338_v12  ;;  %v533_v9 = vld [vmem:[%s8137_s17 + $0xb40] sm:$0xff]  ;;  %v790_v4 = vld [vmem:[%s8137_s17 + $0x1348] sm:$0xff] }
 0x17a   : > { %4969 = vmatprep.subr.bf16.mxu1 %v7500_v13  ;;  %4999 = vmatprep.mubr.bf16.mxu1 %v8169_v35  ;;  %v549_v12 = vld [vmem:[%s8137_s17 + $0xbc0] sm:$0xff]  ;;  %v182_v13 = vld [vmem:[%s8137_s17 + $0x48] sm:$0xff] }
 0x17b   : > { %v4550_v29 = vpop.f32.mrf.mxu0  ;;  %v7658_v18 = vcombine.high %v533_v9, %v549_v12  ;;  %v7657_v26 = vcombine.low %v533_v9, %v549_v12  ;;  %v7307_v27 = vcombine.low %v182_v13, %v198_v14  ;;  %v502_v12 = vld [vmem:[%s8137_s17 + $0xa48] sm:$0xff] }
 0x17c   : > { %v4509_v28 = vpop.f32.mrf.mxu1  ;;  %4898 = vmatpush1.bf16.msra.mxu0 %v7337_v19  ;;  %v7308_v19 = vcombine.high %v182_v13, %v198_v14  ;;  %v518_v13 = vld [vmem:[%s8137_s17 + $0xac8] sm:$0xff] }
 0x17d   : > { %v8608_v30 = vadd.f32 %v4550_v29, %v4509_v28  ;;  %4970 = vmatpush1.bf16.msra.mxu1 %v7499_v20  ;;  %v4552_v33 = vpop.f32.mrf.mxu0  ;;  %4899 = vmatprep.subr.bf16.mxu0 %v7306_v21  ;;  %v501_v20 = vld [vmem:[%s8137_s17 + $0xa40] sm:$0xff]  ;;  %v758_v14 = vld [vmem:[%s8137_s17 + $0x1248] sm:$0xff] }
 0x17e   : > { %v4511_v32 = vpop.f32.mrf.mxu1  ;;  %4971 = vmatprep.subr.bf16.mxu1 %v7468_v24  ;;  %v517_v21 = vld [vmem:[%s8137_s17 + $0xac0] sm:$0xff]  ;;  %v662_v24 = vld [vmem:[%s8137_s17 + $0xf48] sm:$0xff] }
 0x17f   : > { %v8611_v39 = vadd.f32 %v4552_v33, %v4511_v32  ;;  %v4554_v46 = vpop.f32.mrf.mxu0  ;;  %v7626_v29 = vcombine.high %v501_v20, %v517_v21  ;;  %v485_v32 = vld [vmem:[%s8137_s17 + $0x9c0] sm:$0xff]  ;;  %v630_v33 = vld [vmem:[%s8137_s17 + $0xe48] sm:$0xff]  ;;  %v7625_v37 = vcombine.low %v501_v20, %v517_v21  ;;  %v7787_v41 = vcombine.low %v662_v24, %v678_v40 }
 0x180   : > { %v4513_v45 = vpop.f32.mrf.mxu1  ;;  %4900 = vmatpush1.bf16.msra.mxu0 %v7305_v31  ;;  %v7788_v31 = vcombine.high %v662_v24, %v678_v40  ;;  %v437_v46 = vld [vmem:[%s8137_s17 + $0x840] sm:$0xff]  ;;  %v470_v21 = vld [vmem:[%s8137_s17 + $0x948] sm:$0xff] }
 0x181   : > { %4972 = vmatpush1.bf16.msra.mxu1 %v7467_v43  ;;  %v4555_v50 = vpop.f32.mrf.mxu0  ;;  %4901 = vmatprep.subr.bf16.mxu0 %v7786_v34  ;;  %v469_v43 = vld [vmem:[%s8137_s17 + $0x940] sm:$0xff]  ;;  %v646_v34 = vld [vmem:[%s8137_s17 + $0xec8] sm:$0xff] }
 0x182   : > { %v4514_v49 = vpop.f32.mrf.mxu1  ;;  %4973 = vmatprep.subr.bf16.mxu1 %v7436_v36  ;;  %v7594_v44 = vcombine.high %v469_v43, %v485_v32  ;;  %v7756_v45 = vcombine.high %v630_v33, %v646_v34  ;;  %v7593_v50 = vcombine.low %v469_v43, %v485_v32  ;;  %v486_v24 = vld [vmem:[%s8137_s17 + $0x9c8] sm:$0xff] }
 0x183   : > { %v614_v49 = vld [vmem:[%s8137_s17 + $0xdc8] sm:$0xff] }
 0x184   : > { %4902 = vmatpush2.bf16.msra.mxu0 %v7785_v48  ;;  %v453_v48 = vld [vmem:[%s8137_s17 + $0x8c0] sm:$0xff]  ;;  %v726_v40 = vld [vmem:[%s8137_s17 + $0x1148] sm:$0xff] }
 0x185   : > { %4974 = vmatpush1.bf16.msra.mxu1 %v7435_v55  ;;  %4903 = vmatprep.subr.bf16.mxu0 %v7754_v51  ;;  %v598_v55 = vld [vmem:[%s8137_s17 + $0xd48] sm:$0xff]  ;;  %v7755_v51 = vcombine.low %v630_v33, %v646_v34 }
 0x186   : > { %4975 = vmatprep.subr.bf16.mxu1 %v7404_v52  ;;  %v7562_v52 = vcombine.high %v437_v46, %v453_v48  ;;  %v7724_v53 = vcombine.high %v598_v55, %v614_v49  ;;  %v438_v32 = vld [vmem:[%s8137_s17 + $0x848] sm:$0xff] }
 0x187   : > { %v454_v33 = vld [vmem:[%s8137_s17 + $0x8c8] sm:$0xff] }
 0x188   : > { %4904 = vmatpush2.bf16.msra.mxu0 %v7753_v57  ;;  %v7561_v57 = vcombine.low %v437_v46, %v453_v48  ;;  %v694_v34 = vld [vmem:[%s8137_s17 + $0x1048] sm:$0xff]  ;;  %v423_v46 = vld [vmem:[%s8137_s17 + $0x7d0] sm:$0xff] }
 0x189   : > { %4976 = vmatpush1.bf16.msra.mxu1 %v7403_v59  ;;  %4905 = vmatprep.subr.bf16.mxu0 %v7722_v60  ;;  %v7723_v59 = vcombine.low %v598_v55, %v614_v49  ;;  %v7692_v60 = vcombine.high %v566_v54, %v582_v56  ;;  %v823_v48 = vld [vmem:[%s8137_s17 + $0x1450] sm:$0x33]  ;;  %v7563_v55 = vcombine.low %v438_v32, %v454_v33 }
 0x18a   : > { %4977 = vmatprep.subr.bf16.mxu1 %v7372_v62  ;;  %v7948_v62 = vcombine.high %v822_v58, %v822_v58  ;;  %v807_v58 = vld [vmem:[%s8137_s17 + $0x13d0] sm:$0xff] }
 0x18c   : > { %4906 = vmatpush2.bf16.msra.mxu0 %v7721_v5  ;;  %v806_v5 = vld [vmem:[%s8137_s17 + $0x13c8] sm:$0xff] }
 0x18d   : > { %4978 = vmatpush1.bf16.msra.mxu1 %v7371_v6  ;;  %4907 = vmatprep.subr.bf16.mxu0 %v7690_v7  ;;  %v7691_v6 = vcombine.low %v566_v54, %v582_v56  ;;  %v4188_v7 = vsel %vm4132_vm0, %v7947_v63, 0  ;;  %v7916_v9 = vcombine.high %v790_v4, %v806_v5  ;;  %v391_v54 = vld [vmem:[%s8137_s17 + $0x6d0] sm:$0xff] }
 0x18e   : > { %4979 = vmatprep.subr.bf16.mxu1 %v7340_v8  ;;  %v7660_v8 = vcombine.high %v534_v0, %v550_v3  ;;  %v791_v56 = vld [vmem:[%s8137_s17 + $0x1350] sm:$0xff] }
 0x18f   : > { %v343_v63 = vld [vmem:[%s8137_s17 + $0x550] sm:$0xff] }
 0x190   : > { %v8632_v25 = vpop.f32.mrf.mxu1  ;;  %4908 = vmatpush2.bf16.msra.mxu0 %v7689_v16  ;;  %v774_v16 = vld [vmem:[%s8137_s17 + $0x12c8] sm:$0xff] }
 0x191   : > { %4980 = vmatpush1.bf16.msra.mxu1 %v7339_v17  ;;  %4909 = vmatprep.subr.bf16.mxu0 %v7658_v18  ;;  %v7659_v17 = vcombine.low %v534_v0, %v550_v3  ;;  %v7915_v18 = vcombine.low %v790_v4, %v806_v5  ;;  %v7884_v20 = vcombine.high %v758_v14, %v774_v16  ;;  %v359_v0 = vld [vmem:[%s8137_s17 + $0x5d0] sm:$0xff] }
 0x192   : > { %v8634_v28 = vpop.f32.mrf.mxu1  ;;  %4981 = vmatprep.subr.bf16.mxu1 %v7308_v19  ;;  %v7628_v19 = vcombine.high %v502_v12, %v518_v13  ;;  %v759_v3 = vld [vmem:[%s8137_s17 + $0x1250] sm:$0xff] }
 0x193   : > { %v775_v4 = vld [vmem:[%s8137_s17 + $0x12d0] sm:$0xff] }
 0x194   : > { %v4636_v36 = vpop.f32.mrf.mxu1  ;;  %4910 = vmatpush2.bf16.msra.mxu0 %v7657_v26  ;;  %v742_v26 = vld [vmem:[%s8137_s17 + $0x11c8] sm:$0xff] }
 0x195   : > { %4982 = vmatpush1.bf16.msra.mxu1 %v7307_v27  ;;  %4911 = vmatprep.subr.bf16.mxu0 %v7626_v29  ;;  %v7627_v27 = vcombine.low %v502_v12, %v518_v13  ;;  %v7883_v29 = vcombine.low %v758_v14, %v774_v16  ;;  %v7852_v43 = vcombine.high %v726_v40, %v742_v26  ;;  %v710_v36 = vld [vmem:[%s8137_s17 + $0x10c8] sm:$0xff]  ;;  %v327_v12 = vld [vmem:[%s8137_s17 + $0x4d0] sm:$0xff] }
 0x196   : > { %v4637_v42 = vpop.f32.mrf.mxu1  ;;  %4983 = vmatprep.subr.bf16.mxu1 %v7788_v31  ;;  %v7596_v31 = vcombine.high %v470_v21, %v486_v24  ;;  %v7819_v49 = vcombine.low %v694_v34, %v710_v36  ;;  %v727_v13 = vld [vmem:[%s8137_s17 + $0x1150] sm:$0xff] }
 0x197   : > { %v7564_v42 = vcombine.high %v438_v32, %v454_v33  ;;  %v743_v14 = vld [vmem:[%s8137_s17 + $0x11d0] sm:$0xff] }
 0x198   : > { %4912 = vmatpush2.bf16.msra.mxu0 %v7625_v37  ;;  %v7595_v37 = vcombine.low %v470_v21, %v486_v24  ;;  %v7854_v24 = vcombine.high %v727_v13, %v743_v14  ;;  %v7853_v32 = vcombine.low %v727_v13, %v743_v14 }
 0x199   : > { %4984 = vmatpush2.bf16.msra.mxu1 %v7787_v41  ;;  %4913 = vmatprep.subr.bf16.mxu0 %v7594_v44  ;;  %v7851_v41 = vcombine.low %v726_v40, %v742_v26  ;;  %v7820_v44 = vcombine.high %v694_v34, %v710_v36  ;;  %v279_v40 = vld [vmem:[%s8137_s17 + $0x350] sm:$0xff] }
 0x19a   : > { %4985 = vmatprep.subr.bf16.mxu1 %v7756_v45  ;;  %v407_v45 = vld [vmem:[%s8137_s17 + $0x750] sm:$0xff] }
 0x19c   : > { %4914 = vmatpush2.bf16.msra.mxu0 %v7593_v50  ;;  %v7534_v50 = vcombine.high %v407_v45, %v423_v46 }
 0x19d   : > { %4986 = vmatpush2.bf16.msra.mxu1 %v7755_v51  ;;  %4915 = vmatprep.subr.bf16.mxu0 %v7562_v52  ;;  %v7950_v51 = vcombine.high %v823_v48, %v823_v48  ;;  %v7949_v52 = vcombine.low %v823_v48, %v823_v48 }
 0x19e   : > { %4987 = vmatprep.subr.bf16.mxu1 %v7724_v53  ;;  %v375_v53 = vld [vmem:[%s8137_s17 + $0x650] sm:$0xff] }
 0x19f   : > { %v7501_v5 = vcombine.low %v375_v53, %v391_v54 }
 0x1a0   : > { %4916 = vmatpush2.bf16.msra.mxu0 %v7561_v57  ;;  %v7533_v57 = vcombine.low %v407_v45, %v423_v46 }
 0x1a1   : > { %4988 = vmatpush2.bf16.msra.mxu1 %v7723_v59  ;;  %7979 = vmatprep.subr.msk.bf16.mxu0 %vm4132_vm0, %v7948_v62  ;;  %v4194_v59 = vsel %vm4132_vm0, %v7949_v52, 0  ;;  %v7918_v62 = vcombine.high %v791_v56, %v807_v58 }
 0x1a2   : > { %4989 = vmatprep.subr.bf16.mxu1 %v7692_v60  ;;  %v7502_v60 = vcombine.high %v375_v53, %v391_v54 }
 0x1a3   : > { %4918 = vmatmul.mubr.bf16.vlgmr.msra.gmra.mxu0 %v8157_v22 }
 0x1a4   : > { %5015 = vmatpush1.bf16.msra.mxu0 %v4188_v7  ;;  %5040 = vmatprep.mubr.bf16.mxu0 %v8099_v1  ;;  %v7470_v7 = vcombine.high %v343_v63, %v359_v0 }
 0x1a5   : > { %4990 = vmatpush2.bf16.msra.mxu1 %v7691_v6  ;;  %5016 = vmatprep.subr.bf16.mxu0 %v7916_v9  ;;  %v7917_v6 = vcombine.low %v791_v56, %v807_v58  ;;  %v311_v9 = vld [vmem:[%s8137_s17 + $0x450] sm:$0xff] }
 0x1a6   : > { %4991 = vmatprep.subr.bf16.mxu1 %v7660_v8  ;;  %v7886_v8 = vcombine.high %v759_v3, %v775_v4  ;;  %v7438_v21 = vcombine.high %v311_v9, %v327_v12  ;;  %v183_v58 = vld [vmem:[%s8137_s17 + $0x50] sm:$0xff] }
 0x1a8   : > { %5017 = vmatpush1.bf16.msra.mxu0 %v7915_v18  ;;  %v7469_v18 = vcombine.low %v343_v63, %v359_v0 }
 0x1a9   : > { %4992 = vmatpush2.bf16.msra.mxu1 %v7659_v17  ;;  %5018 = vmatprep.subr.bf16.mxu0 %v7884_v20 }
 0x1aa   : > { %4993 = vmatprep.subr.bf16.mxu1 %v7628_v19  ;;  %v7885_v19 = vcombine.low %v759_v3, %v775_v4  ;;  %v663_v4 = vld [vmem:[%s8137_s17 + $0xf50] sm:$0xff] }
 0x1ac   : > { %5019 = vmatpush1.bf16.msra.mxu0 %v7883_v29  ;;  %v711_v29 = vld [vmem:[%s8137_s17 + $0x10d0] sm:$0xff] }
 0x1ad   : > { %4994 = vmatpush2.bf16.msra.mxu1 %v7627_v27  ;;  %5020 = vmatprep.subr.bf16.mxu0 %v7852_v43  ;;  %v295_v27 = vld [vmem:[%s8137_s17 + $0x3d0] sm:$0xff]  ;;  %v7437_v43 = vcombine.low %v311_v9, %v327_v12 }
 0x1ae   : > { %4995 = vmatprep.subr.bf16.mxu1 %v7596_v31  ;;  %v7406_v34 = vcombine.high %v279_v40, %v295_v27 }
 0x1b0   : > { %5021 = vmatpush1.bf16.msra.mxu0 %v7851_v41  ;;  %v408_v41 = vld [vmem:[%s8137_s17 + $0x758] sm:$0xff] }
 0x1b1   : > { %4996 = vmatpush2.bf16.msra.mxu1 %v7595_v37  ;;  %5022 = vmatprep.subr.bf16.mxu0 %v7820_v44  ;;  %v263_v37 = vld [vmem:[%s8137_s17 + $0x2d0] sm:$0xff]  ;;  %v7405_v44 = vcombine.low %v279_v40, %v295_v27  ;;  %v280_v27 = vld [vmem:[%s8137_s17 + $0x358] sm:$0xff] }
 0x1b2   : > { %4997 = vmatprep.subr.bf16.mxu1 %v7564_v42  ;;  %v424_v42 = vld [vmem:[%s8137_s17 + $0x7d8] sm:$0xff]  ;;  %v647_v40 = vld [vmem:[%s8137_s17 + $0xed0] sm:$0xff] }
 0x1b3   : > { %v7536_v48 = vcombine.high %v408_v41, %v424_v42  ;;  %v7535_v53 = vcombine.low %v408_v41, %v424_v42  ;;  %v615_v41 = vld [vmem:[%s8137_s17 + $0xdd0] sm:$0xff]  ;;  %v248_v42 = vld [vmem:[%s8137_s17 + $0x258] sm:$0xff] }
 0x1b4   : > { %5023 = vmatpush1.bf16.msra.mxu0 %v7819_v49  ;;  %v231_v49 = vld [vmem:[%s8137_s17 + $0x1d0] sm:$0xff] }
 0x1b5   : > { %4998 = vmatpush2.bf16.msra.mxu1 %v7563_v55  ;;  %5049 = vmatprep.subr.bf16.mxu0 %v7534_v50  ;;  %v215_v55 = vld [vmem:[%s8137_s17 + $0x150] sm:$0xff]  ;;  %v376_v50 = vld [vmem:[%s8137_s17 + $0x658] sm:$0xff] }
 0x1b6   : > { %7981 = vmatprep.subr.msk.bf16.mxu1 %vm4132_vm0, %v7950_v51  ;;  %v392_v51 = vld [vmem:[%s8137_s17 + $0x6d8] sm:$0xff]  ;;  %v7342_v54 = vcombine.high %v215_v55, %v231_v49 }
 0x1b7   : > { %7980 = vmatmul.mubr.msk.bf16.vlgmr.msra.gmra.mxu0 %vm4128_vm1, %v8187_v61  ;;  %v7504_v56 = vcombine.high %v376_v50, %v392_v51  ;;  %v7503_v63 = vcombine.low %v376_v50, %v392_v51  ;;  %v583_v50 = vld [vmem:[%s8137_s17 + $0xcd0] sm:$0xff]  ;;  %v216_v51 = vld [vmem:[%s8137_s17 + $0x158] sm:$0xff] }
 0x1b8   : > { %5000 = vmatmul.mubr.bf16.vlgmr.msra.gmra.mxu1 %v8157_v22  ;;  %5050 = vmatpush1.bf16.msra.mxu0 %v7533_v57  ;;  %v199_v57 = vld [vmem:[%s8137_s17 + $0xd0] sm:$0xff] }
 0x1b9   : > { %5097 = vmatpush1.bf16.msra.mxu1 %v4194_v59  ;;  %5051 = vmatprep.subr.bf16.mxu0 %v7502_v60  ;;  %v344_v59 = vld [vmem:[%s8137_s17 + $0x558] sm:$0xff]  ;;  %v7310_v0 = vcombine.high %v183_v58, %v199_v57  ;;  %v7309_v13 = vcombine.low %v183_v58, %v199_v57  ;;  %v535_v57 = vld [vmem:[%s8137_s17 + $0xb50] sm:$0xff] }
 0x1ba   : > { %5098 = vmatprep.subr.bf16.mxu1 %v7918_v62  ;;  %5122 = vmatprep.mubr.bf16.mxu1 %v8099_v1  ;;  %v360_v60 = vld [vmem:[%s8137_s17 + $0x5d8] sm:$0xff]  ;;  %v7341_v62 = vcombine.low %v215_v55, %v231_v49  ;;  %v567_v49 = vld [vmem:[%s8137_s17 + $0xc50] sm:$0xff] }
 0x1bb   : > { %5081 = vmatprep.mubr.bf16.mxu0 %v8169_v35  ;;  %v4591_v16 = vpop.f32.mrf.mxu0  ;;  %v7472_v3 = vcombine.high %v344_v59, %v360_v60  ;;  %v7471_v14 = vcombine.low %v344_v59, %v360_v60  ;;  %v551_v59 = vld [vmem:[%s8137_s17 + $0xbd0] sm:$0xff]  ;;  %v184_v60 = vld [vmem:[%s8137_s17 + $0x58] sm:$0xff] }
 0x1bc   : > { %v8690_v17 = vadd.f32 %v8632_v25, %v4591_v16  ;;  %5052 = vmatpush1.bf16.msra.mxu0 %v7501_v5  ;;  %v695_v25 = vld [vmem:[%s8137_s17 + $0x1050] sm:$0xff] }
 0x1bd   : > { %5099 = vmatpush1.bf16.msra.mxu1 %v7917_v6  ;;  %v4593_v20 = vpop.f32.mrf.mxu0  ;;  %5053 = vmatprep.subr.bf16.mxu0 %v7470_v7  ;;  %v7822_v36 = vcombine.high %v695_v25, %v711_v29  ;;  %v7821_v45 = vcombine.low %v695_v25, %v711_v29  ;;  %v679_v5 = vld [vmem:[%s8137_s17 + $0xfd0] sm:$0xff]  ;;  %v312_v6 = vld [vmem:[%s8137_s17 + $0x458] sm:$0xff] }
 0x1be   : > { %5100 = vmatprep.subr.bf16.mxu1 %v7886_v8  ;;  %v8694_v26 = vadd.f32 %v8634_v28, %v4593_v20  ;;  %v247_v28 = vld [vmem:[%s8137_s17 + $0x250] sm:$0xff]  ;;  %v328_v7 = vld [vmem:[%s8137_s17 + $0x4d8] sm:$0xff] }
 0x1bf   : > { %v4595_v31 = vpop.f32.mrf.mxu0  ;;  %v7374_v46 = vcombine.high %v247_v28, %v263_v37  ;;  %v7373_v52 = vcombine.low %v247_v28, %v263_v37  ;;  %v7440_v20 = vcombine.high %v312_v6, %v328_v7  ;;  %v296_v25 = vld [vmem:[%s8137_s17 + $0x3d8] sm:$0xff]  ;;  %v599_v37 = vld [vmem:[%s8137_s17 + $0xd50] sm:$0xff] }
 0x1c0   : > { %5054 = vmatpush1.bf16.msra.mxu0 %v7469_v18  ;;  %v7408_v28 = vcombine.high %v280_v27, %v296_v25 }
 0x1c1   : > { %5101 = vmatpush1.bf16.msra.mxu1 %v7885_v19  ;;  %v4596_v33 = vpop.f32.mrf.mxu0  ;;  %5055 = vmatprep.subr.bf16.mxu0 %v7438_v21  ;;  %v7790_v19 = vcombine.high %v663_v4, %v679_v5  ;;  %v631_v21 = vld [vmem:[%s8137_s17 + $0xe50] sm:$0xff] }
 0x1c2   : > { %5102 = vmatprep.subr.bf16.mxu1 %v7854_v24 }
 0x1c4   : > { %5056 = vmatpush1.bf16.msra.mxu0 %v7437_v43  ;;  %v7789_v43 = vcombine.low %v663_v4, %v679_v5  ;;  %v503_v5 = vld [vmem:[%s8137_s17 + $0xa50] sm:$0xff] }
 0x1c5   : > { %5103 = vmatpush1.bf16.msra.mxu1 %v7853_v32  ;;  %5057 = vmatprep.subr.bf16.mxu0 %v7406_v34  ;;  %v7439_v32 = vcombine.low %v312_v6, %v328_v7  ;;  %v519_v6 = vld [vmem:[%s8137_s17 + $0xad0] sm:$0xff]  ;;  %v664_v7 = vld [vmem:[%s8137_s17 + $0xf58] sm:$0xff] }
 0x1c6   : > { %5104 = vmatprep.subr.bf16.mxu1 %v7822_v36  ;;  %v7758_v36 = vcombine.high %v631_v21, %v647_v40 }
 0x1c8   : > { %5058 = vmatpush1.bf16.msra.mxu0 %v7405_v44  ;;  %v264_v44 = vld [vmem:[%s8137_s17 + $0x2d8] sm:$0xff] }
 0x1c9   : > { %5105 = vmatpush1.bf16.msra.mxu1 %v7821_v45  ;;  %5059 = vmatprep.subr.bf16.mxu0 %v7374_v46  ;;  %v7757_v45 = vcombine.low %v631_v21, %v647_v40  ;;  %v7407_v46 = vcombine.low %v280_v27, %v296_v25  ;;  %v7376_v55 = vcombine.high %v248_v42, %v264_v44  ;;  %v487_v21 = vld [vmem:[%s8137_s17 + $0x9d0] sm:$0xff]  ;;  %v632_v40 = vld [vmem:[%s8137_s17 + $0xe58] sm:$0xff] }
 0x1ca   : > { %5131 = vmatprep.subr.bf16.mxu1 %v7536_v48  ;;  %v7726_v48 = vcombine.high %v599_v37, %v615_v41  ;;  %v648_v27 = vld [vmem:[%s8137_s17 + $0xed8] sm:$0xff] }
 0x1cc   : > { %7982 = vmatmul.mubr.msk.bf16.vlgmr.msra.gmra.mxu1 %vm4128_vm1, %v8187_v61  ;;  %5060 = vmatpush1.bf16.msra.mxu0 %v7373_v52  ;;  %v232_v52 = vld [vmem:[%s8137_s17 + $0x1d8] sm:$0xff] }
 0x1cd   : > { %5132 = vmatpush1.bf16.msra.mxu1 %v7535_v53  ;;  %5061 = vmatprep.subr.bf16.mxu0 %v7342_v54  ;;  %v7725_v53 = vcombine.low %v599_v37, %v615_v41  ;;  %v7375_v54 = vcombine.low %v248_v42, %v264_v44  ;;  %v7344_v58 = vcombine.high %v216_v51, %v232_v52  ;;  %v616_v37 = vld [vmem:[%s8137_s17 + $0xdd8] sm:$0xff] }
 0x1ce   : > { %5133 = vmatprep.subr.bf16.mxu1 %v7504_v56  ;;  %5163 = vmatprep.mubr.bf16.mxu1 %v8169_v35  ;;  %v7694_v56 = vcombine.high %v567_v49, %v583_v50  ;;  %v7759_v42 = vcombine.low %v632_v40, %v648_v27 }
 0x1cf   : > { %v4714_v9 = vpop.f32.mrf.mxu0 }
 0x1d0   : > { %v4673_v8 = vpop.f32.mrf.mxu1  ;;  %5062 = vmatpush1.bf16.msra.mxu0 %v7341_v62  ;;  %v200_v62 = vld [vmem:[%s8137_s17 + $0xd8] sm:$0xff] }
 0x1d1   : > { %v8718_v12 = vadd.f32 %v4714_v9, %v4673_v8  ;;  %5134 = vmatpush1.bf16.msra.mxu1 %v7503_v63  ;;  %v4716_v18 = vpop.f32.mrf.mxu0  ;;  %5063 = vmatprep.subr.bf16.mxu0 %v7310_v0  ;;  %v7693_v63 = vcombine.low %v567_v49, %v583_v50  ;;  %v7343_v0 = vcombine.low %v216_v51, %v232_v52  ;;  %v680_v8 = vld [vmem:[%s8137_s17 + $0xfd8] sm:$0xff] }
 0x1d2   : > { %v4675_v16 = vpop.f32.mrf.mxu1  ;;  %5135 = vmatprep.subr.bf16.mxu1 %v7472_v3  ;;  %v7662_v3 = vcombine.high %v535_v57, %v551_v59  ;;  %v7312_v4 = vcombine.high %v184_v60, %v200_v62 }
 0x1d3   : > { %v8721_v24 = vadd.f32 %v4716_v18, %v4675_v16  ;;  %v4718_v31 = vpop.f32.mrf.mxu0  ;;  %v7630_v18 = vcombine.high %v503_v5, %v519_v6 }
 0x1d4   : > { %v4677_v29 = vpop.f32.mrf.mxu1  ;;  %5064 = vmatpush1.bf16.msra.mxu0 %v7309_v13  ;;  %v7661_v13 = vcombine.low %v535_v57, %v551_v59  ;;  %v7791_v31 = vcombine.low %v664_v7, %v680_v8  ;;  %v808_v57 = vld [vmem:[%s8137_s17 + $0x13d8] sm:$0xff] }
 0x1d5   : > { %5136 = vmatpush1.bf16.msra.mxu1 %v7471_v14  ;;  %v4719_v34 = vpop.f32.mrf.mxu0  ;;  %5065 = vmatprep.subr.bf16.mxu0 %v7790_v19  ;;  %v7311_v14 = vcombine.low %v184_v60, %v200_v62  ;;  %v7792_v19 = vcombine.high %v664_v7, %v680_v8  ;;  %v7629_v29 = vcombine.low %v503_v5, %v519_v6  ;;  %v776_v5 = vld [vmem:[%s8137_s17 + $0x12d8] sm:$0xff] }
 0x1d6   : > { %v4678_v33 = vpop.f32.mrf.mxu1  ;;  %5137 = vmatprep.subr.bf16.mxu1 %v7440_v20  ;;  %v471_v20 = vld [vmem:[%s8137_s17 + $0x950] sm:$0xff] }
 0x1d7   : > { %v7760_v33 = vcombine.high %v632_v40, %v648_v27  ;;  %v439_v34 = vld [vmem:[%s8137_s17 + $0x850] sm:$0xff]  ;;  %v7597_v41 = vcombine.low %v471_v20, %v487_v21 }
 0x1d8   : > { %5066 = vmatpush2.bf16.msra.mxu0 %v7789_v43 }
 0x1d9   : > { %5138 = vmatpush1.bf16.msra.mxu1 %v7439_v32  ;;  %5067 = vmatprep.subr.bf16.mxu0 %v7758_v36  ;;  %v7598_v32 = vcombine.high %v471_v20, %v487_v21  ;;  %v455_v36 = vld [vmem:[%s8137_s17 + $0x8d0] sm:$0xff]  ;;  %v744_v20 = vld [vmem:[%s8137_s17 + $0x11d8] sm:$0xff] }
 0x1da   : > { %5139 = vmatprep.subr.bf16.mxu1 %v7408_v28  ;;  %v600_v28 = vld [vmem:[%s8137_s17 + $0xd58] sm:$0xff]  ;;  %v7566_v44 = vcombine.high %v439_v34, %v455_v36  ;;  %v7565_v49 = vcombine.low %v439_v34, %v455_v36 }
 0x1db   : > { %v7727_v50 = vcombine.low %v600_v28, %v616_v37 }
 0x1dc   : > { %5068 = vmatpush2.bf16.msra.mxu0 %v7757_v45  ;;  %v7728_v45 = vcombine.high %v600_v28, %v616_v37  ;;  %v409_v37 = vld [vmem:[%s8137_s17 + $0x760] sm:$0xff] }
 0x1dd   : > { %5140 = vmatpush1.bf16.msra.mxu1 %v7407_v46  ;;  %5069 = vmatprep.subr.bf16.mxu0 %v7726_v48  ;;  %v568_v46 = vld [vmem:[%s8137_s17 + $0xc58] sm:$0xff] }
 0x1de   : > { %5141 = vmatprep.subr.bf16.mxu1 %v7376_v55  ;;  %v584_v48 = vld [vmem:[%s8137_s17 + $0xcd8] sm:$0xff] }
 0x1df   : > { %v824_v55 = vld [vmem:[%s8137_s17 + $0x1458] sm:$0x33]  ;;  %v7696_v51 = vcombine.high %v568_v46, %v584_v48  ;;  %v7695_v59 = vcombine.low %v568_v46, %v584_v48 }
 0x1e0   : > { %5070 = vmatpush2.bf16.msra.mxu0 %v7725_v53  ;;  %v7952_v52 = vcombine.high %v824_v55, %v824_v55  ;;  %v7951_v53 = vcombine.low %v824_v55, %v824_v55 }
 0x1e1   : > { %5142 = vmatpush1.bf16.msra.mxu1 %v7375_v54  ;;  %5071 = vmatprep.subr.bf16.mxu0 %v7694_v56  ;;  %v536_v54 = vld [vmem:[%s8137_s17 + $0xb58] sm:$0xff] }
 0x1e2   : > { %5143 = vmatprep.subr.bf16.mxu1 %v7344_v58  ;;  %v552_v56 = vld [vmem:[%s8137_s17 + $0xbd8] sm:$0xff]  ;;  %v4200_v60 = vsel %vm4132_vm0, %v7951_v53, 0 }
 0x1e3   : > { %v792_v58 = vld [vmem:[%s8137_s17 + $0x1358] sm:$0xff]  ;;  %v7664_v62 = vcombine.high %v536_v54, %v552_v56  ;;  %v7663_v6 = vcombine.low %v536_v54, %v552_v56 }
 0x1e4   : > { %v8742_v9 = vpop.f32.mrf.mxu1  ;;  %5072 = vmatpush2.bf16.msra.mxu0 %v7693_v63  ;;  %v7920_v63 = vcombine.high %v792_v58, %v808_v57  ;;  %v7919_v7 = vcombine.low %v792_v58, %v808_v57  ;;  %v345_v57 = vld [vmem:[%s8137_s17 + $0x560] sm:$0xff] }
 0x1e5   : > { %5144 = vmatpush1.bf16.msra.mxu1 %v7343_v0  ;;  %5073 = vmatprep.subr.bf16.mxu0 %v7662_v3  ;;  %v504_v0 = vld [vmem:[%s8137_s17 + $0xa58] sm:$0xff] }
 0x1e6   : > { %v8744_v16 = vpop.f32.mrf.mxu1  ;;  %5145 = vmatprep.subr.bf16.mxu1 %v7312_v4  ;;  %v520_v3 = vld [vmem:[%s8137_s17 + $0xad8] sm:$0xff] }
 0x1e7   : > { %v760_v4 = vld [vmem:[%s8137_s17 + $0x1258] sm:$0xff]  ;;  %v7632_v8 = vcombine.high %v504_v0, %v520_v3  ;;  %v7631_v21 = vcombine.low %v504_v0, %v520_v3 }
 0x1e8   : > { %v4800_v25 = vpop.f32.mrf.mxu1  ;;  %5074 = vmatpush2.bf16.msra.mxu0 %v7661_v13  ;;  %v7888_v13 = vcombine.high %v760_v4, %v776_v5  ;;  %v7887_v40 = vcombine.low %v760_v4, %v776_v5  ;;  %v313_v5 = vld [vmem:[%s8137_s17 + $0x460] sm:$0xff] }
 0x1e9   : > { %5146 = vmatpush1.bf16.msra.mxu1 %v7311_v14  ;;  %5075 = vmatprep.subr.bf16.mxu0 %v7630_v18  ;;  %v472_v14 = vld [vmem:[%s8137_s17 + $0x958] sm:$0xff] }
 0x1ea   : > { %v4801_v43 = vpop.f32.mrf.mxu1  ;;  %5147 = vmatprep.subr.bf16.mxu1 %v7792_v19  ;;  %v488_v18 = vld [vmem:[%s8137_s17 + $0x9d8] sm:$0xff] }
 0x1eb   : > { %v728_v19 = vld [vmem:[%s8137_s17 + $0x1158] sm:$0xff]  ;;  %v7600_v27 = vcombine.high %v472_v14, %v488_v18 }
 0x1ec   : > { %5076 = vmatpush2.bf16.msra.mxu0 %v7629_v29  ;;  %v7856_v25 = vcombine.high %v728_v19, %v744_v20  ;;  %v440_v29 = vld [vmem:[%s8137_s17 + $0x858] sm:$0xff]  ;;  %v7855_v34 = vcombine.low %v728_v19, %v744_v20 }
 0x1ed   : > { %5148 = vmatpush2.bf16.msra.mxu1 %v7791_v31  ;;  %5077 = vmatprep.subr.bf16.mxu0 %v7598_v32  ;;  %v456_v31 = vld [vmem:[%s8137_s17 + $0x8d8] sm:$0xff] }
 0x1ee   : > { %5149 = vmatprep.subr.bf16.mxu1 %v7760_v33  ;;  %v696_v43 = vld [vmem:[%s8137_s17 + $0x1058] sm:$0xff]  ;;  %v7599_v33 = vcombine.low %v472_v14, %v488_v18  ;;  %v7568_v36 = vcombine.high %v440_v29, %v456_v31 }
 0x1ef   : > { %v712_v32 = vld [vmem:[%s8137_s17 + $0x10d8] sm:$0xff] }
 0x1f0   : > { %5078 = vmatpush2.bf16.msra.mxu0 %v7597_v41  ;;  %v7824_v28 = vcombine.high %v696_v43, %v712_v32  ;;  %v425_v41 = vld [vmem:[%s8137_s17 + $0x7e0] sm:$0xff] }
 0x1f1   : > { %5150 = vmatpush2.bf16.msra.mxu1 %v7759_v42  ;;  %5079 = vmatprep.subr.bf16.mxu0 %v7566_v44  ;;  %v825_v42 = vld [vmem:[%s8137_s17 + $0x1460] sm:$0x33]  ;;  %v7567_v44 = vcombine.low %v440_v29, %v456_v31  ;;  %v7538_v46 = vcombine.high %v409_v37, %v425_v41  ;;  %v7537_v53 = vcombine.low %v409_v37, %v425_v41  ;;  %v410_v41 = vld [vmem:[%s8137_s17 + $0x768] sm:$0xff] }
 0x1f2   : > { %5151 = vmatprep.subr.bf16.mxu1 %v7728_v45  ;;  %v7823_v45 = vcombine.low %v696_v43, %v712_v32  ;;  %v7954_v48 = vcombine.high %v825_v42, %v825_v42  ;;  %v7953_v55 = vcombine.low %v825_v42, %v825_v42  ;;  %v297_v29 = vld [vmem:[%s8137_s17 + $0x3e0] sm:$0xff]  ;;  %v426_v42 = vld [vmem:[%s8137_s17 + $0x7e8] sm:$0xff] }
 0x1f3   : > { %v713_v31 = vld [vmem:[%s8137_s17 + $0x10e0] sm:$0xff] }
 0x1f4   : > { %5080 = vmatpush2.bf16.msra.mxu0 %v7565_v49  ;;  %v377_v49 = vld [vmem:[%s8137_s17 + $0x660] sm:$0xff]  ;;  %v4206_v54 = vsel %vm4132_vm0, %v7953_v55, 0 }
 0x1f5   : > { %5152 = vmatpush2.bf16.msra.mxu1 %v7727_v50  ;;  %7983 = vmatprep.subr.msk.bf16.mxu0 %vm4132_vm0, %v7952_v52  ;;  %v393_v50 = vld [vmem:[%s8137_s17 + $0x6e0] sm:$0xff] }
 0x1f6   : > { %5153 = vmatprep.subr.bf16.mxu1 %v7696_v51  ;;  %v793_v51 = vld [vmem:[%s8137_s17 + $0x1360] sm:$0xff]  ;;  %v7506_v56 = vcombine.high %v377_v49, %v393_v50 }
 0x1f7   : > { %5082 = vmatmul.mubr.bf16.vlgmr.msra.gmra.mxu0 %v8157_v22  ;;  %v809_v52 = vld [vmem:[%s8137_s17 + $0x13e0] sm:$0xff] }
 0x1f8   : > { %5179 = vmatpush1.bf16.msra.mxu0 %v4200_v60  ;;  %5204 = vmatprep.mubr.bf16.mxu0 %v8099_v1  ;;  %v7922_v58 = vcombine.high %v793_v51, %v809_v52  ;;  %v761_v60 = vld [vmem:[%s8137_s17 + $0x1260] sm:$0xff]  ;;  %v7921_v0 = vcombine.low %v793_v51, %v809_v52  ;;  %v394_v51 = vld [vmem:[%s8137_s17 + $0x6e8] sm:$0xff] }
 0x1f9   : > { %5154 = vmatpush2.bf16.msra.mxu1 %v7695_v59  ;;  %5180 = vmatprep.subr.bf16.mxu0 %v7920_v63  ;;  %v361_v59 = vld [vmem:[%s8137_s17 + $0x5e0] sm:$0xff]  ;;  %v7505_v63 = vcombine.low %v377_v49, %v393_v50  ;;  %v378_v50 = vld [vmem:[%s8137_s17 + $0x668] sm:$0xff] }
 0x1fa   : > { %5155 = vmatprep.subr.bf16.mxu1 %v7664_v62  ;;  %v777_v62 = vld [vmem:[%s8137_s17 + $0x12e0] sm:$0xff]  ;;  %v7474_v3 = vcombine.high %v345_v57, %v361_v59  ;;  %v7473_v18 = vcombine.low %v345_v57, %v361_v59  ;;  %v346_v59 = vld [vmem:[%s8137_s17 + $0x568] sm:$0xff] }
 0x1fb   : > { %v7890_v4 = vcombine.high %v761_v60, %v777_v62  ;;  %v7889_v19 = vcombine.low %v761_v60, %v777_v62  ;;  %v265_v37 = vld [vmem:[%s8137_s17 + $0x2e0] sm:$0xff]  ;;  %v362_v60 = vld [vmem:[%s8137_s17 + $0x5e8] sm:$0xff] }
 0x1fc   : > { %5181 = vmatpush1.bf16.msra.mxu0 %v7919_v7  ;;  %v729_v7 = vld [vmem:[%s8137_s17 + $0x1160] sm:$0xff] }
 0x1fd   : > { %5156 = vmatpush2.bf16.msra.mxu1 %v7663_v6  ;;  %5182 = vmatprep.subr.bf16.mxu0 %v7888_v13  ;;  %v329_v6 = vld [vmem:[%s8137_s17 + $0x4e0] sm:$0xff] }
 0x1fe   : > { %5157 = vmatprep.subr.bf16.mxu1 %v7632_v8  ;;  %v745_v8 = vld [vmem:[%s8137_s17 + $0x11e0] sm:$0xff]  ;;  %v7441_v32 = vcombine.low %v313_v5, %v329_v6 }
 0x1ff   : > { %v217_v55 = vld [vmem:[%s8137_s17 + $0x160] sm:$0xff] }
 0x200   : > { %5183 = vmatpush1.bf16.msra.mxu0 %v7887_v40  ;;  %v7858_v40 = vcombine.high %v729_v7, %v745_v8  ;;  %v233_v49 = vld [vmem:[%s8137_s17 + $0x1e0] sm:$0xff] }
 0x201   : > { %5158 = vmatpush2.bf16.msra.mxu1 %v7631_v21  ;;  %5184 = vmatprep.subr.bf16.mxu0 %v7856_v25  ;;  %v7442_v21 = vcombine.high %v313_v5, %v329_v6  ;;  %v201_v57 = vld [vmem:[%s8137_s17 + $0xe0] sm:$0xff]  ;;  %v7345_v62 = vcombine.low %v217_v55, %v233_v49  ;;  %v314_v6 = vld [vmem:[%s8137_s17 + $0x468] sm:$0xff] }
 0x202   : > { %5159 = vmatprep.subr.bf16.mxu1 %v7600_v27  ;;  %v281_v27 = vld [vmem:[%s8137_s17 + $0x360] sm:$0xff] }
 0x203   : > { %v681_v5 = vld [vmem:[%s8137_s17 + $0xfe0] sm:$0xff] }
 0x204   : > { %5185 = vmatpush1.bf16.msra.mxu0 %v7855_v34 }
 0x205   : > { %5160 = vmatpush2.bf16.msra.mxu1 %v7599_v33  ;;  %5186 = vmatprep.subr.bf16.mxu0 %v7824_v28  ;;  %v7857_v33 = vcombine.low %v729_v7, %v745_v8  ;;  %v330_v7 = vld [vmem:[%s8137_s17 + $0x4e8] sm:$0xff] }
 0x206   : > { %5161 = vmatprep.subr.bf16.mxu1 %v7568_v36  ;;  %v7410_v36 = vcombine.high %v281_v27, %v297_v29 }
 0x208   : > { %5187 = vmatpush1.bf16.msra.mxu0 %v7823_v45 }
 0x209   : > { %5162 = vmatpush2.bf16.msra.mxu1 %v7567_v44  ;;  %5213 = vmatprep.subr.bf16.mxu0 %v7538_v46  ;;  %v7409_v44 = vcombine.low %v281_v27, %v297_v29  ;;  %v7444_v29 = vcombine.high %v314_v6, %v330_v7 }
 0x20a   : > { %7985 = vmatprep.subr.msk.bf16.mxu1 %vm4132_vm0, %v7954_v48  ;;  %v7540_v48 = vcombine.high %v410_v41, %v426_v42 }
 0x20b   : > { %7984 = vmatmul.mubr.msk.bf16.vlgmr.msra.gmra.mxu0 %vm4128_vm1, %v8187_v61 }
 0x20c   : > { %5164 = vmatmul.mubr.bf16.vlgmr.msra.gmra.mxu1 %v8157_v22  ;;  %5214 = vmatpush1.bf16.msra.mxu0 %v7537_v53  ;;  %v7539_v53 = vcombine.low %v410_v41, %v426_v42 }
 0x20d   : > { %5261 = vmatpush1.bf16.msra.mxu1 %v4206_v54  ;;  %5215 = vmatprep.subr.bf16.mxu0 %v7506_v56  ;;  %v7346_v54 = vcombine.high %v217_v55, %v233_v49  ;;  %v7508_v56 = vcombine.high %v378_v50, %v394_v51  ;;  %v266_v55 = vld [vmem:[%s8137_s17 + $0x2e8] sm:$0xff] }
 0x20e   : > { %5262 = vmatprep.subr.bf16.mxu1 %v7922_v58  ;;  %5286 = vmatprep.mubr.bf16.mxu1 %v8099_v1  ;;  %v185_v58 = vld [vmem:[%s8137_s17 + $0x60] sm:$0xff] }
 0x20f   : > { %5245 = vmatprep.mubr.bf16.mxu0 %v8169_v35  ;;  %v4755_v13 = vpop.f32.mrf.mxu0 }
 0x210   : > { %v8800_v14 = vadd.f32 %v8742_v9, %v4755_v13  ;;  %5216 = vmatpush1.bf16.msra.mxu0 %v7505_v63  ;;  %v697_v9 = vld [vmem:[%s8137_s17 + $0x1060] sm:$0xff]  ;;  %v7507_v63 = vcombine.low %v378_v50, %v394_v51 }
 0x211   : > { %5263 = vmatpush1.bf16.msra.mxu1 %v7921_v0  ;;  %v4757_v20 = vpop.f32.mrf.mxu0  ;;  %5217 = vmatprep.subr.bf16.mxu0 %v7474_v3  ;;  %v7826_v28 = vcombine.high %v697_v9, %v713_v31  ;;  %v7825_v45 = vcombine.low %v697_v9, %v713_v31  ;;  %v7314_v0 = vcombine.high %v185_v58, %v201_v57  ;;  %v633_v9 = vld [vmem:[%s8137_s17 + $0xe60] sm:$0xff] }
 0x212   : > { %5264 = vmatprep.subr.bf16.mxu1 %v7890_v4  ;;  %v8804_v25 = vadd.f32 %v8744_v16, %v4757_v20  ;;  %v249_v16 = vld [vmem:[%s8137_s17 + $0x260] sm:$0xff]  ;;  %v7476_v3 = vcombine.high %v346_v59, %v362_v60  ;;  %v7475_v20 = vcombine.low %v346_v59, %v362_v60 }
 0x213   : > { %v4759_v43 = vpop.f32.mrf.mxu0  ;;  %v7378_v46 = vcombine.high %v249_v16, %v265_v37  ;;  %v7377_v52 = vcombine.low %v249_v16, %v265_v37  ;;  %v665_v4 = vld [vmem:[%s8137_s17 + $0xf60] sm:$0xff]  ;;  %v7443_v16 = vcombine.low %v314_v6, %v330_v7 }
 0x214   : > { %5218 = vmatpush1.bf16.msra.mxu0 %v7473_v18  ;;  %v7794_v27 = vcombine.high %v665_v4, %v681_v5  ;;  %v649_v43 = vld [vmem:[%s8137_s17 + $0xee0] sm:$0xff] }
 0x215   : > { %5265 = vmatpush1.bf16.msra.mxu1 %v7889_v19  ;;  %v4760_v34 = vpop.f32.mrf.mxu0  ;;  %5219 = vmatprep.subr.bf16.mxu0 %v7442_v21  ;;  %v7313_v19 = vcombine.low %v185_v58, %v201_v57  ;;  %v7762_v42 = vcombine.high %v633_v9, %v649_v43  ;;  %v7761_v49 = vcombine.low %v633_v9, %v649_v43  ;;  %v234_v58 = vld [vmem:[%s8137_s17 + $0x1e8] sm:$0xff] }
 0x216   : > { %5266 = vmatprep.subr.bf16.mxu1 %v7858_v40 }
 0x218   : > { %5220 = vmatpush1.bf16.msra.mxu0 %v7441_v32  ;;  %v282_v32 = vld [vmem:[%s8137_s17 + $0x368] sm:$0xff] }
 0x219   : > { %5267 = vmatpush1.bf16.msra.mxu1 %v7857_v33  ;;  %5221 = vmatprep.subr.bf16.mxu0 %v7410_v36  ;;  %v298_v33 = vld [vmem:[%s8137_s17 + $0x3e8] sm:$0xff] }
 0x21a   : > { %5268 = vmatprep.subr.bf16.mxu1 %v7826_v28  ;;  %v7793_v28 = vcombine.low %v665_v4, %v681_v5  ;;  %v7411_v50 = vcombine.low %v282_v32, %v298_v33  ;;  %v202_v4 = vld [vmem:[%s8137_s17 + $0xe8] sm:$0xff] }
 0x21c   : > { %5222 = vmatpush1.bf16.msra.mxu0 %v7409_v44  ;;  %v7412_v44 = vcombine.high %v282_v32, %v298_v33  ;;  %v473_v33 = vld [vmem:[%s8137_s17 + $0x960] sm:$0xff] }
 0x21d   : > { %5269 = vmatpush1.bf16.msra.mxu1 %v7825_v45  ;;  %5223 = vmatprep.subr.bf16.mxu0 %v7378_v46  ;;  %v601_v45 = vld [vmem:[%s8137_s17 + $0xd60] sm:$0xff] }
 0x21e   : > { %5295 = vmatprep.subr.bf16.mxu1 %v7540_v48  ;;  %v617_v46 = vld [vmem:[%s8137_s17 + $0xde0] sm:$0xff]  ;;  %v250_v48 = vld [vmem:[%s8137_s17 + $0x268] sm:$0xff] }
 0x21f   : > { %v7730_v51 = vcombine.high %v601_v45, %v617_v46  ;;  %v7729_v57 = vcombine.low %v601_v45, %v617_v46  ;;  %v7379_v59 = vcombine.low %v250_v48, %v266_v55  ;;  %v441_v46 = vld [vmem:[%s8137_s17 + $0x860] sm:$0xff] }
 0x220   : > { %7986 = vmatmul.mubr.msk.bf16.vlgmr.msra.gmra.mxu1 %vm4128_vm1, %v8187_v61  ;;  %5224 = vmatpush1.bf16.msra.mxu0 %v7377_v52  ;;  %v7380_v52 = vcombine.high %v250_v48, %v266_v55  ;;  %v457_v48 = vld [vmem:[%s8137_s17 + $0x8e0] sm:$0xff]  ;;  %v602_v55 = vld [vmem:[%s8137_s17 + $0xd68] sm:$0xff] }
 0x221   : > { %5296 = vmatpush1.bf16.msra.mxu1 %v7539_v53  ;;  %5225 = vmatprep.subr.bf16.mxu0 %v7346_v54  ;;  %v569_v53 = vld [vmem:[%s8137_s17 + $0xc60] sm:$0xff] }
 0x222   : > { %5297 = vmatprep.subr.bf16.mxu1 %v7508_v56  ;;  %5327 = vmatprep.mubr.bf16.mxu1 %v8169_v35  ;;  %v585_v54 = vld [vmem:[%s8137_s17 + $0xce0] sm:$0xff]  ;;  %v218_v56 = vld [vmem:[%s8137_s17 + $0x168] sm:$0xff] }
 0x223   : > { %v4878_v13 = vpop.f32.mrf.mxu0  ;;  %v7698_v60 = vcombine.high %v569_v53, %v585_v54  ;;  %v7697_v5 = vcombine.low %v569_v53, %v585_v54  ;;  %v7347_v6 = vcombine.low %v218_v56, %v234_v58  ;;  %v570_v54 = vld [vmem:[%s8137_s17 + $0xc68] sm:$0xff] }
 0x224   : > { %v4837_v8 = vpop.f32.mrf.mxu1  ;;  %5226 = vmatpush1.bf16.msra.mxu0 %v7345_v62  ;;  %v7348_v62 = vcombine.high %v218_v56, %v234_v58  ;;  %v586_v56 = vld [vmem:[%s8137_s17 + $0xce8] sm:$0xff] }
 0x225   : > { %v8828_v18 = vadd.f32 %v4878_v13, %v4837_v8  ;;  %5298 = vmatpush1.bf16.msra.mxu1 %v7507_v63  ;;  %v4880_v40 = vpop.f32.mrf.mxu0  ;;  %5227 = vmatprep.subr.bf16.mxu0 %v7314_v0  ;;  %v537_v63 = vld [vmem:[%s8137_s17 + $0xb60] sm:$0xff]  ;;  %v826_v58 = vld [vmem:[%s8137_s17 + $0x1468] sm:$0x33] }
 0x226   : > { %v4839_v21 = vpop.f32.mrf.mxu1  ;;  %5299 = vmatprep.subr.bf16.mxu1 %v7476_v3  ;;  %v553_v0 = vld [vmem:[%s8137_s17 + $0xbe0] sm:$0xff]  ;;  %v186_v3 = vld [vmem:[%s8137_s17 + $0x68] sm:$0xff] }
 0x227   : > { %v8831_v31 = vadd.f32 %v4880_v40, %v4839_v21  ;;  %v4882_v36 = vpop.f32.mrf.mxu0  ;;  %v7666_v7 = vcombine.high %v537_v63, %v553_v0  ;;  %v7316_v8 = vcombine.high %v186_v3, %v202_v4  ;;  %v505_v13 = vld [vmem:[%s8137_s17 + $0xa60] sm:$0xff]  ;;  %v682_v21 = vld [vmem:[%s8137_s17 + $0xfe8] sm:$0xff] }
 0x228   : > { %v4841_v34 = vpop.f32.mrf.mxu1  ;;  %5228 = vmatpush1.bf16.msra.mxu0 %v7313_v19  ;;  %v521_v19 = vld [vmem:[%s8137_s17 + $0xae0] sm:$0xff]  ;;  %v634_v36 = vld [vmem:[%s8137_s17 + $0xe68] sm:$0xff] }
 0x229   : > { %5300 = vmatpush1.bf16.msra.mxu1 %v7475_v20  ;;  %v4883_v41 = vpop.f32.mrf.mxu0  ;;  %5229 = vmatprep.subr.bf16.mxu0 %v7794_v27  ;;  %v666_v20 = vld [vmem:[%s8137_s17 + $0xf68] sm:$0xff]  ;;  %v7665_v27 = vcombine.low %v537_v63, %v553_v0  ;;  %v7634_v43 = vcombine.high %v505_v13, %v521_v19  ;;  %v489_v34 = vld [vmem:[%s8137_s17 + $0x9e0] sm:$0xff]  ;;  %v7955_v63 = vcombine.low %v826_v58, %v826_v58 }
 0x22a   : > { %v4842_v37 = vpop.f32.mrf.mxu1  ;;  %5301 = vmatprep.subr.bf16.mxu1 %v7444_v29  ;;  %v7315_v29 = vcombine.low %v186_v3, %v202_v4  ;;  %v7796_v32 = vcombine.high %v666_v20, %v682_v21  ;;  %v7795_v41 = vcombine.low %v666_v20, %v682_v21  ;;  %v538_v0 = vld [vmem:[%s8137_s17 + $0xb68] sm:$0xff] }
 0x22b   : > { %v7633_v37 = vcombine.low %v505_v13, %v521_v19  ;;  %v554_v3 = vld [vmem:[%s8137_s17 + $0xbe8] sm:$0xff] }
 0x22c   : > { %5230 = vmatpush2.bf16.msra.mxu0 %v7793_v28  ;;  %v650_v28 = vld [vmem:[%s8137_s17 + $0xee8] sm:$0xff] }
 0x22d   : > { %5302 = vmatpush1.bf16.msra.mxu1 %v7443_v16  ;;  %5231 = vmatprep.subr.bf16.mxu0 %v7762_v42  ;;  %v7764_v45 = vcombine.high %v634_v36, %v650_v28  ;;  %v794_v4 = vld [vmem:[%s8137_s17 + $0x1368] sm:$0xff] }
 0x22e   : > { %5303 = vmatprep.subr.bf16.mxu1 %v7412_v44  ;;  %v7602_v44 = vcombine.high %v473_v33, %v489_v34  ;;  %v506_v19 = vld [vmem:[%s8137_s17 + $0xa68] sm:$0xff] }
 0x22f   : > { %v522_v20 = vld [vmem:[%s8137_s17 + $0xae8] sm:$0xff] }
 0x230   : > { %5232 = vmatpush2.bf16.msra.mxu0 %v7761_v49  ;;  %v618_v49 = vld [vmem:[%s8137_s17 + $0xde8] sm:$0xff] }
 0x231   : > { %5304 = vmatpush1.bf16.msra.mxu1 %v7411_v50  ;;  %5233 = vmatprep.subr.bf16.mxu0 %v7730_v51  ;;  %v7601_v50 = vcombine.low %v473_v33, %v489_v34  ;;  %v7763_v51 = vcombine.low %v634_v36, %v650_v28  ;;  %v7732_v53 = vcombine.high %v602_v55, %v618_v49  ;;  %v762_v21 = vld [vmem:[%s8137_s17 + $0x1268] sm:$0xff] }
 0x232   : > { %5305 = vmatprep.subr.bf16.mxu1 %v7380_v52  ;;  %v7570_v52 = vcombine.high %v441_v46, %v457_v48  ;;  %v474_v34 = vld [vmem:[%s8137_s17 + $0x968] sm:$0xff] }
 0x233   : > { %v490_v36 = vld [vmem:[%s8137_s17 + $0x9e8] sm:$0xff] }
 0x234   : > { %5234 = vmatpush2.bf16.msra.mxu0 %v7729_v57  ;;  %v7569_v57 = vcombine.low %v441_v46, %v457_v48  ;;  %v730_v28 = vld [vmem:[%s8137_s17 + $0x1168] sm:$0xff] }
 0x235   : > { %5306 = vmatpush1.bf16.msra.mxu1 %v7379_v59  ;;  %5235 = vmatprep.subr.bf16.mxu0 %v7698_v60  ;;  %v7731_v59 = vcombine.low %v602_v55, %v618_v49  ;;  %v7700_v60 = vcombine.high %v570_v54, %v586_v56  ;;  %v458_v46 = vld [vmem:[%s8137_s17 + $0x8e8] sm:$0xff]  ;;  %v7603_v49 = vcombine.low %v474_v34, %v490_v36 }
 0x236   : > { %5307 = vmatprep.subr.bf16.mxu1 %v7348_v62  ;;  %v7956_v62 = vcombine.high %v826_v58, %v826_v58  ;;  %v698_v48 = vld [vmem:[%s8137_s17 + $0x1068] sm:$0xff] }
 0x237   : > { %v714_v55 = vld [vmem:[%s8137_s17 + $0x10e8] sm:$0xff] }
 0x238   : > { %v8852_v40 = vpop.f32.mrf.mxu1  ;;  %5236 = vmatpush2.bf16.msra.mxu0 %v7697_v5  ;;  %v810_v5 = vld [vmem:[%s8137_s17 + $0x13e8] sm:$0xff] }
 0x239   : > { %5308 = vmatpush1.bf16.msra.mxu1 %v7347_v6  ;;  %5237 = vmatprep.subr.bf16.mxu0 %v7666_v7  ;;  %v7699_v6 = vcombine.low %v570_v54, %v586_v56  ;;  %v4212_v7 = vsel %vm4132_vm0, %v7955_v63, 0  ;;  %v7924_v13 = vcombine.high %v794_v4, %v810_v5  ;;  %v427_v54 = vld [vmem:[%s8137_s17 + $0x7f0] sm:$0xff] }
 0x23a   : > { %v8854_v9 = vpop.f32.mrf.mxu1  ;;  %5309 = vmatprep.subr.bf16.mxu1 %v7316_v8  ;;  %v7668_v8 = vcombine.high %v538_v0, %v554_v3  ;;  %v827_v56 = vld [vmem:[%s8137_s17 + $0x1470] sm:$0x33] }
 0x23b   : > { %v379_v63 = vld [vmem:[%s8137_s17 + $0x670] sm:$0xff] }
 0x23c   : > { %v4964_v16 = vpop.f32.mrf.mxu1  ;;  %5238 = vmatpush2.bf16.msra.mxu0 %v7665_v27  ;;  %v778_v27 = vld [vmem:[%s8137_s17 + $0x12e8] sm:$0xff] }
 0x23d   : > { %5310 = vmatpush1.bf16.msra.mxu1 %v7315_v29  ;;  %5239 = vmatprep.subr.bf16.mxu0 %v7634_v43  ;;  %v7667_v29 = vcombine.low %v538_v0, %v554_v3  ;;  %v7923_v43 = vcombine.low %v794_v4, %v810_v5  ;;  %v7892_v33 = vcombine.high %v762_v21, %v778_v27  ;;  %v746_v16 = vld [vmem:[%s8137_s17 + $0x11e8] sm:$0xff]  ;;  %v395_v0 = vld [vmem:[%s8137_s17 + $0x6f0] sm:$0xff] }
 0x23e   : > { %v4965_v42 = vpop.f32.mrf.mxu1  ;;  %5311 = vmatprep.subr.bf16.mxu1 %v7796_v32  ;;  %v7636_v32 = vcombine.high %v506_v19, %v522_v20  ;;  %v795_v3 = vld [vmem:[%s8137_s17 + $0x1370] sm:$0xff] }
 0x23f   : > { %v7604_v42 = vcombine.high %v474_v34, %v490_v36  ;;  %v811_v4 = vld [vmem:[%s8137_s17 + $0x13f0] sm:$0xff] }
 0x240   : > { %5240 = vmatpush2.bf16.msra.mxu0 %v7633_v37  ;;  %v7635_v37 = vcombine.low %v506_v19, %v522_v20  ;;  %v363_v19 = vld [vmem:[%s8137_s17 + $0x5f0] sm:$0xff] }
 0x241   : > { %5312 = vmatpush2.bf16.msra.mxu1 %v7795_v41  ;;  %5241 = vmatprep.subr.bf16.mxu0 %v7602_v44  ;;  %v7891_v41 = vcombine.low %v762_v21, %v778_v27  ;;  %v7860_v44 = vcombine.high %v730_v28, %v746_v16  ;;  %v763_v20 = vld [vmem:[%s8137_s17 + $0x1270] sm:$0xff]  ;;  %v7509_v27 = vcombine.low %v379_v63, %v395_v0 }
 0x242   : > { %5313 = vmatprep.subr.bf16.mxu1 %v7764_v45  ;;  %v442_v45 = vld [vmem:[%s8137_s17 + $0x868] sm:$0xff]  ;;  %v779_v21 = vld [vmem:[%s8137_s17 + $0x12f0] sm:$0xff] }
 0x243   : > { %v7571_v58 = vcombine.low %v442_v45, %v458_v46  ;;  %v331_v34 = vld [vmem:[%s8137_s17 + $0x4f0] sm:$0xff] }
 0x244   : > { %5242 = vmatpush2.bf16.msra.mxu0 %v7601_v50  ;;  %v7859_v50 = vcombine.low %v730_v28, %v746_v16  ;;  %v731_v36 = vld [vmem:[%s8137_s17 + $0x1170] sm:$0xff] }
 0x245   : > { %5314 = vmatpush2.bf16.msra.mxu1 %v7763_v51  ;;  %5243 = vmatprep.subr.bf16.mxu0 %v7570_v52  ;;  %v7572_v51 = vcombine.high %v442_v45, %v458_v46  ;;  %v7828_v52 = vcombine.high %v698_v48, %v714_v55  ;;  %v747_v28 = vld [vmem:[%s8137_s17 + $0x11f0] sm:$0xff] }
 0x246   : > { %5315 = vmatprep.subr.bf16.mxu1 %v7732_v53  ;;  %v411_v53 = vld [vmem:[%s8137_s17 + $0x770] sm:$0xff]  ;;  %v7862_v46 = vcombine.high %v731_v36, %v747_v28 }
 0x247   : > { %v7541_v5 = vcombine.low %v411_v53, %v427_v54 }
 0x248   : > { %5244 = vmatpush2.bf16.msra.mxu0 %v7569_v57  ;;  %v7827_v57 = vcombine.low %v698_v48, %v714_v55  ;;  %v283_v48 = vld [vmem:[%s8137_s17 + $0x370] sm:$0xff] }
 0x249   : > { %5316 = vmatpush2.bf16.msra.mxu1 %v7731_v59  ;;  %7987 = vmatprep.subr.msk.bf16.mxu0 %vm4132_vm0, %v7956_v62  ;;  %v7542_v59 = vcombine.high %v411_v53, %v427_v54  ;;  %v7957_v62 = vcombine.low %v827_v56, %v827_v56  ;;  %v7861_v53 = vcombine.low %v731_v36, %v747_v28  ;;  %v667_v28 = vld [vmem:[%s8137_s17 + $0xf70] sm:$0xff] }
 0x24a   : > { %5317 = vmatprep.subr.bf16.mxu1 %v7700_v60  ;;  %v7958_v60 = vcombine.high %v827_v56, %v827_v56 }
 0x24b   : > { %5246 = vmatmul.mubr.bf16.vlgmr.msra.gmra.mxu0 %v8157_v22 }
 0x24c   : > { %5343 = vmatpush1.bf16.msra.mxu0 %v4212_v7  ;;  %5368 = vmatprep.mubr.bf16.mxu0 %v8099_v1  ;;  %v7510_v7 = vcombine.high %v379_v63, %v395_v0 }
 0x24d   : > { %5318 = vmatpush2.bf16.msra.mxu1 %v7699_v6  ;;  %5344 = vmatprep.subr.bf16.mxu0 %v7924_v13  ;;  %v4218_v6 = vsel %vm4132_vm0, %v7957_v62, 0  ;;  %v347_v13 = vld [vmem:[%s8137_s17 + $0x570] sm:$0xff] }
 0x24e   : > { %5319 = vmatprep.subr.bf16.mxu1 %v7668_v8  ;;  %v7926_v8 = vcombine.high %v795_v3, %v811_v4 }
 0x250   : > { %5345 = vmatpush1.bf16.msra.mxu0 %v7923_v43  ;;  %v7478_v43 = vcombine.high %v347_v13, %v363_v19 }
 0x251   : > { %5320 = vmatpush2.bf16.msra.mxu1 %v7667_v29  ;;  %5346 = vmatprep.subr.bf16.mxu0 %v7892_v33  ;;  %v7925_v29 = vcombine.low %v795_v3, %v811_v4  ;;  %v315_v33 = vld [vmem:[%s8137_s17 + $0x470] sm:$0xff] }
 0x252   : > { %5321 = vmatprep.subr.bf16.mxu1 %v7636_v32  ;;  %v7894_v32 = vcombine.high %v763_v20, %v779_v21  ;;  %v7446_v45 = vcombine.high %v315_v33, %v331_v34  ;;  %v219_v4 = vld [vmem:[%s8137_s17 + $0x170] sm:$0xff] }
 0x254   : > { %5347 = vmatpush1.bf16.msra.mxu0 %v7891_v41  ;;  %v7477_v41 = vcombine.low %v347_v13, %v363_v19 }
 0x255   : > { %5322 = vmatpush2.bf16.msra.mxu1 %v7635_v37  ;;  %5348 = vmatprep.subr.bf16.mxu0 %v7860_v44 }
 0x256   : > { %5323 = vmatprep.subr.bf16.mxu1 %v7604_v42  ;;  %v7893_v42 = vcombine.low %v763_v20, %v779_v21  ;;  %v187_v21 = vld [vmem:[%s8137_s17 + $0x70] sm:$0xff] }
 0x258   : > { %5349 = vmatpush1.bf16.msra.mxu0 %v7859_v50  ;;  %v715_v50 = vld [vmem:[%s8137_s17 + $0x10f0] sm:$0xff] }
 0x259   : > { %5324 = vmatpush2.bf16.msra.mxu1 %v7603_v49  ;;  %5350 = vmatprep.subr.bf16.mxu0 %v7828_v52  ;;  %v299_v49 = vld [vmem:[%s8137_s17 + $0x3f0] sm:$0xff]  ;;  %v7445_v52 = vcombine.low %v315_v33, %v331_v34 }
 0x25a   : > { %5325 = vmatprep.subr.bf16.mxu1 %v7572_v51  ;;  %v7414_v56 = vcombine.high %v283_v48, %v299_v49  ;;  %v7413_v62 = vcombine.low %v283_v48, %v299_v49 }
 0x25c   : > { %5351 = vmatpush1.bf16.msra.mxu0 %v7827_v57  ;;  %v267_v57 = vld [vmem:[%s8137_s17 + $0x2f0] sm:$0xff] }
 0x25d   : > { %5326 = vmatpush2.bf16.msra.mxu1 %v7571_v58  ;;  %5377 = vmatprep.subr.bf16.mxu0 %v7542_v59  ;;  %v412_v59 = vld [vmem:[%s8137_s17 + $0x778] sm:$0xff] }
 0x25e   : > { %7989 = vmatprep.subr.msk.bf16.mxu1 %vm4132_vm0, %v7958_v60  ;;  %v428_v60 = vld [vmem:[%s8137_s17 + $0x7f8] sm:$0xff] }
 0x25f   : > { %7988 = vmatmul.mubr.msk.bf16.vlgmr.msra.gmra.mxu0 %vm4128_vm1, %v8187_v61  ;;  %v7544_v3 = vcombine.high %v412_v59, %v428_v60  ;;  %v7543_v13 = vcombine.low %v412_v59, %v428_v60 }
 0x260   : > { %5328 = vmatmul.mubr.bf16.vlgmr.msra.gmra.mxu1 %v8157_v22  ;;  %5378 = vmatpush1.bf16.msra.mxu0 %v7541_v5  ;;  %v235_v5 = vld [vmem:[%s8137_s17 + $0x1f0] sm:$0xff] }
 0x261   : > { %5425 = vmatpush1.bf16.msra.mxu1 %v4218_v6  ;;  %5379 = vmatprep.subr.bf16.mxu0 %v7510_v7  ;;  %v380_v6 = vld [vmem:[%s8137_s17 + $0x678] sm:$0xff]  ;;  %v7350_v19 = vcombine.high %v219_v4, %v235_v5 }
 0x262   : > { %5426 = vmatprep.subr.bf16.mxu1 %v7926_v8  ;;  %5450 = vmatprep.mubr.bf16.mxu1 %v8099_v1  ;;  %v396_v7 = vld [vmem:[%s8137_s17 + $0x6f8] sm:$0xff] }
 0x263   : > { %5409 = vmatprep.mubr.bf16.mxu0 %v8169_v35  ;;  %v4919_v16 = vpop.f32.mrf.mxu0  ;;  %v7512_v20 = vcombine.high %v380_v6, %v396_v7  ;;  %v7511_v33 = vcombine.low %v380_v6, %v396_v7  ;;  %v252_v6 = vld [vmem:[%s8137_s17 + $0x278] sm:$0xff] }
 0x264   : > { %v8910_v37 = vadd.f32 %v8852_v40, %v4919_v16  ;;  %5380 = vmatpush1.bf16.msra.mxu0 %v7509_v27  ;;  %v699_v40 = vld [vmem:[%s8137_s17 + $0x1070] sm:$0xff]  ;;  %v268_v7 = vld [vmem:[%s8137_s17 + $0x2f8] sm:$0xff] }
 0x265   : > { %5427 = vmatpush1.bf16.msra.mxu1 %v7925_v29  ;;  %v4921_v44 = vpop.f32.mrf.mxu0  ;;  %5381 = vmatprep.subr.bf16.mxu0 %v7478_v43  ;;  %v7830_v58 = vcombine.high %v699_v40, %v715_v50  ;;  %v7829_v63 = vcombine.low %v699_v40, %v715_v50  ;;  %v203_v27 = vld [vmem:[%s8137_s17 + $0xf0] sm:$0xff]  ;;  %v348_v29 = vld [vmem:[%s8137_s17 + $0x578] sm:$0xff] }
 0x266   : > { %5428 = vmatprep.subr.bf16.mxu1 %v7894_v32  ;;  %v8914_v55 = vadd.f32 %v8854_v9, %v4921_v44  ;;  %v251_v9 = vld [vmem:[%s8137_s17 + $0x270] sm:$0xff]  ;;  %v364_v43 = vld [vmem:[%s8137_s17 + $0x5f8] sm:$0xff]  ;;  %v7349_v32 = vcombine.low %v219_v4, %v235_v5  ;;  %v7318_v34 = vcombine.high %v187_v21, %v203_v27  ;;  %v7317_v48 = vcombine.low %v187_v21, %v203_v27 }
 0x267   : > { %v4923_v51 = vpop.f32.mrf.mxu0  ;;  %v7382_v0 = vcombine.high %v251_v9, %v267_v57  ;;  %v7381_v8 = vcombine.low %v251_v9, %v267_v57  ;;  %v7480_v36 = vcombine.high %v348_v29, %v364_v43  ;;  %v683_v16 = vld [vmem:[%s8137_s17 + $0xff0] sm:$0xff]  ;;  %v7479_v49 = vcombine.low %v348_v29, %v364_v43  ;;  %v220_v29 = vld [vmem:[%s8137_s17 + $0x178] sm:$0xff] }
 0x268   : > { %5382 = vmatpush1.bf16.msra.mxu0 %v7477_v41  ;;  %v316_v41 = vld [vmem:[%s8137_s17 + $0x478] sm:$0xff]  ;;  %v7798_v51 = vcombine.high %v667_v28, %v683_v16  ;;  %v7797_v59 = vcombine.low %v667_v28, %v683_v16  ;;  %v603_v4 = vld [vmem:[%s8137_s17 + $0xd70] sm:$0xff] }
 0x269   : > { %5429 = vmatpush1.bf16.msra.mxu1 %v7893_v42  ;;  %v4924_v54 = vpop.f32.mrf.mxu0  ;;  %5383 = vmatprep.subr.bf16.mxu0 %v7446_v45  ;;  %v332_v42 = vld [vmem:[%s8137_s17 + $0x4f8] sm:$0xff]  ;;  %v619_v5 = vld [vmem:[%s8137_s17 + $0xdf0] sm:$0xff] }
 0x26a   : > { %5430 = vmatprep.subr.bf16.mxu1 %v7862_v46  ;;  %v7447_v60 = vcombine.low %v316_v41, %v332_v42  ;;  %v571_v21 = vld [vmem:[%s8137_s17 + $0xc70] sm:$0xff]  ;;  %v236_v43 = vld [vmem:[%s8137_s17 + $0x1f8] sm:$0xff] }
 0x26b   : > { %v587_v27 = vld [vmem:[%s8137_s17 + $0xcf0] sm:$0xff] }
 0x26c   : > { %5384 = vmatpush1.bf16.msra.mxu0 %v7445_v52  ;;  %v7448_v52 = vcombine.high %v316_v41, %v332_v42  ;;  %v539_v28 = vld [vmem:[%s8137_s17 + $0xb70] sm:$0xff]  ;;  %v188_v41 = vld [vmem:[%s8137_s17 + $0x78] sm:$0xff] }
 0x26d   : > { %5431 = vmatpush1.bf16.msra.mxu1 %v7861_v53  ;;  %5385 = vmatprep.subr.bf16.mxu0 %v7414_v56  ;;  %v635_v53 = vld [vmem:[%s8137_s17 + $0xe70] sm:$0xff]  ;;  %v284_v56 = vld [vmem:[%s8137_s17 + $0x378] sm:$0xff] }
 0x26e   : > { %5432 = vmatprep.subr.bf16.mxu1 %v7830_v58  ;;  %v300_v58 = vld [vmem:[%s8137_s17 + $0x3f8] sm:$0xff]  ;;  %v555_v16 = vld [vmem:[%s8137_s17 + $0xbf0] sm:$0xff] }
 0x26f   : > { %v204_v42 = vld [vmem:[%s8137_s17 + $0xf8] sm:$0xff] }
 0x270   : > { %5386 = vmatpush1.bf16.msra.mxu0 %v7413_v62 }
 0x271   : > { %5433 = vmatpush1.bf16.msra.mxu1 %v7829_v63  ;;  %5387 = vmatprep.subr.bf16.mxu0 %v7382_v0 }
 0x272   : > { %5459 = vmatprep.subr.bf16.mxu1 %v7544_v3  ;;  %v7416_v3 = vcombine.high %v284_v56, %v300_v58 }
 0x274   : > { %7990 = vmatmul.mubr.msk.bf16.vlgmr.msra.gmra.mxu1 %vm4128_vm1, %v8187_v61  ;;  %5388 = vmatpush1.bf16.msra.mxu0 %v7381_v8 }
 0x275   : > { %5460 = vmatpush1.bf16.msra.mxu1 %v7543_v13  ;;  %5389 = vmatprep.subr.bf16.mxu0 %v7350_v19  ;;  %v7415_v13 = vcombine.low %v284_v56, %v300_v58  ;;  %v7734_v19 = vcombine.high %v603_v4, %v619_v5  ;;  %v7319_v56 = vcombine.low %v188_v41, %v204_v42 }
 0x276   : > { %5461 = vmatprep.subr.bf16.mxu1 %v7512_v20  ;;  %5491 = vmatprep.mubr.bf16.mxu1 %v8169_v35  ;;  %v651_v35 = vld [vmem:[%s8137_s17 + $0xef0] sm:$0xff]  ;;  %v7384_v20 = vcombine.high %v252_v6, %v268_v7 }
 0x277   : > { %v5042_v45 = vpop.f32.mrf.mxu0  ;;  %v7766_v0 = vcombine.high %v635_v53, %v651_v35  ;;  %v7765_v8 = vcombine.low %v635_v53, %v651_v35  ;;  %v7669_v35 = vcombine.low %v539_v28, %v555_v16 }
 0x278   : > { %v5001_v44 = vpop.f32.mrf.mxu1  ;;  %5390 = vmatpush1.bf16.msra.mxu0 %v7349_v32  ;;  %v7733_v32 = vcombine.low %v603_v4, %v619_v5 }
 0x279   : > { %v8938_v46 = vadd.f32 %v5042_v45, %v5001_v44  ;;  %5462 = vmatpush1.bf16.msra.mxu1 %v7511_v33  ;;  %v5044_v50 = vpop.f32.mrf.mxu0  ;;  %5391 = vmatprep.subr.bf16.mxu0 %v7318_v34  ;;  %v7383_v33 = vcombine.low %v252_v6, %v268_v7  ;;  %v7702_v34 = vcombine.high %v571_v21, %v587_v27 }
 0x27a   : > { %v5003_v40 = vpop.f32.mrf.mxu1  ;;  %5463 = vmatprep.subr.bf16.mxu1 %v7480_v36  ;;  %v7352_v36 = vcombine.high %v220_v29, %v236_v43  ;;  %v7701_v44 = vcombine.low %v571_v21, %v587_v27  ;;  %v7351_v45 = vcombine.low %v220_v29, %v236_v43 }
 0x27b   : > { %v8941_v54 = vadd.f32 %v5044_v50, %v5003_v40  ;;  %v5046_v57 = vpop.f32.mrf.mxu0  ;;  %v507_v40 = vld [vmem:[%s8137_s17 + $0xa70] sm:$0xff] }
 0x27c   : > { %v5005_v9 = vpop.f32.mrf.mxu1  ;;  %5392 = vmatpush1.bf16.msra.mxu0 %v7317_v48  ;;  %v7670_v48 = vcombine.high %v539_v28, %v555_v16  ;;  %v523_v50 = vld [vmem:[%s8137_s17 + $0xaf0] sm:$0xff] }
 0x27d   : > { %5464 = vmatpush1.bf16.msra.mxu1 %v7479_v49  ;;  %v5047_v63 = vpop.f32.mrf.mxu0  ;;  %5393 = vmatprep.subr.bf16.mxu0 %v7798_v51  ;;  %v7320_v49 = vcombine.high %v188_v41, %v204_v42  ;;  %v668_v51 = vld [vmem:[%s8137_s17 + $0xf78] sm:$0xff]  ;;  %v7638_v9 = vcombine.high %v507_v40, %v523_v50 }
 0x27e   : > { %v5006_v62 = vpop.f32.mrf.mxu1  ;;  %5465 = vmatprep.subr.bf16.mxu1 %v7448_v52  ;;  %v684_v52 = vld [vmem:[%s8137_s17 + $0xff8] sm:$0xff] }
 0x27f   : > { %v7800_v57 = vcombine.high %v668_v51, %v684_v52  ;;  %v636_v62 = vld [vmem:[%s8137_s17 + $0xe78] sm:$0xff]  ;;  %v7799_v4 = vcombine.low %v668_v51, %v684_v52 }
 0x280   : > { %5394 = vmatpush2.bf16.msra.mxu0 %v7797_v59  ;;  %v475_v59 = vld [vmem:[%s8137_s17 + $0x970] sm:$0xff]  ;;  %v652_v63 = vld [vmem:[%s8137_s17 + $0xef8] sm:$0xff] }
 0x281   : > { %5466 = vmatpush1.bf16.msra.mxu1 %v7447_v60  ;;  %5395 = vmatprep.subr.bf16.mxu0 %v7766_v0  ;;  %v491_v60 = vld [vmem:[%s8137_s17 + $0x9f0] sm:$0xff]  ;;  %v7768_v7 = vcombine.high %v636_v62, %v652_v63  ;;  %v7767_v27 = vcombine.low %v636_v62, %v652_v63 }
 0x282   : > { %5467 = vmatprep.subr.bf16.mxu1 %v7416_v3  ;;  %v7637_v3 = vcombine.low %v507_v40, %v523_v50  ;;  %v7606_v6 = vcombine.high %v475_v59, %v491_v60  ;;  %v7605_v21 = vcombine.low %v475_v59, %v491_v60 }
 0x284   : > { %5396 = vmatpush2.bf16.msra.mxu0 %v7765_v8  ;;  %v443_v8 = vld [vmem:[%s8137_s17 + $0x870] sm:$0xff] }
 0x285   : > { %5468 = vmatpush1.bf16.msra.mxu1 %v7415_v13  ;;  %5397 = vmatprep.subr.bf16.mxu0 %v7734_v19  ;;  %v459_v13 = vld [vmem:[%s8137_s17 + $0x8f0] sm:$0xff]  ;;  %v604_v19 = vld [vmem:[%s8137_s17 + $0xd78] sm:$0xff] }
 0x286   : > { %5469 = vmatprep.subr.bf16.mxu1 %v7384_v20  ;;  %v620_v20 = vld [vmem:[%s8137_s17 + $0xdf8] sm:$0xff]  ;;  %v7574_v29 = vcombine.high %v443_v8, %v459_v13 }
 0x287   : > { %v7736_v43 = vcombine.high %v604_v19, %v620_v20  ;;  %v7735_v28 = vcombine.low %v604_v19, %v620_v20  ;;  %v444_v19 = vld [vmem:[%s8137_s17 + $0x878] sm:$0xff] }
 0x288   : > { %5398 = vmatpush2.bf16.msra.mxu0 %v7733_v32  ;;  %v572_v32 = vld [vmem:[%s8137_s17 + $0xc78] sm:$0xff] }
 0x289   : > { %5470 = vmatpush1.bf16.msra.mxu1 %v7383_v33  ;;  %5399 = vmatprep.subr.bf16.mxu0 %v7702_v34  ;;  %v588_v33 = vld [vmem:[%s8137_s17 + $0xcf8] sm:$0xff] }
 0x28a   : > { %5471 = vmatprep.subr.bf16.mxu1 %v7352_v36  ;;  %v828_v34 = vld [vmem:[%s8137_s17 + $0x1478] sm:$0x33]  ;;  %v7573_v36 = vcombine.low %v443_v8, %v459_v13  ;;  %v7704_v16 = vcombine.high %v572_v32, %v588_v33  ;;  %v7703_v40 = vcombine.low %v572_v32, %v588_v33 }
 0x28b   : > { %v7960_v41 = vcombine.high %v828_v34, %v828_v34  ;;  %v7959_v42 = vcombine.low %v828_v34, %v828_v34  ;;  %v460_v20 = vld [vmem:[%s8137_s17 + $0x8f8] sm:$0xff] }
 0x28c   : > { %v8962_v53 = vpop.f32.mrf.mxu1  ;;  %5400 = vmatpush2.bf16.msra.mxu0 %v7701_v44  ;;  %v540_v44 = vld [vmem:[%s8137_s17 + $0xb78] sm:$0xff]  ;;  %v7576_v32 = vcombine.high %v444_v19, %v460_v20  ;;  %v7575_v33 = vcombine.low %v444_v19, %v460_v20 }
 0x28d   : > { %5472 = vmatpush1.bf16.msra.mxu1 %v7351_v45  ;;  %5401 = vmatprep.subr.bf16.mxu0 %v7670_v48  ;;  %v556_v45 = vld [vmem:[%s8137_s17 + $0xbf8] sm:$0xff]  ;;  %v4224_v50 = vsel %vm4132_vm0, %v7959_v42, 0 }
 0x28e   : > { %v8964_v58 = vpop.f32.mrf.mxu1  ;;  %5473 = vmatprep.subr.bf16.mxu1 %v7320_v49  ;;  %v796_v48 = vld [vmem:[%s8137_s17 + $0x1378] sm:$0xff]  ;;  %v7672_v51 = vcombine.high %v540_v44, %v556_v45  ;;  %v7671_v59 = vcombine.low %v540_v44, %v556_v45 }
 0x28f   : > { %v812_v49 = vld [vmem:[%s8137_s17 + $0x13f8] sm:$0xff] }
 0x290   : > { %v5128_v0 = vpop.f32.mrf.mxu1  ;;  %5402 = vmatpush2.bf16.msra.mxu0 %v7669_v35  ;;  %v7928_v52 = vcombine.high %v796_v48, %v812_v49  ;;  %v508_v35 = vld [vmem:[%s8137_s17 + $0xa78] sm:$0xff]  ;;  %v7927_v60 = vcombine.low %v796_v48, %v812_v49 }
 0x291   : > { %5474 = vmatpush1.bf16.msra.mxu1 %v7319_v56  ;;  %5403 = vmatprep.subr.bf16.mxu0 %v7638_v9  ;;  %v524_v56 = vld [vmem:[%s8137_s17 + $0xaf8] sm:$0xff] }
 0x292   : > { %v5129_v5 = vpop.f32.mrf.mxu1  ;;  %5475 = vmatprep.subr.bf16.mxu1 %v7800_v57  ;;  %v764_v9 = vld [vmem:[%s8137_s17 + $0x1278] sm:$0xff]  ;;  %v7640_v62 = vcombine.high %v508_v35, %v524_v56 }
 0x293   : > { %v780_v57 = vld [vmem:[%s8137_s17 + $0x12f8] sm:$0xff] }
 0x294   : > { %5404 = vmatpush2.bf16.msra.mxu0 %v7637_v3  ;;  %v7896_v63 = vcombine.high %v764_v9, %v780_v57  ;;  %v476_v0 = vld [vmem:[%s8137_s17 + $0x978] sm:$0xff] }
 0x295   : > { %5476 = vmatpush2.bf16.msra.mxu1 %v7799_v4  ;;  %5405 = vmatprep.subr.bf16.mxu0 %v7606_v6  ;;  %v492_v3 = vld [vmem:[%s8137_s17 + $0x9f8] sm:$0xff]  ;;  %v7639_v6 = vcombine.low %v508_v35, %v524_v56 }
 0x296   : > { %5477 = vmatprep.subr.bf16.mxu1 %v7768_v7  ;;  %v732_v4 = vld [vmem:[%s8137_s17 + $0x1178] sm:$0xff]  ;;  %v7895_v7 = vcombine.low %v764_v9, %v780_v57  ;;  %v7608_v8 = vcombine.high %v476_v0, %v492_v3 }
 0x297   : > { %v748_v5 = vld [vmem:[%s8137_s17 + $0x11f8] sm:$0xff] }
 0x298   : > { %5406 = vmatpush2.bf16.msra.mxu0 %v7605_v21  ;;  %v7864_v13 = vcombine.high %v732_v4, %v748_v5  ;;  %v700_v21 = vld [vmem:[%s8137_s17 + $0x1078] sm:$0xff] }
 0x299   : > { %5478 = vmatpush2.bf16.msra.mxu1 %v7767_v27  ;;  %5407 = vmatprep.subr.bf16.mxu0 %v7574_v29  ;;  %v716_v27 = vld [vmem:[%s8137_s17 + $0x10f8] sm:$0xff]  ;;  %v7607_v29 = vcombine.low %v476_v0, %v492_v3  ;;  %v5543_v3 = vsel %vm5541_vm2, %v8474_v23, 0.0 }
 0x29a   : > { %5479 = vmatprep.subr.bf16.mxu1 %v7736_v43  ;;  %v7863_v43 = vcombine.low %v732_v4, %v748_v5  ;;  %v7831_v34 = vcombine.low %v700_v21, %v716_v27 }
 0x29c   : > { %5408 = vmatpush2.bf16.msra.mxu0 %v7573_v36 }
 0x29d   : > { %5480 = vmatpush2.bf16.msra.mxu1 %v7735_v28  ;;  %7991 = vmatprep.subr.msk.bf16.mxu0 %vm4132_vm0, %v7960_v41 }
 0x29e   : > { %5481 = vmatprep.subr.bf16.mxu1 %v7704_v16 }
 0x29f   : > { %5410 = vmatmul.mubr.bf16.vlgmr.msra.gmra.mxu0 %v8157_v22 }
 0x2a0   : > { %5507 = vmatpush1.bf16.msra.mxu0 %v4224_v50  ;;  %5532 = vmatprep.mubr.bf16.mxu0 %v8099_v1  ;;  %v7832_v1 = vcombine.high %v700_v21, %v716_v27 }
 0x2a1   : > { %5482 = vmatpush2.bf16.msra.mxu1 %v7703_v40  ;;  %5508 = vmatprep.subr.bf16.mxu0 %v7928_v52 }
 0x2a2   : > { %5483 = vmatprep.subr.bf16.mxu1 %v7672_v51 }
 0x2a4   : > { %5509 = vmatpush1.bf16.msra.mxu0 %v7927_v60 }
 0x2a5   : > { %5484 = vmatpush2.bf16.msra.mxu1 %v7671_v59  ;;  %5510 = vmatprep.subr.bf16.mxu0 %v7896_v63 }
 0x2a6   : > { %5485 = vmatprep.subr.bf16.mxu1 %v7640_v62 }
 0x2a8   : > { %5511 = vmatpush1.bf16.msra.mxu0 %v7895_v7  ;;  %v5545_v7 = vsel %vm5541_vm2, %v8498_v2, 0.0 }
 0x2a9   : > { %5486 = vmatpush2.bf16.msra.mxu1 %v7639_v6  ;;  %5512 = vmatprep.subr.bf16.mxu0 %v7864_v13  ;;  %v5542_v6 = vsel %vm5541_vm2, %v8470_v15, 0.0 }
 0x2aa   : > { %5487 = vmatprep.subr.bf16.mxu1 %v7608_v8  ;;  %v5544_v13 = vadd.f32 %v5543_v3, %v5542_v6  ;;  %v5569_v6 = vsel %vm5541_vm2, %v8828_v18, 0.0 }
 0x2ac   : > { %5513 = vmatpush1.bf16.msra.mxu0 %v7863_v43  ;;  %v5546_v27 = vadd.f32 %v5545_v7, %v5544_v13 }
 0x2ad   : > { %5488 = vmatpush2.bf16.msra.mxu1 %v7607_v29  ;;  %5514 = vmatprep.subr.bf16.mxu0 %v7832_v1 }
 0x2ae   : > { %5489 = vmatprep.subr.bf16.mxu1 %v7576_v32  ;;  %v5547_v32 = vsel %vm5541_vm2, %v8501_v11, 0.0 }
 0x2b0   : > { %5515 = vmatpush1.bf16.msra.mxu0 %v7831_v34  ;;  %v5549_v34 = vsel %vm5541_vm2, %v8580_v38, 0.0 }
 0x2b1   : > { %5490 = vmatpush2.bf16.msra.mxu1 %v7575_v33 }
 0x2b3   : > { %7992 = vmatmul.mubr.msk.bf16.vlgmr.msra.gmra.mxu0 %vm4128_vm1, %v8187_v61 }
 0x2b4   : > { %5492 = vmatmul.mubr.bf16.vlgmr.msra.gmra.mxu1 %v8157_v22 }
 0x2b7   : > { %v5083_v36 = vpop.f32.mrf.mxu0 }
 0x2b8   : > { %v9001_v28 = vadd.f32 %v8962_v53, %v5083_v36  ;;  %v5548_v36 = vadd.f32 %v5547_v32, %v5546_v27  ;;  %v5577_v32 = vsel %vm5541_vm2, %v8938_v46, 0.0 }
 0x2b9   : > { %v5085_v16 = vpop.f32.mrf.mxu0 }
 0x2ba   : > { %v9004_v41 = vadd.f32 %v8964_v58, %v5085_v16  ;;  %v5550_v16 = vadd.f32 %v5549_v34, %v5548_v36  ;;  %v5579_v34 = vsel %vm5541_vm2, %v8941_v54, 0.0  ;;  %v5581_v36 = vsel %vm5541_vm2, %v9001_v28, 0.0 }
 0x2bb   : > { %v5087_v42 = vpop.f32.mrf.mxu0 }
 0x2bc   : > { %v5551_v42 = vsel %vm5541_vm2, %v8584_v47, 0.0 }
 0x2bd   : > { %v5088_v44 = vpop.f32.mrf.mxu0 }
 0x2be   : > { %v5553_v44 = vsel %vm5541_vm2, %v8608_v30, 0.0 }
 0x2cb   : > { %v5206_v48 = vpop.f32.mrf.mxu0 }
 0x2cc   : > { %v5165_v45 = vpop.f32.mrf.mxu1 }
 0x2cd   : > { %v9006_v49 = vadd.f32 %v5206_v48, %v5165_v45  ;;  %v5208_v50 = vpop.f32.mrf.mxu0  ;;  %v5552_v45 = vadd.f32 %v5551_v42, %v5550_v16 }
 0x2ce   : > { %v5167_v40 = vpop.f32.mrf.mxu1 }
 0x2cf   : > { %v9008_v22 = vadd.f32 %v5208_v50, %v5167_v40  ;;  %v5210_v61 = vpop.f32.mrf.mxu0  ;;  %v5554_v48 = vadd.f32 %v5553_v44, %v5552_v45  ;;  %v5555_v40 = vsel %vm5541_vm2, %v8611_v39, 0.0  ;;  %v5557_v50 = vsel %vm5541_vm2, %v8690_v17, 0.0 }
 0x2d0   : > { %v5169_v51 = vpop.f32.mrf.mxu1  ;;  %v5583_v44 = vsel %vm5541_vm2, %v9004_v41, 0.0  ;;  %v5585_v45 = vsel %vm5541_vm2, %v9006_v49, 0.0 }
 0x2d1   : > { %v5211_v35 = vpop.f32.mrf.mxu0  ;;  %v5556_v51 = vadd.f32 %v5555_v40, %v5554_v48 }
 0x2d2   : > { %v5170_v52 = vpop.f32.mrf.mxu1 }
 0x2d3   : > { %v5558_v52 = vadd.f32 %v5557_v50, %v5556_v51  ;;  %v5587_v51 = vsel %vm5541_vm2, %v9008_v22, 0.0 }
 0x2e0   : > { %v5288_v53 = vpop.f32.mrf.mxu1 }
 0x2e2   : > { %v5290_v56 = vpop.f32.mrf.mxu1 }
 0x2e4   : > { %v5292_v9 = vpop.f32.mrf.mxu1 }
 0x2e5   : > { %v5561_v9 = vsel %vm5541_vm2, %v8718_v12, 0.0 }
 0x2e6   : > { %v5293_v57 = vpop.f32.mrf.mxu1 }
 0x30b   : > { %v5247_v58 = vpop.f32.mrf.mxu0 }
 0x30c   : > { %v9010_v59 = vadd.f32 %v5288_v53, %v5247_v58  ;;  %v5559_v53 = vsel %vm5541_vm2, %v8694_v26, 0.0 }
 0x30d   : > { %v5249_v60 = vpop.f32.mrf.mxu0  ;;  %v5560_v57 = vadd.f32 %v5559_v53, %v5558_v52 }
 0x30e   : > { %v9012_v62 = vadd.f32 %v5290_v56, %v5249_v60  ;;  %v5589_v53 = vsel %vm5541_vm2, %v9010_v59, 0.0 }
 0x30f   : > { %v5251_v63 = vpop.f32.mrf.mxu0  ;;  %v5562_v60 = vadd.f32 %v5561_v9, %v5560_v57 }
 0x310   : > { %v5563_v63 = vsel %vm5541_vm2, %v8721_v24, 0.0 }
 0x311   : > { %v5252_v0 = vpop.f32.mrf.mxu0  ;;  %v5564_v3 = vadd.f32 %v5563_v63, %v5562_v60  ;;  %v5591_v60 = vsel %vm5541_vm2, %v9012_v62, 0.0 }
 0x312   : > { %v5565_v0 = vsel %vm5541_vm2, %v8800_v14, 0.0 }
 0x31f   : > { %v5370_v5 = vpop.f32.mrf.mxu0 }
 0x320   : > { %v5329_v4 = vpop.f32.mrf.mxu1 }
 0x321   : > { %v9020_v8 = vadd.f32 %v5370_v5, %v5329_v4  ;;  %v5372_v20 = vpop.f32.mrf.mxu0  ;;  %v5566_v4 = vadd.f32 %v5565_v0, %v5564_v3  ;;  %v5567_v5 = vsel %vm5541_vm2, %v8804_v25, 0.0 }
 0x322   : > { %v5331_v19 = vpop.f32.mrf.mxu1 }
 0x323   : > { %v9022_v21 = vadd.f32 %v5372_v20, %v5331_v19  ;;  %v5374_v43 = vpop.f32.mrf.mxu0  ;;  %v5568_v7 = vadd.f32 %v5567_v5, %v5566_v4  ;;  %v5571_v19 = vsel %vm5541_vm2, %v8831_v31, 0.0  ;;  %v5573_v20 = vsel %vm5541_vm2, %v8910_v37, 0.0 }
 0x324   : > { %v5333_v29 = vpop.f32.mrf.mxu1  ;;  %v5575_v43 = vsel %vm5541_vm2, %v8914_v55, 0.0  ;;  %v5593_v63 = vsel %vm5541_vm2, %v9020_v8, 0.0 }
 0x325   : > { %v5375_v33 = vpop.f32.mrf.mxu0  ;;  %v5570_v13 = vadd.f32 %v5569_v6, %v5568_v7  ;;  %v5595_v5 = vsel %vm5541_vm2, %v9022_v21, 0.0 }
 0x326   : > { %v5334_v1 = vpop.f32.mrf.mxu1 }
 0x327   : > { %v5572_v27 = vadd.f32 %v5571_v19, %v5570_v13 }
 0x329   : > { %v5574_v29 = vadd.f32 %v5573_v20, %v5572_v27 }
 0x32b   : > { %v5576_v1 = vadd.f32 %v5575_v43, %v5574_v29 }
 0x32d   : > { %v5578_v33 = vadd.f32 %v5577_v32, %v5576_v1 }
 0x32f   : > { %v5580_v16 = vadd.f32 %v5579_v34, %v5578_v33 }
 0x331   : > { %v5582_v42 = vadd.f32 %v5581_v36, %v5580_v16 }
 0x333   : > { %v5584_v48 = vadd.f32 %v5583_v44, %v5582_v42 }
 0x334   : > { %v5452_v61 = vpop.f32.mrf.mxu1 }
 0x335   : > { %v5586_v40 = vadd.f32 %v5585_v45, %v5584_v48 }
 0x336   : > { %v5454_v35 = vpop.f32.mrf.mxu1 }
 0x338   : > { %v5456_v56 = vpop.f32.mrf.mxu1 }
 0x339   : > { %v5588_v56 = vadd.f32 %v5587_v51, %v5586_v40 }
 0x33a   : > { %v5457_v58 = vpop.f32.mrf.mxu1 }
 0x33b   : > { %v5590_v57 = vadd.f32 %v5589_v53, %v5588_v56 }
 0x33d   : > { %v5592_v0 = vadd.f32 %v5591_v60, %v5590_v57 }
 0x33f   : > { %v5594_v4 = vadd.f32 %v5593_v63, %v5592_v0 }
 0x341   : > { %v5596_v13 = vadd.f32 %v5595_v5, %v5594_v4 }
 0x35f   : > { %v5411_v50 = vpop.f32.mrf.mxu0 }
 0x360   : > { %v9072_v3 = vadd.f32 %v5452_v61, %v5411_v50 }
 0x361   : > { %v5413_v52 = vpop.f32.mrf.mxu0 }
 0x362   : > { %v5597_v6 = vsel %vm5541_vm2, %v9072_v3, 0.0  ;;  %v9078_v7 = vadd.f32 %v5454_v35, %v5413_v52 }
 0x363   : > { %v5415_v9 = vpop.f32.mrf.mxu0  ;;  %v5598_v19 = vadd.f32 %v5597_v6, %v5596_v13 }
 0x364   : > { %v5599_v20 = vsel %vm5541_vm2, %v9078_v7, 0.0 }
 0x365   : > { %v5416_v58 = vpop.f32.mrf.mxu0  ;;  %v5600_v61 = vadd.f32 %v5599_v20, %v5598_v19 }
 0x373   : > { %v5534_v29 = vpop.f32.mrf.mxu0 }
 0x374   : > { %v5493_v27 = vpop.f32.mrf.mxu1 }
 0x375   : > { %v9082_v43 = vadd.f32 %v5534_v29, %v5493_v27  ;;  %v5536_v1 = vpop.f32.mrf.mxu0 }
 0x376   : > { %v5495_v32 = vpop.f32.mrf.mxu1 }
 0x377   : > { %v5601_v33 = vsel %vm5541_vm2, %v9082_v43, 0.0  ;;  %v9086_v34 = vadd.f32 %v5536_v1, %v5495_v32  ;;  %v5538_v35 = vpop.f32.mrf.mxu0 }
 0x378   : > { %v5497_v36 = vpop.f32.mrf.mxu1  ;;  %v5602_v16 = vadd.f32 %v5601_v33, %v5600_v61 }
 0x379   : > { %v5603_v42 = vsel %vm5541_vm2, %v9086_v34, 0.0  ;;  %v5539_v45 = vpop.f32.mrf.mxu0 }
 0x37a   : > { %v5498_v44 = vpop.f32.mrf.mxu1  ;;  %v5604_v48 = vadd.f32 %v5603_v42, %v5602_v16 }
 0x37c   : > { %5605 = vadd.xlane.f32.xlu0 %v5604_v48 }
 0x405   : > { %v5606_v40 = vpop.xlane.xlu0 %5605 }
 0x406   : > { %v9090_v50 = vmul.f32 0.00024414063, %v5606_v40 }
 0x408   : > { %v9094_v51 = vsub.f32 %v8470_v15, %v9090_v50  ;;  %v9098_v52 = vsub.f32 %v8474_v23, %v9090_v50  ;;  %v9102_v53 = vsub.f32 %v8498_v2, %v9090_v50  ;;  %v9106_v56 = vsub.f32 %v8501_v11, %v9090_v50 }
 0x409   : > { %v9114_v15 = vsub.f32 %v8580_v38, %v9090_v50  ;;  %v9120_v2 = vsub.f32 %v8584_v47, %v9090_v50  ;;  %v9128_v0 = vsub.f32 %v8608_v30, %v9090_v50  ;;  %v9135_v47 = vsub.f32 %v8611_v39, %v9090_v50 }
 0x40a   : > { %v5641_v9 = vmul.f32 %v9094_v51, %v9094_v51  ;;  %v5642_v57 = vmul.f32 %v9098_v52, %v9098_v52  ;;  %v5643_v23 = vmul.f32 %v9102_v53, %v9102_v53  ;;  %v5644_v11 = vmul.f32 %v9106_v56, %v9106_v56 }
 0x40b   : > { %v5645_v38 = vmul.f32 %v9114_v15, %v9114_v15  ;;  %v5646_v6 = vmul.f32 %v9120_v2, %v9120_v2  ;;  %v9142_v30 = vsub.f32 %v8690_v17, %v9090_v50  ;;  %v5647_v20 = vmul.f32 %v9128_v0, %v9128_v0 }
 0x40c   : > { %v5673_v58 = vsel %vm5541_vm2, %v5641_v9, 0.0  ;;  %v5674_v60 = vsel %vm5541_vm2, %v5642_v57, 0.0  ;;  %v5676_v4 = vsel %vm5541_vm2, %v5643_v23, 0.0  ;;  %v5678_v13 = vsel %vm5541_vm2, %v5644_v11, 0.0 }
 0x40d   : > { %v5675_v63 = vadd.f32 %v5674_v60, %v5673_v58  ;;  %v5680_v27 = vsel %vm5541_vm2, %v5645_v38, 0.0  ;;  %v9149_v39 = vsub.f32 %v8694_v26, %v9090_v50  ;;  %v5648_v61 = vmul.f32 %v9135_v47, %v9135_v47 }
 0x40e   : > { %v5682_v32 = vsel %vm5541_vm2, %v5646_v6, 0.0  ;;  %v9156_v17 = vsub.f32 %v8718_v12, %v9090_v50  ;;  %v5649_v33 = vmul.f32 %v9142_v30, %v9142_v30  ;;  %v5684_v36 = vsel %vm5541_vm2, %v5647_v20, 0.0 }
 0x40f   : > { %v5677_v5 = vadd.f32 %v5676_v4, %v5675_v63  ;;  %v9163_v26 = vsub.f32 %v8721_v24, %v9090_v50  ;;  %v5650_v16 = vmul.f32 %v9149_v39, %v9149_v39  ;;  %v5686_v42 = vsel %vm5541_vm2, %v5648_v61, 0.0 }
 0x410   : > { %v9170_v12 = vsub.f32 %v8800_v14, %v9090_v50  ;;  %v5651_v45 = vmul.f32 %v9156_v17, %v9156_v17  ;;  %v5688_v48 = vsel %vm5541_vm2, %v5649_v33, 0.0  ;;  %v9177_v24 = vsub.f32 %v8804_v25, %v9090_v50 }
 0x411   : > { %v5679_v19 = vadd.f32 %v5678_v13, %v5677_v5  ;;  %v5652_v9 = vmul.f32 %v9163_v26, %v9163_v26  ;;  %v5690_v57 = vsel %vm5541_vm2, %v5650_v16, 0.0  ;;  %v9184_v14 = vsub.f32 %v8828_v18, %v9090_v50 }
 0x412   : > { %v5653_v11 = vmul.f32 %v9170_v12, %v9170_v12  ;;  %v5692_v58 = vsel %vm5541_vm2, %v5651_v45, 0.0  ;;  %v9191_v25 = vsub.f32 %v8831_v31, %v9090_v50  ;;  %v5654_v63 = vmul.f32 %v9177_v24, %v9177_v24 }
 0x413   : > { %v5681_v29 = vadd.f32 %v5680_v27, %v5679_v19  ;;  %v5694_v38 = vsel %vm5541_vm2, %v5652_v9, 0.0  ;;  %v9198_v18 = vsub.f32 %v8910_v37, %v9090_v50  ;;  %v5655_v5 = vmul.f32 %v9184_v14, %v9184_v14 }
 0x414   : > { %v5696_v6 = vsel %vm5541_vm2, %v5653_v11, 0.0  ;;  %v9205_v31 = vsub.f32 %v8914_v55, %v9090_v50  ;;  %v5656_v19 = vmul.f32 %v9191_v25, %v9191_v25  ;;  %v5698_v20 = vsel %vm5541_vm2, %v5654_v63, 0.0 }
 0x415   : > { %v5683_v1 = vadd.f32 %v5682_v32, %v5681_v29  ;;  %v9212_v37 = vsub.f32 %v8938_v46, %v9090_v50  ;;  %v5657_v29 = vmul.f32 %v9198_v18, %v9198_v18  ;;  %v5700_v61 = vsel %vm5541_vm2, %v5655_v5, 0.0 }
 0x416   : > { %v9219_v55 = vsub.f32 %v8941_v54, %v9090_v50  ;;  %v5702_v33 = vsel %vm5541_vm2, %v5656_v19, 0.0  ;;  %v9226_v46 = vsub.f32 %v9001_v28, %v9090_v50  ;;  %v9233_v54 = vsub.f32 %v9004_v41, %v9090_v50 }
 0x417   : > { %v5685_v35 = vadd.f32 %v5684_v36, %v5683_v1  ;;  %v5658_v1 = vmul.f32 %v9205_v31, %v9205_v31  ;;  %v5704_v16 = vsel %vm5541_vm2, %v5657_v29, 0.0  ;;  %v9240_v28 = vsub.f32 %v9006_v49, %v9090_v50 }
 0x418   : > { %v9247_v41 = vsub.f32 %v9008_v22, %v9090_v50  ;;  %v9254_v49 = vsub.f32 %v9010_v59, %v9090_v50  ;;  %v9261_v22 = vsub.f32 %v9012_v62, %v9090_v50  ;;  %v9268_v59 = vsub.f32 %v9020_v8, %v9090_v50 }
 0x419   : > { %v5687_v44 = vadd.f32 %v5686_v42, %v5685_v35  ;;  %v5659_v35 = vmul.f32 %v9212_v37, %v9212_v37  ;;  %v5706_v45 = vsel %vm5541_vm2, %v5658_v1, 0.0  ;;  %v9275_v62 = vsub.f32 %v9022_v21, %v9090_v50 }
 0x41a   : > { %v9282_v8 = vsub.f32 %v9072_v3, %v9090_v50  ;;  %v9289_v21 = vsub.f32 %v9078_v7, %v9090_v50  ;;  %v9296_v3 = vsub.f32 %v9082_v43, %v9090_v50  ;;  %v9303_v7 = vsub.f32 %v9086_v34, %v9090_v50 }
 0x41b   : > { %v5689_v40 = vadd.f32 %v5688_v48, %v5687_v44  ;;  %v5660_v44 = vmul.f32 %v9219_v55, %v9219_v55  ;;  %v5708_v9 = vsel %vm5541_vm2, %v5659_v35, 0.0 }
 0x41c   : > { %v5671_v43 = vmul.f32 %v9296_v3, %v9296_v3 }
 0x41d   : > { %v5691_v23 = vadd.f32 %v5690_v57, %v5689_v40  ;;  %v5661_v40 = vmul.f32 %v9226_v46, %v9226_v46  ;;  %v5710_v11 = vsel %vm5541_vm2, %v5660_v44, 0.0 }
 0x41e   : > { %v5732_v34 = vsel %vm5541_vm2, %v5671_v43, 0.0 }
 0x41f   : > { %v5693_v60 = vadd.f32 %v5692_v58, %v5691_v23  ;;  %v5662_v23 = vmul.f32 %v9233_v54, %v9233_v54  ;;  %v5712_v63 = vsel %vm5541_vm2, %v5661_v40, 0.0 }
 0x421   : > { %v5695_v4 = vadd.f32 %v5694_v38, %v5693_v60  ;;  %v5663_v60 = vmul.f32 %v9240_v28, %v9240_v28  ;;  %v5714_v5 = vsel %vm5541_vm2, %v5662_v23, 0.0 }
 0x423   : > { %v5697_v13 = vadd.f32 %v5696_v6, %v5695_v4  ;;  %v5664_v4 = vmul.f32 %v9247_v41, %v9247_v41  ;;  %v5716_v19 = vsel %vm5541_vm2, %v5663_v60, 0.0 }
 0x425   : > { %v5699_v27 = vadd.f32 %v5698_v20, %v5697_v13  ;;  %v5665_v13 = vmul.f32 %v9254_v49, %v9254_v49  ;;  %v5718_v29 = vsel %vm5541_vm2, %v5664_v4, 0.0  ;;  %v8101_v4 = vmov 0.0  }
 0x426   : > { %5970 = vmatprep.mubr.f32.mxu0 %v8101_v4  ;;  %6041 = vmatprep.mubr.f32.mxu1 %v8101_v4 }
 0x427   : > { %v5701_v32 = vadd.f32 %v5700_v61, %v5699_v27  ;;  %v5666_v27 = vmul.f32 %v9261_v22, %v9261_v22  ;;  %v5720_v1 = vsel %vm5541_vm2, %v5665_v13, 0.0 }
 0x429   : > { %v5703_v36 = vadd.f32 %v5702_v33, %v5701_v32  ;;  %v5667_v32 = vmul.f32 %v9268_v59, %v9268_v59  ;;  %v5722_v35 = vsel %vm5541_vm2, %v5666_v27, 0.0 }
 0x42b   : > { %v5705_v42 = vadd.f32 %v5704_v16, %v5703_v36  ;;  %v5668_v36 = vmul.f32 %v9275_v62, %v9275_v62  ;;  %v5724_v44 = vsel %vm5541_vm2, %v5667_v32, 0.0 }
 0x42d   : > { %v5707_v48 = vadd.f32 %v5706_v45, %v5705_v42  ;;  %v5669_v42 = vmul.f32 %v9282_v8, %v9282_v8  ;;  %v5726_v40 = vsel %vm5541_vm2, %v5668_v36, 0.0 }
 0x42f   : > { %v5709_v57 = vadd.f32 %v5708_v9, %v5707_v48  ;;  %v5670_v48 = vmul.f32 %v9289_v21, %v9289_v21 }
 0x431   : > { %v5711_v58 = vadd.f32 %v5710_v11, %v5709_v57  ;;  %v5728_v57 = vsel %vm5541_vm2, %v5669_v42, 0.0  ;;  %v5672_v11 = vmul.f32 %v9303_v7, %v9303_v7 }
 0x433   : > { %v5713_v38 = vadd.f32 %v5712_v63, %v5711_v58  ;;  %v5730_v58 = vsel %vm5541_vm2, %v5670_v48, 0.0  ;;  %v5734_v63 = vsel %vm5541_vm2, %v5672_v11, 0.0 }
 0x435   : > { %v5715_v6 = vadd.f32 %v5714_v5, %v5713_v38 }
 0x437   : > { %v5717_v20 = vadd.f32 %v5716_v19, %v5715_v6 }
 0x439   : > { %v5719_v61 = vadd.f32 %v5718_v29, %v5717_v20 }
 0x43b   : > { %v5721_v33 = vadd.f32 %v5720_v1, %v5719_v61 }
 0x43d   : > { %v5723_v16 = vadd.f32 %v5722_v35, %v5721_v33 }
 0x43f   : > { %v5725_v45 = vadd.f32 %v5724_v44, %v5723_v16 }
 0x441   : > { %v5727_v9 = vadd.f32 %v5726_v40, %v5725_v45 }
 0x443   : > { %v5729_v23 = vadd.f32 %v5728_v57, %v5727_v9 }
 0x445   : > { %v5731_v60 = vadd.f32 %v5730_v58, %v5729_v23 }
 0x447   : > { %v5733_v50 = vadd.f32 %v5732_v34, %v5731_v60 }
 0x449   : > { %v5735_v38 = vadd.f32 %v5734_v63, %v5733_v50 }
 0x44b   : > { %5736 = vadd.xlane.f32.xlu0 %v5735_v38 }
 0x4d4   : > { %v5737_v5 = vpop.xlane.xlu0 %5736 }
 0x4d5   : > { %v5738_v6 = vmul.f32 0.00024414063, %v5737_v5 }
 0x4d7   : > { %v5739_v13 = vadd.f32 1e-05, %v5738_v6 }
 0x4d9   : > { %8089 = vrsqrt.f32 %v5739_v13 }
 0x4e6   : > { %v9318_v19 = vpop.eup %8089 }
 0x4e7   : > { %v5741_v20 = vmul.f32 %v9318_v19, %v9094_v51  ;;  %v5742_v27 = vmul.f32 %v9318_v19, %v9098_v52  ;;  %v5743_v29 = vmul.f32 %v9318_v19, %v9102_v53  ;;  %v5744_v61 = vmul.f32 %v9318_v19, %v9106_v56 }
 0x4e8   : > { %v5745_v32 = vmul.f32 %v9318_v19, %v9114_v15  ;;  %v5746_v1 = vmul.f32 %v9318_v19, %v9120_v2  ;;  %v5747_v33 = vmul.f32 %v9318_v19, %v9128_v0  ;;  %v5748_v51 = vmul.f32 %v9318_v19, %v9135_v47  ;;  %v9343_v15 = vld [vmem:[%s9502_s2] sm:$0x3] }
 0x4e9   : > { %v5773_v36 = vmax.f32 %v5741_v20, 0.0  ;;  %v5774_v52 = vmax.f32 %v5742_v27, 0.0  ;;  %v5775_v35 = vmax.f32 %v5743_v29, 0.0  ;;  %v5776_v16 = vmax.f32 %v5744_v61, 0.0 }
 0x4ea   : > { %v5750_v53 = vmul.f32 %v9318_v19, %v9149_v39  ;;  %v5752_v56 = vmul.f32 %v9318_v19, %v9163_v26  ;;  %v5778_v2 = vmax.f32 %v5746_v1, 0.0  ;;  %v5780_v0 = vmax.f32 %v5748_v51, 0.0 }
 0x4eb   : > { %7993 = vmatprep.subr.msk.mxu0 %vm5541_vm2, %v5774_v52  ;;  %7996 = vmatprep.subr.msk.mxu1 %vm5541_vm2, %v5776_v16  ;;  %v5749_v47 = vmul.f32 %v9318_v19, %v9142_v30  ;;  %v5751_v39 = vmul.f32 %v9318_v19, %v9156_v17  ;;  %v5777_v26 = vmax.f32 %v5745_v32, 0.0  ;;  %v5779_v42 = vmax.f32 %v5747_v33, 0.0 }
 0x4ec   : > { %7994 = vmatpush1.msk.msra.mxu0 %vm5541_vm2, %v5773_v36  ;;  %7997 = vmatpush1.msk.msra.mxu1 %vm5541_vm2, %v5775_v35  ;;  %v5754_v44 = vmul.f32 %v9318_v19, %v9177_v24  ;;  %v5756_v45 = vmul.f32 %v9318_v19, %v9191_v25  ;;  %v5782_v48 = vmax.f32 %v5750_v53, 0.0  ;;  %v5784_v40 = vmax.f32 %v5752_v56, 0.0 }
 0x4ed   : > { %7995 = vmatmul.mubr.msk.f32.vlgmr.msra.gmra.mxu0 %vm5806_vm3, %v9343_v15  ;;  %7998 = vmatmul.mubr.msk.f32.vlgmr.msra.gmra.mxu1 %vm5806_vm3, %v9343_v15  ;;  %v5753_v30 = vmul.f32 %v9318_v19, %v9170_v12  ;;  %v5755_v17 = vmul.f32 %v9318_v19, %v9184_v14  ;;  %v5781_v24 = vmax.f32 %v5749_v47, 0.0  ;;  %v5783_v25 = vmax.f32 %v5751_v39, 0.0 }
 0x4ee   : > { %7999 = vmatprep.subr.msk.mxu0 %vm5541_vm2, %v5778_v2  ;;  %8002 = vmatprep.subr.msk.mxu1 %vm5541_vm2, %v5780_v0  ;;  %v5758_v9 = vmul.f32 %v9318_v19, %v9205_v31  ;;  %v5760_v43 = vmul.f32 %v9318_v19, %v9219_v55  ;;  %v5786_v57 = vmax.f32 %v5754_v44, 0.0  ;;  %v5788_v23 = vmax.f32 %v5756_v45, 0.0 }
 0x4ef   : > { %8000 = vmatpush1.msk.msra.mxu0 %vm5541_vm2, %v5777_v26  ;;  %8003 = vmatpush1.msk.msra.mxu1 %vm5541_vm2, %v5779_v42  ;;  %v5757_v12 = vmul.f32 %v9318_v19, %v9198_v18  ;;  %v5759_v14 = vmul.f32 %v9318_v19, %v9212_v37  ;;  %v5785_v31 = vmax.f32 %v5753_v30, 0.0  ;;  %v5787_v55 = vmax.f32 %v5755_v17, 0.0 }
 0x4f0   : > { %8005 = vmatprep.subr.msk.mxu0 %vm5541_vm2, %v5782_v48  ;;  %8008 = vmatprep.subr.msk.mxu1 %vm5541_vm2, %v5784_v40  ;;  %v5762_v11 = vmul.f32 %v9318_v19, %v9233_v54  ;;  %v5764_v58 = vmul.f32 %v9318_v19, %v9247_v41  ;;  %v5790_v60 = vmax.f32 %v5758_v9, 0.0  ;;  %v5792_v34 = vmax.f32 %v5760_v43, 0.0 }
 0x4f1   : > { %6112 = vmatprep.mubr.f32.mxu0 %v8101_v4  ;;  %6183 = vmatprep.mubr.f32.mxu1 %v8101_v4  ;;  %v5761_v18 = vmul.f32 %v9318_v19, %v9226_v46  ;;  %v5763_v37 = vmul.f32 %v9318_v19, %v9240_v28  ;;  %v5789_v54 = vmax.f32 %v5757_v12, 0.0  ;;  %v5791_v41 = vmax.f32 %v5759_v14, 0.0 }
 0x4f2   : > { %8001 = vmatmul.mubr.msk.f32.vlgmr.msra.gmra.mxu0 %vm5806_vm3, %v9343_v15  ;;  %8004 = vmatmul.mubr.msk.f32.vlgmr.msra.gmra.mxu1 %vm5806_vm3, %v9343_v15  ;;  %v5766_v50 = vmul.f32 %v9318_v19, %v9261_v22  ;;  %v5768_v63 = vmul.f32 %v9318_v19, %v9275_v62  ;;  %v5794_v38 = vmax.f32 %v5762_v11, 0.0  ;;  %v5796_v5 = vmax.f32 %v5764_v58, 0.0 }
 0x4f3   : > { %8006 = vmatpush1.msk.msra.mxu0 %vm5541_vm2, %v5781_v24  ;;  %8009 = vmatpush1.msk.msra.mxu1 %vm5541_vm2, %v5783_v25  ;;  %v5765_v46 = vmul.f32 %v9318_v19, %v9254_v49  ;;  %v5767_v28 = vmul.f32 %v9318_v19, %v9268_v59  ;;  %v5793_v22 = vmax.f32 %v5761_v18, 0.0  ;;  %v5795_v62 = vmax.f32 %v5763_v37, 0.0 }
 0x4f4   : > { %8011 = vmatprep.subr.msk.mxu0 %vm5541_vm2, %v5786_v57  ;;  %8014 = vmatprep.subr.msk.mxu1 %vm5541_vm2, %v5788_v23  ;;  %v5770_v6 = vmul.f32 %v9318_v19, %v9289_v21  ;;  %v5772_v13 = vmul.f32 %v9318_v19, %v9303_v7  ;;  %v5798_v20 = vmax.f32 %v5766_v50, 0.0  ;;  %v5800_v27 = vmax.f32 %v5768_v63, 0.0 }
 0x4f5   : > { %6254 = vmatprep.mubr.f32.mxu0 %v8101_v4  ;;  %6325 = vmatprep.mubr.f32.mxu1 %v8101_v4  ;;  %v5769_v49 = vmul.f32 %v9318_v19, %v9282_v8  ;;  %v5771_v59 = vmul.f32 %v9318_v19, %v9296_v3  ;;  %v5797_v21 = vmax.f32 %v5765_v46, 0.0  ;;  %v5799_v7 = vmax.f32 %v5767_v28, 0.0 }
 0x4f6   : > { %8007 = vmatmul.mubr.msk.f32.vlgmr.msra.gmra.mxu0 %vm5806_vm3, %v9343_v15  ;;  %8010 = vmatmul.mubr.msk.f32.vlgmr.msra.gmra.mxu1 %vm5806_vm3, %v9343_v15  ;;  %v5802_v29 = vmax.f32 %v5770_v6, 0.0  ;;  %v5804_v61 = vmax.f32 %v5772_v13, 0.0 }
 0x4f7   : > { %8012 = vmatpush1.msk.msra.mxu0 %vm5541_vm2, %v5785_v31  ;;  %8015 = vmatpush1.msk.msra.mxu1 %vm5541_vm2, %v5787_v55  ;;  %v5801_v8 = vmax.f32 %v5769_v49, 0.0  ;;  %v5803_v3 = vmax.f32 %v5771_v59, 0.0 }
 0x4f8   : > { %8017 = vmatprep.subr.msk.mxu0 %vm5541_vm2, %v5790_v60  ;;  %8020 = vmatprep.subr.msk.mxu1 %vm5541_vm2, %v5792_v34 }
 0x4f9   : > { %6396 = vmatprep.mubr.f32.mxu0 %v8101_v4  ;;  %6467 = vmatprep.mubr.f32.mxu1 %v8101_v4 }
 0x4fa   : > { %8013 = vmatmul.mubr.msk.f32.vlgmr.msra.gmra.mxu0 %vm5806_vm3, %v9343_v15  ;;  %8016 = vmatmul.mubr.msk.f32.vlgmr.msra.gmra.mxu1 %vm5806_vm3, %v9343_v15 }
 0x4fb   : > { %8018 = vmatpush1.msk.msra.mxu0 %vm5541_vm2, %v5789_v54  ;;  %8021 = vmatpush1.msk.msra.mxu1 %vm5541_vm2, %v5791_v41 }
 0x4fc   : > { %8023 = vmatprep.subr.msk.mxu0 %vm5541_vm2, %v5794_v38  ;;  %8026 = vmatprep.subr.msk.mxu1 %vm5541_vm2, %v5796_v5 }
 0x4fd   : > { %6538 = vmatprep.mubr.f32.mxu0 %v8101_v4  ;;  %6609 = vmatprep.mubr.f32.mxu1 %v8101_v4 }
 0x4fe   : > { %8019 = vmatmul.mubr.msk.f32.vlgmr.msra.gmra.mxu0 %vm5806_vm3, %v9343_v15  ;;  %8022 = vmatmul.mubr.msk.f32.vlgmr.msra.gmra.mxu1 %vm5806_vm3, %v9343_v15 }
 0x4ff   : > { %8024 = vmatpush1.msk.msra.mxu0 %vm5541_vm2, %v5793_v22  ;;  %8027 = vmatpush1.msk.msra.mxu1 %vm5541_vm2, %v5795_v62 }
 0x500   : > { %8029 = vmatprep.subr.msk.mxu0 %vm5541_vm2, %v5798_v20  ;;  %8032 = vmatprep.subr.msk.mxu1 %vm5541_vm2, %v5800_v27 }
 0x501   : > { %6680 = vmatprep.mubr.f32.mxu0 %v8101_v4  ;;  %6751 = vmatprep.mubr.f32.mxu1 %v8101_v4 }
 0x502   : > { %8025 = vmatmul.mubr.msk.f32.vlgmr.msra.gmra.mxu0 %vm5806_vm3, %v9343_v15  ;;  %8028 = vmatmul.mubr.msk.f32.vlgmr.msra.gmra.mxu1 %vm5806_vm3, %v9343_v15 }
 0x503   : > { %8030 = vmatpush1.msk.msra.mxu0 %vm5541_vm2, %v5797_v21  ;;  %8033 = vmatpush1.msk.msra.mxu1 %vm5541_vm2, %v5799_v7 }
 0x504   : > { %8035 = vmatprep.subr.msk.mxu0 %vm5541_vm2, %v5802_v29  ;;  %8038 = vmatprep.subr.msk.mxu1 %vm5541_vm2, %v5804_v61 }
 0x505   : > { %6822 = vmatprep.mubr.f32.mxu0 %v8101_v4  ;;  %6893 = vmatprep.mubr.f32.mxu1 %v8101_v4 }
 0x506   : > { %8031 = vmatmul.mubr.msk.f32.vlgmr.msra.gmra.mxu0 %vm5806_vm3, %v9343_v15  ;;  %8034 = vmatmul.mubr.msk.f32.vlgmr.msra.gmra.mxu1 %vm5806_vm3, %v9343_v15 }
 0x507   : > { %8036 = vmatpush1.msk.msra.mxu0 %vm5541_vm2, %v5801_v8  ;;  %8039 = vmatpush1.msk.msra.mxu1 %vm5541_vm2, %v5803_v3 }
 0x508   : > { %6964 = vmatprep.mubr.f32.mxu0 %v8101_v4  ;;  %7035 = vmatprep.mubr.f32.mxu1 %v8101_v4 }
 0x50a   : > { %8037 = vmatmul.mubr.msk.f32.vlgmr.msra.gmra.mxu0 %vm5806_vm3, %v9343_v15  ;;  %8040 = vmatmul.mubr.msk.f32.vlgmr.msra.gmra.mxu1 %vm5806_vm3, %v9343_v15 }
 0x5ad   : > { %v5972_v19 = vpop.f32.mrf.mxu0  ;;  %v6043_v32 = vpop.f32.mrf.mxu1 }
 0x5af   : > { %v5974_v1 = vpop.f32.mrf.mxu0  ;;  %v6045_v33 = vpop.f32.mrf.mxu1 }
 0x5b0   : > { %v7074_v51 = vcombine.low %v5972_v19, %v5974_v1  ;;  %v7075_v36 = vcombine.low %v6043_v32, %v6045_v33 }
 0x5b2   : > { %v7082_v52 = vrot.slane %v7074_v51, %v8147_v10  ;;  %v7089_v35 = vrot.slane %v7075_v36, %v8147_v10  ;;  %v6114_v16 = vpop.f32.mrf.mxu0  ;;  %v6185_v53 = vpop.f32.mrf.mxu1 }
 0x5b4   : > { %v7090_v4 = vcombine.low %v7082_v52, %v7089_v35  ;;  %v6116_v56 = vpop.f32.mrf.mxu0  ;;  %v6187_v15 = vpop.f32.mrf.mxu1 }
 0x5b5   : > { %v7091_v2 = vcombine.low %v6114_v16, %v6116_v56  ;;  %v7092_v0 = vcombine.low %v6185_v53, %v6187_v15 }
 0x5b6   : > { %7218 = vst [vmem:[%s9473_s25] sm:$0xff] %v7090_v4  ;;  %v6256_v47 = vpop.f32.mrf.mxu0  ;;  %v6327_v39 = vpop.f32.mrf.mxu1 }
 0x5b7   : > { %v7099_v26 = vrot.slane %v7091_v2, %v8147_v10  ;;  %v7106_v42 = vrot.slane %v7092_v0, %v8147_v10 }
 0x5b8   : > { %v6258_v44 = vpop.f32.mrf.mxu0  ;;  %v6329_v45 = vpop.f32.mrf.mxu1 }
 0x5b9   : > { %v7107_v48 = vcombine.low %v7099_v26, %v7106_v42  ;;  %v7108_v40 = vcombine.low %v6256_v47, %v6258_v44  ;;  %v7109_v30 = vcombine.low %v6327_v39, %v6329_v45 }
 0x5ba   : > { %v6398_v17 = vpop.f32.mrf.mxu0  ;;  %v6469_v24 = vpop.f32.mrf.mxu1 }
 0x5bb   : > { %7219 = vst [vmem:[%s9473_s25 + $0x8] sm:$0xff] %v7107_v48  ;;  %v7116_v25 = vrot.slane %v7108_v40, %v8147_v10  ;;  %v7123_v9 = vrot.slane %v7109_v30, %v8147_v10 }
 0x5bc   : > { %v6400_v43 = vpop.f32.mrf.mxu0  ;;  %v6471_v57 = vpop.f32.mrf.mxu1 }
 0x5bd   : > { %v7124_v23 = vcombine.low %v7116_v25, %v7123_v9  ;;  %v7125_v12 = vcombine.low %v6398_v17, %v6400_v43  ;;  %v7126_v14 = vcombine.low %v6469_v24, %v6471_v57 }
 0x5be   : > { %v6540_v31 = vpop.f32.mrf.mxu0  ;;  %v6611_v55 = vpop.f32.mrf.mxu1 }
 0x5bf   : > { %7220 = vst [vmem:[%s9473_s25 + $0x10] sm:$0xff] %v7124_v23  ;;  %v7133_v11 = vrot.slane %v7125_v12, %v8147_v10  ;;  %v7140_v58 = vrot.slane %v7126_v14, %v8147_v10 }
 0x5c0   : > { %v6542_v60 = vpop.f32.mrf.mxu0  ;;  %v6613_v34 = vpop.f32.mrf.mxu1 }
 0x5c1   : > { %v7141_v18 = vcombine.low %v7133_v11, %v7140_v58  ;;  %v7142_v37 = vcombine.low %v6540_v31, %v6542_v60  ;;  %v7143_v54 = vcombine.low %v6611_v55, %v6613_v34 }
 0x5c2   : > { %v6682_v41 = vpop.f32.mrf.mxu0  ;;  %v6753_v50 = vpop.f32.mrf.mxu1 }
 0x5c3   : > { %7221 = vst [vmem:[%s9473_s25 + $0x18] sm:$0xff] %v7141_v18  ;;  %v7150_v63 = vrot.slane %v7142_v37, %v8147_v10  ;;  %v7157_v38 = vrot.slane %v7143_v54, %v8147_v10 }
 0x5c4   : > { %v6684_v5 = vpop.f32.mrf.mxu0  ;;  %v6755_v46 = vpop.f32.mrf.mxu1 }
 0x5c5   : > { %v7158_v28 = vcombine.low %v7150_v63, %v7157_v38  ;;  %v7159_v22 = vcombine.low %v6682_v41, %v6684_v5  ;;  %v7160_v62 = vcombine.low %v6753_v50, %v6755_v46 }
 0x5c6   : > { %v6824_v6 = vpop.f32.mrf.mxu0  ;;  %v6895_v13 = vpop.f32.mrf.mxu1 }
 0x5c7   : > { %7222 = vst [vmem:[%s9473_s25 + $0x20] sm:$0xff] %v7158_v28  ;;  %v7167_v20 = vrot.slane %v7159_v22, %v8147_v10  ;;  %v7174_v27 = vrot.slane %v7160_v62, %v8147_v10 }
 0x5c8   : > { %v6826_v49 = vpop.f32.mrf.mxu0  ;;  %v6897_v59 = vpop.f32.mrf.mxu1 }
 0x5c9   : > { %v7175_v21 = vcombine.low %v7167_v20, %v7174_v27  ;;  %v7176_v7 = vcombine.low %v6824_v6, %v6826_v49  ;;  %v7177_v29 = vcombine.low %v6895_v13, %v6897_v59 }
 0x5ca   : > { %v6966_v61 = vpop.f32.mrf.mxu0  ;;  %v7037_v8 = vpop.f32.mrf.mxu1 }
 0x5cb   : > { %7223 = vst [vmem:[%s9473_s25 + $0x28] sm:$0xff] %v7175_v21  ;;  %v7184_v3 = vrot.slane %v7176_v7, %v8147_v10  ;;  %v7191_v19 = vrot.slane %v7177_v29, %v8147_v10 }
 0x5cc   : > { %v6968_v32 = vpop.f32.mrf.mxu0  ;;  %v7039_v1 = vpop.f32.mrf.mxu1 }
 0x5cd   : > { %v7192_v33 = vcombine.low %v7184_v3, %v7191_v19  ;;  %v7193_v51 = vcombine.low %v6966_v61, %v6968_v32  ;;  %v7194_v36 = vcombine.low %v7037_v8, %v7039_v1 }
 0x5cf   : > { %7224 = vst [vmem:[%s9473_s25 + $0x30] sm:$0xff] %v7192_v33  ;;  %v7201_v52 = vrot.slane %v7193_v51, %v8147_v10  ;;  %v7208_v35 = vrot.slane %v7194_v36, %v8147_v10 }
 0x5d1   : > { %v7209_v16 = vcombine.low %v7201_v52, %v7208_v35 }
 0x5d3   : > { %7225 = vst [vmem:[%s9473_s25 + $0x38] sm:$0xff] %v7209_v16 }
 0x5d4 PF: > { %s13_s12 = sadd.s32 1, %s8097_s12  }
 0x5d5   : > { %p10_p4 = scmp.ge.s32.totalorder %s13_s12, 4  }
 0x5d7   :  { %12 = sbr.rel (!%p10_p4) target bundleno = 1 (0x1), region = 62 }

</bundles_post_ra>
